<compile_context>
chip_gen: v7x
topology: tpu7x:2x2x1
jax: 0.10.0
libtpu: 0.0.40
codegen_flags: <defaults>
</compile_context>

<pallas_src>
import jax
import jax.numpy as jnp
from jax.experimental import pallas as pl
from jax.experimental.pallas import tpu as pltpu

EPS = 1e-5


# ----------------------------- Pallas kernel ------------------------------- #

def _double_conv_kernel(x_ref, w1_ref, g1_ref, be1_ref, w2_ref, g2_ref, be2_ref,
                        o_ref, xp_ref, h1p_ref, xs_ref):
    # x_ref  : (N, H, W, Cin) f32          w*_ref : (9*C_in_of_conv, Co) bf16
    # g*/be* : (1, Co) f32                 o_ref  : (N, H, W, Co) f32
    # xp_ref : (N, H+2, W+2, Cin) f32 scratch (padded input)
    # h1p_ref: (N, H+2, W+2, Co)  f32 scratch (padded intermediate)
    # xs_ref : (M, 9*max(Cin, Co)) f32 scratch (im2col operand, reused by both convs)
    N, H, W, Cin = x_ref.shape
    Hp, Wp = H + 2, W + 2
    Co = o_ref.shape[-1]
    M = N * H * W

    def zero_halo(dst_ref, C):
        # zero only the 1-pixel border (4 edge slabs) instead of the whole padded buffer
        dst_ref[:, 0:1, :, :] = jnp.zeros((N, 1, Wp, C), jnp.float32)
        dst_ref[:, Hp - 1:Hp, :, :] = jnp.zeros((N, 1, Wp, C), jnp.float32)
        dst_ref[:, :, 0:1, :] = jnp.zeros((N, Hp, 1, C), jnp.float32)
        dst_ref[:, :, Wp - 1:Wp, :] = jnp.zeros((N, Hp, 1, C), jnp.float32)

    def conv3x3(src_ref, w_ref, C):
        # im2col: materialize the (M, 9*C) operand once, then ONE MXU matmul with K = 9*C
        for dh in range(3):
            for dw in range(3):
                t = dh * 3 + dw
                xs_ref[:, t * C:(t + 1) * C] = (
                    src_ref[:, dh:dh + H, dw:dw + W, :].reshape(M, C))
        xs = xs_ref[:, :9 * C].astype(jnp.bfloat16)      # bf16 MXU operands
        return jnp.dot(xs, w_ref[...], preferred_element_type=jnp.float32)  # f32 accumulate

    def bn_relu(y, g_ref, be_ref):
        # training-mode BatchNorm over the (N, H, W) batch, biased variance.
        # (conv bias omitted: it is cancelled exactly by the mean subtraction.)
        mean = jnp.mean(y, axis=0, keepdims=True)
        var = jnp.mean((y - mean) ** 2, axis=0, keepdims=True)
        y = (y - mean) * jax.lax.rsqrt(var + EPS) * g_ref[...] + be_ref[...]
        return jnp.maximum(y, 0.0)

    # conv1 + BN1 + ReLU
    zero_halo(xp_ref, Cin)
    xp_ref[:, 1:1 + H, 1:1 + W, :] = x_ref[...]
    h1 = bn_relu(conv3x3(xp_ref, w1_ref, Cin), g1_ref, be1_ref)       # (M, Co), registers

    # conv2 + BN2 + ReLU (intermediate stays in VMEM)
    zero_halo(h1p_ref, Co)
    h1p_ref[:, 1:1 + H, 1:1 + W, :] = h1.reshape(N, H, W, Co)
    h2 = bn_relu(conv3x3(h1p_ref, w2_ref, Co), g2_ref, be2_ref)
    o_ref[...] = h2.reshape(N, H, W, Co).astype(o_ref.dtype)


# ------------------------------ JAX wrapper -------------------------------- #

def _pack_conv_weight(w_pt):
    """PyTorch (Co, Cin, 3, 3) -> (9*Cin, Co) bf16, rows ordered (kh, kw, cin)."""
    co, cin = w_pt.shape[0], w_pt.shape[1]
    return jnp.transpose(w_pt, (2, 3, 1, 0)).reshape(9 * cin, co).astype(jnp.bfloat16)


@jax.jit
def double_conv_forward(x_nchw, p):
    """DoubleConv forward. x_nchw: (N, Cin, H, W) f32 -> (N, Co, H, W) f32."""
    N, Cin, H, W = x_nchw.shape
    Co = p["w1"].shape[0]
    x = jnp.transpose(x_nchw, (0, 2, 3, 1))               # NCHW -> NHWC (boundary glue)
    w1 = _pack_conv_weight(p["w1"])
    w2 = _pack_conv_weight(p["w2"])
    row = lambda v: v.reshape(1, -1).astype(jnp.float32)

    out = pl.pallas_call(
        _double_conv_kernel,
        out_shape=jax.ShapeDtypeStruct((N, H, W, Co), jnp.float32),
        in_specs=[pl.BlockSpec(memory_space=pltpu.MemorySpace.VMEM)] * 7,
        out_specs=pl.BlockSpec(memory_space=pltpu.MemorySpace.VMEM),
        scratch_shapes=[
            pltpu.VMEM((N, H + 2, W + 2, Cin), jnp.float32),      # padded input
            pltpu.VMEM((N, H + 2, W + 2, Co), jnp.float32),       # padded intermediate
            pltpu.VMEM((N * H * W, 9 * max(Cin, Co)), jnp.float32),  # im2col operand
        ],
    )(x, w1, row(p["g1"]), row(p["be1"]), w2, row(p["g2"]), row(p["be2"]))

    return jnp.transpose(out, (0, 3, 1, 2))                # NHWC -> NCHW


# ------------------------- pure-JAX reference check ------------------------ #

def ref_forward(x_nchw, p):
    """Faithful f32 (HIGHEST precision) reference of the PyTorch module, biases included."""
    x = jnp.transpose(x_nchw, (0, 2, 3, 1))

    def conv_bn_relu(x, w_pt, b, g, be):
        w = jnp.transpose(w_pt, (2, 3, 1, 0))
        y = jax.lax.conv_general_dilated(
            x, w, (1, 1), "SAME",
            dimension_numbers=("NHWC", "HWIO", "NHWC"),
            precision=jax.lax.Precision.HIGHEST) + b
        mean = jnp.mean(y, axis=(0, 1, 2), keepdims=True)
        var = jnp.mean((y - mean) ** 2, axis=(0, 1, 2), keepdims=True)
        y = (y - mean) * jax.lax.rsqrt(var + EPS) * g + be
        return jnp.maximum(y, 0.0)

    h = conv_bn_relu(x, p["w1"], p["b1"], p["g1"], p["be1"])
    h = conv_bn_relu(h, p["w2"], p["b2"], p["g2"], p["be2"])
    return jnp.transpose(h, (0, 3, 1, 2))


# ----------------------------------- main ----------------------------------- #

if __name__ == "__main__":
    key = jax.random.PRNGKey(0)
    in_ch, out_ch = 12, 8
    N, H, W = 2, 16, 16

    ks = jax.random.split(key, 11)
    params = dict(
        w1=0.2 * jax.random.normal(ks[0], (out_ch, in_ch, 3, 3), jnp.float32),
        b1=0.1 * jax.random.normal(ks[1], (out_ch,), jnp.float32),
        g1=1.0 + 0.1 * jax.random.normal(ks[2], (out_ch,), jnp.float32),
        be1=0.1 * jax.random.normal(ks[3], (out_ch,), jnp.float32),
        w2=0.2 * jax.random.normal(ks[4], (out_ch, out_ch, 3, 3), jnp.float32),
        b2=0.1 * jax.random.normal(ks[5], (out_ch,), jnp.float32),
        g2=1.0 + 0.1 * jax.random.normal(ks[6], (out_ch,), jnp.float32),
        be2=0.1 * jax.random.normal(ks[7], (out_ch,), jnp.float32),
    )
    x = jax.random.normal(ks[8], (N, in_ch, H, W), jnp.float32)   # NCHW, like the PyTorch module

    out = jax.block_until_ready(double_conv_forward(x, params))
    ref = jax.block_until_ready(ref_forward(x, params))

    assert out.shape == (N, out_ch, H, W), out.shape
    # Tolerance accounts for the bf16 MXU operands in the kernel vs. the full-f32 reference
    # (per-review trade-off: ~3x less MXU work; observed error is O(1e-2) max on unit-scale BN output).
    assert jnp.allclose(out, ref, atol=2e-2, rtol=2e-2), float(jnp.max(jnp.abs(out - ref)))
    print("KERNEL_OK")
</pallas_src>

<mosaic_0001>
module attributes {stable_mosaic.version = 11 : i64} {
  func.func @_double_conv_kernel(%arg0: memref<2x16x16x12xf32, #tpu.memory_space<vmem>>, %arg1: memref<108x8xbf16, #tpu.memory_space<vmem>>, %arg2: memref<1x8xf32, #tpu.memory_space<vmem>>, %arg3: memref<1x8xf32, #tpu.memory_space<vmem>>, %arg4: memref<72x8xbf16, #tpu.memory_space<vmem>>, %arg5: memref<1x8xf32, #tpu.memory_space<vmem>>, %arg6: memref<1x8xf32, #tpu.memory_space<vmem>>, %arg7: memref<2x16x16x8xf32, #tpu.memory_space<vmem>>, %arg8: memref<2x18x18x12xf32, #tpu.memory_space<vmem>>, %arg9: memref<2x18x18x8xf32, #tpu.memory_space<vmem>>, %arg10: memref<512x108xf32, #tpu.memory_space<vmem>>) attributes {dimension_semantics = [], scalar_prefetch = 0 : i64, scratch_operands = 3 : i64, tpu.core_type = #tpu.core_type<tc>} {
    %cst = arith.constant 0.000000e+00 : f32
    %0 = vector.broadcast %cst : f32 to vector<2x1x18x12xf32>
    %c0 = arith.constant 0 : index
    %c0_0 = arith.constant 0 : index
    %c0_1 = arith.constant 0 : index
    %c0_2 = arith.constant 0 : index
    %1 = vector.load %arg8[%c0, %c0_0, %c0_1, %c0_2] : memref<2x18x18x12xf32, #tpu.memory_space<vmem>>, vector<2x1x18x12xf32>
    tpu.vector_store %arg8[%c0, %c0_0, %c0_1, %c0_2], %0 {strides = array<i32>} : memref<2x18x18x12xf32, #tpu.memory_space<vmem>>, vector<2x1x18x12xf32>,
    %cst_3 = arith.constant 0.000000e+00 : f32
    %2 = vector.broadcast %cst_3 : f32 to vector<2x1x18x12xf32>
    %c0_4 = arith.constant 0 : index
    %c17 = arith.constant 17 : index
    %c0_5 = arith.constant 0 : index
    %c0_6 = arith.constant 0 : index
    %3 = vector.load %arg8[%c0_4, %c17, %c0_5, %c0_6] : memref<2x18x18x12xf32, #tpu.memory_space<vmem>>, vector<2x1x18x12xf32>
    tpu.vector_store %arg8[%c0_4, %c17, %c0_5, %c0_6], %2 {strides = array<i32>} : memref<2x18x18x12xf32, #tpu.memory_space<vmem>>, vector<2x1x18x12xf32>,
    %cst_7 = arith.constant 0.000000e+00 : f32
    %4 = vector.broadcast %cst_7 : f32 to vector<2x18x1x12xf32>
    %c0_8 = arith.constant 0 : index
    %c0_9 = arith.constant 0 : index
    %c0_10 = arith.constant 0 : index
    %c0_11 = arith.constant 0 : index
    %5 = vector.load %arg8[%c0_8, %c0_9, %c0_10, %c0_11] : memref<2x18x18x12xf32, #tpu.memory_space<vmem>>, vector<2x18x1x12xf32>
    tpu.vector_store %arg8[%c0_8, %c0_9, %c0_10, %c0_11], %4 {strides = array<i32>} : memref<2x18x18x12xf32, #tpu.memory_space<vmem>>, vector<2x18x1x12xf32>,
    %cst_12 = arith.constant 0.000000e+00 : f32
    %6 = vector.broadcast %cst_12 : f32 to vector<2x18x1x12xf32>
    %c0_13 = arith.constant 0 : index
    %c0_14 = arith.constant 0 : index
    %c17_15 = arith.constant 17 : index
    %c0_16 = arith.constant 0 : index
    %7 = vector.load %arg8[%c0_13, %c0_14, %c17_15, %c0_16] : memref<2x18x18x12xf32, #tpu.memory_space<vmem>>, vector<2x18x1x12xf32>
    tpu.vector_store %arg8[%c0_13, %c0_14, %c17_15, %c0_16], %6 {strides = array<i32>} : memref<2x18x18x12xf32, #tpu.memory_space<vmem>>, vector<2x18x1x12xf32>,
    %c0_17 = arith.constant 0 : index
    %c0_18 = arith.constant 0 : index
    %c0_19 = arith.constant 0 : index
    %c0_20 = arith.constant 0 : index
    %8 = vector.load %arg0[%c0_17, %c0_18, %c0_19, %c0_20] : memref<2x16x16x12xf32, #tpu.memory_space<vmem>>, vector<2x16x16x12xf32>
    %c0_21 = arith.constant 0 : index
    %c1 = arith.constant 1 : index
    %c1_22 = arith.constant 1 : index
    %c0_23 = arith.constant 0 : index
    %9 = vector.load %arg8[%c0_21, %c1, %c1_22, %c0_23] : memref<2x18x18x12xf32, #tpu.memory_space<vmem>>, vector<2x16x16x12xf32>
    tpu.vector_store %arg8[%c0_21, %c1, %c1_22, %c0_23], %8 {strides = array<i32>} : memref<2x18x18x12xf32, #tpu.memory_space<vmem>>, vector<2x16x16x12xf32>,
    %c0_24 = arith.constant 0 : index
    %c0_25 = arith.constant 0 : index
    %c0_26 = arith.constant 0 : index
    %c0_27 = arith.constant 0 : index
    %10 = vector.load %arg8[%c0_24, %c0_25, %c0_26, %c0_27] : memref<2x18x18x12xf32, #tpu.memory_space<vmem>>, vector<2x16x16x12xf32>
    %11 = vector.shape_cast %10 : vector<2x16x16x12xf32> to vector<512x12xf32>
    %c0_28 = arith.constant 0 : index
    %c0_29 = arith.constant 0 : index
    %12 = vector.load %arg10[%c0_28, %c0_29] : memref<512x108xf32, #tpu.memory_space<vmem>>, vector<512x12xf32>
    tpu.vector_store %arg10[%c0_28, %c0_29], %11 {strides = array<i32>} : memref<512x108xf32, #tpu.memory_space<vmem>>, vector<512x12xf32>,
    %c0_30 = arith.constant 0 : index
    %c0_31 = arith.constant 0 : index
    %c1_32 = arith.constant 1 : index
    %c0_33 = arith.constant 0 : index
    %13 = vector.load %arg8[%c0_30, %c0_31, %c1_32, %c0_33] : memref<2x18x18x12xf32, #tpu.memory_space<vmem>>, vector<2x16x16x12xf32>
    %14 = vector.shape_cast %13 : vector<2x16x16x12xf32> to vector<512x12xf32>
    %c0_34 = arith.constant 0 : index
    %c12 = arith.constant 12 : index
    %15 = vector.load %arg10[%c0_34, %c12] : memref<512x108xf32, #tpu.memory_space<vmem>>, vector<512x12xf32>
    tpu.vector_store %arg10[%c0_34, %c12], %14 {strides = array<i32>} : memref<512x108xf32, #tpu.memory_space<vmem>>, vector<512x12xf32>,
    %c0_35 = arith.constant 0 : index
    %c0_36 = arith.constant 0 : index
    %c2 = arith.constant 2 : index
    %c0_37 = arith.constant 0 : index
    %16 = vector.load %arg8[%c0_35, %c0_36, %c2, %c0_37] : memref<2x18x18x12xf32, #tpu.memory_space<vmem>>, vector<2x16x16x12xf32>
    %17 = vector.shape_cast %16 : vector<2x16x16x12xf32> to vector<512x12xf32>
    %c0_38 = arith.constant 0 : index
    %c24 = arith.constant 24 : index
    %18 = vector.load %arg10[%c0_38, %c24] : memref<512x108xf32, #tpu.memory_space<vmem>>, vector<512x12xf32>
    tpu.vector_store %arg10[%c0_38, %c24], %17 {strides = array<i32>} : memref<512x108xf32, #tpu.memory_space<vmem>>, vector<512x12xf32>,
    %c0_39 = arith.constant 0 : index
    %c1_40 = arith.constant 1 : index
    %c0_41 = arith.constant 0 : index
    %c0_42 = arith.constant 0 : index
    %19 = vector.load %arg8[%c0_39, %c1_40, %c0_41, %c0_42] : memref<2x18x18x12xf32, #tpu.memory_space<vmem>>, vector<2x16x16x12xf32>
    %20 = vector.shape_cast %19 : vector<2x16x16x12xf32> to vector<512x12xf32>
    %c0_43 = arith.constant 0 : index
    %c36 = arith.constant 36 : index
    %21 = vector.load %arg10[%c0_43, %c36] : memref<512x108xf32, #tpu.memory_space<vmem>>, vector<512x12xf32>
    tpu.vector_store %arg10[%c0_43, %c36], %20 {strides = array<i32>} : memref<512x108xf32, #tpu.memory_space<vmem>>, vector<512x12xf32>,
    %c0_44 = arith.constant 0 : index
    %c1_45 = arith.constant 1 : index
    %c1_46 = arith.constant 1 : index
    %c0_47 = arith.constant 0 : index
    %22 = vector.load %arg8[%c0_44, %c1_45, %c1_46, %c0_47] : memref<2x18x18x12xf32, #tpu.memory_space<vmem>>, vector<2x16x16x12xf32>
    %23 = vector.shape_cast %22 : vector<2x16x16x12xf32> to vector<512x12xf32>
    %c0_48 = arith.constant 0 : index
    %c48 = arith.constant 48 : index
    %24 = vector.load %arg10[%c0_48, %c48] : memref<512x108xf32, #tpu.memory_space<vmem>>, vector<512x12xf32>
    tpu.vector_store %arg10[%c0_48, %c48], %23 {strides = array<i32>} : memref<512x108xf32, #tpu.memory_space<vmem>>, vector<512x12xf32>,
    %c0_49 = arith.constant 0 : index
    %c1_50 = arith.constant 1 : index
    %c2_51 = arith.constant 2 : index
    %c0_52 = arith.constant 0 : index
    %25 = vector.load %arg8[%c0_49, %c1_50, %c2_51, %c0_52] : memref<2x18x18x12xf32, #tpu.memory_space<vmem>>, vector<2x16x16x12xf32>
    %26 = vector.shape_cast %25 : vector<2x16x16x12xf32> to vector<512x12xf32>
    %c0_53 = arith.constant 0 : index
    %c60 = arith.constant 60 : index
    %27 = vector.load %arg10[%c0_53, %c60] : memref<512x108xf32, #tpu.memory_space<vmem>>, vector<512x12xf32>
    tpu.vector_store %arg10[%c0_53, %c60], %26 {strides = array<i32>} : memref<512x108xf32, #tpu.memory_space<vmem>>, vector<512x12xf32>,
    %c0_54 = arith.constant 0 : index
    %c2_55 = arith.constant 2 : index
    %c0_56 = arith.constant 0 : index
    %c0_57 = arith.constant 0 : index
    %28 = vector.load %arg8[%c0_54, %c2_55, %c0_56, %c0_57] : memref<2x18x18x12xf32, #tpu.memory_space<vmem>>, vector<2x16x16x12xf32>
    %29 = vector.shape_cast %28 : vector<2x16x16x12xf32> to vector<512x12xf32>
    %c0_58 = arith.constant 0 : index
    %c72 = arith.constant 72 : index
    %30 = vector.load %arg10[%c0_58, %c72] : memref<512x108xf32, #tpu.memory_space<vmem>>, vector<512x12xf32>
    tpu.vector_store %arg10[%c0_58, %c72], %29 {strides = array<i32>} : memref<512x108xf32, #tpu.memory_space<vmem>>, vector<512x12xf32>,
    %c0_59 = arith.constant 0 : index
    %c2_60 = arith.constant 2 : index
    %c1_61 = arith.constant 1 : index
    %c0_62 = arith.constant 0 : index
    %31 = vector.load %arg8[%c0_59, %c2_60, %c1_61, %c0_62] : memref<2x18x18x12xf32, #tpu.memory_space<vmem>>, vector<2x16x16x12xf32>
    %32 = vector.shape_cast %31 : vector<2x16x16x12xf32> to vector<512x12xf32>
    %c0_63 = arith.constant 0 : index
    %c84 = arith.constant 84 : index
    %33 = vector.load %arg10[%c0_63, %c84] : memref<512x108xf32, #tpu.memory_space<vmem>>, vector<512x12xf32>
    tpu.vector_store %arg10[%c0_63, %c84], %32 {strides = array<i32>} : memref<512x108xf32, #tpu.memory_space<vmem>>, vector<512x12xf32>,
    %c0_64 = arith.constant 0 : index
    %c2_65 = arith.constant 2 : index
    %c2_66 = arith.constant 2 : index
    %c0_67 = arith.constant 0 : index
    %34 = vector.load %arg8[%c0_64, %c2_65, %c2_66, %c0_67] : memref<2x18x18x12xf32, #tpu.memory_space<vmem>>, vector<2x16x16x12xf32>
    %35 = vector.shape_cast %34 : vector<2x16x16x12xf32> to vector<512x12xf32>
    %c0_68 = arith.constant 0 : index
    %c96 = arith.constant 96 : index
    %36 = vector.load %arg10[%c0_68, %c96] : memref<512x108xf32, #tpu.memory_space<vmem>>, vector<512x12xf32>
    tpu.vector_store %arg10[%c0_68, %c96], %35 {strides = array<i32>} : memref<512x108xf32, #tpu.memory_space<vmem>>, vector<512x12xf32>,
    %c0_69 = arith.constant 0 : index
    %c0_70 = arith.constant 0 : index
    %37 = vector.load %arg10[%c0_69, %c0_70] : memref<512x108xf32, #tpu.memory_space<vmem>>, vector<512x108xf32>
    %38 = arith.truncf %37 : vector<512x108xf32> to vector<512x108xbf16>
    %c0_71 = arith.constant 0 : index
    %c0_72 = arith.constant 0 : index
    %39 = vector.load %arg1[%c0_71, %c0_72] : memref<108x8xbf16, #tpu.memory_space<vmem>>, vector<108x8xbf16>
    %cst_73 = arith.constant dense<0.000000e+00> : vector<512x8xf32>
    %40 = tpu.matmul %38, %39, %cst_73 {dimension_numbers = #tpu.dot_dimension_numbers<[1], [0], [0], [1], [0, 0, 1, 1], [], []>} : vector<512x108xbf16>, vector<108x8xbf16>, vector<512x8xf32> -> vector<512x8xf32>
    %cst_74 = arith.constant dense<0.000000e+00> : vector<8xf32>
    %41 = vector.multi_reduction <add>, %40, %cst_74 [0] : vector<512x8xf32> to vector<8xf32>
    %42 = vector.shape_cast %41 : vector<8xf32> to vector<1x8xf32>
    %cst_75 = arith.constant 5.120000e+02 : f32
    %43 = vector.broadcast %cst_75 : f32 to vector<1x8xf32>
    %44 = arith.divf %42, %43 : vector<1x8xf32>
    %45 = vector.broadcast %44 : vector<1x8xf32> to vector<512x8xf32>
    %46 = arith.subf %40, %45 : vector<512x8xf32>
    %47 = arith.mulf %46, %46 : vector<512x8xf32>
    %cst_76 = arith.constant dense<0.000000e+00> : vector<8xf32>
    %48 = vector.multi_reduction <add>, %47, %cst_76 [0] : vector<512x8xf32> to vector<8xf32>
    %49 = vector.shape_cast %48 : vector<8xf32> to vector<1x8xf32>
    %cst_77 = arith.constant 5.120000e+02 : f32
    %50 = vector.broadcast %cst_77 : f32 to vector<1x8xf32>
    %51 = arith.divf %49, %50 : vector<1x8xf32>
    %52 = vector.broadcast %44 : vector<1x8xf32> to vector<512x8xf32>
    %53 = arith.subf %40, %52 : vector<512x8xf32>
    %cst_78 = arith.constant 9.99999974E-6 : f32
    %54 = vector.broadcast %cst_78 : f32 to vector<1x8xf32>
    %55 = arith.addf %51, %54 : vector<1x8xf32>
    %56 = math.rsqrt %55 : vector<1x8xf32>
    %57 = vector.broadcast %56 : vector<1x8xf32> to vector<512x8xf32>
    %58 = arith.mulf %53, %57 : vector<512x8xf32>
    %c0_79 = arith.constant 0 : index
    %c0_80 = arith.constant 0 : index
    %59 = vector.load %arg2[%c0_79, %c0_80] : memref<1x8xf32, #tpu.memory_space<vmem>>, vector<1x8xf32>
    %60 = vector.broadcast %59 : vector<1x8xf32> to vector<512x8xf32>
    %61 = arith.mulf %58, %60 : vector<512x8xf32>
    %c0_81 = arith.constant 0 : index
    %c0_82 = arith.constant 0 : index
    %62 = vector.load %arg3[%c0_81, %c0_82] : memref<1x8xf32, #tpu.memory_space<vmem>>, vector<1x8xf32>
    %63 = vector.broadcast %62 : vector<1x8xf32> to vector<512x8xf32>
    %64 = arith.addf %61, %63 : vector<512x8xf32>
    %cst_83 = arith.constant 0.000000e+00 : f32
    %65 = vector.broadcast %cst_83 : f32 to vector<512x8xf32>
    %66 = arith.maximumf %64, %65 : vector<512x8xf32>
    %cst_84 = arith.constant 0.000000e+00 : f32
    %67 = vector.broadcast %cst_84 : f32 to vector<2x1x18x8xf32>
    %c0_85 = arith.constant 0 : index
    %c0_86 = arith.constant 0 : index
    %c0_87 = arith.constant 0 : index
    %c0_88 = arith.constant 0 : index
    %68 = vector.load %arg9[%c0_85, %c0_86, %c0_87, %c0_88] : memref<2x18x18x8xf32, #tpu.memory_space<vmem>>, vector<2x1x18x8xf32>
    tpu.vector_store %arg9[%c0_85, %c0_86, %c0_87, %c0_88], %67 {strides = array<i32>} : memref<2x18x18x8xf32, #tpu.memory_space<vmem>>, vector<2x1x18x8xf32>,
    %cst_89 = arith.constant 0.000000e+00 : f32
    %69 = vector.broadcast %cst_89 : f32 to vector<2x1x18x8xf32>
    %c0_90 = arith.constant 0 : index
    %c17_91 = arith.constant 17 : index
    %c0_92 = arith.constant 0 : index
    %c0_93 = arith.constant 0 : index
    %70 = vector.load %arg9[%c0_90, %c17_91, %c0_92, %c0_93] : memref<2x18x18x8xf32, #tpu.memory_space<vmem>>, vector<2x1x18x8xf32>
    tpu.vector_store %arg9[%c0_90, %c17_91, %c0_92, %c0_93], %69 {strides = array<i32>} : memref<2x18x18x8xf32, #tpu.memory_space<vmem>>, vector<2x1x18x8xf32>,
    %cst_94 = arith.constant 0.000000e+00 : f32
    %71 = vector.broadcast %cst_94 : f32 to vector<2x18x1x8xf32>
    %c0_95 = arith.constant 0 : index
    %c0_96 = arith.constant 0 : index
    %c0_97 = arith.constant 0 : index
    %c0_98 = arith.constant 0 : index
    %72 = vector.load %arg9[%c0_95, %c0_96, %c0_97, %c0_98] : memref<2x18x18x8xf32, #tpu.memory_space<vmem>>, vector<2x18x1x8xf32>
    tpu.vector_store %arg9[%c0_95, %c0_96, %c0_97, %c0_98], %71 {strides = array<i32>} : memref<2x18x18x8xf32, #tpu.memory_space<vmem>>, vector<2x18x1x8xf32>,
    %cst_99 = arith.constant 0.000000e+00 : f32
    %73 = vector.broadcast %cst_99 : f32 to vector<2x18x1x8xf32>
    %c0_100 = arith.constant 0 : index
    %c0_101 = arith.constant 0 : index
    %c17_102 = arith.constant 17 : index
    %c0_103 = arith.constant 0 : index
    %74 = vector.load %arg9[%c0_100, %c0_101, %c17_102, %c0_103] : memref<2x18x18x8xf32, #tpu.memory_space<vmem>>, vector<2x18x1x8xf32>
    tpu.vector_store %arg9[%c0_100, %c0_101, %c17_102, %c0_103], %73 {strides = array<i32>} : memref<2x18x18x8xf32, #tpu.memory_space<vmem>>, vector<2x18x1x8xf32>,
    %75 = vector.shape_cast %66 : vector<512x8xf32> to vector<2x16x16x8xf32>
    %c0_104 = arith.constant 0 : index
    %c1_105 = arith.constant 1 : index
    %c1_106 = arith.constant 1 : index
    %c0_107 = arith.constant 0 : index
    %76 = vector.load %arg9[%c0_104, %c1_105, %c1_106, %c0_107] : memref<2x18x18x8xf32, #tpu.memory_space<vmem>>, vector<2x16x16x8xf32>
    tpu.vector_store %arg9[%c0_104, %c1_105, %c1_106, %c0_107], %75 {strides = array<i32>} : memref<2x18x18x8xf32, #tpu.memory_space<vmem>>, vector<2x16x16x8xf32>,
    %c0_108 = arith.constant 0 : index
    %c0_109 = arith.constant 0 : index
    %c0_110 = arith.constant 0 : index
    %c0_111 = arith.constant 0 : index
    %77 = vector.load %arg9[%c0_108, %c0_109, %c0_110, %c0_111] : memref<2x18x18x8xf32, #tpu.memory_space<vmem>>, vector<2x16x16x8xf32>
    %78 = vector.shape_cast %77 : vector<2x16x16x8xf32> to vector<512x8xf32>
    %c0_112 = arith.constant 0 : index
    %c0_113 = arith.constant 0 : index
    %79 = vector.load %arg10[%c0_112, %c0_113] : memref<512x108xf32, #tpu.memory_space<vmem>>, vector<512x8xf32>
    tpu.vector_store %arg10[%c0_112, %c0_113], %78 {strides = array<i32>} : memref<512x108xf32, #tpu.memory_space<vmem>>, vector<512x8xf32>,
    %c0_114 = arith.constant 0 : index
    %c0_115 = arith.constant 0 : index
    %c1_116 = arith.constant 1 : index
    %c0_117 = arith.constant 0 : index
    %80 = vector.load %arg9[%c0_114, %c0_115, %c1_116, %c0_117] : memref<2x18x18x8xf32, #tpu.memory_space<vmem>>, vector<2x16x16x8xf32>
    %81 = vector.shape_cast %80 : vector<2x16x16x8xf32> to vector<512x8xf32>
    %c0_118 = arith.constant 0 : index
    %c8 = arith.constant 8 : index
    %82 = vector.load %arg10[%c0_118, %c8] : memref<512x108xf32, #tpu.memory_space<vmem>>, vector<512x8xf32>
    tpu.vector_store %arg10[%c0_118, %c8], %81 {strides = array<i32>} : memref<512x108xf32, #tpu.memory_space<vmem>>, vector<512x8xf32>,
    %c0_119 = arith.constant 0 : index
    %c0_120 = arith.constant 0 : index
    %c2_121 = arith.constant 2 : index
    %c0_122 = arith.constant 0 : index
    %83 = vector.load %arg9[%c0_119, %c0_120, %c2_121, %c0_122] : memref<2x18x18x8xf32, #tpu.memory_space<vmem>>, vector<2x16x16x8xf32>
    %84 = vector.shape_cast %83 : vector<2x16x16x8xf32> to vector<512x8xf32>
    %c0_123 = arith.constant 0 : index
    %c16 = arith.constant 16 : index
    %85 = vector.load %arg10[%c0_123, %c16] : memref<512x108xf32, #tpu.memory_space<vmem>>, vector<512x8xf32>
    tpu.vector_store %arg10[%c0_123, %c16], %84 {strides = array<i32>} : memref<512x108xf32, #tpu.memory_space<vmem>>, vector<512x8xf32>,
    %c0_124 = arith.constant 0 : index
    %c1_125 = arith.constant 1 : index
    %c0_126 = arith.constant 0 : index
    %c0_127 = arith.constant 0 : index
    %86 = vector.load %arg9[%c0_124, %c1_125, %c0_126, %c0_127] : memref<2x18x18x8xf32, #tpu.memory_space<vmem>>, vector<2x16x16x8xf32>
    %87 = vector.shape_cast %86 : vector<2x16x16x8xf32> to vector<512x8xf32>
    %c0_128 = arith.constant 0 : index
    %c24_129 = arith.constant 24 : index
    %88 = vector.load %arg10[%c0_128, %c24_129] : memref<512x108xf32, #tpu.memory_space<vmem>>, vector<512x8xf32>
    tpu.vector_store %arg10[%c0_128, %c24_129], %87 {strides = array<i32>} : memref<512x108xf32, #tpu.memory_space<vmem>>, vector<512x8xf32>,
    %c0_130 = arith.constant 0 : index
    %c1_131 = arith.constant 1 : index
    %c1_132 = arith.constant 1 : index
    %c0_133 = arith.constant 0 : index
    %89 = vector.load %arg9[%c0_130, %c1_131, %c1_132, %c0_133] : memref<2x18x18x8xf32, #tpu.memory_space<vmem>>, vector<2x16x16x8xf32>
    %90 = vector.shape_cast %89 : vector<2x16x16x8xf32> to vector<512x8xf32>
    %c0_134 = arith.constant 0 : index
    %c32 = arith.constant 32 : index
    %91 = vector.load %arg10[%c0_134, %c32] : memref<512x108xf32, #tpu.memory_space<vmem>>, vector<512x8xf32>
    tpu.vector_store %arg10[%c0_134, %c32], %90 {strides = array<i32>} : memref<512x108xf32, #tpu.memory_space<vmem>>, vector<512x8xf32>,
    %c0_135 = arith.constant 0 : index
    %c1_136 = arith.constant 1 : index
    %c2_137 = arith.constant 2 : index
    %c0_138 = arith.constant 0 : index
    %92 = vector.load %arg9[%c0_135, %c1_136, %c2_137, %c0_138] : memref<2x18x18x8xf32, #tpu.memory_space<vmem>>, vector<2x16x16x8xf32>
    %93 = vector.shape_cast %92 : vector<2x16x16x8xf32> to vector<512x8xf32>
    %c0_139 = arith.constant 0 : index
    %c40 = arith.constant 40 : index
    %94 = vector.load %arg10[%c0_139, %c40] : memref<512x108xf32, #tpu.memory_space<vmem>>, vector<512x8xf32>
    tpu.vector_store %arg10[%c0_139, %c40], %93 {strides = array<i32>} : memref<512x108xf32, #tpu.memory_space<vmem>>, vector<512x8xf32>,
    %c0_140 = arith.constant 0 : index
    %c2_141 = arith.constant 2 : index
    %c0_142 = arith.constant 0 : index
    %c0_143 = arith.constant 0 : index
    %95 = vector.load %arg9[%c0_140, %c2_141, %c0_142, %c0_143] : memref<2x18x18x8xf32, #tpu.memory_space<vmem>>, vector<2x16x16x8xf32>
    %96 = vector.shape_cast %95 : vector<2x16x16x8xf32> to vector<512x8xf32>
    %c0_144 = arith.constant 0 : index
    %c48_145 = arith.constant 48 : index
    %97 = vector.load %arg10[%c0_144, %c48_145] : memref<512x108xf32, #tpu.memory_space<vmem>>, vector<512x8xf32>
    tpu.vector_store %arg10[%c0_144, %c48_145], %96 {strides = array<i32>} : memref<512x108xf32, #tpu.memory_space<vmem>>, vector<512x8xf32>,
    %c0_146 = arith.constant 0 : index
    %c2_147 = arith.constant 2 : index
    %c1_148 = arith.constant 1 : index
    %c0_149 = arith.constant 0 : index
    %98 = vector.load %arg9[%c0_146, %c2_147, %c1_148, %c0_149] : memref<2x18x18x8xf32, #tpu.memory_space<vmem>>, vector<2x16x16x8xf32>
    %99 = vector.shape_cast %98 : vector<2x16x16x8xf32> to vector<512x8xf32>
    %c0_150 = arith.constant 0 : index
    %c56 = arith.constant 56 : index
    %100 = vector.load %arg10[%c0_150, %c56] : memref<512x108xf32, #tpu.memory_space<vmem>>, vector<512x8xf32>
    tpu.vector_store %arg10[%c0_150, %c56], %99 {strides = array<i32>} : memref<512x108xf32, #tpu.memory_space<vmem>>, vector<512x8xf32>,
    %c0_151 = arith.constant 0 : index
    %c2_152 = arith.constant 2 : index
    %c2_153 = arith.constant 2 : index
    %c0_154 = arith.constant 0 : index
    %101 = vector.load %arg9[%c0_151, %c2_152, %c2_153, %c0_154] : memref<2x18x18x8xf32, #tpu.memory_space<vmem>>, vector<2x16x16x8xf32>
    %102 = vector.shape_cast %101 : vector<2x16x16x8xf32> to vector<512x8xf32>
    %c0_155 = arith.constant 0 : index
    %c64 = arith.constant 64 : index
    %103 = vector.load %arg10[%c0_155, %c64] : memref<512x108xf32, #tpu.memory_space<vmem>>, vector<512x8xf32>
    tpu.vector_store %arg10[%c0_155, %c64], %102 {strides = array<i32>} : memref<512x108xf32, #tpu.memory_space<vmem>>, vector<512x8xf32>,
    %c0_156 = arith.constant 0 : index
    %c0_157 = arith.constant 0 : index
    %104 = vector.load %arg10[%c0_156, %c0_157] : memref<512x108xf32, #tpu.memory_space<vmem>>, vector<512x72xf32>
    %105 = arith.truncf %104 : vector<512x72xf32> to vector<512x72xbf16>
    %c0_158 = arith.constant 0 : index
    %c0_159 = arith.constant 0 : index
    %106 = vector.load %arg4[%c0_158, %c0_159] : memref<72x8xbf16, #tpu.memory_space<vmem>>, vector<72x8xbf16>
    %cst_160 = arith.constant dense<0.000000e+00> : vector<512x8xf32>
    %107 = tpu.matmul %105, %106, %cst_160 {dimension_numbers = #tpu.dot_dimension_numbers<[1], [0], [0], [1], [0, 0, 1, 1], [], []>} : vector<512x72xbf16>, vector<72x8xbf16>, vector<512x8xf32> -> vector<512x8xf32>
    %cst_161 = arith.constant dense<0.000000e+00> : vector<8xf32>
    %108 = vector.multi_reduction <add>, %107, %cst_161 [0] : vector<512x8xf32> to vector<8xf32>
    %109 = vector.shape_cast %108 : vector<8xf32> to vector<1x8xf32>
    %cst_162 = arith.constant 5.120000e+02 : f32
    %110 = vector.broadcast %cst_162 : f32 to vector<1x8xf32>
    %111 = arith.divf %109, %110 : vector<1x8xf32>
    %112 = vector.broadcast %111 : vector<1x8xf32> to vector<512x8xf32>
    %113 = arith.subf %107, %112 : vector<512x8xf32>
    %114 = arith.mulf %113, %113 : vector<512x8xf32>
    %cst_163 = arith.constant dense<0.000000e+00> : vector<8xf32>
    %115 = vector.multi_reduction <add>, %114, %cst_163 [0] : vector<512x8xf32> to vector<8xf32>
    %116 = vector.shape_cast %115 : vector<8xf32> to vector<1x8xf32>
    %cst_164 = arith.constant 5.120000e+02 : f32
    %117 = vector.broadcast %cst_164 : f32 to vector<1x8xf32>
    %118 = arith.divf %116, %117 : vector<1x8xf32>
    %119 = vector.broadcast %111 : vector<1x8xf32> to vector<512x8xf32>
    %120 = arith.subf %107, %119 : vector<512x8xf32>
    %cst_165 = arith.constant 9.99999974E-6 : f32
    %121 = vector.broadcast %cst_165 : f32 to vector<1x8xf32>
    %122 = arith.addf %118, %121 : vector<1x8xf32>
    %123 = math.rsqrt %122 : vector<1x8xf32>
    %124 = vector.broadcast %123 : vector<1x8xf32> to vector<512x8xf32>
    %125 = arith.mulf %120, %124 : vector<512x8xf32>
    %c0_166 = arith.constant 0 : index
    %c0_167 = arith.constant 0 : index
    %126 = vector.load %arg5[%c0_166, %c0_167] : memref<1x8xf32, #tpu.memory_space<vmem>>, vector<1x8xf32>
    %127 = vector.broadcast %126 : vector<1x8xf32> to vector<512x8xf32>
    %128 = arith.mulf %125, %127 : vector<512x8xf32>
    %c0_168 = arith.constant 0 : index
    %c0_169 = arith.constant 0 : index
    %129 = vector.load %arg6[%c0_168, %c0_169] : memref<1x8xf32, #tpu.memory_space<vmem>>, vector<1x8xf32>
    %130 = vector.broadcast %129 : vector<1x8xf32> to vector<512x8xf32>
    %131 = arith.addf %128, %130 : vector<512x8xf32>
    %cst_170 = arith.constant 0.000000e+00 : f32
    %132 = vector.broadcast %cst_170 : f32 to vector<512x8xf32>
    %133 = arith.maximumf %131, %132 : vector<512x8xf32>
    %134 = vector.shape_cast %133 : vector<512x8xf32> to vector<2x16x16x8xf32>
    %c0_171 = arith.constant 0 : index
    %c0_172 = arith.constant 0 : index
    %c0_173 = arith.constant 0 : index
    %c0_174 = arith.constant 0 : index
    %135 = vector.load %arg7[%c0_171, %c0_172, %c0_173, %c0_174] : memref<2x16x16x8xf32, #tpu.memory_space<vmem>>, vector<2x16x16x8xf32>
    tpu.vector_store %arg7[%c0_171, %c0_172, %c0_173, %c0_174], %134 {strides = array<i32>} : memref<2x16x16x8xf32, #tpu.memory_space<vmem>>, vector<2x16x16x8xf32>,
    return
  }
}

</mosaic_0001>

<bundles_post_ra>
// kernel: double_conv_forward.1
= control target key start
LH: loop header
LB: loop body
LE: loop exit
PB: predicated region body
PF: predicated region fallthrough
CT: control target
= control target key end

     0   :  { %vm27_vm0 = vcmask 97280   ;;  %vm42_vm1 = vcmask 90112   ;;  %vm30_vm2 = vcmask 91136   ;;  %v16538_v0 = vmov 0.0   ;;  %s9625_s22 = smov 12   ;;  %s9626_s10 = smov 24   ;;  %s16530_s0 = inlined_call_operand.vmem [shape: f32[2,16,16,12], index: 0, kind: input, shape index: {}]   ;;  %s16531_s1 = inlined_call_operand.vmem [shape: bf16[108,8], index: 1, kind: input, shape index: {}]   ;;  %s16532_s2 = inlined_call_operand.vmem [shape: f32[1,8], index: 2, kind: input, shape index: {}]   ;;  %s16533_s3 = inlined_call_operand.vmem [shape: f32[1,8], index: 3, kind: input, shape index: {}]   ;;  %s16534_s4 = inlined_call_operand.vmem [shape: bf16[72,8], index: 4, kind: input, shape index: {}]   ;;  %s16535_s5 = inlined_call_operand.vmem [shape: f32[1,8], index: 5, kind: input, shape index: {}]   ;;  %s16536_s6 = inlined_call_operand.vmem [shape: f32[1,8], index: 6, kind: input, shape index: {}]   ;;  %s16537_s7 = inlined_call_operand.vmem [shape: f32[2,16,16,8], index: 7, kind: output, shape index: {}]  }
   0x1   :  { %28 = vst.msk [vmem:[#allocation2] sm:$0xff] %vm27_vm0, %v16538_v0  ;;  %29 = vst.msk [vmem:[#allocation2 + $0x8] sm:$0xff] %vm27_vm0, %v16538_v0  ;;  %v115_v1 = vld [vmem:[%s16530_s0] sm:$0xff]  ;;  %v116_v2 = vld [vmem:[%s16530_s0 + $0x8] sm:$0xff]  ;;  %vm692_vm3 = vcmask 195680   ;;  %vm1077_vm4 = vcmask 294080  }
   0x2   :  { %32 = vst.msk [vmem:[#allocation2 + $0x1b0] sm:$0xff] %vm27_vm0, %v16538_v0  ;;  %33 = vst.msk [vmem:[#allocation2 + $0x1b8] sm:$0xff] %vm27_vm0, %v16538_v0  ;;  %v117_v3 = vld [vmem:[%s16530_s0 + $0x10] sm:$0xff]  ;;  %v118_v4 = vld [vmem:[%s16530_s0 + $0x18] sm:$0xff]  ;;  %vm1462_vm5 = vcmask 392480   ;;  %s9628_s18 = smov 48  }
   0x3   :  { %36 = vst.msk [vmem:[#allocation2 + $0x198] sm:$0xff] %vm27_vm0, %v16538_v0  ;;  %37 = vst.msk [vmem:[#allocation2 + $0x1a0] sm:$0xff] %vm27_vm0, %v16538_v0  ;;  %v119_v5 = vld [vmem:[%s16530_s0 + $0x20] sm:$0xff]  ;;  %v120_v6 = vld [vmem:[%s16530_s0 + $0x28] sm:$0xff]  ;;  %vm1847_vm6 = vcmask 490880   ;;  %s9629_s19 = smov 60  }
   0x4   :  { %39 = vst.msk [vmem:[#allocation2 + $0x348] sm:$0xff] %vm27_vm0, %v16538_v0  ;;  %40 = vst.msk [vmem:[#allocation2 + $0x350] sm:$0xff] %vm27_vm0, %v16538_v0  ;;  %v121_v7 = vld [vmem:[%s16530_s0 + $0x30] sm:$0xff]  ;;  %v122_v8 = vld [vmem:[%s16530_s0 + $0x38] sm:$0xff]  ;;  %vm2232_vm7 = vcmask 589280   ;;  %s9630_s20 = smov 72  }
   0x5   :  { %44 = vst.msk [vmem:[#allocation2 + $0x18] sm:$0x1] %vm42_vm1, %v16538_v0  ;;  %45 = vst.msk [vmem:[#allocation2 + $0x30] sm:$0x1] %vm42_vm1, %v16538_v0  ;;  %v123_v9 = vld [vmem:[%s16530_s0 + $0x40] sm:$0xff]  ;;  %v124_v10 = vld [vmem:[%s16530_s0 + $0x48] sm:$0xff] }
   0x6   :  { %46 = vst.msk [vmem:[#allocation2 + $0x48] sm:$0x1] %vm42_vm1, %v16538_v0  ;;  %47 = vst.msk [vmem:[#allocation2 + $0x60] sm:$0x1] %vm42_vm1, %v16538_v0  ;;  %v125_v11 = vld [vmem:[%s16530_s0 + $0x50] sm:$0xff]  ;;  %v126_v12 = vld [vmem:[%s16530_s0 + $0x58] sm:$0xff] }
   0x7   :  { %48 = vst.msk [vmem:[#allocation2 + $0x78] sm:$0x1] %vm42_vm1, %v16538_v0  ;;  %49 = vst.msk [vmem:[#allocation2 + $0x90] sm:$0x1] %vm42_vm1, %v16538_v0  ;;  %v127_v13 = vld [vmem:[%s16530_s0 + $0x60] sm:$0xff]  ;;  %v128_v14 = vld [vmem:[%s16530_s0 + $0x68] sm:$0xff] }
   0x8   :  { %50 = vst.msk [vmem:[#allocation2 + $0xa8] sm:$0x1] %vm42_vm1, %v16538_v0  ;;  %51 = vst.msk [vmem:[#allocation2 + $0xc0] sm:$0x1] %vm42_vm1, %v16538_v0  ;;  %v129_v15 = vld [vmem:[%s16530_s0 + $0x70] sm:$0xff]  ;;  %v130_v16 = vld [vmem:[%s16530_s0 + $0x78] sm:$0xff] }
   0x9   :  { %52 = vst.msk [vmem:[#allocation2 + $0xd8] sm:$0x1] %vm42_vm1, %v16538_v0  ;;  %53 = vst.msk [vmem:[#allocation2 + $0xf0] sm:$0x1] %vm42_vm1, %v16538_v0  ;;  %v131_v17 = vld [vmem:[%s16530_s0 + $0x80] sm:$0xff]  ;;  %v132_v18 = vld [vmem:[%s16530_s0 + $0x88] sm:$0xff] }
   0xa   :  { %54 = vst.msk [vmem:[#allocation2 + $0x108] sm:$0x1] %vm42_vm1, %v16538_v0  ;;  %55 = vst.msk [vmem:[#allocation2 + $0x120] sm:$0x1] %vm42_vm1, %v16538_v0  ;;  %v133_v19 = vld [vmem:[%s16530_s0 + $0x90] sm:$0xff]  ;;  %v134_v20 = vld [vmem:[%s16530_s0 + $0x98] sm:$0xff] }
   0xb   :  { %56 = vst.msk [vmem:[#allocation2 + $0x138] sm:$0x1] %vm42_vm1, %v16538_v0  ;;  %57 = vst.msk [vmem:[#allocation2 + $0x150] sm:$0x1] %vm42_vm1, %v16538_v0  ;;  %v135_v21 = vld [vmem:[%s16530_s0 + $0xa0] sm:$0xff]  ;;  %v136_v23 = vld [vmem:[%s16530_s0 + $0xa8] sm:$0xff] }
   0xc   :  { %58 = vst.msk [vmem:[#allocation2 + $0x168] sm:$0x1] %vm42_vm1, %v16538_v0  ;;  %59 = vst.msk [vmem:[#allocation2 + $0x180] sm:$0x1] %vm42_vm1, %v16538_v0  ;;  %v372_v22 = vld [vmem:[#allocation2 + $0x1] sm:$0xff]  ;;  %v137_v30 = vld [vmem:[%s16530_s0 + $0xb0] sm:$0xff] }
   0xd   :  { %62 = vst.msk [vmem:[#allocation2 + $0x1c8] sm:$0x1] %vm42_vm1, %v16538_v0  ;;  %63 = vst.msk [vmem:[#allocation2 + $0x1e0] sm:$0x1] %vm42_vm1, %v16538_v0  ;;  %500 = vrot.lane.b32.xlu0 %v372_v22, %s9625_s22  ;;  %v138_v31 = vld [vmem:[%s16530_s0 + $0xb8] sm:$0xff]  ;;  %v139_v32 = vld [vmem:[%s16530_s0 + $0xc0] sm:$0xff] }
   0xe   :  { %64 = vst.msk [vmem:[#allocation2 + $0x1f8] sm:$0x1] %vm42_vm1, %v16538_v0  ;;  %65 = vst.msk [vmem:[#allocation2 + $0x210] sm:$0x1] %vm42_vm1, %v16538_v0  ;;  %v140_v33 = vld [vmem:[%s16530_s0 + $0xc8] sm:$0xff]  ;;  %v141_v34 = vld [vmem:[%s16530_s0 + $0xd0] sm:$0xff] }
   0xf   :  { %66 = vst.msk [vmem:[#allocation2 + $0x228] sm:$0x1] %vm42_vm1, %v16538_v0  ;;  %67 = vst.msk [vmem:[#allocation2 + $0x240] sm:$0x1] %vm42_vm1, %v16538_v0  ;;  %v142_v35 = vld [vmem:[%s16530_s0 + $0xd8] sm:$0xff]  ;;  %v143_v36 = vld [vmem:[%s16530_s0 + $0xe0] sm:$0xff] }
  0x10   :  { %68 = vst.msk [vmem:[#allocation2 + $0x258] sm:$0x1] %vm42_vm1, %v16538_v0  ;;  %69 = vst.msk [vmem:[#allocation2 + $0x270] sm:$0x1] %vm42_vm1, %v16538_v0  ;;  %v144_v37 = vld [vmem:[%s16530_s0 + $0xe8] sm:$0xff]  ;;  %v147_v39 = vld [vmem:[%s16530_s0 + $0x100] sm:$0xff] }
  0x11   :  { %70 = vst.msk [vmem:[#allocation2 + $0x288] sm:$0x1] %vm42_vm1, %v16538_v0  ;;  %71 = vst.msk [vmem:[#allocation2 + $0x2a0] sm:$0x1] %vm42_vm1, %v16538_v0  ;;  %v148_v41 = vld [vmem:[%s16530_s0 + $0x108] sm:$0xff]  ;;  %v149_v42 = vld [vmem:[%s16530_s0 + $0x110] sm:$0xff] }
  0x12   :  { %72 = vst.msk [vmem:[#allocation2 + $0x2b8] sm:$0x1] %vm42_vm1, %v16538_v0  ;;  %73 = vst.msk [vmem:[#allocation2 + $0x2d0] sm:$0x1] %vm42_vm1, %v16538_v0  ;;  %v150_v43 = vld [vmem:[%s16530_s0 + $0x118] sm:$0xff]  ;;  %v151_v45 = vld [vmem:[%s16530_s0 + $0x120] sm:$0xff] }
  0x13   :  { %74 = vst.msk [vmem:[#allocation2 + $0x2e8] sm:$0x1] %vm42_vm1, %v16538_v0  ;;  %75 = vst.msk [vmem:[#allocation2 + $0x300] sm:$0x1] %vm42_vm1, %v16538_v0  ;;  %v152_v46 = vld [vmem:[%s16530_s0 + $0x128] sm:$0xff]  ;;  %v153_v47 = vld [vmem:[%s16530_s0 + $0x130] sm:$0xff] }
  0x14   :  { %76 = vst.msk [vmem:[#allocation2 + $0x318] sm:$0x1] %vm42_vm1, %v16538_v0  ;;  %77 = vst.msk [vmem:[#allocation2 + $0x330] sm:$0x1] %vm42_vm1, %v16538_v0  ;;  %v154_v48 = vld [vmem:[%s16530_s0 + $0x138] sm:$0xff]  ;;  %v155_v49 = vld [vmem:[%s16530_s0 + $0x140] sm:$0xff] }
  0x15   :  { %80 = vst.msk [vmem:[#allocation2 + $0x29] sm:$0x1] %vm42_vm1, %v16538_v0  ;;  %81 = vst.msk [vmem:[#allocation2 + $0x41] sm:$0x1] %vm42_vm1, %v16538_v0  ;;  %v156_v50 = vld [vmem:[%s16530_s0 + $0x148] sm:$0xff]  ;;  %v157_v51 = vld [vmem:[%s16530_s0 + $0x150] sm:$0xff] }
  0x16   :  { %82 = vst.msk [vmem:[#allocation2 + $0x59] sm:$0x1] %vm42_vm1, %v16538_v0  ;;  %83 = vst.msk [vmem:[#allocation2 + $0x71] sm:$0x1] %vm42_vm1, %v16538_v0  ;;  %v158_v52 = vld [vmem:[%s16530_s0 + $0x158] sm:$0xff]  ;;  %v159_v53 = vld [vmem:[%s16530_s0 + $0x160] sm:$0xff] }
  0x17   :  { %84 = vst.msk [vmem:[#allocation2 + $0x89] sm:$0x1] %vm42_vm1, %v16538_v0  ;;  %85 = vst.msk [vmem:[#allocation2 + $0xa1] sm:$0x1] %vm42_vm1, %v16538_v0  ;;  %v160_v54 = vld [vmem:[%s16530_s0 + $0x168] sm:$0xff]  ;;  %v161_v57 = vld [vmem:[%s16530_s0 + $0x170] sm:$0xff] }
  0x18   :  { %86 = vst.msk [vmem:[#allocation2 + $0xb9] sm:$0x1] %vm42_vm1, %v16538_v0  ;;  %87 = vst.msk [vmem:[#allocation2 + $0xd1] sm:$0x1] %vm42_vm1, %v16538_v0  ;;  %v162_v58 = vld [vmem:[%s16530_s0 + $0x178] sm:$0xff]  ;;  %v163_v62 = vld [vmem:[%s16530_s0 + $0x180] sm:$0xff] }
  0x19   :  { %88 = vst.msk [vmem:[#allocation2 + $0xe9] sm:$0x1] %vm42_vm1, %v16538_v0  ;;  %89 = vst.msk [vmem:[#allocation2 + $0x101] sm:$0x1] %vm42_vm1, %v16538_v0  ;;  %v164_v63 = vld [vmem:[%s16530_s0 + $0x188] sm:$0xff]  ;;  %vm2618_vm8 = vcmask 687680  }
  0x1a   :  { %90 = vst.msk [vmem:[#allocation2 + $0x119] sm:$0x1] %vm42_vm1, %v16538_v0  ;;  %91 = vst.msk [vmem:[#allocation2 + $0x131] sm:$0x1] %vm42_vm1, %v16538_v0  ;;  %s9631_s21 = smov 84   ;;  %vm3701_vm9 = vcmask 1045504  }
  0x1b   :  { %92 = vst.msk [vmem:[#allocation2 + $0x149] sm:$0x1] %vm42_vm1, %v16538_v0  ;;  %93 = vst.msk [vmem:[#allocation2 + $0x161] sm:$0x1] %vm42_vm1, %v16538_v0  ;;  %s9632_s14 = smov 96   ;;  %vm3003_vm10 = vcmask 786080  }
  0x1c   :  { %94 = vst.msk [vmem:[#allocation2 + $0x179] sm:$0x1] %vm42_vm1, %v16538_v0  ;;  %95 = vst.msk [vmem:[#allocation2 + $0x191] sm:$0x1] %vm42_vm1, %v16538_v0  ;;  %vm3388_vm11 = vcmask 884480   ;;  %vm3604_vm12 = vcmask 883712  }
  0x1d   :  { %98 = vst.msk [vmem:[#allocation2 + $0x1d9] sm:$0x1] %vm42_vm1, %v16538_v0  ;;  %99 = vst.msk [vmem:[#allocation2 + $0x1f1] sm:$0x1] %vm42_vm1, %v16538_v0  ;;  %vm3994_vm13 = vcmask 64512   ;;  %vm4678_vm14 = vcmask 57344  }
  0x1e   :  { %100 = vst.msk [vmem:[#allocation2 + $0x209] sm:$0x1] %vm42_vm1, %v16538_v0  ;;  %101 = vst.msk [vmem:[#allocation2 + $0x221] sm:$0x1] %vm42_vm1, %v16538_v0  ;;  %vm4666_vm15 = vcmask 58368   ;;  %s9637_s24 = smov 56  }
  0x1f   :  { %102 = vst.msk [vmem:[#allocation2 + $0x239] sm:$0x1] %vm42_vm1, %v16538_v0  ;;  %103 = vst.msk [vmem:[#allocation2 + $0x251] sm:$0x1] %vm42_vm1, %v16538_v0  ;;  %s9638_s29 = smov 64  }
  0x20   :  { %104 = vst.msk [vmem:[#allocation2 + $0x269] sm:$0x1] %vm42_vm1, %v16538_v0  ;;  %105 = vst.msk [vmem:[#allocation2 + $0x281] sm:$0x1] %vm42_vm1, %v16538_v0 }
  0x21   :  { %106 = vst.msk [vmem:[#allocation2 + $0x299] sm:$0x1] %vm42_vm1, %v16538_v0  ;;  %107 = vst.msk [vmem:[#allocation2 + $0x2b1] sm:$0x1] %vm42_vm1, %v16538_v0 }
  0x22   :  { %108 = vst.msk [vmem:[#allocation2 + $0x2c9] sm:$0x1] %vm42_vm1, %v16538_v0  ;;  %109 = vst.msk [vmem:[#allocation2 + $0x2e1] sm:$0x1] %vm42_vm1, %v16538_v0 }
  0x23   :  { %110 = vst.msk [vmem:[#allocation2 + $0x2f9] sm:$0x1] %vm42_vm1, %v16538_v0  ;;  %111 = vst.msk [vmem:[#allocation2 + $0x311] sm:$0x1] %vm42_vm1, %v16538_v0 }
  0x24   :  { %112 = vst.msk [vmem:[#allocation2 + $0x329] sm:$0x1] %vm42_vm1, %v16538_v0  ;;  %113 = vst.msk [vmem:[#allocation2 + $0x341] sm:$0x1] %vm42_vm1, %v16538_v0 }
  0x25   :  { %31 = vst.msk [vmem:[#allocation2 + $0x10] sm:$0x3] %vm30_vm2, %v16538_v0  ;;  %34 = vst.msk [vmem:[#allocation2 + $0x1c0] sm:$0x3] %vm30_vm2, %v16538_v0 }
  0x26   :  { %38 = vst.msk [vmem:[#allocation2 + $0x1a8] sm:$0x3] %vm30_vm2, %v16538_v0  ;;  %41 = vst.msk [vmem:[#allocation2 + $0x358] sm:$0x3] %vm30_vm2, %v16538_v0  ;;  %vm6034_vm2 = vcmask 261312  }
  0x27   :  { %43 = vst.msk [vmem:[#allocation2] sm:$0x1] %vm42_vm1, %v16538_v0  ;;  %60 = vst.msk [vmem:[#allocation2 + $0x198] sm:$0x1] %vm42_vm1, %v16538_v0 }
  0x28   :  { %180 = vst.msk [vmem:[#allocation2 + $0x19] sm:$0xff] %vm27_vm0, %v115_v1  ;;  %181 = vst.msk [vmem:[#allocation2 + $0x21] sm:$0xff] %vm27_vm0, %v116_v2  ;;  %v165_v1 = vld [vmem:[%s16530_s0 + $0x190] sm:$0xff]  ;;  %v166_v2 = vld [vmem:[%s16530_s0 + $0x198] sm:$0xff] }
  0x29   :  { %61 = vst.msk [vmem:[#allocation2 + $0x1b0] sm:$0x1] %vm42_vm1, %v16538_v0  ;;  %78 = vst.msk [vmem:[#allocation2 + $0x348] sm:$0x1] %vm42_vm1, %v16538_v0 }
  0x2a   :  { %79 = vst.msk [vmem:[#allocation2 + $0x11] sm:$0x1] %vm42_vm1, %v16538_v0  ;;  %96 = vst.msk [vmem:[#allocation2 + $0x1a9] sm:$0x1] %vm42_vm1, %v16538_v0 }
  0x2b   :  { %97 = vst.msk [vmem:[#allocation2 + $0x1c1] sm:$0x1] %vm42_vm1, %v16538_v0  ;;  %114 = vst.msk [vmem:[#allocation2 + $0x359] sm:$0x1] %vm42_vm1, %v16538_v0  ;;  %vm5649_vm1 = vcmask 195712  }
  0x2c   :  { %182 = vst.msk [vmem:[#allocation2 + $0x31] sm:$0xff] %vm27_vm0, %v117_v3  ;;  %183 = vst.msk [vmem:[#allocation2 + $0x39] sm:$0xff] %vm27_vm0, %v118_v4  ;;  %v373_v25 = vld [vmem:[#allocation2 + $0x9] sm:$0xff]  ;;  %v167_v3 = vld [vmem:[%s16530_s0 + $0x1a0] sm:$0xff] }
  0x2d   :  { %184 = vst.msk [vmem:[#allocation2 + $0x49] sm:$0xff] %vm27_vm0, %v119_v5  ;;  %185 = vst.msk [vmem:[#allocation2 + $0x51] sm:$0xff] %vm27_vm0, %v120_v6  ;;  %502 = vrot.lane.b32.xlu0 %v373_v25, %s9625_s22  ;;  %v168_v4 = vld [vmem:[%s16530_s0 + $0x1a8] sm:$0xff]  ;;  %v169_v5 = vld [vmem:[%s16530_s0 + $0x1b0] sm:$0xff] }
  0x2e   :  { %186 = vst.msk [vmem:[#allocation2 + $0x61] sm:$0xff] %vm27_vm0, %v121_v7  ;;  %187 = vst.msk [vmem:[#allocation2 + $0x69] sm:$0xff] %vm27_vm0, %v122_v8  ;;  %v170_v6 = vld [vmem:[%s16530_s0 + $0x1b8] sm:$0xff]  ;;  %v244_v8 = vld [vmem:[#allocation2] sm:$0xff] }
  0x2f   :  { %188 = vst.msk [vmem:[#allocation2 + $0x79] sm:$0xff] %vm27_vm0, %v123_v9  ;;  %189 = vst.msk [vmem:[#allocation2 + $0x81] sm:$0xff] %vm27_vm0, %v124_v10  ;;  %v374_v24 = vld [vmem:[#allocation2 + $0x19] sm:$0xff]  ;;  %v375_v26 = vld [vmem:[#allocation2 + $0x21] sm:$0xff] }
  0x30   :  { %190 = vst.msk [vmem:[#allocation2 + $0x91] sm:$0xff] %vm27_vm0, %v125_v11  ;;  %191 = vst.msk [vmem:[#allocation2 + $0x99] sm:$0xff] %vm27_vm0, %v126_v12  ;;  %504 = vrot.lane.b32.xlu1 %v374_v24, %s9625_s22  ;;  %v10078_v10 = vld [vmem:[#allocation2 + $0x18] sm:$0xff]  ;;  %v171_v11 = vld [vmem:[%s16530_s0 + $0x1c0] sm:$0xff] }
  0x31   :  { %192 = vst.msk [vmem:[#allocation2 + $0xa9] sm:$0xff] %vm27_vm0, %v127_v13  ;;  %193 = vst.msk [vmem:[#allocation2 + $0xb1] sm:$0xff] %vm27_vm0, %v128_v14  ;;  %v172_v12 = vld [vmem:[%s16530_s0 + $0x1c8] sm:$0xff] }
  0x32   :  { %194 = vst.msk [vmem:[#allocation2 + $0xc1] sm:$0xff] %vm27_vm0, %v129_v15  ;;  %195 = vst.msk [vmem:[#allocation2 + $0xc9] sm:$0xff] %vm27_vm0, %v130_v16  ;;  %v245_v14 = vld [vmem:[#allocation2 + $0x8] sm:$0xff]  ;;  %v10091_v15 = vld [vmem:[#allocation2 + $0x20] sm:$0xff] }
  0x33   :  { %196 = vst.msk [vmem:[#allocation2 + $0xd9] sm:$0xff] %vm27_vm0, %v131_v17  ;;  %197 = vst.msk [vmem:[#allocation2 + $0xe1] sm:$0xff] %vm27_vm0, %v132_v18  ;;  %v376_v27 = vld [vmem:[#allocation2 + $0x31] sm:$0xff]  ;;  %v377_v28 = vld [vmem:[#allocation2 + $0x39] sm:$0xff] }
  0x34   :  { %198 = vst.msk [vmem:[#allocation2 + $0xf1] sm:$0xff] %vm27_vm0, %v133_v19  ;;  %199 = vst.msk [vmem:[#allocation2 + $0xf9] sm:$0xff] %vm27_vm0, %v134_v20  ;;  %506 = vrot.lane.b32.xlu1 %v375_v26, %s9625_s22  ;;  %v378_v29 = vld [vmem:[#allocation2 + $0x49] sm:$0xff]  ;;  %508 = vrot.lane.b32.xlu0 %v376_v27, %s9625_s22  ;;  %v379_v38 = vld [vmem:[#allocation2 + $0x51] sm:$0xff] }
  0x35   :  { %200 = vst.msk [vmem:[#allocation2 + $0x109] sm:$0xff] %vm27_vm0, %v135_v21  ;;  %201 = vst.msk [vmem:[#allocation2 + $0x111] sm:$0xff] %vm27_vm0, %v136_v23  ;;  %v380_v40 = vld [vmem:[#allocation2 + $0x61] sm:$0xff]  ;;  %v381_v44 = vld [vmem:[#allocation2 + $0x69] sm:$0xff] }
  0x36   :  { %202 = vst.msk [vmem:[#allocation2 + $0x121] sm:$0xff] %vm27_vm0, %v137_v30  ;;  %203 = vst.msk [vmem:[#allocation2 + $0x129] sm:$0xff] %vm27_vm0, %v138_v31  ;;  %v382_v55 = vld [vmem:[#allocation2 + $0x79] sm:$0xff]  ;;  %v383_v56 = vld [vmem:[#allocation2 + $0x81] sm:$0xff] }
  0x37   :  { %204 = vst.msk [vmem:[#allocation2 + $0x139] sm:$0xff] %vm27_vm0, %v139_v32  ;;  %205 = vst.msk [vmem:[#allocation2 + $0x141] sm:$0xff] %vm27_vm0, %v140_v33  ;;  %v384_v59 = vld [vmem:[#allocation2 + $0x91] sm:$0xff]  ;;  %v385_v60 = vld [vmem:[#allocation2 + $0x99] sm:$0xff] }
  0x38   :  { %510 = vrot.lane.b32.xlu1 %v377_v28, %s9625_s22  ;;  %206 = vst.msk [vmem:[#allocation2 + $0x151] sm:$0xff] %vm27_vm0, %v141_v34  ;;  %207 = vst.msk [vmem:[#allocation2 + $0x159] sm:$0xff] %vm27_vm0, %v142_v35  ;;  %512 = vrot.lane.b32.xlu0 %v378_v29, %s9625_s22  ;;  %v386_v61 = vld [vmem:[#allocation2 + $0xa9] sm:$0xff]  ;;  %v387_v7 = vld [vmem:[#allocation2 + $0xb1] sm:$0xff] }
  0x39   :  { %208 = vst.msk [vmem:[#allocation2 + $0x169] sm:$0xff] %vm27_vm0, %v143_v36  ;;  %209 = vst.msk [vmem:[#allocation2 + $0x171] sm:$0xff] %vm27_vm0, %v144_v37  ;;  %v388_v9 = vld [vmem:[#allocation2 + $0xc1] sm:$0xff]  ;;  %v389_v13 = vld [vmem:[#allocation2 + $0xc9] sm:$0xff] }
  0x3a   :  { %212 = vst.msk [vmem:[#allocation2 + $0x1c9] sm:$0xff] %vm27_vm0, %v147_v39  ;;  %213 = vst.msk [vmem:[#allocation2 + $0x1d1] sm:$0xff] %vm27_vm0, %v148_v41  ;;  %v173_v16 = vld [vmem:[%s16530_s0 + $0x1d0] sm:$0xff]  ;;  %v174_v17 = vld [vmem:[%s16530_s0 + $0x1d8] sm:$0xff] }
  0x3b   :  { %214 = vst.msk [vmem:[#allocation2 + $0x1e1] sm:$0xff] %vm27_vm0, %v149_v42  ;;  %215 = vst.msk [vmem:[#allocation2 + $0x1e9] sm:$0xff] %vm27_vm0, %v150_v43  ;;  %v10104_v18 = vld [vmem:[#allocation2 + $0x30] sm:$0xff]  ;;  %v10106_v19 = vld [vmem:[#allocation2 + $0x38] sm:$0xff] }
  0x3c   :  { %514 = vrot.lane.b32.xlu1 %v379_v38, %s9625_s22  ;;  %216 = vst.msk [vmem:[#allocation2 + $0x1f9] sm:$0xff] %vm27_vm0, %v151_v45  ;;  %217 = vst.msk [vmem:[#allocation2 + $0x201] sm:$0xff] %vm27_vm0, %v152_v46  ;;  %516 = vrot.lane.b32.xlu0 %v380_v40, %s9625_s22  ;;  %v175_v20 = vld [vmem:[%s16530_s0 + $0x1e0] sm:$0xff]  ;;  %v176_v21 = vld [vmem:[%s16530_s0 + $0x1e8] sm:$0xff] }
  0x3d   :  { %218 = vst.msk [vmem:[#allocation2 + $0x211] sm:$0xff] %vm27_vm0, %v153_v47  ;;  %219 = vst.msk [vmem:[#allocation2 + $0x219] sm:$0xff] %vm27_vm0, %v154_v48  ;;  %v10119_v22 = vld [vmem:[#allocation2 + $0x48] sm:$0xff]  ;;  %v10125_v23 = vld [vmem:[#allocation2 + $0x50] sm:$0xff] }
  0x3e   :  { %220 = vst.msk [vmem:[#allocation2 + $0x229] sm:$0xff] %vm27_vm0, %v155_v49  ;;  %221 = vst.msk [vmem:[#allocation2 + $0x231] sm:$0xff] %vm27_vm0, %v156_v50  ;;  %v390_v24 = vld [vmem:[#allocation2 + $0xd9] sm:$0xff]  ;;  %v391_v25 = vld [vmem:[#allocation2 + $0xe1] sm:$0xff] }
  0x3f   :  { %222 = vst.msk [vmem:[#allocation2 + $0x241] sm:$0xff] %vm27_vm0, %v157_v51  ;;  %223 = vst.msk [vmem:[#allocation2 + $0x249] sm:$0xff] %vm27_vm0, %v158_v52  ;;  %v10131_v26 = vld [vmem:[#allocation2 + $0x60] sm:$0xff]  ;;  %v10135_v27 = vld [vmem:[#allocation2 + $0x68] sm:$0xff] }
  0x40   :  { %224 = vst.msk [vmem:[#allocation2 + $0x259] sm:$0xff] %vm27_vm0, %v159_v53  ;;  %225 = vst.msk [vmem:[#allocation2 + $0x261] sm:$0xff] %vm27_vm0, %v160_v54  ;;  %518 = vrot.lane.b32.xlu1 %v381_v44, %s9625_s22  ;;  %520 = vrot.lane.b32.xlu0 %v382_v55, %s9625_s22  ;;  %v392_v28 = vld [vmem:[#allocation2 + $0xf1] sm:$0xff]  ;;  %v10143_v30 = vld [vmem:[#allocation2 + $0x80] sm:$0xff] }
  0x41   :  { %226 = vst.msk [vmem:[#allocation2 + $0x271] sm:$0xff] %vm27_vm0, %v161_v57  ;;  %227 = vst.msk [vmem:[#allocation2 + $0x279] sm:$0xff] %vm27_vm0, %v162_v58  ;;  %v10141_v29 = vld [vmem:[#allocation2 + $0x78] sm:$0xff]  ;;  %v10149_v32 = vld [vmem:[#allocation2 + $0x90] sm:$0xff] }
  0x42   :  { %228 = vst.msk [vmem:[#allocation2 + $0x289] sm:$0xff] %vm27_vm0, %v163_v62  ;;  %229 = vst.msk [vmem:[#allocation2 + $0x291] sm:$0xff] %vm27_vm0, %v164_v63  ;;  %v393_v31 = vld [vmem:[#allocation2 + $0xf9] sm:$0xff]  ;;  %v10158_v34 = vld [vmem:[#allocation2 + $0xa8] sm:$0xff] }
  0x43   :  { %230 = vst.msk [vmem:[#allocation2 + $0x2a1] sm:$0xff] %vm27_vm0, %v165_v1  ;;  %231 = vst.msk [vmem:[#allocation2 + $0x2a9] sm:$0xff] %vm27_vm0, %v166_v2  ;;  %v10151_v33 = vld [vmem:[#allocation2 + $0x98] sm:$0xff]  ;;  %v394_v35 = vld [vmem:[#allocation2 + $0x109] sm:$0xff] }
  0x44   :  { %522 = vrot.lane.b32.xlu1 %v383_v56, %s9625_s22  ;;  %524 = vrot.lane.b32.xlu0 %v384_v59, %s9625_s22  ;;  %232 = vst.msk [vmem:[#allocation2 + $0x2b9] sm:$0xff] %vm27_vm0, %v167_v3  ;;  %233 = vst.msk [vmem:[#allocation2 + $0x2c1] sm:$0xff] %vm27_vm0, %v168_v4  ;;  %v10163_v36 = vld [vmem:[#allocation2 + $0xb0] sm:$0xff]  ;;  %v10167_v38 = vld [vmem:[#allocation2 + $0xc0] sm:$0xff] }
  0x45   :  { %234 = vst.msk [vmem:[#allocation2 + $0x2d1] sm:$0xff] %vm27_vm0, %v169_v5  ;;  %235 = vst.msk [vmem:[#allocation2 + $0x2d9] sm:$0xff] %vm27_vm0, %v170_v6  ;;  %v395_v37 = vld [vmem:[#allocation2 + $0x111] sm:$0xff]  ;;  %v10169_v39 = vld [vmem:[#allocation2 + $0xc8] sm:$0xff] }
  0x46   :  { %308 = vst.msk [vmem:[#allocation4] sm:$0xff] %vm27_vm0, %v244_v8  ;;  %310 = vst.msk [vmem:[#allocation4 + $0x10] sm:$0xff] %vm27_vm0, %v10078_v10  ;;  %v10175_v40 = vld [vmem:[#allocation2 + $0xd8] sm:$0xff]  ;;  %v10177_v41 = vld [vmem:[#allocation2 + $0xe0] sm:$0xff] }
  0x47   :  { %236 = vst.msk [vmem:[#allocation2 + $0x2e9] sm:$0xff] %vm27_vm0, %v171_v11  ;;  %237 = vst.msk [vmem:[#allocation2 + $0x2f1] sm:$0xff] %vm27_vm0, %v172_v12  ;;  %v10184_v42 = vld [vmem:[#allocation2 + $0xf0] sm:$0xff]  ;;  %v396_v43 = vld [vmem:[#allocation2 + $0x121] sm:$0xff] }
  0x48   :  { %526 = vrot.lane.b32.xlu1 %v385_v60, %s9625_s22  ;;  %528 = vrot.lane.b32.xlu0 %v386_v61, %s9625_s22  ;;  %309 = vst.msk [vmem:[#allocation4 + $0x8] sm:$0xff] %vm27_vm0, %v245_v14  ;;  %311 = vst.msk [vmem:[#allocation4 + $0x18] sm:$0xff] %vm27_vm0, %v10091_v15  ;;  %v10189_v44 = vld [vmem:[#allocation2 + $0xf8] sm:$0xff]  ;;  %v397_v45 = vld [vmem:[#allocation2 + $0x129] sm:$0xff] }
  0x49   :  { %238 = vst.msk [vmem:[#allocation2 + $0x301] sm:$0xff] %vm27_vm0, %v173_v16  ;;  %239 = vst.msk [vmem:[#allocation2 + $0x309] sm:$0xff] %vm27_vm0, %v174_v17  ;;  %v10193_v46 = vld [vmem:[#allocation2 + $0x108] sm:$0xff]  ;;  %v10195_v47 = vld [vmem:[#allocation2 + $0x110] sm:$0xff] }
  0x4a   :  { %312 = vst.msk [vmem:[#allocation4 + $0x20] sm:$0xff] %vm27_vm0, %v10104_v18  ;;  %313 = vst.msk [vmem:[#allocation4 + $0x28] sm:$0xff] %vm27_vm0, %v10106_v19  ;;  %v10201_v48 = vld [vmem:[#allocation2 + $0x120] sm:$0xff]  ;;  %v10203_v49 = vld [vmem:[#allocation2 + $0x128] sm:$0xff] }
  0x4b   :  { %240 = vst.msk [vmem:[#allocation2 + $0x319] sm:$0xff] %vm27_vm0, %v175_v20  ;;  %241 = vst.msk [vmem:[#allocation2 + $0x321] sm:$0xff] %vm27_vm0, %v176_v21  ;;  %v10210_v50 = vld [vmem:[#allocation2 + $0x138] sm:$0xff]  ;;  %v10215_v52 = vld [vmem:[#allocation2 + $0x140] sm:$0xff] }
  0x4c   :  { %530 = vrot.lane.b32.xlu1 %v387_v7, %s9625_s22  ;;  %314 = vst.msk [vmem:[#allocation4 + $0x30] sm:$0xff] %vm27_vm0, %v10119_v22  ;;  %532 = vrot.lane.b32.xlu0 %v388_v9, %s9625_s22  ;;  %315 = vst.msk [vmem:[#allocation4 + $0x38] sm:$0xff] %vm27_vm0, %v10125_v23  ;;  %v398_v51 = vld [vmem:[#allocation2 + $0x139] sm:$0xff]  ;;  %v399_v53 = vld [vmem:[#allocation2 + $0x141] sm:$0xff] }
  0x4d   :  { %316 = vst.msk [vmem:[#allocation4 + $0x40] sm:$0xff] %vm27_vm0, %v10131_v26  ;;  %317 = vst.msk [vmem:[#allocation4 + $0x48] sm:$0xff] %vm27_vm0, %v10135_v27  ;;  %v10219_v54 = vld [vmem:[#allocation2 + $0x150] sm:$0xff]  ;;  %v10221_v55 = vld [vmem:[#allocation2 + $0x158] sm:$0xff] }
  0x4e   :  { %318 = vst.msk [vmem:[#allocation4 + $0x50] sm:$0xff] %vm27_vm0, %v10141_v29  ;;  %319 = vst.msk [vmem:[#allocation4 + $0x58] sm:$0xff] %vm27_vm0, %v10143_v30  ;;  %v10227_v56 = vld [vmem:[#allocation2 + $0x168] sm:$0xff]  ;;  %v10229_v57 = vld [vmem:[#allocation2 + $0x170] sm:$0xff] }
  0x4f   :  { %320 = vst.msk [vmem:[#allocation4 + $0x60] sm:$0xff] %vm27_vm0, %v10149_v32  ;;  %321 = vst.msk [vmem:[#allocation4 + $0x68] sm:$0xff] %vm27_vm0, %v10151_v33  ;;  %v276_v58 = vld [vmem:[#allocation2 + $0x1b0] sm:$0xff]  ;;  %v277_v60 = vld [vmem:[#allocation2 + $0x1b8] sm:$0xff] }
  0x50   :  { %534 = vrot.lane.b32.xlu1 %v389_v13, %s9625_s22  ;;  %536 = vrot.lane.b32.xlu0 %v390_v24, %s9625_s22  ;;  %322 = vst.msk [vmem:[#allocation4 + $0x70] sm:$0xff] %vm27_vm0, %v10158_v34  ;;  %323 = vst.msk [vmem:[#allocation4 + $0x78] sm:$0xff] %vm27_vm0, %v10163_v36  ;;  %v400_v59 = vld [vmem:[#allocation2 + $0x151] sm:$0xff]  ;;  %v401_v61 = vld [vmem:[#allocation2 + $0x159] sm:$0xff] }
  0x51   :  { %324 = vst.msk [vmem:[#allocation4 + $0x80] sm:$0xff] %vm27_vm0, %v10167_v38  ;;  %325 = vst.msk [vmem:[#allocation4 + $0x88] sm:$0xff] %vm27_vm0, %v10169_v39  ;;  %v10239_v62 = vld [vmem:[#allocation2 + $0x1c8] sm:$0xff]  ;;  %v10241_v63 = vld [vmem:[#allocation2 + $0x1d0] sm:$0xff] }
  0x52   :  { %326 = vst.msk [vmem:[#allocation4 + $0x90] sm:$0xff] %vm27_vm0, %v10175_v40  ;;  %327 = vst.msk [vmem:[#allocation4 + $0x98] sm:$0xff] %vm27_vm0, %v10177_v41  ;;  %v402_v1 = vld [vmem:[#allocation2 + $0x169] sm:$0xff]  ;;  %v10249_v2 = vld [vmem:[#allocation2 + $0x1e0] sm:$0xff] }
  0x53   :  { %328 = vst.msk [vmem:[#allocation4 + $0xa0] sm:$0xff] %vm27_vm0, %v10184_v42  ;;  %329 = vst.msk [vmem:[#allocation4 + $0xa8] sm:$0xff] %vm27_vm0, %v10189_v44  ;;  %v403_v3 = vld [vmem:[#allocation2 + $0x171] sm:$0xff]  ;;  %v10253_v4 = vld [vmem:[#allocation2 + $0x1e8] sm:$0xff] }
  0x54   :  { %538 = vrot.lane.b32.xlu1 %v391_v25, %s9625_s22  ;;  %540 = vrot.lane.b32.xlu0 %v392_v28, %s9625_s22  ;;  %330 = vst.msk [vmem:[#allocation4 + $0xb0] sm:$0xff] %vm27_vm0, %v10193_v46  ;;  %331 = vst.msk [vmem:[#allocation4 + $0xb8] sm:$0xff] %vm27_vm0, %v10195_v47  ;;  %v404_v5 = vld [vmem:[#allocation2 + $0x1b1] sm:$0xff]  ;;  %v405_v7 = vld [vmem:[#allocation2 + $0x1b9] sm:$0xff] }
  0x55   :  { %332 = vst.msk [vmem:[#allocation4 + $0xc0] sm:$0xff] %vm27_vm0, %v10201_v48  ;;  %333 = vst.msk [vmem:[#allocation4 + $0xc8] sm:$0xff] %vm27_vm0, %v10203_v49  ;;  %v10259_v6 = vld [vmem:[#allocation2 + $0x1f8] sm:$0xff]  ;;  %v10263_v8 = vld [vmem:[#allocation2 + $0x200] sm:$0xff] }
  0x56   :  { %334 = vst.msk [vmem:[#allocation4 + $0xd0] sm:$0xff] %vm27_vm0, %v10210_v50  ;;  %335 = vst.msk [vmem:[#allocation4 + $0xd8] sm:$0xff] %vm27_vm0, %v10215_v52  ;;  %v406_v9 = vld [vmem:[#allocation2 + $0x1c9] sm:$0xff]  ;;  %v407_v12 = vld [vmem:[#allocation2 + $0x1d1] sm:$0xff] }
  0x57   :  { %336 = vst.msk [vmem:[#allocation4 + $0xe0] sm:$0xff] %vm27_vm0, %v10219_v54  ;;  %337 = vst.msk [vmem:[#allocation4 + $0xe8] sm:$0xff] %vm27_vm0, %v10221_v55  ;;  %v10269_v11 = vld [vmem:[#allocation2 + $0x210] sm:$0xff]  ;;  %v10273_v13 = vld [vmem:[#allocation2 + $0x218] sm:$0xff] }
  0x58   :  { %542 = vrot.lane.b32.xlu1 %v393_v31, %s9625_s22  ;;  %544 = vrot.lane.b32.xlu0 %v394_v35, %s9625_s22  ;;  %338 = vst.msk [vmem:[#allocation4 + $0xf0] sm:$0xff] %vm27_vm0, %v10227_v56  ;;  %339 = vst.msk [vmem:[#allocation4 + $0xf8] sm:$0xff] %vm27_vm0, %v10229_v57  ;;  %v408_v14 = vld [vmem:[#allocation2 + $0x1e1] sm:$0xff]  ;;  %v409_v17 = vld [vmem:[#allocation2 + $0x1e9] sm:$0xff] }
  0x59   :  { %340 = vst.msk [vmem:[#allocation4 + $0x100] sm:$0xff] %vm27_vm0, %v276_v58  ;;  %341 = vst.msk [vmem:[#allocation4 + $0x108] sm:$0xff] %vm27_vm0, %v277_v60  ;;  %v10279_v16 = vld [vmem:[#allocation2 + $0x228] sm:$0xff]  ;;  %v10283_v20 = vld [vmem:[#allocation2 + $0x230] sm:$0xff] }
  0x5a   :  { %342 = vst.msk [vmem:[#allocation4 + $0x110] sm:$0xff] %vm27_vm0, %v10239_v62  ;;  %343 = vst.msk [vmem:[#allocation4 + $0x118] sm:$0xff] %vm27_vm0, %v10241_v63  ;;  %v410_v21 = vld [vmem:[#allocation2 + $0x1f9] sm:$0xff]  ;;  %v411_v25 = vld [vmem:[#allocation2 + $0x201] sm:$0xff] }
  0x5b   :  { %344 = vst.msk [vmem:[#allocation4 + $0x120] sm:$0xff] %vm27_vm0, %v10249_v2  ;;  %345 = vst.msk [vmem:[#allocation4 + $0x128] sm:$0xff] %vm27_vm0, %v10253_v4  ;;  %v10289_v24 = vld [vmem:[#allocation2 + $0x240] sm:$0xff]  ;;  %v10293_v28 = vld [vmem:[#allocation2 + $0x248] sm:$0xff] }
  0x5c   :  { %546 = vrot.lane.b32.xlu1 %v395_v37, %s9625_s22  ;;  %548 = vrot.lane.b32.xlu0 %v396_v43, %s9625_s22  ;;  %346 = vst.msk [vmem:[#allocation4 + $0x130] sm:$0xff] %vm27_vm0, %v10259_v6  ;;  %347 = vst.msk [vmem:[#allocation4 + $0x138] sm:$0xff] %vm27_vm0, %v10263_v8  ;;  %v412_v31 = vld [vmem:[#allocation2 + $0x211] sm:$0xff]  ;;  %v413_v37 = vld [vmem:[#allocation2 + $0x219] sm:$0xff] }
  0x5d   :  { %348 = vst.msk [vmem:[#allocation4 + $0x140] sm:$0xff] %vm27_vm0, %v10269_v11  ;;  %349 = vst.msk [vmem:[#allocation4 + $0x148] sm:$0xff] %vm27_vm0, %v10273_v13  ;;  %v10299_v35 = vld [vmem:[#allocation2 + $0x258] sm:$0xff]  ;;  %v10303_v43 = vld [vmem:[#allocation2 + $0x260] sm:$0xff] }
  0x5e   :  { %350 = vst.msk [vmem:[#allocation4 + $0x150] sm:$0xff] %vm27_vm0, %v10279_v16  ;;  %351 = vst.msk [vmem:[#allocation4 + $0x158] sm:$0xff] %vm27_vm0, %v10283_v20  ;;  %v10313_v58 = vld [vmem:[#allocation2 + $0x278] sm:$0xff]  ;;  %v10319_v60 = vld [vmem:[#allocation2 + $0x288] sm:$0xff] }
  0x5f   :  { %352 = vst.msk [vmem:[#allocation4 + $0x160] sm:$0xff] %vm27_vm0, %v10289_v24  ;;  %353 = vst.msk [vmem:[#allocation4 + $0x168] sm:$0xff] %vm27_vm0, %v10293_v28  ;;  %v10383_v0 = vld [vmem:[#allocation2 + $0x320] sm:$0xff] }
  0x60   :  { %550 = vrot.lane.b32.xlu1 %v397_v45, %s9625_s22  ;;  %552 = vrot.lane.b32.xlu0 %v398_v51, %s9625_s22  ;;  %354 = vst.msk [vmem:[#allocation4 + $0x170] sm:$0xff] %vm27_vm0, %v10299_v35  ;;  %355 = vst.msk [vmem:[#allocation4 + $0x178] sm:$0xff] %vm27_vm0, %v10303_v43  ;;  %v414_v45 = vld [vmem:[#allocation2 + $0x229] sm:$0xff] }
  0x61   :  { %v10309_v51 = vld [vmem:[#allocation2 + $0x270] sm:$0xff]  ;;  %357 = vst.msk [vmem:[#allocation4 + $0x188] sm:$0xff] %vm27_vm0, %v10313_v58  ;;  %358 = vst.msk [vmem:[#allocation4 + $0x190] sm:$0xff] %vm27_vm0, %v10319_v60 }
  0x62   :  { %356 = vst.msk [vmem:[#allocation4 + $0x180] sm:$0xff] %vm27_vm0, %v10309_v51  ;;  %16632 = vst [vmem:[#allocation10_spill] sm:$0xff] %v10383_v0 }
  0x63   :  { %371 = vst.msk [vmem:[#allocation4 + $0x1f8] sm:$0xff] %vm27_vm0, %v10383_v0  ;;  %v433_v0 = vld [vmem:[#allocation2 + $0x309] sm:$0xff] }
  0x64   :  { %554 = vrot.lane.b32.xlu1 %v399_v53, %s9625_s22  ;;  %556 = vrot.lane.b32.xlu0 %v400_v59, %s9625_s22  ;;  %v415_v53 = vld [vmem:[#allocation2 + $0x231] sm:$0xff]  ;;  %v416_v59 = vld [vmem:[#allocation2 + $0x241] sm:$0xff] }
  0x68   :  { %558 = vrot.lane.b32.xlu1 %v401_v61, %s9625_s22  ;;  %560 = vrot.lane.b32.xlu0 %v402_v1, %s9625_s22  ;;  %v417_v61 = vld [vmem:[#allocation2 + $0x249] sm:$0xff] }
  0x69   :  { %v10323_v1 = vld [vmem:[#allocation2 + $0x290] sm:$0xff] }
  0x6a   :  { %359 = vst.msk [vmem:[#allocation4 + $0x198] sm:$0xff] %vm27_vm0, %v10323_v1 }
  0x6c   :  { %562 = vrot.lane.b32.xlu1 %v403_v3, %s9625_s22  ;;  %564 = vrot.lane.b32.xlu0 %v404_v5, %s9625_s22  ;;  %v418_v3 = vld [vmem:[#allocation2 + $0x259] sm:$0xff] }
  0x6d   :  { %v10329_v5 = vld [vmem:[#allocation2 + $0x2a0] sm:$0xff] }
  0x6e   :  { %360 = vst.msk [vmem:[#allocation4 + $0x1a0] sm:$0xff] %vm27_vm0, %v10329_v5 }
  0x70   :  { %566 = vrot.lane.b32.xlu1 %v405_v7, %s9625_s22  ;;  %568 = vrot.lane.b32.xlu0 %v406_v9, %s9625_s22  ;;  %v419_v7 = vld [vmem:[#allocation2 + $0x261] sm:$0xff] }
  0x71   :  { %v10333_v9 = vld [vmem:[#allocation2 + $0x2a8] sm:$0xff] }
  0x72   :  { %361 = vst.msk [vmem:[#allocation4 + $0x1a8] sm:$0xff] %vm27_vm0, %v10333_v9 }
  0x74   :  { %570 = vrot.lane.b32.xlu1 %v407_v12, %s9625_s22  ;;  %572 = vrot.lane.b32.xlu0 %v408_v14, %s9625_s22  ;;  %v420_v12 = vld [vmem:[#allocation2 + $0x271] sm:$0xff] }
  0x75   :  { %v10339_v14 = vld [vmem:[#allocation2 + $0x2b8] sm:$0xff] }
  0x76   :  { %362 = vst.msk [vmem:[#allocation4 + $0x1b0] sm:$0xff] %vm27_vm0, %v10339_v14 }
  0x78   :  { %574 = vrot.lane.b32.xlu1 %v409_v17, %s9625_s22  ;;  %576 = vrot.lane.b32.xlu0 %v410_v21, %s9625_s22  ;;  %v421_v17 = vld [vmem:[#allocation2 + $0x279] sm:$0xff] }
  0x79   :  { %v10343_v21 = vld [vmem:[#allocation2 + $0x2c0] sm:$0xff] }
  0x7a   :  { %363 = vst.msk [vmem:[#allocation4 + $0x1b8] sm:$0xff] %vm27_vm0, %v10343_v21 }
  0x7c   :  { %578 = vrot.lane.b32.xlu1 %v411_v25, %s9625_s22  ;;  %580 = vrot.lane.b32.xlu0 %v412_v31, %s9625_s22  ;;  %v422_v25 = vld [vmem:[#allocation2 + $0x289] sm:$0xff] }
  0x7d   :  { %v10349_v31 = vld [vmem:[#allocation2 + $0x2d0] sm:$0xff] }
  0x7e   :  { %364 = vst.msk [vmem:[#allocation4 + $0x1c0] sm:$0xff] %vm27_vm0, %v10349_v31 }
  0x80   :  { %582 = vrot.lane.b32.xlu1 %v413_v37, %s9625_s22  ;;  %584 = vrot.lane.b32.xlu0 %v414_v45, %s9625_s22  ;;  %v423_v37 = vld [vmem:[#allocation2 + $0x291] sm:$0xff] }
  0x81   :  { %v10353_v45 = vld [vmem:[#allocation2 + $0x2d8] sm:$0xff] }
  0x82   :  { %365 = vst.msk [vmem:[#allocation4 + $0x1c8] sm:$0xff] %vm27_vm0, %v10353_v45 }
  0x84   :  { %586 = vrot.lane.b32.xlu1 %v415_v53, %s9625_s22  ;;  %588 = vrot.lane.b32.xlu0 %v416_v59, %s9625_s22  ;;  %v424_v53 = vld [vmem:[#allocation2 + $0x2a1] sm:$0xff] }
  0x85   :  { %v10359_v59 = vld [vmem:[#allocation2 + $0x2e8] sm:$0xff] }
  0x86   :  { %16627 = vst [vmem:[#allocation5_spill] sm:$0xff] %v10359_v59  ;;  %366 = vst.msk [vmem:[#allocation4 + $0x1d0] sm:$0xff] %vm27_vm0, %v10359_v59  ;;  %v435_v59 = vld [vmem:[#allocation2 + $0x321] sm:$0xff] }
  0x88   :  { %590 = vrot.lane.b32.xlu1 %v417_v61, %s9625_s22  ;;  %592 = vrot.lane.b32.xlu0 %v418_v3, %s9625_s22  ;;  %v425_v61 = vld [vmem:[#allocation2 + $0x2a9] sm:$0xff] }
  0x89   :  { %v10363_v3 = vld [vmem:[#allocation2 + $0x2f0] sm:$0xff] }
  0x8a   :  { %16628 = vst [vmem:[#allocation6_spill] sm:$0xff] %v10363_v3  ;;  %367 = vst.msk [vmem:[#allocation4 + $0x1d8] sm:$0xff] %vm27_vm0, %v10363_v3 }
  0x8c   :  { %594 = vrot.lane.b32.xlu1 %v419_v7, %s9625_s22  ;;  %596 = vrot.lane.b32.xlu0 %v420_v12, %s9625_s22  ;;  %v426_v7 = vld [vmem:[#allocation2 + $0x2b9] sm:$0xff] }
  0x8d   :  { %v10369_v12 = vld [vmem:[#allocation2 + $0x300] sm:$0xff] }
  0x8e   :  { %16629 = vst [vmem:[#allocation7_spill] sm:$0xff] %v10369_v12  ;;  %368 = vst.msk [vmem:[#allocation4 + $0x1e0] sm:$0xff] %vm27_vm0, %v10369_v12 }
  0x90   :  { %598 = vrot.lane.b32.xlu1 %v421_v17, %s9625_s22  ;;  %600 = vrot.lane.b32.xlu0 %v422_v25, %s9625_s22  ;;  %v427_v17 = vld [vmem:[#allocation2 + $0x2c1] sm:$0xff] }
  0x91   :  { %v10373_v25 = vld [vmem:[#allocation2 + $0x308] sm:$0xff] }
  0x92   :  { %16630 = vst [vmem:[#allocation8_spill] sm:$0xff] %v10373_v25  ;;  %369 = vst.msk [vmem:[#allocation4 + $0x1e8] sm:$0xff] %vm27_vm0, %v10373_v25  ;;  %v501_v25 = vpop.permute.xlu0 %500 }
  0x93   :  { %693 = vst.msk [vmem:[#allocation4] sm:$0xff] %vm692_vm3, %v501_v25  ;;  %v434_v25 = vld [vmem:[#allocation2 + $0x319] sm:$0xff] }
  0x94   :  { %602 = vrot.lane.b32.xlu1 %v423_v37, %s9625_s22  ;;  %604 = vrot.lane.b32.xlu0 %v424_v53, %s9625_s22  ;;  %v428_v37 = vld [vmem:[#allocation2 + $0x2d1] sm:$0xff] }
  0x95   :  { %v10379_v53 = vld [vmem:[#allocation2 + $0x318] sm:$0xff] }
  0x96   :  { %16631 = vst [vmem:[#allocation9_spill] sm:$0xff] %v10379_v53  ;;  %370 = vst.msk [vmem:[#allocation4 + $0x1f0] sm:$0xff] %vm27_vm0, %v10379_v53  ;;  %v432_v53 = vld [vmem:[#allocation2 + $0x301] sm:$0xff] }
  0x98   :  { %606 = vrot.lane.b32.xlu1 %v425_v61, %s9625_s22  ;;  %608 = vrot.lane.b32.xlu0 %v426_v7, %s9625_s22  ;;  %v429_v61 = vld [vmem:[#allocation2 + $0x2d9] sm:$0xff]  ;;  %v430_v7 = vld [vmem:[#allocation2 + $0x2e9] sm:$0xff] }
  0x9c   :  { %610 = vrot.lane.b32.xlu1 %v427_v17, %s9625_s22  ;;  %612 = vrot.lane.b32.xlu0 %v428_v37, %s9625_s22  ;;  %v431_v17 = vld [vmem:[#allocation2 + $0x2f1] sm:$0xff] }
  0x9f   :  { %v503_v3 = vpop.permute.xlu0 %502 }
  0xa0   :  { %614 = vrot.lane.b32.xlu1 %v429_v61, %s9625_s22  ;;  %616 = vrot.lane.b32.xlu0 %v430_v7, %s9625_s22  ;;  %694 = vst.msk [vmem:[#allocation4 + $0x8] sm:$0xff] %vm692_vm3, %v503_v3  ;;  %v757_v3 = vld [vmem:[#allocation2 + $0x2] sm:$0xff] }
  0xa2   :  { %v505_v12 = vpop.permute.xlu1 %504 }
  0xa3   :  { %695 = vst.msk [vmem:[#allocation4 + $0x10] sm:$0xff] %vm692_vm3, %v505_v12 }
  0xa4   :  { %618 = vrot.lane.b32.xlu1 %v431_v17, %s9625_s22  ;;  %620 = vrot.lane.b32.xlu0 %v432_v53, %s9625_s22  ;;  %v758_v17 = vld [vmem:[#allocation2 + $0xa] sm:$0xff] }
  0xa6   :  { %v507_v37 = vpop.permute.xlu1 %506  ;;  %v509_v61 = vpop.permute.xlu0 %508 }
  0xa7   :  { %696 = vst.msk [vmem:[#allocation4 + $0x18] sm:$0xff] %vm692_vm3, %v507_v37  ;;  %697 = vst.msk [vmem:[#allocation4 + $0x20] sm:$0xff] %vm692_vm3, %v509_v61  ;;  %v760_v61 = vld [vmem:[#allocation2 + $0x22] sm:$0xff] }
  0xa8   :  { %622 = vrot.lane.b32.xlu1 %v433_v0, %s9625_s22  ;;  %624 = vrot.lane.b32.xlu0 %v434_v25, %s9625_s22  ;;  %v759_v0 = vld [vmem:[#allocation2 + $0x1a] sm:$0xff] }
  0xaa   :  { %v511_v12 = vpop.permute.xlu1 %510  ;;  %v513_v7 = vpop.permute.xlu0 %512 }
  0xab   :  { %698 = vst.msk [vmem:[#allocation4 + $0x28] sm:$0xff] %vm692_vm3, %v511_v12  ;;  %699 = vst.msk [vmem:[#allocation4 + $0x30] sm:$0xff] %vm692_vm3, %v513_v7  ;;  %v762_v7 = vld [vmem:[#allocation2 + $0x3a] sm:$0xff] }
  0xac   :  { %626 = vrot.lane.b32.xlu1 %v435_v59, %s9625_s22  ;;  %885 = vrot.lane.b32.xlu0 %v757_v3, %s9626_s10  ;;  %v761_v59 = vld [vmem:[#allocation2 + $0x32] sm:$0xff] }
  0xae   :  { %v515_v53 = vpop.permute.xlu1 %514  ;;  %v517_v37 = vpop.permute.xlu0 %516 }
  0xaf   :  { %700 = vst.msk [vmem:[#allocation4 + $0x38] sm:$0xff] %vm692_vm3, %v515_v53  ;;  %701 = vst.msk [vmem:[#allocation4 + $0x40] sm:$0xff] %vm692_vm3, %v517_v37  ;;  %v764_v37 = vld [vmem:[#allocation2 + $0x52] sm:$0xff] }
  0xb0   :  { %887 = vrot.lane.b32.xlu1 %v758_v17, %s9626_s10  ;;  %889 = vrot.lane.b32.xlu0 %v759_v0, %s9626_s10  ;;  %v763_v17 = vld [vmem:[#allocation2 + $0x4a] sm:$0xff] }
  0xb2   :  { %v519_v25 = vpop.permute.xlu1 %518  ;;  %v521_v12 = vpop.permute.xlu0 %520 }
  0xb3   :  { %702 = vst.msk [vmem:[#allocation4 + $0x48] sm:$0xff] %vm692_vm3, %v519_v25  ;;  %703 = vst.msk [vmem:[#allocation4 + $0x50] sm:$0xff] %vm692_vm3, %v521_v12  ;;  %v766_v12 = vld [vmem:[#allocation2 + $0x6a] sm:$0xff] }
  0xb4   :  { %891 = vrot.lane.b32.xlu1 %v760_v61, %s9626_s10  ;;  %893 = vrot.lane.b32.xlu0 %v761_v59, %s9626_s10  ;;  %v765_v61 = vld [vmem:[#allocation2 + $0x62] sm:$0xff] }
  0xb6   :  { %v523_v3 = vpop.permute.xlu1 %522  ;;  %v525_v53 = vpop.permute.xlu0 %524 }
  0xb7   :  { %704 = vst.msk [vmem:[#allocation4 + $0x58] sm:$0xff] %vm692_vm3, %v523_v3  ;;  %705 = vst.msk [vmem:[#allocation4 + $0x60] sm:$0xff] %vm692_vm3, %v525_v53  ;;  %v768_v53 = vld [vmem:[#allocation2 + $0x82] sm:$0xff] }
  0xb8   :  { %895 = vrot.lane.b32.xlu1 %v762_v7, %s9626_s10  ;;  %897 = vrot.lane.b32.xlu0 %v763_v17, %s9626_s10  ;;  %v767_v7 = vld [vmem:[#allocation2 + $0x7a] sm:$0xff] }
  0xba   :  { %v527_v0 = vpop.permute.xlu1 %526  ;;  %v529_v25 = vpop.permute.xlu0 %528 }
  0xbb   :  { %706 = vst.msk [vmem:[#allocation4 + $0x68] sm:$0xff] %vm692_vm3, %v527_v0  ;;  %707 = vst.msk [vmem:[#allocation4 + $0x70] sm:$0xff] %vm692_vm3, %v529_v25  ;;  %v770_v25 = vld [vmem:[#allocation2 + $0x9a] sm:$0xff] }
  0xbc   :  { %899 = vrot.lane.b32.xlu1 %v764_v37, %s9626_s10  ;;  %901 = vrot.lane.b32.xlu0 %v765_v61, %s9626_s10  ;;  %v769_v37 = vld [vmem:[#allocation2 + $0x92] sm:$0xff] }
  0xbe   :  { %v531_v59 = vpop.permute.xlu1 %530  ;;  %v533_v3 = vpop.permute.xlu0 %532 }
  0xbf   :  { %708 = vst.msk [vmem:[#allocation4 + $0x78] sm:$0xff] %vm692_vm3, %v531_v59  ;;  %709 = vst.msk [vmem:[#allocation4 + $0x80] sm:$0xff] %vm692_vm3, %v533_v3  ;;  %v772_v3 = vld [vmem:[#allocation2 + $0xb2] sm:$0xff] }
  0xc0   :  { %903 = vrot.lane.b32.xlu1 %v766_v12, %s9626_s10  ;;  %905 = vrot.lane.b32.xlu0 %v767_v7, %s9626_s10  ;;  %v771_v12 = vld [vmem:[#allocation2 + $0xaa] sm:$0xff] }
  0xc2   :  { %v535_v17 = vpop.permute.xlu1 %534  ;;  %v537_v0 = vpop.permute.xlu0 %536 }
  0xc3   :  { %710 = vst.msk [vmem:[#allocation4 + $0x88] sm:$0xff] %vm692_vm3, %v535_v17  ;;  %711 = vst.msk [vmem:[#allocation4 + $0x90] sm:$0xff] %vm692_vm3, %v537_v0  ;;  %v774_v0 = vld [vmem:[#allocation2 + $0xca] sm:$0xff] }
  0xc4   :  { %907 = vrot.lane.b32.xlu1 %v768_v53, %s9626_s10  ;;  %909 = vrot.lane.b32.xlu0 %v769_v37, %s9626_s10  ;;  %v773_v53 = vld [vmem:[#allocation2 + $0xc2] sm:$0xff] }
  0xc6   :  { %v539_v61 = vpop.permute.xlu1 %538  ;;  %v541_v59 = vpop.permute.xlu0 %540 }
  0xc7   :  { %712 = vst.msk [vmem:[#allocation4 + $0x98] sm:$0xff] %vm692_vm3, %v539_v61  ;;  %713 = vst.msk [vmem:[#allocation4 + $0xa0] sm:$0xff] %vm692_vm3, %v541_v59  ;;  %v776_v59 = vld [vmem:[#allocation2 + $0xe2] sm:$0xff] }
  0xc8   :  { %911 = vrot.lane.b32.xlu1 %v770_v25, %s9626_s10  ;;  %913 = vrot.lane.b32.xlu0 %v771_v12, %s9626_s10  ;;  %v775_v25 = vld [vmem:[#allocation2 + $0xda] sm:$0xff] }
  0xca   :  { %v543_v7 = vpop.permute.xlu1 %542  ;;  %v545_v17 = vpop.permute.xlu0 %544 }
  0xcb   :  { %714 = vst.msk [vmem:[#allocation4 + $0xa8] sm:$0xff] %vm692_vm3, %v543_v7  ;;  %715 = vst.msk [vmem:[#allocation4 + $0xb0] sm:$0xff] %vm692_vm3, %v545_v17  ;;  %v778_v17 = vld [vmem:[#allocation2 + $0xfa] sm:$0xff] }
  0xcc   :  { %915 = vrot.lane.b32.xlu1 %v772_v3, %s9626_s10  ;;  %917 = vrot.lane.b32.xlu0 %v773_v53, %s9626_s10  ;;  %v777_v3 = vld [vmem:[#allocation2 + $0xf2] sm:$0xff] }
  0xce   :  { %v547_v37 = vpop.permute.xlu1 %546  ;;  %v549_v61 = vpop.permute.xlu0 %548 }
  0xcf   :  { %716 = vst.msk [vmem:[#allocation4 + $0xb8] sm:$0xff] %vm692_vm3, %v547_v37  ;;  %717 = vst.msk [vmem:[#allocation4 + $0xc0] sm:$0xff] %vm692_vm3, %v549_v61  ;;  %v780_v61 = vld [vmem:[#allocation2 + $0x112] sm:$0xff] }
  0xd0   :  { %919 = vrot.lane.b32.xlu1 %v774_v0, %s9626_s10  ;;  %921 = vrot.lane.b32.xlu0 %v775_v25, %s9626_s10  ;;  %v779_v0 = vld [vmem:[#allocation2 + $0x10a] sm:$0xff] }
  0xd2   :  { %v551_v12 = vpop.permute.xlu1 %550  ;;  %v553_v7 = vpop.permute.xlu0 %552 }
  0xd3   :  { %718 = vst.msk [vmem:[#allocation4 + $0xc8] sm:$0xff] %vm692_vm3, %v551_v12  ;;  %719 = vst.msk [vmem:[#allocation4 + $0xd0] sm:$0xff] %vm692_vm3, %v553_v7  ;;  %v782_v7 = vld [vmem:[#allocation2 + $0x12a] sm:$0xff] }
  0xd4   :  { %923 = vrot.lane.b32.xlu1 %v776_v59, %s9626_s10  ;;  %925 = vrot.lane.b32.xlu0 %v777_v3, %s9626_s10  ;;  %v781_v59 = vld [vmem:[#allocation2 + $0x122] sm:$0xff] }
  0xd6   :  { %v555_v53 = vpop.permute.xlu1 %554  ;;  %v557_v37 = vpop.permute.xlu0 %556 }
  0xd7   :  { %720 = vst.msk [vmem:[#allocation4 + $0xd8] sm:$0xff] %vm692_vm3, %v555_v53  ;;  %721 = vst.msk [vmem:[#allocation4 + $0xe0] sm:$0xff] %vm692_vm3, %v557_v37  ;;  %v784_v37 = vld [vmem:[#allocation2 + $0x142] sm:$0xff] }
  0xd8   :  { %927 = vrot.lane.b32.xlu1 %v778_v17, %s9626_s10  ;;  %929 = vrot.lane.b32.xlu0 %v779_v0, %s9626_s10  ;;  %v783_v17 = vld [vmem:[#allocation2 + $0x13a] sm:$0xff] }
  0xda   :  { %v559_v25 = vpop.permute.xlu1 %558  ;;  %v561_v12 = vpop.permute.xlu0 %560 }
  0xdb   :  { %722 = vst.msk [vmem:[#allocation4 + $0xe8] sm:$0xff] %vm692_vm3, %v559_v25  ;;  %723 = vst.msk [vmem:[#allocation4 + $0xf0] sm:$0xff] %vm692_vm3, %v561_v12  ;;  %v146_v25 = vld [vmem:[%s16530_s0 + $0xf8] sm:$0xff] }
  0xdc   :  { %931 = vrot.lane.b32.xlu1 %v780_v61, %s9626_s10  ;;  %933 = vrot.lane.b32.xlu0 %v781_v59, %s9626_s10  ;;  %v145_v61 = vld [vmem:[%s16530_s0 + $0xf0] sm:$0xff]  ;;  %211 = vst.msk [vmem:[#allocation2 + $0x189] sm:$0xff] %vm27_vm0, %v146_v25 }
  0xdd   :  { %v785_v59 = vld [vmem:[#allocation2 + $0x152] sm:$0xff]  ;;  %210 = vst.msk [vmem:[#allocation2 + $0x181] sm:$0xff] %vm27_vm0, %v145_v61 }
  0xde   :  { %v563_v3 = vpop.permute.xlu1 %562  ;;  %v565_v53 = vpop.permute.xlu0 %564  ;;  %v789_v61 = vld [vmem:[#allocation2 + $0x1b2] sm:$0xff] }
  0xdf   :  { %724 = vst.msk [vmem:[#allocation4 + $0xf8] sm:$0xff] %vm692_vm3, %v563_v3  ;;  %725 = vst.msk [vmem:[#allocation4 + $0x100] sm:$0xff] %vm692_vm3, %v565_v53 }
  0xe0   :  { %935 = vrot.lane.b32.xlu1 %v782_v7, %s9626_s10  ;;  %937 = vrot.lane.b32.xlu0 %v783_v17, %s9626_s10  ;;  %v786_v7 = vld [vmem:[#allocation2 + $0x15a] sm:$0xff]  ;;  %v787_v17 = vld [vmem:[#allocation2 + $0x16a] sm:$0xff] }
  0xe2   :  { %v567_v0 = vpop.permute.xlu1 %566  ;;  %v569_v12 = vpop.permute.xlu0 %568 }
  0xe3   :  { %726 = vst.msk [vmem:[#allocation4 + $0x108] sm:$0xff] %vm692_vm3, %v567_v0  ;;  %727 = vst.msk [vmem:[#allocation4 + $0x110] sm:$0xff] %vm692_vm3, %v569_v12  ;;  %v788_v0 = vld [vmem:[#allocation2 + $0x172] sm:$0xff]  ;;  %v790_v12 = vld [vmem:[#allocation2 + $0x1ba] sm:$0xff] }
  0xe4   :  { %939 = vrot.lane.b32.xlu1 %v784_v37, %s9626_s10  ;;  %941 = vrot.lane.b32.xlu0 %v785_v59, %s9626_s10 }
  0xe6   :  { %v571_v3 = vpop.permute.xlu1 %570  ;;  %v573_v53 = vpop.permute.xlu0 %572 }
  0xe7   :  { %728 = vst.msk [vmem:[#allocation4 + $0x118] sm:$0xff] %vm692_vm3, %v571_v3  ;;  %729 = vst.msk [vmem:[#allocation4 + $0x120] sm:$0xff] %vm692_vm3, %v573_v53  ;;  %v792_v53 = vld [vmem:[#allocation2 + $0x1d2] sm:$0xff] }
  0xe8   :  { %943 = vrot.lane.b32.xlu1 %v786_v7, %s9626_s10  ;;  %945 = vrot.lane.b32.xlu0 %v787_v17, %s9626_s10  ;;  %v791_v7 = vld [vmem:[#allocation2 + $0x1ca] sm:$0xff] }
  0xea   :  { %v575_v37 = vpop.permute.xlu1 %574  ;;  %v577_v25 = vpop.permute.xlu0 %576 }
  0xeb   :  { %730 = vst.msk [vmem:[#allocation4 + $0x128] sm:$0xff] %vm692_vm3, %v575_v37  ;;  %731 = vst.msk [vmem:[#allocation4 + $0x130] sm:$0xff] %vm692_vm3, %v577_v25  ;;  %v794_v25 = vld [vmem:[#allocation2 + $0x1ea] sm:$0xff] }
  0xec   :  { %947 = vrot.lane.b32.xlu1 %v788_v0, %s9626_s10  ;;  %949 = vrot.lane.b32.xlu0 %v789_v61, %s9626_s10  ;;  %v793_v0 = vld [vmem:[#allocation2 + $0x1e2] sm:$0xff] }
  0xee   :  { %v579_v59 = vpop.permute.xlu1 %578  ;;  %v581_v3 = vpop.permute.xlu0 %580 }
  0xef   :  { %732 = vst.msk [vmem:[#allocation4 + $0x138] sm:$0xff] %vm692_vm3, %v579_v59  ;;  %733 = vst.msk [vmem:[#allocation4 + $0x140] sm:$0xff] %vm692_vm3, %v581_v3  ;;  %v796_v3 = vld [vmem:[#allocation2 + $0x202] sm:$0xff] }
  0xf0   :  { %951 = vrot.lane.b32.xlu1 %v790_v12, %s9626_s10  ;;  %953 = vrot.lane.b32.xlu0 %v791_v7, %s9626_s10  ;;  %v795_v12 = vld [vmem:[#allocation2 + $0x1fa] sm:$0xff] }
  0xf2   :  { %v583_v17 = vpop.permute.xlu1 %582  ;;  %v585_v37 = vpop.permute.xlu0 %584 }
  0xf3   :  { %734 = vst.msk [vmem:[#allocation4 + $0x148] sm:$0xff] %vm692_vm3, %v583_v17  ;;  %735 = vst.msk [vmem:[#allocation4 + $0x150] sm:$0xff] %vm692_vm3, %v585_v37  ;;  %v798_v37 = vld [vmem:[#allocation2 + $0x21a] sm:$0xff] }
  0xf4   :  { %955 = vrot.lane.b32.xlu1 %v792_v53, %s9626_s10  ;;  %957 = vrot.lane.b32.xlu0 %v793_v0, %s9626_s10  ;;  %v797_v53 = vld [vmem:[#allocation2 + $0x212] sm:$0xff] }
  0xf6   :  { %v587_v61 = vpop.permute.xlu1 %586  ;;  %v589_v59 = vpop.permute.xlu0 %588 }
  0xf7   :  { %736 = vst.msk [vmem:[#allocation4 + $0x158] sm:$0xff] %vm692_vm3, %v587_v61  ;;  %737 = vst.msk [vmem:[#allocation4 + $0x160] sm:$0xff] %vm692_vm3, %v589_v59  ;;  %v800_v59 = vld [vmem:[#allocation2 + $0x232] sm:$0xff] }
  0xf8   :  { %959 = vrot.lane.b32.xlu1 %v794_v25, %s9626_s10  ;;  %961 = vrot.lane.b32.xlu0 %v795_v12, %s9626_s10  ;;  %v799_v25 = vld [vmem:[#allocation2 + $0x22a] sm:$0xff] }
  0xfa   :  { %v591_v7 = vpop.permute.xlu1 %590  ;;  %v593_v17 = vpop.permute.xlu0 %592 }
  0xfb   :  { %738 = vst.msk [vmem:[#allocation4 + $0x168] sm:$0xff] %vm692_vm3, %v591_v7  ;;  %739 = vst.msk [vmem:[#allocation4 + $0x170] sm:$0xff] %vm692_vm3, %v593_v17  ;;  %v802_v17 = vld [vmem:[#allocation2 + $0x24a] sm:$0xff] }
  0xfc   :  { %963 = vrot.lane.b32.xlu1 %v796_v3, %s9626_s10  ;;  %965 = vrot.lane.b32.xlu0 %v797_v53, %s9626_s10  ;;  %v801_v3 = vld [vmem:[#allocation2 + $0x242] sm:$0xff] }
  0xfe   :  { %v595_v0 = vpop.permute.xlu1 %594  ;;  %v597_v61 = vpop.permute.xlu0 %596 }
  0xff   :  { %740 = vst.msk [vmem:[#allocation4 + $0x178] sm:$0xff] %vm692_vm3, %v595_v0  ;;  %741 = vst.msk [vmem:[#allocation4 + $0x180] sm:$0xff] %vm692_vm3, %v597_v61  ;;  %v804_v61 = vld [vmem:[#allocation2 + $0x262] sm:$0xff] }
 0x100   :  { %967 = vrot.lane.b32.xlu1 %v798_v37, %s9626_s10  ;;  %969 = vrot.lane.b32.xlu0 %v799_v25, %s9626_s10  ;;  %v803_v37 = vld [vmem:[#allocation2 + $0x25a] sm:$0xff] }
 0x102   :  { %v599_v12 = vpop.permute.xlu1 %598  ;;  %v601_v7 = vpop.permute.xlu0 %600 }
 0x103   :  { %742 = vst.msk [vmem:[#allocation4 + $0x188] sm:$0xff] %vm692_vm3, %v599_v12  ;;  %743 = vst.msk [vmem:[#allocation4 + $0x190] sm:$0xff] %vm692_vm3, %v601_v7  ;;  %v806_v7 = vld [vmem:[#allocation2 + $0x27a] sm:$0xff] }
 0x104   :  { %971 = vrot.lane.b32.xlu1 %v800_v59, %s9626_s10  ;;  %973 = vrot.lane.b32.xlu0 %v801_v3, %s9626_s10  ;;  %v805_v59 = vld [vmem:[#allocation2 + $0x272] sm:$0xff] }
 0x106   :  { %v603_v53 = vpop.permute.xlu1 %602  ;;  %v605_v0 = vpop.permute.xlu0 %604 }
 0x107   :  { %744 = vst.msk [vmem:[#allocation4 + $0x198] sm:$0xff] %vm692_vm3, %v603_v53  ;;  %745 = vst.msk [vmem:[#allocation4 + $0x1a0] sm:$0xff] %vm692_vm3, %v605_v0  ;;  %v808_v0 = vld [vmem:[#allocation2 + $0x292] sm:$0xff] }
 0x108   :  { %975 = vrot.lane.b32.xlu1 %v802_v17, %s9626_s10  ;;  %977 = vrot.lane.b32.xlu0 %v803_v37, %s9626_s10  ;;  %v807_v17 = vld [vmem:[#allocation2 + $0x28a] sm:$0xff] }
 0x10a   :  { %v607_v25 = vpop.permute.xlu1 %606  ;;  %v609_v12 = vpop.permute.xlu0 %608 }
 0x10b   :  { %746 = vst.msk [vmem:[#allocation4 + $0x1a8] sm:$0xff] %vm692_vm3, %v607_v25  ;;  %747 = vst.msk [vmem:[#allocation4 + $0x1b0] sm:$0xff] %vm692_vm3, %v609_v12  ;;  %v810_v12 = vld [vmem:[#allocation2 + $0x2aa] sm:$0xff] }
 0x10c   :  { %979 = vrot.lane.b32.xlu1 %v804_v61, %s9626_s10  ;;  %981 = vrot.lane.b32.xlu0 %v805_v59, %s9626_s10  ;;  %v809_v61 = vld [vmem:[#allocation2 + $0x2a2] sm:$0xff] }
 0x10e   :  { %v611_v3 = vpop.permute.xlu1 %610  ;;  %v613_v53 = vpop.permute.xlu0 %612 }
 0x10f   :  { %748 = vst.msk [vmem:[#allocation4 + $0x1b8] sm:$0xff] %vm692_vm3, %v611_v3  ;;  %749 = vst.msk [vmem:[#allocation4 + $0x1c0] sm:$0xff] %vm692_vm3, %v613_v53  ;;  %v812_v53 = vld [vmem:[#allocation2 + $0x2c2] sm:$0xff] }
 0x110   :  { %983 = vrot.lane.b32.xlu1 %v806_v7, %s9626_s10  ;;  %985 = vrot.lane.b32.xlu0 %v807_v17, %s9626_s10  ;;  %v811_v7 = vld [vmem:[#allocation2 + $0x2ba] sm:$0xff] }
 0x112   :  { %v615_v37 = vpop.permute.xlu1 %614  ;;  %v617_v25 = vpop.permute.xlu0 %616 }
 0x113   :  { %750 = vst.msk [vmem:[#allocation4 + $0x1c8] sm:$0xff] %vm692_vm3, %v615_v37  ;;  %751 = vst.msk [vmem:[#allocation4 + $0x1d0] sm:$0xff] %vm692_vm3, %v617_v25  ;;  %v814_v25 = vld [vmem:[#allocation2 + $0x2da] sm:$0xff] }
 0x114   :  { %987 = vrot.lane.b32.xlu1 %v808_v0, %s9626_s10  ;;  %989 = vrot.lane.b32.xlu0 %v809_v61, %s9626_s10  ;;  %v813_v0 = vld [vmem:[#allocation2 + $0x2d2] sm:$0xff] }
 0x116   :  { %v619_v59 = vpop.permute.xlu1 %618  ;;  %v621_v3 = vpop.permute.xlu0 %620 }
 0x117   :  { %752 = vst.msk [vmem:[#allocation4 + $0x1d8] sm:$0xff] %vm692_vm3, %v619_v59  ;;  %753 = vst.msk [vmem:[#allocation4 + $0x1e0] sm:$0xff] %vm692_vm3, %v621_v3  ;;  %v816_v3 = vld [vmem:[#allocation2 + $0x2f2] sm:$0xff] }
 0x118   :  { %991 = vrot.lane.b32.xlu1 %v810_v12, %s9626_s10  ;;  %993 = vrot.lane.b32.xlu0 %v811_v7, %s9626_s10  ;;  %v815_v12 = vld [vmem:[#allocation2 + $0x2ea] sm:$0xff] }
 0x11a   :  { %v623_v17 = vpop.permute.xlu1 %622  ;;  %v625_v37 = vpop.permute.xlu0 %624 }
 0x11b   :  { %754 = vst.msk [vmem:[#allocation4 + $0x1e8] sm:$0xff] %vm692_vm3, %v623_v17  ;;  %755 = vst.msk [vmem:[#allocation4 + $0x1f0] sm:$0xff] %vm692_vm3, %v625_v37  ;;  %v178_v17 = vld [vmem:[%s16530_s0 + $0x1f8] sm:$0xff] }
 0x11c   :  { %995 = vrot.lane.b32.xlu1 %v812_v53, %s9626_s10  ;;  %997 = vrot.lane.b32.xlu0 %v813_v0, %s9626_s10  ;;  %v177_v53 = vld [vmem:[%s16530_s0 + $0x1f0] sm:$0xff]  ;;  %v817_v0 = vld [vmem:[#allocation2 + $0x302] sm:$0xff]  ;;  %243 = vst.msk [vmem:[#allocation2 + $0x339] sm:$0xff] %vm27_vm0, %v178_v17  ;;  %s9627_s0 = smov 36  }
 0x11d   :  { %242 = vst.msk [vmem:[#allocation2 + $0x331] sm:$0xff] %vm27_vm0, %v177_v53  ;;  %vm5264_vm0 = vcmask 130112  }
 0x11e   :  { %v627_v61 = vpop.permute.xlu1 %626  ;;  %v886_v59 = vpop.permute.xlu0 %885 }
 0x11f   :  { %756 = vst.msk [vmem:[#allocation4 + $0x1f8] sm:$0xff] %vm692_vm3, %v627_v61  ;;  %vm8254_vm3 = vcmask 1043456  }
 0x120   :  { %999 = vrot.lane.b32.xlu1 %v814_v25, %s9626_s10  ;;  %1078 = vst.msk [vmem:[#allocation4] sm:$0xff] %vm1077_vm4, %v886_v59  ;;  %1001 = vrot.lane.b32.xlu0 %v815_v12, %s9626_s10  ;;  %v818_v25 = vld [vmem:[#allocation2 + $0x30a] sm:$0xff]  ;;  %v819_v12 = vld [vmem:[#allocation2 + $0x31a] sm:$0xff] }
 0x122   :  { %v888_v7 = vpop.permute.xlu1 %887  ;;  %v890_v37 = vpop.permute.xlu0 %889 }
 0x123   :  { %1079 = vst.msk [vmem:[#allocation4 + $0x8] sm:$0xff] %vm1077_vm4, %v888_v7  ;;  %1080 = vst.msk [vmem:[#allocation4 + $0x10] sm:$0xff] %vm1077_vm4, %v890_v37  ;;  %v820_v7 = vld [vmem:[#allocation2 + $0x322] sm:$0xff] }
 0x124   :  { %1003 = vrot.lane.b32.xlu1 %v816_v3, %s9626_s10  ;;  %1005 = vrot.lane.b32.xlu0 %v817_v0, %s9626_s10 }
 0x126   :  { %v892_v61 = vpop.permute.xlu1 %891  ;;  %v894_v59 = vpop.permute.xlu0 %893 }
 0x127   :  { %1081 = vst.msk [vmem:[#allocation4 + $0x18] sm:$0xff] %vm1077_vm4, %v892_v61  ;;  %1082 = vst.msk [vmem:[#allocation4 + $0x20] sm:$0xff] %vm1077_vm4, %v894_v59 }
 0x128   :  { %1007 = vrot.lane.b32.xlu1 %v818_v25, %s9626_s10  ;;  %1009 = vrot.lane.b32.xlu0 %v819_v12, %s9626_s10  ;;  %v1173_v12 = vld [vmem:[#allocation2 + $0x188] sm:$0xff] }
 0x12a   :  { %v896_v3 = vpop.permute.xlu1 %895  ;;  %v898_v53 = vpop.permute.xlu0 %897 }
 0x12b   :  { %1083 = vst.msk [vmem:[#allocation4 + $0x28] sm:$0xff] %vm1077_vm4, %v896_v3  ;;  %1084 = vst.msk [vmem:[#allocation4 + $0x30] sm:$0xff] %vm1077_vm4, %v898_v53 }
 0x12c   :  { %1011 = vrot.lane.b32.xlu1 %v820_v7, %s9626_s10  ;;  %1270 = vrot.lane.b32.xlu0 %v10078_v10, %s9627_s0 }
 0x12e   :  { %v900_v17 = vpop.permute.xlu1 %899  ;;  %v902_v0 = vpop.permute.xlu0 %901 }
 0x12f   :  { %1085 = vst.msk [vmem:[#allocation4 + $0x38] sm:$0xff] %vm1077_vm4, %v900_v17  ;;  %1086 = vst.msk [vmem:[#allocation4 + $0x40] sm:$0xff] %vm1077_vm4, %v902_v0  ;;  %v16636_v17 = vld [vmem:[#allocation8_spill] sm:$0xff] }
 0x130   :  { %1272 = vrot.lane.b32.xlu1 %v10091_v15, %s9627_s0  ;;  %1274 = vrot.lane.b32.xlu0 %v10104_v18, %s9627_s0 }
 0x132   :  { %v904_v37 = vpop.permute.xlu1 %903  ;;  %v906_v25 = vpop.permute.xlu0 %905 }
 0x133   :  { %1087 = vst.msk [vmem:[#allocation4 + $0x48] sm:$0xff] %vm1077_vm4, %v904_v37  ;;  %1088 = vst.msk [vmem:[#allocation4 + $0x50] sm:$0xff] %vm1077_vm4, %v906_v25  ;;  %v16637_v25 = vld [vmem:[#allocation9_spill] sm:$0xff] }
 0x134   :  { %1276 = vrot.lane.b32.xlu1 %v10106_v19, %s9627_s0  ;;  %1278 = vrot.lane.b32.xlu0 %v10119_v22, %s9627_s0 }
 0x136   :  { %v908_v61 = vpop.permute.xlu1 %907  ;;  %v910_v10 = vpop.permute.xlu0 %909 }
 0x137   :  { %1089 = vst.msk [vmem:[#allocation4 + $0x58] sm:$0xff] %vm1077_vm4, %v908_v61  ;;  %1090 = vst.msk [vmem:[#allocation4 + $0x60] sm:$0xff] %vm1077_vm4, %v910_v10  ;;  %v16638_v61 = vld [vmem:[#allocation10_spill] sm:$0xff]  ;;  %v1204_v10 = vld [vmem:[#allocation2 + $0x330] sm:$0xff] }
 0x138   :  { %1280 = vrot.lane.b32.xlu1 %v10125_v23, %s9627_s0  ;;  %1282 = vrot.lane.b32.xlu0 %v10131_v26, %s9627_s0 }
 0x13a   :  { %v912_v15 = vpop.permute.xlu1 %911  ;;  %v914_v18 = vpop.permute.xlu0 %913 }
 0x13b   :  { %1091 = vst.msk [vmem:[#allocation4 + $0x68] sm:$0xff] %vm1077_vm4, %v912_v15  ;;  %1092 = vst.msk [vmem:[#allocation4 + $0x70] sm:$0xff] %vm1077_vm4, %v914_v18  ;;  %v1205_v18 = vld [vmem:[#allocation2 + $0x338] sm:$0xff] }
 0x13c   :  { %1284 = vrot.lane.b32.xlu1 %v10135_v27, %s9627_s0  ;;  %1286 = vrot.lane.b32.xlu0 %v10141_v29, %s9627_s0 }
 0x13e   :  { %v916_v19 = vpop.permute.xlu1 %915  ;;  %v918_v22 = vpop.permute.xlu0 %917 }
 0x13f   :  { %1093 = vst.msk [vmem:[#allocation4 + $0x78] sm:$0xff] %vm1077_vm4, %v916_v19  ;;  %1094 = vst.msk [vmem:[#allocation4 + $0x80] sm:$0xff] %vm1077_vm4, %v918_v22  ;;  %v1527_v22 = vld [vmem:[#allocation2 + $0x19] sm:$0xff] }
 0x140   :  { %1288 = vrot.lane.b32.xlu1 %v10143_v30, %s9627_s0  ;;  %1290 = vrot.lane.b32.xlu0 %v10149_v32, %s9627_s0 }
 0x142   :  { %v920_v23 = vpop.permute.xlu1 %919  ;;  %v922_v26 = vpop.permute.xlu0 %921 }
 0x143   :  { %1095 = vst.msk [vmem:[#allocation4 + $0x88] sm:$0xff] %vm1077_vm4, %v920_v23  ;;  %1096 = vst.msk [vmem:[#allocation4 + $0x90] sm:$0xff] %vm1077_vm4, %v922_v26  ;;  %v1528_v26 = vld [vmem:[#allocation2 + $0x21] sm:$0xff] }
 0x144   :  { %1292 = vrot.lane.b32.xlu1 %v10151_v33, %s9627_s0  ;;  %1294 = vrot.lane.b32.xlu0 %v10158_v34, %s9627_s0 }
 0x146   :  { %v924_v27 = vpop.permute.xlu1 %923  ;;  %v926_v29 = vpop.permute.xlu0 %925 }
 0x147   :  { %1097 = vst.msk [vmem:[#allocation4 + $0x98] sm:$0xff] %vm1077_vm4, %v924_v27  ;;  %1098 = vst.msk [vmem:[#allocation4 + $0xa0] sm:$0xff] %vm1077_vm4, %v926_v29  ;;  %v1529_v29 = vld [vmem:[#allocation2 + $0x31] sm:$0xff] }
 0x148   :  { %1296 = vrot.lane.b32.xlu1 %v10163_v36, %s9627_s0  ;;  %1298 = vrot.lane.b32.xlu0 %v10167_v38, %s9627_s0 }
 0x14a   :  { %v928_v30 = vpop.permute.xlu1 %927  ;;  %v930_v32 = vpop.permute.xlu0 %929 }
 0x14b   :  { %1099 = vst.msk [vmem:[#allocation4 + $0xa8] sm:$0xff] %vm1077_vm4, %v928_v30  ;;  %1100 = vst.msk [vmem:[#allocation4 + $0xb0] sm:$0xff] %vm1077_vm4, %v930_v32  ;;  %v1530_v32 = vld [vmem:[#allocation2 + $0x39] sm:$0xff] }
 0x14c   :  { %1300 = vrot.lane.b32.xlu1 %v10169_v39, %s9627_s0  ;;  %1302 = vrot.lane.b32.xlu0 %v10175_v40, %s9627_s0 }
 0x14e   :  { %v932_v33 = vpop.permute.xlu1 %931  ;;  %v934_v34 = vpop.permute.xlu0 %933 }
 0x14f   :  { %1101 = vst.msk [vmem:[#allocation4 + $0xb8] sm:$0xff] %vm1077_vm4, %v932_v33  ;;  %1102 = vst.msk [vmem:[#allocation4 + $0xc0] sm:$0xff] %vm1077_vm4, %v934_v34  ;;  %v1531_v34 = vld [vmem:[#allocation2 + $0x49] sm:$0xff] }
 0x150   :  { %1304 = vrot.lane.b32.xlu1 %v10177_v41, %s9627_s0  ;;  %1306 = vrot.lane.b32.xlu0 %v10184_v42, %s9627_s0 }
 0x152   :  { %v936_v36 = vpop.permute.xlu1 %935  ;;  %v938_v38 = vpop.permute.xlu0 %937 }
 0x153   :  { %1103 = vst.msk [vmem:[#allocation4 + $0xc8] sm:$0xff] %vm1077_vm4, %v936_v36  ;;  %1104 = vst.msk [vmem:[#allocation4 + $0xd0] sm:$0xff] %vm1077_vm4, %v938_v38  ;;  %v1532_v38 = vld [vmem:[#allocation2 + $0x51] sm:$0xff] }
 0x154   :  { %1308 = vrot.lane.b32.xlu1 %v10189_v44, %s9627_s0  ;;  %1310 = vrot.lane.b32.xlu0 %v10193_v46, %s9627_s0 }
 0x156   :  { %v940_v39 = vpop.permute.xlu1 %939  ;;  %v942_v40 = vpop.permute.xlu0 %941 }
 0x157   :  { %1105 = vst.msk [vmem:[#allocation4 + $0xd8] sm:$0xff] %vm1077_vm4, %v940_v39  ;;  %1106 = vst.msk [vmem:[#allocation4 + $0xe0] sm:$0xff] %vm1077_vm4, %v942_v40  ;;  %v1533_v40 = vld [vmem:[#allocation2 + $0x61] sm:$0xff] }
 0x158   :  { %1312 = vrot.lane.b32.xlu1 %v10195_v47, %s9627_s0  ;;  %1314 = vrot.lane.b32.xlu0 %v10201_v48, %s9627_s0 }
 0x15a   :  { %v944_v41 = vpop.permute.xlu1 %943  ;;  %v946_v42 = vpop.permute.xlu0 %945 }
 0x15b   :  { %1107 = vst.msk [vmem:[#allocation4 + $0xe8] sm:$0xff] %vm1077_vm4, %v944_v41  ;;  %1108 = vst.msk [vmem:[#allocation4 + $0xf0] sm:$0xff] %vm1077_vm4, %v946_v42  ;;  %v1534_v42 = vld [vmem:[#allocation2 + $0x69] sm:$0xff] }
 0x15c   :  { %1316 = vrot.lane.b32.xlu1 %v10203_v49, %s9627_s0  ;;  %1318 = vrot.lane.b32.xlu0 %v10210_v50, %s9627_s0  ;;  %v1172_v50 = vld [vmem:[#allocation2 + $0x180] sm:$0xff] }
 0x15e   :  { %v948_v44 = vpop.permute.xlu1 %947  ;;  %v950_v46 = vpop.permute.xlu0 %949 }
 0x15f   :  { %1109 = vst.msk [vmem:[#allocation4 + $0xf8] sm:$0xff] %vm1077_vm4, %v948_v44  ;;  %1110 = vst.msk [vmem:[#allocation4 + $0x100] sm:$0xff] %vm1077_vm4, %v950_v46  ;;  %v1535_v46 = vld [vmem:[#allocation2 + $0x79] sm:$0xff] }
 0x160   :  { %1320 = vrot.lane.b32.xlu1 %v10215_v52, %s9627_s0  ;;  %1322 = vrot.lane.b32.xlu0 %v10219_v54, %s9627_s0 }
 0x162   :  { %v952_v47 = vpop.permute.xlu1 %951  ;;  %v954_v48 = vpop.permute.xlu0 %953 }
 0x163   :  { %1111 = vst.msk [vmem:[#allocation4 + $0x108] sm:$0xff] %vm1077_vm4, %v952_v47  ;;  %1112 = vst.msk [vmem:[#allocation4 + $0x110] sm:$0xff] %vm1077_vm4, %v954_v48  ;;  %v1536_v48 = vld [vmem:[#allocation2 + $0x81] sm:$0xff] }
 0x164   :  { %1324 = vrot.lane.b32.xlu1 %v10221_v55, %s9627_s0  ;;  %1326 = vrot.lane.b32.xlu0 %v10227_v56, %s9627_s0 }
 0x166   :  { %v956_v49 = vpop.permute.xlu1 %955  ;;  %v958_v52 = vpop.permute.xlu0 %957 }
 0x167   :  { %1113 = vst.msk [vmem:[#allocation4 + $0x118] sm:$0xff] %vm1077_vm4, %v956_v49  ;;  %1114 = vst.msk [vmem:[#allocation4 + $0x120] sm:$0xff] %vm1077_vm4, %v958_v52 }
 0x168   :  { %1328 = vrot.lane.b32.xlu1 %v10229_v57, %s9627_s0  ;;  %1330 = vrot.lane.b32.xlu0 %v1172_v50, %s9627_s0  ;;  %v1537_v50 = vld [vmem:[#allocation2 + $0x91] sm:$0xff] }
 0x16a   :  { %v960_v54 = vpop.permute.xlu1 %959  ;;  %v962_v55 = vpop.permute.xlu0 %961 }
 0x16b   :  { %1115 = vst.msk [vmem:[#allocation4 + $0x128] sm:$0xff] %vm1077_vm4, %v960_v54  ;;  %1116 = vst.msk [vmem:[#allocation4 + $0x130] sm:$0xff] %vm1077_vm4, %v962_v55  ;;  %v1539_v55 = vld [vmem:[#allocation2 + $0xa9] sm:$0xff] }
 0x16c   :  { %1332 = vrot.lane.b32.xlu1 %v1173_v12, %s9627_s0  ;;  %1334 = vrot.lane.b32.xlu0 %v10239_v62, %s9627_s0  ;;  %v1538_v12 = vld [vmem:[#allocation2 + $0x99] sm:$0xff] }
 0x16e   :  { %v964_v59 = vpop.permute.xlu1 %963  ;;  %v966_v56 = vpop.permute.xlu0 %965 }
 0x16f   :  { %1117 = vst.msk [vmem:[#allocation4 + $0x138] sm:$0xff] %vm1077_vm4, %v964_v59  ;;  %1118 = vst.msk [vmem:[#allocation4 + $0x140] sm:$0xff] %vm1077_vm4, %v966_v56  ;;  %v1540_v56 = vld [vmem:[#allocation2 + $0xb1] sm:$0xff] }
 0x170   :  { %1336 = vrot.lane.b32.xlu1 %v10241_v63, %s9627_s0  ;;  %1338 = vrot.lane.b32.xlu0 %v10249_v2, %s9627_s0 }
 0x172   :  { %v968_v57 = vpop.permute.xlu1 %967  ;;  %v970_v7 = vpop.permute.xlu0 %969 }
 0x173   :  { %1119 = vst.msk [vmem:[#allocation4 + $0x148] sm:$0xff] %vm1077_vm4, %v968_v57  ;;  %1120 = vst.msk [vmem:[#allocation4 + $0x150] sm:$0xff] %vm1077_vm4, %v970_v7  ;;  %v1541_v7 = vld [vmem:[#allocation2 + $0xc1] sm:$0xff] }
 0x174   :  { %1340 = vrot.lane.b32.xlu1 %v10253_v4, %s9627_s0  ;;  %1342 = vrot.lane.b32.xlu0 %v10259_v6, %s9627_s0 }
 0x176   :  { %v972_v3 = vpop.permute.xlu1 %971  ;;  %v974_v62 = vpop.permute.xlu0 %973 }
 0x177   :  { %1121 = vst.msk [vmem:[#allocation4 + $0x158] sm:$0xff] %vm1077_vm4, %v972_v3  ;;  %1122 = vst.msk [vmem:[#allocation4 + $0x160] sm:$0xff] %vm1077_vm4, %v974_v62  ;;  %v1542_v62 = vld [vmem:[#allocation2 + $0xc9] sm:$0xff] }
 0x178   :  { %1344 = vrot.lane.b32.xlu1 %v10263_v8, %s9627_s0  ;;  %1346 = vrot.lane.b32.xlu0 %v10269_v11, %s9627_s0 }
 0x17a   :  { %v976_v63 = vpop.permute.xlu1 %975  ;;  %v978_v2 = vpop.permute.xlu0 %977 }
 0x17b   :  { %1123 = vst.msk [vmem:[#allocation4 + $0x168] sm:$0xff] %vm1077_vm4, %v976_v63  ;;  %1124 = vst.msk [vmem:[#allocation4 + $0x170] sm:$0xff] %vm1077_vm4, %v978_v2  ;;  %v1543_v2 = vld [vmem:[#allocation2 + $0xd9] sm:$0xff] }
 0x17c   :  { %1348 = vrot.lane.b32.xlu1 %v10273_v13, %s9627_s0  ;;  %1350 = vrot.lane.b32.xlu0 %v10279_v16, %s9627_s0 }
 0x17e   :  { %v980_v4 = vpop.permute.xlu1 %979  ;;  %v982_v6 = vpop.permute.xlu0 %981 }
 0x17f   :  { %1125 = vst.msk [vmem:[#allocation4 + $0x178] sm:$0xff] %vm1077_vm4, %v980_v4  ;;  %1126 = vst.msk [vmem:[#allocation4 + $0x180] sm:$0xff] %vm1077_vm4, %v982_v6  ;;  %v1544_v6 = vld [vmem:[#allocation2 + $0xe1] sm:$0xff] }
 0x180   :  { %1352 = vrot.lane.b32.xlu1 %v10283_v20, %s9627_s0  ;;  %1354 = vrot.lane.b32.xlu0 %v10289_v24, %s9627_s0 }
 0x182   :  { %v984_v8 = vpop.permute.xlu1 %983  ;;  %v986_v11 = vpop.permute.xlu0 %985 }
 0x183   :  { %1127 = vst.msk [vmem:[#allocation4 + $0x188] sm:$0xff] %vm1077_vm4, %v984_v8  ;;  %1128 = vst.msk [vmem:[#allocation4 + $0x190] sm:$0xff] %vm1077_vm4, %v986_v11  ;;  %v1545_v11 = vld [vmem:[#allocation2 + $0xf1] sm:$0xff] }
 0x184   :  { %1356 = vrot.lane.b32.xlu1 %v10293_v28, %s9627_s0  ;;  %1358 = vrot.lane.b32.xlu0 %v10299_v35, %s9627_s0 }
 0x186   :  { %v988_v13 = vpop.permute.xlu1 %987  ;;  %v990_v16 = vpop.permute.xlu0 %989 }
 0x187   :  { %1129 = vst.msk [vmem:[#allocation4 + $0x198] sm:$0xff] %vm1077_vm4, %v988_v13  ;;  %1130 = vst.msk [vmem:[#allocation4 + $0x1a0] sm:$0xff] %vm1077_vm4, %v990_v16  ;;  %v1546_v16 = vld [vmem:[#allocation2 + $0xf9] sm:$0xff] }
 0x188   :  { %1360 = vrot.lane.b32.xlu1 %v10303_v43, %s9627_s0  ;;  %1362 = vrot.lane.b32.xlu0 %v10309_v51, %s9627_s0 }
 0x18a   :  { %v992_v20 = vpop.permute.xlu1 %991  ;;  %v994_v24 = vpop.permute.xlu0 %993 }
 0x18b   :  { %1131 = vst.msk [vmem:[#allocation4 + $0x1a8] sm:$0xff] %vm1077_vm4, %v992_v20  ;;  %1132 = vst.msk [vmem:[#allocation4 + $0x1b0] sm:$0xff] %vm1077_vm4, %v994_v24  ;;  %v1547_v24 = vld [vmem:[#allocation2 + $0x109] sm:$0xff] }
 0x18c   :  { %1364 = vrot.lane.b32.xlu1 %v10313_v58, %s9627_s0  ;;  %1366 = vrot.lane.b32.xlu0 %v10319_v60, %s9627_s0 }
 0x18e   :  { %v996_v28 = vpop.permute.xlu1 %995  ;;  %v998_v35 = vpop.permute.xlu0 %997 }
 0x18f   :  { %1133 = vst.msk [vmem:[#allocation4 + $0x1b8] sm:$0xff] %vm1077_vm4, %v996_v28  ;;  %1134 = vst.msk [vmem:[#allocation4 + $0x1c0] sm:$0xff] %vm1077_vm4, %v998_v35  ;;  %v1548_v35 = vld [vmem:[#allocation2 + $0x111] sm:$0xff] }
 0x190   :  { %1368 = vrot.lane.b32.xlu1 %v10323_v1, %s9627_s0  ;;  %1370 = vrot.lane.b32.xlu0 %v10329_v5, %s9627_s0 }
 0x192   :  { %v1000_v43 = vpop.permute.xlu1 %999  ;;  %v1002_v51 = vpop.permute.xlu0 %1001 }
 0x193   :  { %1135 = vst.msk [vmem:[#allocation4 + $0x1c8] sm:$0xff] %vm1077_vm4, %v1000_v43  ;;  %1136 = vst.msk [vmem:[#allocation4 + $0x1d0] sm:$0xff] %vm1077_vm4, %v1002_v51  ;;  %v1549_v51 = vld [vmem:[#allocation2 + $0x121] sm:$0xff] }
 0x194   :  { %1372 = vrot.lane.b32.xlu1 %v10333_v9, %s9627_s0  ;;  %1374 = vrot.lane.b32.xlu0 %v10339_v14, %s9627_s0  ;;  %v16633_v14 = vld [vmem:[#allocation5_spill] sm:$0xff] }
 0x196   :  { %v1004_v58 = vpop.permute.xlu1 %1003  ;;  %v1006_v60 = vpop.permute.xlu0 %1005 }
 0x197   :  { %1137 = vst.msk [vmem:[#allocation4 + $0x1d8] sm:$0xff] %vm1077_vm4, %v1004_v58  ;;  %1138 = vst.msk [vmem:[#allocation4 + $0x1e0] sm:$0xff] %vm1077_vm4, %v1006_v60  ;;  %v1550_v60 = vld [vmem:[#allocation2 + $0x129] sm:$0xff] }
 0x198   :  { %1376 = vrot.lane.b32.xlu1 %v10343_v21, %s9627_s0  ;;  %1378 = vrot.lane.b32.xlu0 %v10349_v31, %s9627_s0  ;;  %v16634_v21 = vld [vmem:[#allocation6_spill] sm:$0xff] }
 0x19a   :  { %v1008_v1 = vpop.permute.xlu1 %1007  ;;  %v1010_v5 = vpop.permute.xlu0 %1009 }
 0x19b   :  { %1139 = vst.msk [vmem:[#allocation4 + $0x1e8] sm:$0xff] %vm1077_vm4, %v1008_v1  ;;  %1140 = vst.msk [vmem:[#allocation4 + $0x1f0] sm:$0xff] %vm1077_vm4, %v1010_v5  ;;  %v1551_v5 = vld [vmem:[#allocation2 + $0x139] sm:$0xff] }
 0x19c   :  { %1380 = vrot.lane.b32.xlu1 %v10353_v45, %s9627_s0  ;;  %1382 = vrot.lane.b32.xlu0 %v16633_v14, %s9627_s0  ;;  %v16635_v45 = vld [vmem:[#allocation7_spill] sm:$0xff]  ;;  %v1552_v14 = vld [vmem:[#allocation2 + $0x141] sm:$0xff] }
 0x19e   :  { %v1012_v9 = vpop.permute.xlu1 %1011  ;;  %v1271_v53 = vpop.permute.xlu0 %1270 }
 0x19f   :  { %1141 = vst.msk [vmem:[#allocation4 + $0x1f8] sm:$0xff] %vm1077_vm4, %v1012_v9  ;;  %vm6419_vm4 = vcmask 326912  }
 0x1a0   :  { %1384 = vrot.lane.b32.xlu1 %v16634_v21, %s9627_s0  ;;  %1463 = vst.msk [vmem:[#allocation4] sm:$0xff] %vm1462_vm5, %v1271_v53  ;;  %1386 = vrot.lane.b32.xlu0 %v16635_v45, %s9627_s0  ;;  %v1553_v53 = vld [vmem:[#allocation2 + $0x151] sm:$0xff]  ;;  %v1554_v45 = vld [vmem:[#allocation2 + $0x159] sm:$0xff] }
 0x1a2   :  { %v1273_v31 = vpop.permute.xlu1 %1272  ;;  %v1275_v0 = vpop.permute.xlu0 %1274 }
 0x1a3   :  { %1464 = vst.msk [vmem:[#allocation4 + $0x8] sm:$0xff] %vm1462_vm5, %v1273_v31  ;;  %1465 = vst.msk [vmem:[#allocation4 + $0x10] sm:$0xff] %vm1462_vm5, %v1275_v0  ;;  %v1555_v0 = vld [vmem:[#allocation2 + $0x169] sm:$0xff] }
 0x1a4   :  { %1388 = vrot.lane.b32.xlu1 %v16636_v17, %s9627_s0  ;;  %1390 = vrot.lane.b32.xlu0 %v16637_v25, %s9627_s0  ;;  %v1556_v25 = vld [vmem:[#allocation2 + $0x171] sm:$0xff] }
 0x1a6   :  { %v1277_v37 = vpop.permute.xlu1 %1276  ;;  %v1279_v15 = vpop.permute.xlu0 %1278 }
 0x1a7   :  { %1466 = vst.msk [vmem:[#allocation4 + $0x18] sm:$0xff] %vm1462_vm5, %v1277_v37  ;;  %1467 = vst.msk [vmem:[#allocation4 + $0x20] sm:$0xff] %vm1462_vm5, %v1279_v15 }
 0x1a8   :  { %1392 = vrot.lane.b32.xlu1 %v16638_v61, %s9627_s0  ;;  %1394 = vrot.lane.b32.xlu0 %v1204_v10, %s9627_s0  ;;  %v1557_v10 = vld [vmem:[#allocation2 + $0x181] sm:$0xff] }
 0x1aa   :  { %v1281_v19 = vpop.permute.xlu1 %1280  ;;  %v1283_v23 = vpop.permute.xlu0 %1282 }
 0x1ab   :  { %1468 = vst.msk [vmem:[#allocation4 + $0x28] sm:$0xff] %vm1462_vm5, %v1281_v19  ;;  %1469 = vst.msk [vmem:[#allocation4 + $0x30] sm:$0xff] %vm1462_vm5, %v1283_v23 }
 0x1ac   :  { %1396 = vrot.lane.b32.xlu1 %v1205_v18, %s9627_s0  ;;  %1655 = vrot.lane.b32.xlu0 %v1527_v22, %s9628_s18  ;;  %v1558_v18 = vld [vmem:[#allocation2 + $0x189] sm:$0xff] }
 0x1ad   :  { %v1559_v22 = vld [vmem:[#allocation2 + $0x1c9] sm:$0xff] }
 0x1ae   :  { %v1285_v27 = vpop.permute.xlu1 %1284  ;;  %v1287_v30 = vpop.permute.xlu0 %1286 }
 0x1af   :  { %1470 = vst.msk [vmem:[#allocation4 + $0x38] sm:$0xff] %vm1462_vm5, %v1285_v27  ;;  %1471 = vst.msk [vmem:[#allocation4 + $0x40] sm:$0xff] %vm1462_vm5, %v1287_v30 }
 0x1b0   :  { %1657 = vrot.lane.b32.xlu1 %v1528_v26, %s9628_s18  ;;  %1659 = vrot.lane.b32.xlu0 %v1529_v29, %s9628_s18  ;;  %v1560_v26 = vld [vmem:[#allocation2 + $0x1d1] sm:$0xff]  ;;  %v1561_v29 = vld [vmem:[#allocation2 + $0x1e1] sm:$0xff] }
 0x1b2   :  { %v1289_v33 = vpop.permute.xlu1 %1288  ;;  %v1291_v36 = vpop.permute.xlu0 %1290 }
 0x1b3   :  { %1472 = vst.msk [vmem:[#allocation4 + $0x48] sm:$0xff] %vm1462_vm5, %v1289_v33  ;;  %1473 = vst.msk [vmem:[#allocation4 + $0x50] sm:$0xff] %vm1462_vm5, %v1291_v36 }
 0x1b4   :  { %1661 = vrot.lane.b32.xlu1 %v1530_v32, %s9628_s18  ;;  %1663 = vrot.lane.b32.xlu0 %v1531_v34, %s9628_s18  ;;  %v1562_v32 = vld [vmem:[#allocation2 + $0x1e9] sm:$0xff]  ;;  %v1563_v34 = vld [vmem:[#allocation2 + $0x1f9] sm:$0xff] }
 0x1b6   :  { %v1293_v39 = vpop.permute.xlu1 %1292  ;;  %v1295_v41 = vpop.permute.xlu0 %1294 }
 0x1b7   :  { %1474 = vst.msk [vmem:[#allocation4 + $0x58] sm:$0xff] %vm1462_vm5, %v1293_v39  ;;  %1475 = vst.msk [vmem:[#allocation4 + $0x60] sm:$0xff] %vm1462_vm5, %v1295_v41 }
 0x1b8   :  { %1665 = vrot.lane.b32.xlu1 %v1532_v38, %s9628_s18  ;;  %1667 = vrot.lane.b32.xlu0 %v1533_v40, %s9628_s18  ;;  %v1564_v38 = vld [vmem:[#allocation2 + $0x201] sm:$0xff]  ;;  %v1565_v40 = vld [vmem:[#allocation2 + $0x211] sm:$0xff] }
 0x1ba   :  { %v1297_v44 = vpop.permute.xlu1 %1296  ;;  %v1299_v47 = vpop.permute.xlu0 %1298 }
 0x1bb   :  { %1476 = vst.msk [vmem:[#allocation4 + $0x68] sm:$0xff] %vm1462_vm5, %v1297_v44  ;;  %1477 = vst.msk [vmem:[#allocation4 + $0x70] sm:$0xff] %vm1462_vm5, %v1299_v47 }
 0x1bc   :  { %1669 = vrot.lane.b32.xlu1 %v1534_v42, %s9628_s18  ;;  %1671 = vrot.lane.b32.xlu0 %v1535_v46, %s9628_s18  ;;  %v1566_v42 = vld [vmem:[#allocation2 + $0x219] sm:$0xff]  ;;  %v1567_v46 = vld [vmem:[#allocation2 + $0x229] sm:$0xff] }
 0x1be   :  { %v1301_v49 = vpop.permute.xlu1 %1300  ;;  %v1303_v52 = vpop.permute.xlu0 %1302 }
 0x1bf   :  { %1478 = vst.msk [vmem:[#allocation4 + $0x78] sm:$0xff] %vm1462_vm5, %v1301_v49  ;;  %1479 = vst.msk [vmem:[#allocation4 + $0x80] sm:$0xff] %vm1462_vm5, %v1303_v52 }
 0x1c0   :  { %1673 = vrot.lane.b32.xlu1 %v1536_v48, %s9628_s18  ;;  %1675 = vrot.lane.b32.xlu0 %v1537_v50, %s9628_s18  ;;  %v1568_v48 = vld [vmem:[#allocation2 + $0x231] sm:$0xff]  ;;  %v1569_v50 = vld [vmem:[#allocation2 + $0x241] sm:$0xff] }
 0x1c2   :  { %v1305_v54 = vpop.permute.xlu1 %1304  ;;  %v1307_v59 = vpop.permute.xlu0 %1306 }
 0x1c3   :  { %1480 = vst.msk [vmem:[#allocation4 + $0x88] sm:$0xff] %vm1462_vm5, %v1305_v54  ;;  %1481 = vst.msk [vmem:[#allocation4 + $0x90] sm:$0xff] %vm1462_vm5, %v1307_v59 }
 0x1c4   :  { %1677 = vrot.lane.b32.xlu1 %v1538_v12, %s9628_s18  ;;  %1679 = vrot.lane.b32.xlu0 %v1539_v55, %s9628_s18  ;;  %v1570_v12 = vld [vmem:[#allocation2 + $0x249] sm:$0xff]  ;;  %v1571_v55 = vld [vmem:[#allocation2 + $0x259] sm:$0xff] }
 0x1c6   :  { %v1309_v57 = vpop.permute.xlu1 %1308  ;;  %v1311_v3 = vpop.permute.xlu0 %1310 }
 0x1c7   :  { %1482 = vst.msk [vmem:[#allocation4 + $0x98] sm:$0xff] %vm1462_vm5, %v1309_v57  ;;  %1483 = vst.msk [vmem:[#allocation4 + $0xa0] sm:$0xff] %vm1462_vm5, %v1311_v3 }
 0x1c8   :  { %1681 = vrot.lane.b32.xlu1 %v1540_v56, %s9628_s18  ;;  %1683 = vrot.lane.b32.xlu0 %v1541_v7, %s9628_s18  ;;  %v1572_v56 = vld [vmem:[#allocation2 + $0x261] sm:$0xff]  ;;  %v1573_v7 = vld [vmem:[#allocation2 + $0x271] sm:$0xff] }
 0x1ca   :  { %v1313_v63 = vpop.permute.xlu1 %1312  ;;  %v1315_v4 = vpop.permute.xlu0 %1314 }
 0x1cb   :  { %1484 = vst.msk [vmem:[#allocation4 + $0xa8] sm:$0xff] %vm1462_vm5, %v1313_v63  ;;  %1485 = vst.msk [vmem:[#allocation4 + $0xb0] sm:$0xff] %vm1462_vm5, %v1315_v4 }
 0x1cc   :  { %1685 = vrot.lane.b32.xlu1 %v1542_v62, %s9628_s18  ;;  %1687 = vrot.lane.b32.xlu0 %v1543_v2, %s9628_s18  ;;  %v1574_v62 = vld [vmem:[#allocation2 + $0x279] sm:$0xff]  ;;  %v1575_v2 = vld [vmem:[#allocation2 + $0x289] sm:$0xff] }
 0x1ce   :  { %v1317_v8 = vpop.permute.xlu1 %1316  ;;  %v1319_v13 = vpop.permute.xlu0 %1318 }
 0x1cf   :  { %1486 = vst.msk [vmem:[#allocation4 + $0xb8] sm:$0xff] %vm1462_vm5, %v1317_v8  ;;  %1487 = vst.msk [vmem:[#allocation4 + $0xc0] sm:$0xff] %vm1462_vm5, %v1319_v13 }
 0x1d0   :  { %1689 = vrot.lane.b32.xlu1 %v1544_v6, %s9628_s18  ;;  %1691 = vrot.lane.b32.xlu0 %v1545_v11, %s9628_s18  ;;  %v1576_v6 = vld [vmem:[#allocation2 + $0x291] sm:$0xff]  ;;  %v1577_v11 = vld [vmem:[#allocation2 + $0x2a1] sm:$0xff] }
 0x1d2   :  { %v1321_v20 = vpop.permute.xlu1 %1320  ;;  %v1323_v28 = vpop.permute.xlu0 %1322 }
 0x1d3   :  { %1488 = vst.msk [vmem:[#allocation4 + $0xc8] sm:$0xff] %vm1462_vm5, %v1321_v20  ;;  %1489 = vst.msk [vmem:[#allocation4 + $0xd0] sm:$0xff] %vm1462_vm5, %v1323_v28 }
 0x1d4   :  { %1693 = vrot.lane.b32.xlu1 %v1546_v16, %s9628_s18  ;;  %1695 = vrot.lane.b32.xlu0 %v1547_v24, %s9628_s18  ;;  %v1578_v16 = vld [vmem:[#allocation2 + $0x2a9] sm:$0xff]  ;;  %v1579_v24 = vld [vmem:[#allocation2 + $0x2b9] sm:$0xff] }
 0x1d6   :  { %v1325_v43 = vpop.permute.xlu1 %1324  ;;  %v1327_v58 = vpop.permute.xlu0 %1326 }
 0x1d7   :  { %1490 = vst.msk [vmem:[#allocation4 + $0xd8] sm:$0xff] %vm1462_vm5, %v1325_v43  ;;  %1491 = vst.msk [vmem:[#allocation4 + $0xe0] sm:$0xff] %vm1462_vm5, %v1327_v58 }
 0x1d8   :  { %1697 = vrot.lane.b32.xlu1 %v1548_v35, %s9628_s18  ;;  %1699 = vrot.lane.b32.xlu0 %v1549_v51, %s9628_s18  ;;  %v1580_v35 = vld [vmem:[#allocation2 + $0x2c1] sm:$0xff]  ;;  %v1581_v51 = vld [vmem:[#allocation2 + $0x2d1] sm:$0xff] }
 0x1da   :  { %v1329_v1 = vpop.permute.xlu1 %1328  ;;  %v1331_v9 = vpop.permute.xlu0 %1330 }
 0x1db   :  { %1492 = vst.msk [vmem:[#allocation4 + $0xe8] sm:$0xff] %vm1462_vm5, %v1329_v1  ;;  %1493 = vst.msk [vmem:[#allocation4 + $0xf0] sm:$0xff] %vm1462_vm5, %v1331_v9 }
 0x1dc   :  { %1701 = vrot.lane.b32.xlu1 %v1550_v60, %s9628_s18  ;;  %1703 = vrot.lane.b32.xlu0 %v1551_v5, %s9628_s18  ;;  %v1582_v60 = vld [vmem:[#allocation2 + $0x2d9] sm:$0xff]  ;;  %v1583_v5 = vld [vmem:[#allocation2 + $0x2e9] sm:$0xff] }
 0x1de   :  { %v1333_v21 = vpop.permute.xlu1 %1332  ;;  %v1335_v31 = vpop.permute.xlu0 %1334 }
 0x1df   :  { %1494 = vst.msk [vmem:[#allocation4 + $0xf8] sm:$0xff] %vm1462_vm5, %v1333_v21  ;;  %1495 = vst.msk [vmem:[#allocation4 + $0x100] sm:$0xff] %vm1462_vm5, %v1335_v31 }
 0x1e0   :  { %1705 = vrot.lane.b32.xlu1 %v1552_v14, %s9628_s18  ;;  %1707 = vrot.lane.b32.xlu0 %v1553_v53, %s9628_s18  ;;  %v1584_v14 = vld [vmem:[#allocation2 + $0x2f1] sm:$0xff]  ;;  %v1585_v53 = vld [vmem:[#allocation2 + $0x301] sm:$0xff] }
 0x1e2   :  { %v1337_v17 = vpop.permute.xlu1 %1336  ;;  %v1339_v37 = vpop.permute.xlu0 %1338 }
 0x1e3   :  { %1496 = vst.msk [vmem:[#allocation4 + $0x108] sm:$0xff] %vm1462_vm5, %v1337_v17  ;;  %1497 = vst.msk [vmem:[#allocation4 + $0x110] sm:$0xff] %vm1462_vm5, %v1339_v37 }
 0x1e4   :  { %1709 = vrot.lane.b32.xlu1 %v1554_v45, %s9628_s18  ;;  %1711 = vrot.lane.b32.xlu0 %v1555_v0, %s9628_s18  ;;  %v1586_v45 = vld [vmem:[#allocation2 + $0x309] sm:$0xff]  ;;  %v1587_v0 = vld [vmem:[#allocation2 + $0x319] sm:$0xff] }
 0x1e6   :  { %v1341_v61 = vpop.permute.xlu1 %1340  ;;  %v1343_v15 = vpop.permute.xlu0 %1342 }
 0x1e7   :  { %1498 = vst.msk [vmem:[#allocation4 + $0x118] sm:$0xff] %vm1462_vm5, %v1341_v61  ;;  %1499 = vst.msk [vmem:[#allocation4 + $0x120] sm:$0xff] %vm1462_vm5, %v1343_v15 }
 0x1e8   :  { %1713 = vrot.lane.b32.xlu1 %v1556_v25, %s9628_s18  ;;  %1715 = vrot.lane.b32.xlu0 %v1557_v10, %s9628_s18  ;;  %v1588_v25 = vld [vmem:[#allocation2 + $0x321] sm:$0xff]  ;;  %v1589_v10 = vld [vmem:[#allocation2 + $0x331] sm:$0xff] }
 0x1ea   :  { %v1345_v19 = vpop.permute.xlu1 %1344  ;;  %v1347_v23 = vpop.permute.xlu0 %1346 }
 0x1eb   :  { %1500 = vst.msk [vmem:[#allocation4 + $0x128] sm:$0xff] %vm1462_vm5, %v1345_v19  ;;  %1501 = vst.msk [vmem:[#allocation4 + $0x130] sm:$0xff] %vm1462_vm5, %v1347_v23 }
 0x1ec   :  { %1717 = vrot.lane.b32.xlu1 %v1558_v18, %s9628_s18  ;;  %1719 = vrot.lane.b32.xlu0 %v1559_v22, %s9628_s18  ;;  %v1590_v18 = vld [vmem:[#allocation2 + $0x339] sm:$0xff] }
 0x1ed   :  { %v1912_v22 = vld [vmem:[#allocation2 + $0x1a] sm:$0xff] }
 0x1ee   :  { %v1349_v27 = vpop.permute.xlu1 %1348  ;;  %v1351_v30 = vpop.permute.xlu0 %1350 }
 0x1ef   :  { %1502 = vst.msk [vmem:[#allocation4 + $0x138] sm:$0xff] %vm1462_vm5, %v1349_v27  ;;  %1503 = vst.msk [vmem:[#allocation4 + $0x140] sm:$0xff] %vm1462_vm5, %v1351_v30 }
 0x1f0   :  { %1721 = vrot.lane.b32.xlu1 %v1560_v26, %s9628_s18  ;;  %1723 = vrot.lane.b32.xlu0 %v1561_v29, %s9628_s18  ;;  %v1913_v26 = vld [vmem:[#allocation2 + $0x22] sm:$0xff]  ;;  %v1914_v29 = vld [vmem:[#allocation2 + $0x32] sm:$0xff] }
 0x1f2   :  { %v1353_v33 = vpop.permute.xlu1 %1352  ;;  %v1355_v36 = vpop.permute.xlu0 %1354 }
 0x1f3   :  { %1504 = vst.msk [vmem:[#allocation4 + $0x148] sm:$0xff] %vm1462_vm5, %v1353_v33  ;;  %1505 = vst.msk [vmem:[#allocation4 + $0x150] sm:$0xff] %vm1462_vm5, %v1355_v36 }
 0x1f4   :  { %1725 = vrot.lane.b32.xlu1 %v1562_v32, %s9628_s18  ;;  %1727 = vrot.lane.b32.xlu0 %v1563_v34, %s9628_s18  ;;  %v1915_v32 = vld [vmem:[#allocation2 + $0x3a] sm:$0xff]  ;;  %v1916_v34 = vld [vmem:[#allocation2 + $0x4a] sm:$0xff] }
 0x1f6   :  { %v1357_v39 = vpop.permute.xlu1 %1356  ;;  %v1359_v41 = vpop.permute.xlu0 %1358 }
 0x1f7   :  { %1506 = vst.msk [vmem:[#allocation4 + $0x158] sm:$0xff] %vm1462_vm5, %v1357_v39  ;;  %1507 = vst.msk [vmem:[#allocation4 + $0x160] sm:$0xff] %vm1462_vm5, %v1359_v41 }
 0x1f8   :  { %1729 = vrot.lane.b32.xlu1 %v1564_v38, %s9628_s18  ;;  %1731 = vrot.lane.b32.xlu0 %v1565_v40, %s9628_s18  ;;  %v1917_v38 = vld [vmem:[#allocation2 + $0x52] sm:$0xff]  ;;  %v1918_v40 = vld [vmem:[#allocation2 + $0x62] sm:$0xff] }
 0x1fa   :  { %v1361_v44 = vpop.permute.xlu1 %1360  ;;  %v1363_v47 = vpop.permute.xlu0 %1362 }
 0x1fb   :  { %1508 = vst.msk [vmem:[#allocation4 + $0x168] sm:$0xff] %vm1462_vm5, %v1361_v44  ;;  %1509 = vst.msk [vmem:[#allocation4 + $0x170] sm:$0xff] %vm1462_vm5, %v1363_v47 }
 0x1fc   :  { %1733 = vrot.lane.b32.xlu1 %v1566_v42, %s9628_s18  ;;  %1735 = vrot.lane.b32.xlu0 %v1567_v46, %s9628_s18  ;;  %v1919_v42 = vld [vmem:[#allocation2 + $0x6a] sm:$0xff]  ;;  %v1920_v46 = vld [vmem:[#allocation2 + $0x7a] sm:$0xff] }
 0x1fe   :  { %v1365_v49 = vpop.permute.xlu1 %1364  ;;  %v1367_v52 = vpop.permute.xlu0 %1366 }
 0x1ff   :  { %1510 = vst.msk [vmem:[#allocation4 + $0x178] sm:$0xff] %vm1462_vm5, %v1365_v49  ;;  %1511 = vst.msk [vmem:[#allocation4 + $0x180] sm:$0xff] %vm1462_vm5, %v1367_v52 }
 0x200   :  { %1737 = vrot.lane.b32.xlu1 %v1568_v48, %s9628_s18  ;;  %1739 = vrot.lane.b32.xlu0 %v1569_v50, %s9628_s18  ;;  %v1921_v48 = vld [vmem:[#allocation2 + $0x82] sm:$0xff]  ;;  %v1922_v50 = vld [vmem:[#allocation2 + $0x92] sm:$0xff] }
 0x202   :  { %v1369_v54 = vpop.permute.xlu1 %1368  ;;  %v1371_v59 = vpop.permute.xlu0 %1370 }
 0x203   :  { %1512 = vst.msk [vmem:[#allocation4 + $0x188] sm:$0xff] %vm1462_vm5, %v1369_v54  ;;  %1513 = vst.msk [vmem:[#allocation4 + $0x190] sm:$0xff] %vm1462_vm5, %v1371_v59 }
 0x204   :  { %1741 = vrot.lane.b32.xlu1 %v1570_v12, %s9628_s18  ;;  %1743 = vrot.lane.b32.xlu0 %v1571_v55, %s9628_s18  ;;  %v1923_v12 = vld [vmem:[#allocation2 + $0x9a] sm:$0xff]  ;;  %v1924_v55 = vld [vmem:[#allocation2 + $0xaa] sm:$0xff] }
 0x206   :  { %v1373_v57 = vpop.permute.xlu1 %1372  ;;  %v1375_v3 = vpop.permute.xlu0 %1374 }
 0x207   :  { %1514 = vst.msk [vmem:[#allocation4 + $0x198] sm:$0xff] %vm1462_vm5, %v1373_v57  ;;  %1515 = vst.msk [vmem:[#allocation4 + $0x1a0] sm:$0xff] %vm1462_vm5, %v1375_v3 }
 0x208   :  { %1745 = vrot.lane.b32.xlu1 %v1572_v56, %s9628_s18  ;;  %1747 = vrot.lane.b32.xlu0 %v1573_v7, %s9628_s18  ;;  %v1925_v56 = vld [vmem:[#allocation2 + $0xb2] sm:$0xff]  ;;  %v1926_v7 = vld [vmem:[#allocation2 + $0xc2] sm:$0xff] }
 0x20a   :  { %v1377_v63 = vpop.permute.xlu1 %1376  ;;  %v1379_v4 = vpop.permute.xlu0 %1378 }
 0x20b   :  { %1516 = vst.msk [vmem:[#allocation4 + $0x1a8] sm:$0xff] %vm1462_vm5, %v1377_v63  ;;  %1517 = vst.msk [vmem:[#allocation4 + $0x1b0] sm:$0xff] %vm1462_vm5, %v1379_v4 }
 0x20c   :  { %1749 = vrot.lane.b32.xlu1 %v1574_v62, %s9628_s18  ;;  %1751 = vrot.lane.b32.xlu0 %v1575_v2, %s9628_s18  ;;  %v1927_v62 = vld [vmem:[#allocation2 + $0xca] sm:$0xff]  ;;  %v1928_v2 = vld [vmem:[#allocation2 + $0xda] sm:$0xff] }
 0x20e   :  { %v1381_v8 = vpop.permute.xlu1 %1380  ;;  %v1383_v13 = vpop.permute.xlu0 %1382 }
 0x20f   :  { %1518 = vst.msk [vmem:[#allocation4 + $0x1b8] sm:$0xff] %vm1462_vm5, %v1381_v8  ;;  %1519 = vst.msk [vmem:[#allocation4 + $0x1c0] sm:$0xff] %vm1462_vm5, %v1383_v13 }
 0x210   :  { %1753 = vrot.lane.b32.xlu1 %v1576_v6, %s9628_s18  ;;  %1755 = vrot.lane.b32.xlu0 %v1577_v11, %s9628_s18  ;;  %v1929_v6 = vld [vmem:[#allocation2 + $0xe2] sm:$0xff]  ;;  %v1930_v11 = vld [vmem:[#allocation2 + $0xf2] sm:$0xff] }
 0x212   :  { %v1385_v20 = vpop.permute.xlu1 %1384  ;;  %v1387_v28 = vpop.permute.xlu0 %1386 }
 0x213   :  { %1520 = vst.msk [vmem:[#allocation4 + $0x1c8] sm:$0xff] %vm1462_vm5, %v1385_v20  ;;  %1521 = vst.msk [vmem:[#allocation4 + $0x1d0] sm:$0xff] %vm1462_vm5, %v1387_v28 }
 0x214   :  { %1757 = vrot.lane.b32.xlu1 %v1578_v16, %s9628_s18  ;;  %1759 = vrot.lane.b32.xlu0 %v1579_v24, %s9628_s18  ;;  %v1931_v16 = vld [vmem:[#allocation2 + $0xfa] sm:$0xff]  ;;  %v1932_v24 = vld [vmem:[#allocation2 + $0x10a] sm:$0xff] }
 0x216   :  { %v1389_v43 = vpop.permute.xlu1 %1388  ;;  %v1391_v58 = vpop.permute.xlu0 %1390 }
 0x217   :  { %1522 = vst.msk [vmem:[#allocation4 + $0x1d8] sm:$0xff] %vm1462_vm5, %v1389_v43  ;;  %1523 = vst.msk [vmem:[#allocation4 + $0x1e0] sm:$0xff] %vm1462_vm5, %v1391_v58 }
 0x218   :  { %1761 = vrot.lane.b32.xlu1 %v1580_v35, %s9628_s18  ;;  %1763 = vrot.lane.b32.xlu0 %v1581_v51, %s9628_s18  ;;  %v1933_v35 = vld [vmem:[#allocation2 + $0x112] sm:$0xff]  ;;  %v1934_v51 = vld [vmem:[#allocation2 + $0x122] sm:$0xff] }
 0x21a   :  { %v1393_v1 = vpop.permute.xlu1 %1392  ;;  %v1395_v9 = vpop.permute.xlu0 %1394 }
 0x21b   :  { %1524 = vst.msk [vmem:[#allocation4 + $0x1e8] sm:$0xff] %vm1462_vm5, %v1393_v1  ;;  %1525 = vst.msk [vmem:[#allocation4 + $0x1f0] sm:$0xff] %vm1462_vm5, %v1395_v9 }
 0x21c   :  { %1765 = vrot.lane.b32.xlu1 %v1582_v60, %s9628_s18  ;;  %1767 = vrot.lane.b32.xlu0 %v1583_v5, %s9628_s18  ;;  %v1935_v60 = vld [vmem:[#allocation2 + $0x12a] sm:$0xff]  ;;  %v1936_v5 = vld [vmem:[#allocation2 + $0x13a] sm:$0xff] }
 0x21e   :  { %v1397_v21 = vpop.permute.xlu1 %1396  ;;  %v1656_v31 = vpop.permute.xlu0 %1655 }
 0x21f   :  { %1526 = vst.msk [vmem:[#allocation4 + $0x1f8] sm:$0xff] %vm1462_vm5, %v1397_v21  ;;  %vm6804_vm5 = vcmask 392512  }
 0x220   :  { %1769 = vrot.lane.b32.xlu1 %v1584_v14, %s9628_s18  ;;  %1848 = vst.msk [vmem:[#allocation4] sm:$0xff] %vm1847_vm6, %v1656_v31  ;;  %1771 = vrot.lane.b32.xlu0 %v1585_v53, %s9628_s18  ;;  %v1937_v14 = vld [vmem:[#allocation2 + $0x142] sm:$0xff]  ;;  %v1938_v53 = vld [vmem:[#allocation2 + $0x152] sm:$0xff] }
 0x222   :  { %v1658_v17 = vpop.permute.xlu1 %1657  ;;  %v1660_v37 = vpop.permute.xlu0 %1659 }
 0x223   :  { %1849 = vst.msk [vmem:[#allocation4 + $0x8] sm:$0xff] %vm1847_vm6, %v1658_v17  ;;  %1850 = vst.msk [vmem:[#allocation4 + $0x10] sm:$0xff] %vm1847_vm6, %v1660_v37 }
 0x224   :  { %1773 = vrot.lane.b32.xlu1 %v1586_v45, %s9628_s18  ;;  %1775 = vrot.lane.b32.xlu0 %v1587_v0, %s9628_s18  ;;  %v1939_v45 = vld [vmem:[#allocation2 + $0x15a] sm:$0xff]  ;;  %v1940_v0 = vld [vmem:[#allocation2 + $0x16a] sm:$0xff] }
 0x226   :  { %v1662_v61 = vpop.permute.xlu1 %1661  ;;  %v1664_v15 = vpop.permute.xlu0 %1663 }
 0x227   :  { %1851 = vst.msk [vmem:[#allocation4 + $0x18] sm:$0xff] %vm1847_vm6, %v1662_v61  ;;  %1852 = vst.msk [vmem:[#allocation4 + $0x20] sm:$0xff] %vm1847_vm6, %v1664_v15 }
 0x228   :  { %1777 = vrot.lane.b32.xlu1 %v1588_v25, %s9628_s18  ;;  %1779 = vrot.lane.b32.xlu0 %v1589_v10, %s9628_s18  ;;  %v1941_v25 = vld [vmem:[#allocation2 + $0x172] sm:$0xff]  ;;  %v1942_v10 = vld [vmem:[#allocation2 + $0x182] sm:$0xff] }
 0x22a   :  { %v1666_v19 = vpop.permute.xlu1 %1665  ;;  %v1668_v23 = vpop.permute.xlu0 %1667 }
 0x22b   :  { %1853 = vst.msk [vmem:[#allocation4 + $0x28] sm:$0xff] %vm1847_vm6, %v1666_v19  ;;  %1854 = vst.msk [vmem:[#allocation4 + $0x30] sm:$0xff] %vm1847_vm6, %v1668_v23 }
 0x22c   :  { %1781 = vrot.lane.b32.xlu1 %v1590_v18, %s9628_s18  ;;  %2040 = vrot.lane.b32.xlu0 %v1912_v22, %s9629_s19  ;;  %v1943_v18 = vld [vmem:[#allocation2 + $0x18a] sm:$0xff] }
 0x22d   :  { %v1944_v22 = vld [vmem:[#allocation2 + $0x1ca] sm:$0xff] }
 0x22e   :  { %v1670_v27 = vpop.permute.xlu1 %1669  ;;  %v1672_v30 = vpop.permute.xlu0 %1671 }
 0x22f   :  { %1855 = vst.msk [vmem:[#allocation4 + $0x38] sm:$0xff] %vm1847_vm6, %v1670_v27  ;;  %1856 = vst.msk [vmem:[#allocation4 + $0x40] sm:$0xff] %vm1847_vm6, %v1672_v30 }
 0x230   :  { %2042 = vrot.lane.b32.xlu1 %v1913_v26, %s9629_s19  ;;  %2044 = vrot.lane.b32.xlu0 %v1914_v29, %s9629_s19  ;;  %v1945_v26 = vld [vmem:[#allocation2 + $0x1d2] sm:$0xff]  ;;  %v1946_v29 = vld [vmem:[#allocation2 + $0x1e2] sm:$0xff] }
 0x232   :  { %v1674_v33 = vpop.permute.xlu1 %1673  ;;  %v1676_v36 = vpop.permute.xlu0 %1675 }
 0x233   :  { %1857 = vst.msk [vmem:[#allocation4 + $0x48] sm:$0xff] %vm1847_vm6, %v1674_v33  ;;  %1858 = vst.msk [vmem:[#allocation4 + $0x50] sm:$0xff] %vm1847_vm6, %v1676_v36 }
 0x234   :  { %2046 = vrot.lane.b32.xlu1 %v1915_v32, %s9629_s19  ;;  %2048 = vrot.lane.b32.xlu0 %v1916_v34, %s9629_s19  ;;  %v1947_v32 = vld [vmem:[#allocation2 + $0x1ea] sm:$0xff]  ;;  %v1948_v34 = vld [vmem:[#allocation2 + $0x1fa] sm:$0xff] }
 0x236   :  { %v1678_v39 = vpop.permute.xlu1 %1677  ;;  %v1680_v41 = vpop.permute.xlu0 %1679 }
 0x237   :  { %1859 = vst.msk [vmem:[#allocation4 + $0x58] sm:$0xff] %vm1847_vm6, %v1678_v39  ;;  %1860 = vst.msk [vmem:[#allocation4 + $0x60] sm:$0xff] %vm1847_vm6, %v1680_v41 }
 0x238   :  { %2050 = vrot.lane.b32.xlu1 %v1917_v38, %s9629_s19  ;;  %2052 = vrot.lane.b32.xlu0 %v1918_v40, %s9629_s19  ;;  %v1949_v38 = vld [vmem:[#allocation2 + $0x202] sm:$0xff]  ;;  %v1950_v40 = vld [vmem:[#allocation2 + $0x212] sm:$0xff] }
 0x23a   :  { %v1682_v44 = vpop.permute.xlu1 %1681  ;;  %v1684_v47 = vpop.permute.xlu0 %1683 }
 0x23b   :  { %1861 = vst.msk [vmem:[#allocation4 + $0x68] sm:$0xff] %vm1847_vm6, %v1682_v44  ;;  %1862 = vst.msk [vmem:[#allocation4 + $0x70] sm:$0xff] %vm1847_vm6, %v1684_v47 }
 0x23c   :  { %2054 = vrot.lane.b32.xlu1 %v1919_v42, %s9629_s19  ;;  %2056 = vrot.lane.b32.xlu0 %v1920_v46, %s9629_s19  ;;  %v1951_v42 = vld [vmem:[#allocation2 + $0x21a] sm:$0xff]  ;;  %v1952_v46 = vld [vmem:[#allocation2 + $0x22a] sm:$0xff] }
 0x23e   :  { %v1686_v49 = vpop.permute.xlu1 %1685  ;;  %v1688_v52 = vpop.permute.xlu0 %1687 }
 0x23f   :  { %1863 = vst.msk [vmem:[#allocation4 + $0x78] sm:$0xff] %vm1847_vm6, %v1686_v49  ;;  %1864 = vst.msk [vmem:[#allocation4 + $0x80] sm:$0xff] %vm1847_vm6, %v1688_v52 }
 0x240   :  { %2058 = vrot.lane.b32.xlu1 %v1921_v48, %s9629_s19  ;;  %2060 = vrot.lane.b32.xlu0 %v1922_v50, %s9629_s19  ;;  %v1953_v48 = vld [vmem:[#allocation2 + $0x232] sm:$0xff]  ;;  %v1954_v50 = vld [vmem:[#allocation2 + $0x242] sm:$0xff] }
 0x242   :  { %v1690_v54 = vpop.permute.xlu1 %1689  ;;  %v1692_v59 = vpop.permute.xlu0 %1691 }
 0x243   :  { %1865 = vst.msk [vmem:[#allocation4 + $0x88] sm:$0xff] %vm1847_vm6, %v1690_v54  ;;  %1866 = vst.msk [vmem:[#allocation4 + $0x90] sm:$0xff] %vm1847_vm6, %v1692_v59 }
 0x244   :  { %2062 = vrot.lane.b32.xlu1 %v1923_v12, %s9629_s19  ;;  %2064 = vrot.lane.b32.xlu0 %v1924_v55, %s9629_s19  ;;  %v1955_v12 = vld [vmem:[#allocation2 + $0x24a] sm:$0xff]  ;;  %v1956_v55 = vld [vmem:[#allocation2 + $0x25a] sm:$0xff] }
 0x246   :  { %v1694_v57 = vpop.permute.xlu1 %1693  ;;  %v1696_v3 = vpop.permute.xlu0 %1695 }
 0x247   :  { %1867 = vst.msk [vmem:[#allocation4 + $0x98] sm:$0xff] %vm1847_vm6, %v1694_v57  ;;  %1868 = vst.msk [vmem:[#allocation4 + $0xa0] sm:$0xff] %vm1847_vm6, %v1696_v3 }
 0x248   :  { %2066 = vrot.lane.b32.xlu1 %v1925_v56, %s9629_s19  ;;  %2068 = vrot.lane.b32.xlu0 %v1926_v7, %s9629_s19  ;;  %v1957_v56 = vld [vmem:[#allocation2 + $0x262] sm:$0xff]  ;;  %v1958_v7 = vld [vmem:[#allocation2 + $0x272] sm:$0xff] }
 0x24a   :  { %v1698_v63 = vpop.permute.xlu1 %1697  ;;  %v1700_v4 = vpop.permute.xlu0 %1699 }
 0x24b   :  { %1869 = vst.msk [vmem:[#allocation4 + $0xa8] sm:$0xff] %vm1847_vm6, %v1698_v63  ;;  %1870 = vst.msk [vmem:[#allocation4 + $0xb0] sm:$0xff] %vm1847_vm6, %v1700_v4 }
 0x24c   :  { %2070 = vrot.lane.b32.xlu1 %v1927_v62, %s9629_s19  ;;  %2072 = vrot.lane.b32.xlu0 %v1928_v2, %s9629_s19  ;;  %v1959_v62 = vld [vmem:[#allocation2 + $0x27a] sm:$0xff]  ;;  %v1960_v2 = vld [vmem:[#allocation2 + $0x28a] sm:$0xff] }
 0x24e   :  { %v1702_v8 = vpop.permute.xlu1 %1701  ;;  %v1704_v13 = vpop.permute.xlu0 %1703 }
 0x24f   :  { %1871 = vst.msk [vmem:[#allocation4 + $0xb8] sm:$0xff] %vm1847_vm6, %v1702_v8  ;;  %1872 = vst.msk [vmem:[#allocation4 + $0xc0] sm:$0xff] %vm1847_vm6, %v1704_v13 }
 0x250   :  { %2074 = vrot.lane.b32.xlu1 %v1929_v6, %s9629_s19  ;;  %2076 = vrot.lane.b32.xlu0 %v1930_v11, %s9629_s19  ;;  %v1961_v6 = vld [vmem:[#allocation2 + $0x292] sm:$0xff]  ;;  %v1962_v11 = vld [vmem:[#allocation2 + $0x2a2] sm:$0xff] }
 0x252   :  { %v1706_v20 = vpop.permute.xlu1 %1705  ;;  %v1708_v28 = vpop.permute.xlu0 %1707 }
 0x253   :  { %1873 = vst.msk [vmem:[#allocation4 + $0xc8] sm:$0xff] %vm1847_vm6, %v1706_v20  ;;  %1874 = vst.msk [vmem:[#allocation4 + $0xd0] sm:$0xff] %vm1847_vm6, %v1708_v28 }
 0x254   :  { %2078 = vrot.lane.b32.xlu1 %v1931_v16, %s9629_s19  ;;  %2080 = vrot.lane.b32.xlu0 %v1932_v24, %s9629_s19  ;;  %v1963_v16 = vld [vmem:[#allocation2 + $0x2aa] sm:$0xff]  ;;  %v1964_v24 = vld [vmem:[#allocation2 + $0x2ba] sm:$0xff] }
 0x256   :  { %v1710_v43 = vpop.permute.xlu1 %1709  ;;  %v1712_v58 = vpop.permute.xlu0 %1711 }
 0x257   :  { %1875 = vst.msk [vmem:[#allocation4 + $0xd8] sm:$0xff] %vm1847_vm6, %v1710_v43  ;;  %1876 = vst.msk [vmem:[#allocation4 + $0xe0] sm:$0xff] %vm1847_vm6, %v1712_v58 }
 0x258   :  { %2082 = vrot.lane.b32.xlu1 %v1933_v35, %s9629_s19  ;;  %2084 = vrot.lane.b32.xlu0 %v1934_v51, %s9629_s19  ;;  %v1965_v35 = vld [vmem:[#allocation2 + $0x2c2] sm:$0xff]  ;;  %v1966_v51 = vld [vmem:[#allocation2 + $0x2d2] sm:$0xff] }
 0x25a   :  { %v1714_v1 = vpop.permute.xlu1 %1713  ;;  %v1716_v9 = vpop.permute.xlu0 %1715 }
 0x25b   :  { %1877 = vst.msk [vmem:[#allocation4 + $0xe8] sm:$0xff] %vm1847_vm6, %v1714_v1  ;;  %1878 = vst.msk [vmem:[#allocation4 + $0xf0] sm:$0xff] %vm1847_vm6, %v1716_v9 }
 0x25c   :  { %2086 = vrot.lane.b32.xlu1 %v1935_v60, %s9629_s19  ;;  %2088 = vrot.lane.b32.xlu0 %v1936_v5, %s9629_s19  ;;  %v1967_v60 = vld [vmem:[#allocation2 + $0x2da] sm:$0xff]  ;;  %v1968_v5 = vld [vmem:[#allocation2 + $0x2ea] sm:$0xff] }
 0x25e   :  { %v1718_v21 = vpop.permute.xlu1 %1717  ;;  %v1720_v31 = vpop.permute.xlu0 %1719 }
 0x25f   :  { %1879 = vst.msk [vmem:[#allocation4 + $0xf8] sm:$0xff] %vm1847_vm6, %v1718_v21  ;;  %1880 = vst.msk [vmem:[#allocation4 + $0x100] sm:$0xff] %vm1847_vm6, %v1720_v31 }
 0x260   :  { %2090 = vrot.lane.b32.xlu1 %v1937_v14, %s9629_s19  ;;  %2092 = vrot.lane.b32.xlu0 %v1938_v53, %s9629_s19  ;;  %v1969_v14 = vld [vmem:[#allocation2 + $0x2f2] sm:$0xff]  ;;  %v1970_v53 = vld [vmem:[#allocation2 + $0x302] sm:$0xff] }
 0x262   :  { %v1722_v17 = vpop.permute.xlu1 %1721  ;;  %v1724_v37 = vpop.permute.xlu0 %1723 }
 0x263   :  { %1881 = vst.msk [vmem:[#allocation4 + $0x108] sm:$0xff] %vm1847_vm6, %v1722_v17  ;;  %1882 = vst.msk [vmem:[#allocation4 + $0x110] sm:$0xff] %vm1847_vm6, %v1724_v37 }
 0x264   :  { %2094 = vrot.lane.b32.xlu1 %v1939_v45, %s9629_s19  ;;  %2096 = vrot.lane.b32.xlu0 %v1940_v0, %s9629_s19  ;;  %v1971_v45 = vld [vmem:[#allocation2 + $0x30a] sm:$0xff]  ;;  %v1972_v0 = vld [vmem:[#allocation2 + $0x31a] sm:$0xff] }
 0x266   :  { %v1726_v61 = vpop.permute.xlu1 %1725  ;;  %v1728_v15 = vpop.permute.xlu0 %1727 }
 0x267   :  { %1883 = vst.msk [vmem:[#allocation4 + $0x118] sm:$0xff] %vm1847_vm6, %v1726_v61  ;;  %1884 = vst.msk [vmem:[#allocation4 + $0x120] sm:$0xff] %vm1847_vm6, %v1728_v15 }
 0x268   :  { %2098 = vrot.lane.b32.xlu1 %v1941_v25, %s9629_s19  ;;  %2100 = vrot.lane.b32.xlu0 %v1942_v10, %s9629_s19  ;;  %v1973_v25 = vld [vmem:[#allocation2 + $0x322] sm:$0xff]  ;;  %v1974_v10 = vld [vmem:[#allocation2 + $0x332] sm:$0xff] }
 0x26a   :  { %v1730_v19 = vpop.permute.xlu1 %1729  ;;  %v1732_v23 = vpop.permute.xlu0 %1731 }
 0x26b   :  { %1885 = vst.msk [vmem:[#allocation4 + $0x128] sm:$0xff] %vm1847_vm6, %v1730_v19  ;;  %1886 = vst.msk [vmem:[#allocation4 + $0x130] sm:$0xff] %vm1847_vm6, %v1732_v23 }
 0x26c   :  { %2102 = vrot.lane.b32.xlu1 %v1943_v18, %s9629_s19  ;;  %2104 = vrot.lane.b32.xlu0 %v1944_v22, %s9629_s19  ;;  %v1975_v18 = vld [vmem:[#allocation2 + $0x33a] sm:$0xff]  ;;  %v2298_v22 = vld [vmem:[#allocation2 + $0x30] sm:$0xff] }
 0x26e   :  { %v1734_v27 = vpop.permute.xlu1 %1733  ;;  %v1736_v30 = vpop.permute.xlu0 %1735 }
 0x26f   :  { %1887 = vst.msk [vmem:[#allocation4 + $0x138] sm:$0xff] %vm1847_vm6, %v1734_v27  ;;  %1888 = vst.msk [vmem:[#allocation4 + $0x140] sm:$0xff] %vm1847_vm6, %v1736_v30 }
 0x270   :  { %2106 = vrot.lane.b32.xlu1 %v1945_v26, %s9629_s19  ;;  %2108 = vrot.lane.b32.xlu0 %v1946_v29, %s9629_s19  ;;  %v2299_v26 = vld [vmem:[#allocation2 + $0x38] sm:$0xff]  ;;  %v2300_v29 = vld [vmem:[#allocation2 + $0x48] sm:$0xff] }
 0x272   :  { %v1738_v33 = vpop.permute.xlu1 %1737  ;;  %v1740_v36 = vpop.permute.xlu0 %1739 }
 0x273   :  { %1889 = vst.msk [vmem:[#allocation4 + $0x148] sm:$0xff] %vm1847_vm6, %v1738_v33  ;;  %1890 = vst.msk [vmem:[#allocation4 + $0x150] sm:$0xff] %vm1847_vm6, %v1740_v36 }
 0x274   :  { %2110 = vrot.lane.b32.xlu1 %v1947_v32, %s9629_s19  ;;  %2112 = vrot.lane.b32.xlu0 %v1948_v34, %s9629_s19  ;;  %v2301_v32 = vld [vmem:[#allocation2 + $0x50] sm:$0xff]  ;;  %v2302_v34 = vld [vmem:[#allocation2 + $0x60] sm:$0xff] }
 0x276   :  { %v1742_v39 = vpop.permute.xlu1 %1741  ;;  %v1744_v41 = vpop.permute.xlu0 %1743 }
 0x277   :  { %1891 = vst.msk [vmem:[#allocation4 + $0x158] sm:$0xff] %vm1847_vm6, %v1742_v39  ;;  %1892 = vst.msk [vmem:[#allocation4 + $0x160] sm:$0xff] %vm1847_vm6, %v1744_v41 }
 0x278   :  { %2114 = vrot.lane.b32.xlu1 %v1949_v38, %s9629_s19  ;;  %2116 = vrot.lane.b32.xlu0 %v1950_v40, %s9629_s19  ;;  %v2303_v38 = vld [vmem:[#allocation2 + $0x68] sm:$0xff]  ;;  %v2304_v40 = vld [vmem:[#allocation2 + $0x78] sm:$0xff] }
 0x27a   :  { %v1746_v44 = vpop.permute.xlu1 %1745  ;;  %v1748_v47 = vpop.permute.xlu0 %1747 }
 0x27b   :  { %1893 = vst.msk [vmem:[#allocation4 + $0x168] sm:$0xff] %vm1847_vm6, %v1746_v44  ;;  %1894 = vst.msk [vmem:[#allocation4 + $0x170] sm:$0xff] %vm1847_vm6, %v1748_v47 }
 0x27c   :  { %2118 = vrot.lane.b32.xlu1 %v1951_v42, %s9629_s19  ;;  %2120 = vrot.lane.b32.xlu0 %v1952_v46, %s9629_s19  ;;  %v2305_v42 = vld [vmem:[#allocation2 + $0x80] sm:$0xff]  ;;  %v2306_v46 = vld [vmem:[#allocation2 + $0x90] sm:$0xff] }
 0x27e   :  { %v1750_v49 = vpop.permute.xlu1 %1749  ;;  %v1752_v52 = vpop.permute.xlu0 %1751 }
 0x27f   :  { %1895 = vst.msk [vmem:[#allocation4 + $0x178] sm:$0xff] %vm1847_vm6, %v1750_v49  ;;  %1896 = vst.msk [vmem:[#allocation4 + $0x180] sm:$0xff] %vm1847_vm6, %v1752_v52 }
 0x280   :  { %2122 = vrot.lane.b32.xlu1 %v1953_v48, %s9629_s19  ;;  %2124 = vrot.lane.b32.xlu0 %v1954_v50, %s9629_s19  ;;  %v2307_v48 = vld [vmem:[#allocation2 + $0x98] sm:$0xff]  ;;  %v2308_v50 = vld [vmem:[#allocation2 + $0xa8] sm:$0xff] }
 0x282   :  { %v1754_v54 = vpop.permute.xlu1 %1753  ;;  %v1756_v59 = vpop.permute.xlu0 %1755 }
 0x283   :  { %1897 = vst.msk [vmem:[#allocation4 + $0x188] sm:$0xff] %vm1847_vm6, %v1754_v54  ;;  %1898 = vst.msk [vmem:[#allocation4 + $0x190] sm:$0xff] %vm1847_vm6, %v1756_v59 }
 0x284   :  { %2126 = vrot.lane.b32.xlu1 %v1955_v12, %s9629_s19  ;;  %2128 = vrot.lane.b32.xlu0 %v1956_v55, %s9629_s19  ;;  %v2309_v12 = vld [vmem:[#allocation2 + $0xb0] sm:$0xff]  ;;  %v2310_v55 = vld [vmem:[#allocation2 + $0xc0] sm:$0xff] }
 0x286   :  { %v1758_v57 = vpop.permute.xlu1 %1757  ;;  %v1760_v3 = vpop.permute.xlu0 %1759 }
 0x287   :  { %1899 = vst.msk [vmem:[#allocation4 + $0x198] sm:$0xff] %vm1847_vm6, %v1758_v57  ;;  %1900 = vst.msk [vmem:[#allocation4 + $0x1a0] sm:$0xff] %vm1847_vm6, %v1760_v3 }
 0x288   :  { %2130 = vrot.lane.b32.xlu1 %v1957_v56, %s9629_s19  ;;  %2132 = vrot.lane.b32.xlu0 %v1958_v7, %s9629_s19  ;;  %v2311_v56 = vld [vmem:[#allocation2 + $0xc8] sm:$0xff]  ;;  %v2312_v7 = vld [vmem:[#allocation2 + $0xd8] sm:$0xff] }
 0x28a   :  { %v1762_v63 = vpop.permute.xlu1 %1761  ;;  %v1764_v4 = vpop.permute.xlu0 %1763 }
 0x28b   :  { %1901 = vst.msk [vmem:[#allocation4 + $0x1a8] sm:$0xff] %vm1847_vm6, %v1762_v63  ;;  %1902 = vst.msk [vmem:[#allocation4 + $0x1b0] sm:$0xff] %vm1847_vm6, %v1764_v4 }
 0x28c   :  { %2134 = vrot.lane.b32.xlu1 %v1959_v62, %s9629_s19  ;;  %2136 = vrot.lane.b32.xlu0 %v1960_v2, %s9629_s19  ;;  %v2313_v62 = vld [vmem:[#allocation2 + $0xe0] sm:$0xff]  ;;  %v2314_v2 = vld [vmem:[#allocation2 + $0xf0] sm:$0xff] }
 0x28e   :  { %v1766_v8 = vpop.permute.xlu1 %1765  ;;  %v1768_v13 = vpop.permute.xlu0 %1767 }
 0x28f   :  { %1903 = vst.msk [vmem:[#allocation4 + $0x1b8] sm:$0xff] %vm1847_vm6, %v1766_v8  ;;  %1904 = vst.msk [vmem:[#allocation4 + $0x1c0] sm:$0xff] %vm1847_vm6, %v1768_v13 }
 0x290   :  { %2138 = vrot.lane.b32.xlu1 %v1961_v6, %s9629_s19  ;;  %2140 = vrot.lane.b32.xlu0 %v1962_v11, %s9629_s19  ;;  %v2315_v6 = vld [vmem:[#allocation2 + $0xf8] sm:$0xff]  ;;  %v2316_v11 = vld [vmem:[#allocation2 + $0x108] sm:$0xff] }
 0x292   :  { %v1770_v20 = vpop.permute.xlu1 %1769  ;;  %v1772_v28 = vpop.permute.xlu0 %1771 }
 0x293   :  { %1905 = vst.msk [vmem:[#allocation4 + $0x1c8] sm:$0xff] %vm1847_vm6, %v1770_v20  ;;  %1906 = vst.msk [vmem:[#allocation4 + $0x1d0] sm:$0xff] %vm1847_vm6, %v1772_v28 }
 0x294   :  { %2142 = vrot.lane.b32.xlu1 %v1963_v16, %s9629_s19  ;;  %2144 = vrot.lane.b32.xlu0 %v1964_v24, %s9629_s19  ;;  %v2317_v16 = vld [vmem:[#allocation2 + $0x110] sm:$0xff]  ;;  %v2318_v24 = vld [vmem:[#allocation2 + $0x120] sm:$0xff] }
 0x296   :  { %v1774_v43 = vpop.permute.xlu1 %1773  ;;  %v1776_v58 = vpop.permute.xlu0 %1775 }
 0x297   :  { %1907 = vst.msk [vmem:[#allocation4 + $0x1d8] sm:$0xff] %vm1847_vm6, %v1774_v43  ;;  %1908 = vst.msk [vmem:[#allocation4 + $0x1e0] sm:$0xff] %vm1847_vm6, %v1776_v58 }
 0x298   :  { %2146 = vrot.lane.b32.xlu1 %v1965_v35, %s9629_s19  ;;  %2148 = vrot.lane.b32.xlu0 %v1966_v51, %s9629_s19  ;;  %v2319_v35 = vld [vmem:[#allocation2 + $0x128] sm:$0xff]  ;;  %v2320_v51 = vld [vmem:[#allocation2 + $0x138] sm:$0xff] }
 0x29a   :  { %v1778_v1 = vpop.permute.xlu1 %1777  ;;  %v1780_v9 = vpop.permute.xlu0 %1779 }
 0x29b   :  { %1909 = vst.msk [vmem:[#allocation4 + $0x1e8] sm:$0xff] %vm1847_vm6, %v1778_v1  ;;  %1910 = vst.msk [vmem:[#allocation4 + $0x1f0] sm:$0xff] %vm1847_vm6, %v1780_v9 }
 0x29c   :  { %2150 = vrot.lane.b32.xlu1 %v1967_v60, %s9629_s19  ;;  %2152 = vrot.lane.b32.xlu0 %v1968_v5, %s9629_s19  ;;  %v2321_v60 = vld [vmem:[#allocation2 + $0x140] sm:$0xff]  ;;  %v2322_v5 = vld [vmem:[#allocation2 + $0x150] sm:$0xff] }
 0x29e   :  { %v1782_v21 = vpop.permute.xlu1 %1781  ;;  %v2041_v31 = vpop.permute.xlu0 %2040 }
 0x29f   :  { %1911 = vst.msk [vmem:[#allocation4 + $0x1f8] sm:$0xff] %vm1847_vm6, %v1782_v21  ;;  %vm7190_vm6 = vcmask 458112  }
 0x2a0   :  { %2154 = vrot.lane.b32.xlu1 %v1969_v14, %s9629_s19  ;;  %2233 = vst.msk [vmem:[#allocation4] sm:$0xff] %vm2232_vm7, %v2041_v31  ;;  %2156 = vrot.lane.b32.xlu0 %v1970_v53, %s9629_s19  ;;  %v2323_v14 = vld [vmem:[#allocation2 + $0x158] sm:$0xff]  ;;  %v2324_v53 = vld [vmem:[#allocation2 + $0x168] sm:$0xff] }
 0x2a2   :  { %v2043_v17 = vpop.permute.xlu1 %2042  ;;  %v2045_v37 = vpop.permute.xlu0 %2044 }
 0x2a3   :  { %2234 = vst.msk [vmem:[#allocation4 + $0x8] sm:$0xff] %vm2232_vm7, %v2043_v17  ;;  %2235 = vst.msk [vmem:[#allocation4 + $0x10] sm:$0xff] %vm2232_vm7, %v2045_v37 }
 0x2a4   :  { %2158 = vrot.lane.b32.xlu1 %v1971_v45, %s9629_s19  ;;  %2160 = vrot.lane.b32.xlu0 %v1972_v0, %s9629_s19  ;;  %v2325_v45 = vld [vmem:[#allocation2 + $0x170] sm:$0xff]  ;;  %v2326_v0 = vld [vmem:[#allocation2 + $0x180] sm:$0xff] }
 0x2a6   :  { %v2047_v61 = vpop.permute.xlu1 %2046  ;;  %v2049_v15 = vpop.permute.xlu0 %2048 }
 0x2a7   :  { %2236 = vst.msk [vmem:[#allocation4 + $0x18] sm:$0xff] %vm2232_vm7, %v2047_v61  ;;  %2237 = vst.msk [vmem:[#allocation4 + $0x20] sm:$0xff] %vm2232_vm7, %v2049_v15 }
 0x2a8   :  { %2162 = vrot.lane.b32.xlu1 %v1973_v25, %s9629_s19  ;;  %2164 = vrot.lane.b32.xlu0 %v1974_v10, %s9629_s19  ;;  %v2327_v25 = vld [vmem:[#allocation2 + $0x188] sm:$0xff]  ;;  %v2328_v10 = vld [vmem:[#allocation2 + $0x198] sm:$0xff] }
 0x2aa   :  { %v2051_v19 = vpop.permute.xlu1 %2050  ;;  %v2053_v23 = vpop.permute.xlu0 %2052 }
 0x2ab   :  { %2238 = vst.msk [vmem:[#allocation4 + $0x28] sm:$0xff] %vm2232_vm7, %v2051_v19  ;;  %2239 = vst.msk [vmem:[#allocation4 + $0x30] sm:$0xff] %vm2232_vm7, %v2053_v23 }
 0x2ac   :  { %2166 = vrot.lane.b32.xlu1 %v1975_v18, %s9629_s19  ;;  %2426 = vrot.lane.b32.xlu0 %v2298_v22, %s9630_s20  ;;  %v2329_v18 = vld [vmem:[#allocation2 + $0x1a0] sm:$0xff] }
 0x2ad   :  { %v2330_v22 = vld [vmem:[#allocation2 + $0x1e0] sm:$0xff] }
 0x2ae   :  { %v2055_v27 = vpop.permute.xlu1 %2054  ;;  %v2057_v30 = vpop.permute.xlu0 %2056 }
 0x2af   :  { %2240 = vst.msk [vmem:[#allocation4 + $0x38] sm:$0xff] %vm2232_vm7, %v2055_v27  ;;  %2241 = vst.msk [vmem:[#allocation4 + $0x40] sm:$0xff] %vm2232_vm7, %v2057_v30 }
 0x2b0   :  { %2428 = vrot.lane.b32.xlu1 %v2299_v26, %s9630_s20  ;;  %2430 = vrot.lane.b32.xlu0 %v2300_v29, %s9630_s20  ;;  %v2331_v26 = vld [vmem:[#allocation2 + $0x1e8] sm:$0xff]  ;;  %v2332_v29 = vld [vmem:[#allocation2 + $0x1f8] sm:$0xff] }
 0x2b2   :  { %v2059_v33 = vpop.permute.xlu1 %2058  ;;  %v2061_v36 = vpop.permute.xlu0 %2060 }
 0x2b3   :  { %2242 = vst.msk [vmem:[#allocation4 + $0x48] sm:$0xff] %vm2232_vm7, %v2059_v33  ;;  %2243 = vst.msk [vmem:[#allocation4 + $0x50] sm:$0xff] %vm2232_vm7, %v2061_v36 }
 0x2b4   :  { %2432 = vrot.lane.b32.xlu1 %v2301_v32, %s9630_s20  ;;  %2434 = vrot.lane.b32.xlu0 %v2302_v34, %s9630_s20  ;;  %v2333_v32 = vld [vmem:[#allocation2 + $0x200] sm:$0xff]  ;;  %v2334_v34 = vld [vmem:[#allocation2 + $0x210] sm:$0xff] }
 0x2b6   :  { %v2063_v39 = vpop.permute.xlu1 %2062  ;;  %v2065_v41 = vpop.permute.xlu0 %2064 }
 0x2b7   :  { %2244 = vst.msk [vmem:[#allocation4 + $0x58] sm:$0xff] %vm2232_vm7, %v2063_v39  ;;  %2245 = vst.msk [vmem:[#allocation4 + $0x60] sm:$0xff] %vm2232_vm7, %v2065_v41 }
 0x2b8   :  { %2436 = vrot.lane.b32.xlu1 %v2303_v38, %s9630_s20  ;;  %2438 = vrot.lane.b32.xlu0 %v2304_v40, %s9630_s20  ;;  %v2335_v38 = vld [vmem:[#allocation2 + $0x218] sm:$0xff]  ;;  %v2336_v40 = vld [vmem:[#allocation2 + $0x228] sm:$0xff] }
 0x2ba   :  { %v2067_v44 = vpop.permute.xlu1 %2066  ;;  %v2069_v47 = vpop.permute.xlu0 %2068 }
 0x2bb   :  { %2246 = vst.msk [vmem:[#allocation4 + $0x68] sm:$0xff] %vm2232_vm7, %v2067_v44  ;;  %2247 = vst.msk [vmem:[#allocation4 + $0x70] sm:$0xff] %vm2232_vm7, %v2069_v47 }
 0x2bc   :  { %2440 = vrot.lane.b32.xlu1 %v2305_v42, %s9630_s20  ;;  %2442 = vrot.lane.b32.xlu0 %v2306_v46, %s9630_s20  ;;  %v2337_v42 = vld [vmem:[#allocation2 + $0x230] sm:$0xff]  ;;  %v2338_v46 = vld [vmem:[#allocation2 + $0x240] sm:$0xff] }
 0x2be   :  { %v2071_v49 = vpop.permute.xlu1 %2070  ;;  %v2073_v52 = vpop.permute.xlu0 %2072 }
 0x2bf   :  { %2248 = vst.msk [vmem:[#allocation4 + $0x78] sm:$0xff] %vm2232_vm7, %v2071_v49  ;;  %2249 = vst.msk [vmem:[#allocation4 + $0x80] sm:$0xff] %vm2232_vm7, %v2073_v52 }
 0x2c0   :  { %2444 = vrot.lane.b32.xlu1 %v2307_v48, %s9630_s20  ;;  %2446 = vrot.lane.b32.xlu0 %v2308_v50, %s9630_s20  ;;  %v2339_v48 = vld [vmem:[#allocation2 + $0x248] sm:$0xff]  ;;  %v2340_v50 = vld [vmem:[#allocation2 + $0x258] sm:$0xff] }
 0x2c2   :  { %v2075_v54 = vpop.permute.xlu1 %2074  ;;  %v2077_v59 = vpop.permute.xlu0 %2076 }
 0x2c3   :  { %2250 = vst.msk [vmem:[#allocation4 + $0x88] sm:$0xff] %vm2232_vm7, %v2075_v54  ;;  %2251 = vst.msk [vmem:[#allocation4 + $0x90] sm:$0xff] %vm2232_vm7, %v2077_v59 }
 0x2c4   :  { %2448 = vrot.lane.b32.xlu1 %v2309_v12, %s9630_s20  ;;  %2450 = vrot.lane.b32.xlu0 %v2310_v55, %s9630_s20  ;;  %v2341_v12 = vld [vmem:[#allocation2 + $0x260] sm:$0xff]  ;;  %v2342_v55 = vld [vmem:[#allocation2 + $0x270] sm:$0xff] }
 0x2c6   :  { %v2079_v57 = vpop.permute.xlu1 %2078  ;;  %v2081_v3 = vpop.permute.xlu0 %2080 }
 0x2c7   :  { %2252 = vst.msk [vmem:[#allocation4 + $0x98] sm:$0xff] %vm2232_vm7, %v2079_v57  ;;  %2253 = vst.msk [vmem:[#allocation4 + $0xa0] sm:$0xff] %vm2232_vm7, %v2081_v3 }
 0x2c8   :  { %2452 = vrot.lane.b32.xlu1 %v2311_v56, %s9630_s20  ;;  %2454 = vrot.lane.b32.xlu0 %v2312_v7, %s9630_s20  ;;  %v2343_v56 = vld [vmem:[#allocation2 + $0x278] sm:$0xff]  ;;  %v2344_v7 = vld [vmem:[#allocation2 + $0x288] sm:$0xff] }
 0x2ca   :  { %v2083_v63 = vpop.permute.xlu1 %2082  ;;  %v2085_v4 = vpop.permute.xlu0 %2084 }
 0x2cb   :  { %2254 = vst.msk [vmem:[#allocation4 + $0xa8] sm:$0xff] %vm2232_vm7, %v2083_v63  ;;  %2255 = vst.msk [vmem:[#allocation4 + $0xb0] sm:$0xff] %vm2232_vm7, %v2085_v4 }
 0x2cc   :  { %2456 = vrot.lane.b32.xlu1 %v2313_v62, %s9630_s20  ;;  %2458 = vrot.lane.b32.xlu0 %v2314_v2, %s9630_s20  ;;  %v2345_v62 = vld [vmem:[#allocation2 + $0x290] sm:$0xff]  ;;  %v2346_v2 = vld [vmem:[#allocation2 + $0x2a0] sm:$0xff] }
 0x2ce   :  { %v2087_v8 = vpop.permute.xlu1 %2086  ;;  %v2089_v13 = vpop.permute.xlu0 %2088 }
 0x2cf   :  { %2256 = vst.msk [vmem:[#allocation4 + $0xb8] sm:$0xff] %vm2232_vm7, %v2087_v8  ;;  %2257 = vst.msk [vmem:[#allocation4 + $0xc0] sm:$0xff] %vm2232_vm7, %v2089_v13 }
 0x2d0   :  { %2460 = vrot.lane.b32.xlu1 %v2315_v6, %s9630_s20  ;;  %2462 = vrot.lane.b32.xlu0 %v2316_v11, %s9630_s20  ;;  %v2347_v6 = vld [vmem:[#allocation2 + $0x2a8] sm:$0xff]  ;;  %v2348_v11 = vld [vmem:[#allocation2 + $0x2b8] sm:$0xff] }
 0x2d2   :  { %v2091_v20 = vpop.permute.xlu1 %2090  ;;  %v2093_v28 = vpop.permute.xlu0 %2092 }
 0x2d3   :  { %2258 = vst.msk [vmem:[#allocation4 + $0xc8] sm:$0xff] %vm2232_vm7, %v2091_v20  ;;  %2259 = vst.msk [vmem:[#allocation4 + $0xd0] sm:$0xff] %vm2232_vm7, %v2093_v28 }
 0x2d4   :  { %2464 = vrot.lane.b32.xlu1 %v2317_v16, %s9630_s20  ;;  %2466 = vrot.lane.b32.xlu0 %v2318_v24, %s9630_s20  ;;  %v2349_v16 = vld [vmem:[#allocation2 + $0x2c0] sm:$0xff]  ;;  %v2350_v24 = vld [vmem:[#allocation2 + $0x2d0] sm:$0xff] }
 0x2d6   :  { %v2095_v43 = vpop.permute.xlu1 %2094  ;;  %v2097_v58 = vpop.permute.xlu0 %2096 }
 0x2d7   :  { %2260 = vst.msk [vmem:[#allocation4 + $0xd8] sm:$0xff] %vm2232_vm7, %v2095_v43  ;;  %2261 = vst.msk [vmem:[#allocation4 + $0xe0] sm:$0xff] %vm2232_vm7, %v2097_v58 }
 0x2d8   :  { %2468 = vrot.lane.b32.xlu1 %v2319_v35, %s9630_s20  ;;  %2470 = vrot.lane.b32.xlu0 %v2320_v51, %s9630_s20  ;;  %v2351_v35 = vld [vmem:[#allocation2 + $0x2d8] sm:$0xff]  ;;  %v2352_v51 = vld [vmem:[#allocation2 + $0x2e8] sm:$0xff] }
 0x2da   :  { %v2099_v1 = vpop.permute.xlu1 %2098  ;;  %v2101_v9 = vpop.permute.xlu0 %2100 }
 0x2db   :  { %2262 = vst.msk [vmem:[#allocation4 + $0xe8] sm:$0xff] %vm2232_vm7, %v2099_v1  ;;  %2263 = vst.msk [vmem:[#allocation4 + $0xf0] sm:$0xff] %vm2232_vm7, %v2101_v9 }
 0x2dc   :  { %2472 = vrot.lane.b32.xlu1 %v2321_v60, %s9630_s20  ;;  %2474 = vrot.lane.b32.xlu0 %v2322_v5, %s9630_s20  ;;  %v2353_v60 = vld [vmem:[#allocation2 + $0x2f0] sm:$0xff]  ;;  %v2354_v5 = vld [vmem:[#allocation2 + $0x300] sm:$0xff] }
 0x2de   :  { %v2103_v21 = vpop.permute.xlu1 %2102  ;;  %v2105_v31 = vpop.permute.xlu0 %2104 }
 0x2df   :  { %2264 = vst.msk [vmem:[#allocation4 + $0xf8] sm:$0xff] %vm2232_vm7, %v2103_v21  ;;  %2265 = vst.msk [vmem:[#allocation4 + $0x100] sm:$0xff] %vm2232_vm7, %v2105_v31 }
 0x2e0   :  { %2476 = vrot.lane.b32.xlu1 %v2323_v14, %s9630_s20  ;;  %2478 = vrot.lane.b32.xlu0 %v2324_v53, %s9630_s20  ;;  %v2355_v14 = vld [vmem:[#allocation2 + $0x308] sm:$0xff]  ;;  %v2356_v53 = vld [vmem:[#allocation2 + $0x318] sm:$0xff] }
 0x2e2   :  { %v2107_v17 = vpop.permute.xlu1 %2106  ;;  %v2109_v37 = vpop.permute.xlu0 %2108 }
 0x2e3   :  { %2266 = vst.msk [vmem:[#allocation4 + $0x108] sm:$0xff] %vm2232_vm7, %v2107_v17  ;;  %2267 = vst.msk [vmem:[#allocation4 + $0x110] sm:$0xff] %vm2232_vm7, %v2109_v37 }
 0x2e4   :  { %2480 = vrot.lane.b32.xlu1 %v2325_v45, %s9630_s20  ;;  %2482 = vrot.lane.b32.xlu0 %v2326_v0, %s9630_s20  ;;  %v2357_v45 = vld [vmem:[#allocation2 + $0x320] sm:$0xff]  ;;  %v2358_v0 = vld [vmem:[#allocation2 + $0x330] sm:$0xff] }
 0x2e6   :  { %v2111_v61 = vpop.permute.xlu1 %2110  ;;  %v2113_v15 = vpop.permute.xlu0 %2112 }
 0x2e7   :  { %2268 = vst.msk [vmem:[#allocation4 + $0x118] sm:$0xff] %vm2232_vm7, %v2111_v61  ;;  %2269 = vst.msk [vmem:[#allocation4 + $0x120] sm:$0xff] %vm2232_vm7, %v2113_v15 }
 0x2e8   :  { %2484 = vrot.lane.b32.xlu1 %v2327_v25, %s9630_s20  ;;  %2486 = vrot.lane.b32.xlu0 %v2328_v10, %s9630_s20  ;;  %v2359_v25 = vld [vmem:[#allocation2 + $0x338] sm:$0xff]  ;;  %v2360_v10 = vld [vmem:[#allocation2 + $0x348] sm:$0xff] }
 0x2ea   :  { %v2115_v19 = vpop.permute.xlu1 %2114  ;;  %v2117_v23 = vpop.permute.xlu0 %2116 }
 0x2eb   :  { %2270 = vst.msk [vmem:[#allocation4 + $0x128] sm:$0xff] %vm2232_vm7, %v2115_v19  ;;  %2271 = vst.msk [vmem:[#allocation4 + $0x130] sm:$0xff] %vm2232_vm7, %v2117_v23 }
 0x2ec   :  { %2488 = vrot.lane.b32.xlu1 %v2329_v18, %s9630_s20  ;;  %2490 = vrot.lane.b32.xlu0 %v2330_v22, %s9630_s20  ;;  %v2361_v18 = vld [vmem:[#allocation2 + $0x350] sm:$0xff] }
 0x2ed   :  { %v2683_v22 = vld [vmem:[#allocation2 + $0x31] sm:$0xff] }
 0x2ee   :  { %v2119_v27 = vpop.permute.xlu1 %2118  ;;  %v2121_v30 = vpop.permute.xlu0 %2120 }
 0x2ef   :  { %2272 = vst.msk [vmem:[#allocation4 + $0x138] sm:$0xff] %vm2232_vm7, %v2119_v27  ;;  %2273 = vst.msk [vmem:[#allocation4 + $0x140] sm:$0xff] %vm2232_vm7, %v2121_v30 }
 0x2f0   :  { %2492 = vrot.lane.b32.xlu1 %v2331_v26, %s9630_s20  ;;  %2494 = vrot.lane.b32.xlu0 %v2332_v29, %s9630_s20  ;;  %v2684_v26 = vld [vmem:[#allocation2 + $0x39] sm:$0xff]  ;;  %v2685_v29 = vld [vmem:[#allocation2 + $0x49] sm:$0xff] }
 0x2f2   :  { %v2123_v33 = vpop.permute.xlu1 %2122  ;;  %v2125_v36 = vpop.permute.xlu0 %2124 }
 0x2f3   :  { %2274 = vst.msk [vmem:[#allocation4 + $0x148] sm:$0xff] %vm2232_vm7, %v2123_v33  ;;  %2275 = vst.msk [vmem:[#allocation4 + $0x150] sm:$0xff] %vm2232_vm7, %v2125_v36 }
 0x2f4   :  { %2496 = vrot.lane.b32.xlu1 %v2333_v32, %s9630_s20  ;;  %2498 = vrot.lane.b32.xlu0 %v2334_v34, %s9630_s20  ;;  %v2686_v32 = vld [vmem:[#allocation2 + $0x51] sm:$0xff]  ;;  %v2687_v34 = vld [vmem:[#allocation2 + $0x61] sm:$0xff] }
 0x2f6   :  { %v2127_v39 = vpop.permute.xlu1 %2126  ;;  %v2129_v41 = vpop.permute.xlu0 %2128 }
 0x2f7   :  { %2276 = vst.msk [vmem:[#allocation4 + $0x158] sm:$0xff] %vm2232_vm7, %v2127_v39  ;;  %2277 = vst.msk [vmem:[#allocation4 + $0x160] sm:$0xff] %vm2232_vm7, %v2129_v41 }
 0x2f8   :  { %2500 = vrot.lane.b32.xlu1 %v2335_v38, %s9630_s20  ;;  %2502 = vrot.lane.b32.xlu0 %v2336_v40, %s9630_s20  ;;  %v2688_v38 = vld [vmem:[#allocation2 + $0x69] sm:$0xff]  ;;  %v2689_v40 = vld [vmem:[#allocation2 + $0x79] sm:$0xff] }
 0x2fa   :  { %v2131_v44 = vpop.permute.xlu1 %2130  ;;  %v2133_v47 = vpop.permute.xlu0 %2132 }
 0x2fb   :  { %2278 = vst.msk [vmem:[#allocation4 + $0x168] sm:$0xff] %vm2232_vm7, %v2131_v44  ;;  %2279 = vst.msk [vmem:[#allocation4 + $0x170] sm:$0xff] %vm2232_vm7, %v2133_v47 }
 0x2fc   :  { %2504 = vrot.lane.b32.xlu1 %v2337_v42, %s9630_s20  ;;  %2506 = vrot.lane.b32.xlu0 %v2338_v46, %s9630_s20  ;;  %v2690_v42 = vld [vmem:[#allocation2 + $0x81] sm:$0xff]  ;;  %v2691_v46 = vld [vmem:[#allocation2 + $0x91] sm:$0xff] }
 0x2fe   :  { %v2135_v49 = vpop.permute.xlu1 %2134  ;;  %v2137_v52 = vpop.permute.xlu0 %2136 }
 0x2ff   :  { %2280 = vst.msk [vmem:[#allocation4 + $0x178] sm:$0xff] %vm2232_vm7, %v2135_v49  ;;  %2281 = vst.msk [vmem:[#allocation4 + $0x180] sm:$0xff] %vm2232_vm7, %v2137_v52 }
 0x300   :  { %2508 = vrot.lane.b32.xlu1 %v2339_v48, %s9630_s20  ;;  %2510 = vrot.lane.b32.xlu0 %v2340_v50, %s9630_s20  ;;  %v2692_v48 = vld [vmem:[#allocation2 + $0x99] sm:$0xff]  ;;  %v2693_v50 = vld [vmem:[#allocation2 + $0xa9] sm:$0xff] }
 0x302   :  { %v2139_v54 = vpop.permute.xlu1 %2138  ;;  %v2141_v59 = vpop.permute.xlu0 %2140 }
 0x303   :  { %2282 = vst.msk [vmem:[#allocation4 + $0x188] sm:$0xff] %vm2232_vm7, %v2139_v54  ;;  %2283 = vst.msk [vmem:[#allocation4 + $0x190] sm:$0xff] %vm2232_vm7, %v2141_v59 }
 0x304   :  { %2512 = vrot.lane.b32.xlu1 %v2341_v12, %s9630_s20  ;;  %2514 = vrot.lane.b32.xlu0 %v2342_v55, %s9630_s20  ;;  %v2694_v12 = vld [vmem:[#allocation2 + $0xb1] sm:$0xff]  ;;  %v2695_v55 = vld [vmem:[#allocation2 + $0xc1] sm:$0xff] }
 0x306   :  { %v2143_v57 = vpop.permute.xlu1 %2142  ;;  %v2145_v3 = vpop.permute.xlu0 %2144 }
 0x307   :  { %2284 = vst.msk [vmem:[#allocation4 + $0x198] sm:$0xff] %vm2232_vm7, %v2143_v57  ;;  %2285 = vst.msk [vmem:[#allocation4 + $0x1a0] sm:$0xff] %vm2232_vm7, %v2145_v3 }
 0x308   :  { %2516 = vrot.lane.b32.xlu1 %v2343_v56, %s9630_s20  ;;  %2518 = vrot.lane.b32.xlu0 %v2344_v7, %s9630_s20  ;;  %v2696_v56 = vld [vmem:[#allocation2 + $0xc9] sm:$0xff]  ;;  %v2697_v7 = vld [vmem:[#allocation2 + $0xd9] sm:$0xff] }
 0x30a   :  { %v2147_v63 = vpop.permute.xlu1 %2146  ;;  %v2149_v4 = vpop.permute.xlu0 %2148 }
 0x30b   :  { %2286 = vst.msk [vmem:[#allocation4 + $0x1a8] sm:$0xff] %vm2232_vm7, %v2147_v63  ;;  %2287 = vst.msk [vmem:[#allocation4 + $0x1b0] sm:$0xff] %vm2232_vm7, %v2149_v4 }
 0x30c   :  { %2520 = vrot.lane.b32.xlu1 %v2345_v62, %s9630_s20  ;;  %2522 = vrot.lane.b32.xlu0 %v2346_v2, %s9630_s20  ;;  %v2698_v62 = vld [vmem:[#allocation2 + $0xe1] sm:$0xff]  ;;  %v2699_v2 = vld [vmem:[#allocation2 + $0xf1] sm:$0xff] }
 0x30e   :  { %v2151_v8 = vpop.permute.xlu1 %2150  ;;  %v2153_v13 = vpop.permute.xlu0 %2152 }
 0x30f   :  { %2288 = vst.msk [vmem:[#allocation4 + $0x1b8] sm:$0xff] %vm2232_vm7, %v2151_v8  ;;  %2289 = vst.msk [vmem:[#allocation4 + $0x1c0] sm:$0xff] %vm2232_vm7, %v2153_v13 }
 0x310   :  { %2524 = vrot.lane.b32.xlu1 %v2347_v6, %s9630_s20  ;;  %2526 = vrot.lane.b32.xlu0 %v2348_v11, %s9630_s20  ;;  %v2700_v6 = vld [vmem:[#allocation2 + $0xf9] sm:$0xff]  ;;  %v2701_v11 = vld [vmem:[#allocation2 + $0x109] sm:$0xff] }
 0x312   :  { %v2155_v20 = vpop.permute.xlu1 %2154  ;;  %v2157_v28 = vpop.permute.xlu0 %2156 }
 0x313   :  { %2290 = vst.msk [vmem:[#allocation4 + $0x1c8] sm:$0xff] %vm2232_vm7, %v2155_v20  ;;  %2291 = vst.msk [vmem:[#allocation4 + $0x1d0] sm:$0xff] %vm2232_vm7, %v2157_v28 }
 0x314   :  { %2528 = vrot.lane.b32.xlu1 %v2349_v16, %s9630_s20  ;;  %2530 = vrot.lane.b32.xlu0 %v2350_v24, %s9630_s20  ;;  %v2702_v16 = vld [vmem:[#allocation2 + $0x111] sm:$0xff]  ;;  %v2703_v24 = vld [vmem:[#allocation2 + $0x121] sm:$0xff] }
 0x316   :  { %v2159_v43 = vpop.permute.xlu1 %2158  ;;  %v2161_v58 = vpop.permute.xlu0 %2160 }
 0x317   :  { %2292 = vst.msk [vmem:[#allocation4 + $0x1d8] sm:$0xff] %vm2232_vm7, %v2159_v43  ;;  %2293 = vst.msk [vmem:[#allocation4 + $0x1e0] sm:$0xff] %vm2232_vm7, %v2161_v58 }
 0x318   :  { %2532 = vrot.lane.b32.xlu1 %v2351_v35, %s9630_s20  ;;  %2534 = vrot.lane.b32.xlu0 %v2352_v51, %s9630_s20  ;;  %v2704_v35 = vld [vmem:[#allocation2 + $0x129] sm:$0xff]  ;;  %v2705_v51 = vld [vmem:[#allocation2 + $0x139] sm:$0xff] }
 0x31a   :  { %v2163_v1 = vpop.permute.xlu1 %2162  ;;  %v2165_v9 = vpop.permute.xlu0 %2164 }
 0x31b   :  { %2294 = vst.msk [vmem:[#allocation4 + $0x1e8] sm:$0xff] %vm2232_vm7, %v2163_v1  ;;  %2295 = vst.msk [vmem:[#allocation4 + $0x1f0] sm:$0xff] %vm2232_vm7, %v2165_v9 }
 0x31c   :  { %2536 = vrot.lane.b32.xlu1 %v2353_v60, %s9630_s20  ;;  %2538 = vrot.lane.b32.xlu0 %v2354_v5, %s9630_s20  ;;  %v2706_v60 = vld [vmem:[#allocation2 + $0x141] sm:$0xff]  ;;  %v2707_v5 = vld [vmem:[#allocation2 + $0x151] sm:$0xff] }
 0x31e   :  { %v2167_v21 = vpop.permute.xlu1 %2166  ;;  %v2427_v31 = vpop.permute.xlu0 %2426 }
 0x31f   :  { %2296 = vst.msk [vmem:[#allocation4 + $0x1f8] sm:$0xff] %vm2232_vm7, %v2167_v21  ;;  %vm7575_vm7 = vcmask 523712  }
 0x320   :  { %2540 = vrot.lane.b32.xlu1 %v2355_v14, %s9630_s20  ;;  %2619 = vst.msk [vmem:[#allocation4] sm:$0xff] %vm2618_vm8, %v2427_v31  ;;  %2542 = vrot.lane.b32.xlu0 %v2356_v53, %s9630_s20  ;;  %v2708_v14 = vld [vmem:[#allocation2 + $0x159] sm:$0xff]  ;;  %v2709_v53 = vld [vmem:[#allocation2 + $0x169] sm:$0xff] }
 0x322   :  { %v2429_v17 = vpop.permute.xlu1 %2428  ;;  %v2431_v37 = vpop.permute.xlu0 %2430 }
 0x323   :  { %2620 = vst.msk [vmem:[#allocation4 + $0x8] sm:$0xff] %vm2618_vm8, %v2429_v17  ;;  %2621 = vst.msk [vmem:[#allocation4 + $0x10] sm:$0xff] %vm2618_vm8, %v2431_v37 }
 0x324   :  { %2544 = vrot.lane.b32.xlu1 %v2357_v45, %s9630_s20  ;;  %2546 = vrot.lane.b32.xlu0 %v2358_v0, %s9630_s20  ;;  %v2710_v45 = vld [vmem:[#allocation2 + $0x171] sm:$0xff]  ;;  %v2711_v0 = vld [vmem:[#allocation2 + $0x181] sm:$0xff] }
 0x326   :  { %v2433_v61 = vpop.permute.xlu1 %2432  ;;  %v2435_v15 = vpop.permute.xlu0 %2434 }
 0x327   :  { %2622 = vst.msk [vmem:[#allocation4 + $0x18] sm:$0xff] %vm2618_vm8, %v2433_v61  ;;  %2623 = vst.msk [vmem:[#allocation4 + $0x20] sm:$0xff] %vm2618_vm8, %v2435_v15  ;;  %v2714_v15 = vld [vmem:[#allocation2 + $0x1a1] sm:$0xff] }
 0x328   :  { %2548 = vrot.lane.b32.xlu1 %v2359_v25, %s9630_s20  ;;  %2550 = vrot.lane.b32.xlu0 %v2360_v10, %s9630_s20  ;;  %v2712_v25 = vld [vmem:[#allocation2 + $0x189] sm:$0xff]  ;;  %v2713_v10 = vld [vmem:[#allocation2 + $0x199] sm:$0xff] }
 0x32a   :  { %v2437_v19 = vpop.permute.xlu1 %2436  ;;  %v2439_v23 = vpop.permute.xlu0 %2438 }
 0x32b   :  { %2624 = vst.msk [vmem:[#allocation4 + $0x28] sm:$0xff] %vm2618_vm8, %v2437_v19  ;;  %2625 = vst.msk [vmem:[#allocation4 + $0x30] sm:$0xff] %vm2618_vm8, %v2439_v23  ;;  %v2715_v23 = vld [vmem:[#allocation2 + $0x1e1] sm:$0xff] }
 0x32c   :  { %2552 = vrot.lane.b32.xlu1 %v2361_v18, %s9630_s20  ;;  %2811 = vrot.lane.b32.xlu0 %v2683_v22, %s9631_s21  ;;  %v9608_v18 = vld [vmem:[%s16531_s1] sm:$0xff]  }
 0x32d   :  { %9439 = vmatprep.subr.bf16.mxu0 %v9608_v18 }
 0x32e   :  { %v2441_v27 = vpop.permute.xlu1 %2440  ;;  %v2443_v30 = vpop.permute.xlu0 %2442  ;;  %9440 = vmatpush3.bf16.msra.mxu0 %v9608_v18  ;;  %v3085_v18 = vld [vmem:[#allocation2 + $0xfa] sm:$0xff] }
 0x32f   :  { %2626 = vst.msk [vmem:[#allocation4 + $0x38] sm:$0xff] %vm2618_vm8, %v2441_v27  ;;  %2627 = vst.msk [vmem:[#allocation4 + $0x40] sm:$0xff] %vm2618_vm8, %v2443_v30 }
 0x330   :  { %2813 = vrot.lane.b32.xlu1 %v2684_v26, %s9631_s21  ;;  %2815 = vrot.lane.b32.xlu0 %v2685_v29, %s9631_s21  ;;  %v9609_v26 = vld [vmem:[%s16531_s1 + $0x8] sm:$0xff]  }
 0x331   :  { %v2716_v29 = vld [vmem:[#allocation2 + $0x1e9] sm:$0xff]  ;;  %9441 = vmatprep.subr.bf16.mxu0 %v9609_v26 }
 0x332   :  { %v2445_v33 = vpop.permute.xlu1 %2444  ;;  %v2447_v36 = vpop.permute.xlu0 %2446  ;;  %9442 = vmatpush3.bf16.msra.mxu0 %v9609_v26  ;;  %v3087_v26 = vld [vmem:[#allocation2 + $0x112] sm:$0xff] }
 0x333   :  { %2628 = vst.msk [vmem:[#allocation4 + $0x48] sm:$0xff] %vm2618_vm8, %v2445_v33  ;;  %2629 = vst.msk [vmem:[#allocation4 + $0x50] sm:$0xff] %vm2618_vm8, %v2447_v36  ;;  %v2717_v33 = vld [vmem:[#allocation2 + $0x1f9] sm:$0xff]  ;;  %v2718_v36 = vld [vmem:[#allocation2 + $0x201] sm:$0xff] }
 0x334   :  { %2817 = vrot.lane.b32.xlu1 %v2686_v32, %s9631_s21  ;;  %2819 = vrot.lane.b32.xlu0 %v2687_v34, %s9631_s21  ;;  %v9610_v32 = vld [vmem:[%s16531_s1 + $0x10] sm:$0xff]  }
 0x335   :  { %9443 = vmatprep.subr.bf16.mxu0 %v9610_v32 }
 0x336   :  { %v2449_v39 = vpop.permute.xlu1 %2448  ;;  %v2451_v41 = vpop.permute.xlu0 %2450  ;;  %9444 = vmatpush3.bf16.msra.mxu0 %v9610_v32  ;;  %v3089_v32 = vld [vmem:[#allocation2 + $0x12a] sm:$0xff] }
 0x337   :  { %2630 = vst.msk [vmem:[#allocation4 + $0x58] sm:$0xff] %vm2618_vm8, %v2449_v39  ;;  %2631 = vst.msk [vmem:[#allocation4 + $0x60] sm:$0xff] %vm2618_vm8, %v2451_v41  ;;  %v9611_v39 = vld [vmem:[%s16531_s1 + $0x18] sm:$0xff]  }
 0x338   :  { %2821 = vrot.lane.b32.xlu1 %v2688_v38, %s9631_s21  ;;  %2823 = vrot.lane.b32.xlu0 %v2689_v40, %s9631_s21  ;;  %v2719_v40 = vld [vmem:[#allocation2 + $0x211] sm:$0xff] }
 0x339   :  { %9445 = vmatprep.subr.bf16.mxu0 %v9611_v39 }
 0x33a   :  { %v2453_v44 = vpop.permute.xlu1 %2452  ;;  %v2455_v47 = vpop.permute.xlu0 %2454  ;;  %9446 = vmatpush3.bf16.msra.mxu0 %v9611_v39 }
 0x33b   :  { %2632 = vst.msk [vmem:[#allocation4 + $0x68] sm:$0xff] %vm2618_vm8, %v2453_v44  ;;  %2633 = vst.msk [vmem:[#allocation4 + $0x70] sm:$0xff] %vm2618_vm8, %v2455_v47  ;;  %v2721_v47 = vld [vmem:[#allocation2 + $0x229] sm:$0xff] }
 0x33c   :  { %2825 = vrot.lane.b32.xlu1 %v2690_v42, %s9631_s21  ;;  %2827 = vrot.lane.b32.xlu0 %v2691_v46, %s9631_s21  ;;  %v2720_v42 = vld [vmem:[#allocation2 + $0x219] sm:$0xff] }
 0x33d   :  { %v9612_v46 = vld [vmem:[%s16531_s1 + $0x20] sm:$0xff]  }
 0x33e   :  { %v2457_v49 = vpop.permute.xlu1 %2456  ;;  %v2459_v52 = vpop.permute.xlu0 %2458  ;;  %9447 = vmatprep.subr.bf16.mxu0 %v9612_v46 }
 0x33f   :  { %2634 = vst.msk [vmem:[#allocation4 + $0x78] sm:$0xff] %vm2618_vm8, %v2457_v49  ;;  %2635 = vst.msk [vmem:[#allocation4 + $0x80] sm:$0xff] %vm2618_vm8, %v2459_v52  ;;  %v2722_v49 = vld [vmem:[#allocation2 + $0x231] sm:$0xff]  ;;  %9448 = vmatpush3.bf16.msra.mxu0 %v9612_v46  ;;  %v9613_v52 = vld [vmem:[%s16531_s1 + $0x28] sm:$0xff]  }
 0x340   :  { %2829 = vrot.lane.b32.xlu1 %v2692_v48, %s9631_s21  ;;  %2831 = vrot.lane.b32.xlu0 %v2693_v50, %s9631_s21  ;;  %v3094_v46 = vld [vmem:[#allocation2 + $0x16a] sm:$0xff] }
 0x341   :  { %9449 = vmatprep.subr.bf16.mxu0 %v9613_v52 }
 0x342   :  { %v2461_v54 = vpop.permute.xlu1 %2460  ;;  %v2463_v59 = vpop.permute.xlu0 %2462 }
 0x343   :  { %2636 = vst.msk [vmem:[#allocation4 + $0x88] sm:$0xff] %vm2618_vm8, %v2461_v54  ;;  %2637 = vst.msk [vmem:[#allocation4 + $0x90] sm:$0xff] %vm2618_vm8, %v2463_v59  ;;  %9450 = vmatpush3.bf16.msra.mxu0 %v9613_v52 }
 0x344   :  { %2833 = vrot.lane.b32.xlu1 %v2694_v12, %s9631_s21  ;;  %2835 = vrot.lane.b32.xlu0 %v2695_v55, %s9631_s21  ;;  %v2723_v12 = vld [vmem:[#allocation2 + $0x241] sm:$0xff]  ;;  %v2724_v55 = vld [vmem:[#allocation2 + $0x249] sm:$0xff] }
 0x346   :  { %v2465_v57 = vpop.permute.xlu1 %2464  ;;  %v2467_v3 = vpop.permute.xlu0 %2466 }
 0x347   :  { %2638 = vst.msk [vmem:[#allocation4 + $0x98] sm:$0xff] %vm2618_vm8, %v2465_v57  ;;  %2639 = vst.msk [vmem:[#allocation4 + $0xa0] sm:$0xff] %vm2618_vm8, %v2467_v3  ;;  %v3068_v57 = vld [vmem:[#allocation2 + $0x32] sm:$0xff]  ;;  %v3069_v3 = vld [vmem:[#allocation2 + $0x3a] sm:$0xff] }
 0x348   :  { %2837 = vrot.lane.b32.xlu1 %v2696_v56, %s9631_s21  ;;  %2839 = vrot.lane.b32.xlu0 %v2697_v7, %s9631_s21  ;;  %v9614_v56 = vld [vmem:[%s16531_s1 + $0x30] sm:$0x3f]   ;;  %s9633_s1 = smov 8  }
 0x349   :  { %9591 = vmatprep.subr.msk.bf16.mxu0 %vm3701_vm9, %v9614_v56 }
 0x34a   :  { %v2469_v63 = vpop.permute.xlu1 %2468  ;;  %v2471_v4 = vpop.permute.xlu0 %2470 }
 0x34b   :  { %2640 = vst.msk [vmem:[#allocation4 + $0xa8] sm:$0xff] %vm2618_vm8, %v2469_v63  ;;  %2641 = vst.msk [vmem:[#allocation4 + $0xb0] sm:$0xff] %vm2618_vm8, %v2471_v4 }
 0x34c   :  { %2841 = vrot.lane.b32.xlu1 %v2698_v62, %s9631_s21  ;;  %2843 = vrot.lane.b32.xlu0 %v2699_v2, %s9631_s21  ;;  %v3703_v62 = vsel %vm3701_vm9, %v9614_v56, 0  ;;  %v3070_v2 = vld [vmem:[#allocation2 + $0x4a] sm:$0xff]  ;;  %v3099_v56 = vld [vmem:[#allocation2 + $0x1a2] sm:$0xff]  ;;  %vm8157_vm9 = vcmask 588800  }
 0x34d   :  { %9452 = vmatpush3.bf16.msra.mxu0 %v3703_v62  ;;  %v3101_v62 = vld [vmem:[#allocation2 + $0x1ea] sm:$0xff] }
 0x34e   :  { %v2473_v8 = vpop.permute.xlu1 %2472  ;;  %v2475_v13 = vpop.permute.xlu0 %2474 }
 0x34f   :  { %2642 = vst.msk [vmem:[#allocation4 + $0xb8] sm:$0xff] %vm2618_vm8, %v2473_v8  ;;  %2643 = vst.msk [vmem:[#allocation4 + $0xc0] sm:$0xff] %vm2618_vm8, %v2475_v13 }
 0x350   :  { %2845 = vrot.lane.b32.xlu1 %v2700_v6, %s9631_s21  ;;  %2847 = vrot.lane.b32.xlu0 %v2701_v11, %s9631_s21  ;;  %v3071_v6 = vld [vmem:[#allocation2 + $0x52] sm:$0xff]  ;;  %v3072_v11 = vld [vmem:[#allocation2 + $0x62] sm:$0xff] }
 0x352   :  { %v2477_v20 = vpop.permute.xlu1 %2476  ;;  %v2479_v28 = vpop.permute.xlu0 %2478 }
 0x353   :  { %2644 = vst.msk [vmem:[#allocation4 + $0xc8] sm:$0xff] %vm2618_vm8, %v2477_v20  ;;  %2645 = vst.msk [vmem:[#allocation4 + $0xd0] sm:$0xff] %vm2618_vm8, %v2479_v28 }
 0x354   :  { %2849 = vrot.lane.b32.xlu1 %v2702_v16, %s9631_s21  ;;  %2851 = vrot.lane.b32.xlu0 %v2703_v24, %s9631_s21  ;;  %v3073_v16 = vld [vmem:[#allocation2 + $0x6a] sm:$0xff]  ;;  %v3074_v24 = vld [vmem:[#allocation2 + $0x7a] sm:$0xff] }
 0x356   :  { %v2481_v43 = vpop.permute.xlu1 %2480  ;;  %v2483_v58 = vpop.permute.xlu0 %2482 }
 0x357   :  { %2646 = vst.msk [vmem:[#allocation4 + $0xd8] sm:$0xff] %vm2618_vm8, %v2481_v43  ;;  %2647 = vst.msk [vmem:[#allocation4 + $0xe0] sm:$0xff] %vm2618_vm8, %v2483_v58 }
 0x358   :  { %2853 = vrot.lane.b32.xlu1 %v2704_v35, %s9631_s21  ;;  %2855 = vrot.lane.b32.xlu0 %v2705_v51, %s9631_s21  ;;  %v3075_v35 = vld [vmem:[#allocation2 + $0x82] sm:$0xff]  ;;  %v3076_v51 = vld [vmem:[#allocation2 + $0x92] sm:$0xff] }
 0x35a   :  { %v2485_v1 = vpop.permute.xlu1 %2484  ;;  %v2487_v9 = vpop.permute.xlu0 %2486 }
 0x35b   :  { %2648 = vst.msk [vmem:[#allocation4 + $0xe8] sm:$0xff] %vm2618_vm8, %v2485_v1  ;;  %2649 = vst.msk [vmem:[#allocation4 + $0xf0] sm:$0xff] %vm2618_vm8, %v2487_v9 }
 0x35c   :  { %2857 = vrot.lane.b32.xlu1 %v2706_v60, %s9631_s21  ;;  %2859 = vrot.lane.b32.xlu0 %v2707_v5, %s9631_s21  ;;  %v3077_v60 = vld [vmem:[#allocation2 + $0x9a] sm:$0xff]  ;;  %v3078_v5 = vld [vmem:[#allocation2 + $0xaa] sm:$0xff] }
 0x35e   :  { %v2489_v21 = vpop.permute.xlu1 %2488  ;;  %v2491_v31 = vpop.permute.xlu0 %2490 }
 0x35f   :  { %2650 = vst.msk [vmem:[#allocation4 + $0xf8] sm:$0xff] %vm2618_vm8, %v2489_v21  ;;  %2651 = vst.msk [vmem:[#allocation4 + $0x100] sm:$0xff] %vm2618_vm8, %v2491_v31 }
 0x360   :  { %2861 = vrot.lane.b32.xlu1 %v2708_v14, %s9631_s21  ;;  %2863 = vrot.lane.b32.xlu0 %v2709_v53, %s9631_s21  ;;  %v3079_v14 = vld [vmem:[#allocation2 + $0xb2] sm:$0xff]  ;;  %v3080_v53 = vld [vmem:[#allocation2 + $0xc2] sm:$0xff] }
 0x362   :  { %v2493_v17 = vpop.permute.xlu1 %2492  ;;  %v2495_v37 = vpop.permute.xlu0 %2494 }
 0x363   :  { %2652 = vst.msk [vmem:[#allocation4 + $0x108] sm:$0xff] %vm2618_vm8, %v2493_v17  ;;  %2653 = vst.msk [vmem:[#allocation4 + $0x110] sm:$0xff] %vm2618_vm8, %v2495_v37 }
 0x364   :  { %2865 = vrot.lane.b32.xlu1 %v2710_v45, %s9631_s21  ;;  %2867 = vrot.lane.b32.xlu0 %v2711_v0, %s9631_s21  ;;  %v3081_v45 = vld [vmem:[#allocation2 + $0xca] sm:$0xff]  ;;  %v3082_v0 = vld [vmem:[#allocation2 + $0xda] sm:$0xff] }
 0x366   :  { %v2497_v61 = vpop.permute.xlu1 %2496  ;;  %v2499_v19 = vpop.permute.xlu0 %2498 }
 0x367   :  { %2654 = vst.msk [vmem:[#allocation4 + $0x118] sm:$0xff] %vm2618_vm8, %v2497_v61  ;;  %2655 = vst.msk [vmem:[#allocation4 + $0x120] sm:$0xff] %vm2618_vm8, %v2499_v19 }
 0x368   :  { %2869 = vrot.lane.b32.xlu1 %v2712_v25, %s9631_s21  ;;  %2871 = vrot.lane.b32.xlu0 %v2713_v10, %s9631_s21  ;;  %v3083_v25 = vld [vmem:[#allocation2 + $0xe2] sm:$0xff]  ;;  %v3084_v10 = vld [vmem:[#allocation2 + $0xf2] sm:$0xff] }
 0x36a   :  { %v2501_v22 = vpop.permute.xlu1 %2500  ;;  %v2503_v27 = vpop.permute.xlu0 %2502 }
 0x36b   :  { %2656 = vst.msk [vmem:[#allocation4 + $0x128] sm:$0xff] %vm2618_vm8, %v2501_v22  ;;  %2657 = vst.msk [vmem:[#allocation4 + $0x130] sm:$0xff] %vm2618_vm8, %v2503_v27  ;;  %v3086_v22 = vld [vmem:[#allocation2 + $0x10a] sm:$0xff] }
 0x36c   :  { %2873 = vrot.lane.b32.xlu1 %v2714_v15, %s9631_s21  ;;  %2875 = vrot.lane.b32.xlu0 %v2715_v23, %s9631_s21 }
 0x36e   :  { %v2505_v30 = vpop.permute.xlu1 %2504  ;;  %v2507_v34 = vpop.permute.xlu0 %2506 }
 0x36f   :  { %2658 = vst.msk [vmem:[#allocation4 + $0x138] sm:$0xff] %vm2618_vm8, %v2505_v30  ;;  %2659 = vst.msk [vmem:[#allocation4 + $0x140] sm:$0xff] %vm2618_vm8, %v2507_v34  ;;  %v3090_v34 = vld [vmem:[#allocation2 + $0x13a] sm:$0xff] }
 0x370   :  { %2877 = vrot.lane.b32.xlu1 %v2716_v29, %s9631_s21  ;;  %2879 = vrot.lane.b32.xlu0 %v2717_v33, %s9631_s21  ;;  %v3088_v29 = vld [vmem:[#allocation2 + $0x122] sm:$0xff] }
 0x372   :  { %v2509_v38 = vpop.permute.xlu1 %2508  ;;  %v2511_v41 = vpop.permute.xlu0 %2510 }
 0x373   :  { %2660 = vst.msk [vmem:[#allocation4 + $0x148] sm:$0xff] %vm2618_vm8, %v2509_v38  ;;  %2661 = vst.msk [vmem:[#allocation4 + $0x150] sm:$0xff] %vm2618_vm8, %v2511_v41  ;;  %v3091_v38 = vld [vmem:[#allocation2 + $0x142] sm:$0xff] }
 0x374   :  { %2881 = vrot.lane.b32.xlu1 %v2718_v36, %s9631_s21  ;;  %2883 = vrot.lane.b32.xlu0 %v2719_v40, %s9631_s21  ;;  %v3092_v40 = vld [vmem:[#allocation2 + $0x152] sm:$0xff] }
 0x376   :  { %v2513_v44 = vpop.permute.xlu1 %2512  ;;  %v2515_v48 = vpop.permute.xlu0 %2514 }
 0x377   :  { %2662 = vst.msk [vmem:[#allocation4 + $0x158] sm:$0xff] %vm2618_vm8, %v2513_v44  ;;  %2663 = vst.msk [vmem:[#allocation4 + $0x160] sm:$0xff] %vm2618_vm8, %v2515_v48  ;;  %v3095_v48 = vld [vmem:[#allocation2 + $0x172] sm:$0xff] }
 0x378   :  { %2885 = vrot.lane.b32.xlu1 %v2720_v42, %s9631_s21  ;;  %2887 = vrot.lane.b32.xlu0 %v2721_v47, %s9631_s21  ;;  %v3093_v42 = vld [vmem:[#allocation2 + $0x15a] sm:$0xff] }
 0x37a   :  { %v2517_v50 = vpop.permute.xlu1 %2516  ;;  %v2519_v54 = vpop.permute.xlu0 %2518 }
 0x37b   :  { %2664 = vst.msk [vmem:[#allocation4 + $0x168] sm:$0xff] %vm2618_vm8, %v2517_v50  ;;  %2665 = vst.msk [vmem:[#allocation4 + $0x170] sm:$0xff] %vm2618_vm8, %v2519_v54  ;;  %v3096_v50 = vld [vmem:[#allocation2 + $0x182] sm:$0xff] }
 0x37c   :  { %2889 = vrot.lane.b32.xlu1 %v2722_v49, %s9631_s21  ;;  %2891 = vrot.lane.b32.xlu0 %v2723_v12, %s9631_s21  ;;  %v3097_v12 = vld [vmem:[#allocation2 + $0x18a] sm:$0xff] }
 0x37e   :  { %v2521_v59 = vpop.permute.xlu1 %2520  ;;  %v2523_v7 = vpop.permute.xlu0 %2522 }
 0x37f   :  { %2666 = vst.msk [vmem:[#allocation4 + $0x178] sm:$0xff] %vm2618_vm8, %v2521_v59  ;;  %2667 = vst.msk [vmem:[#allocation4 + $0x180] sm:$0xff] %vm2618_vm8, %v2523_v7  ;;  %v3100_v7 = vld [vmem:[#allocation2 + $0x1e2] sm:$0xff] }
 0x380   :  { %2893 = vrot.lane.b32.xlu1 %v2724_v55, %s9631_s21  ;;  %3196 = vrot.lane.b32.xlu0 %v3068_v57, %s9632_s14  ;;  %v3098_v55 = vld [vmem:[#allocation2 + $0x19a] sm:$0xff] }
 0x382   :  { %v2525_v63 = vpop.permute.xlu1 %2524  ;;  %v2527_v4 = vpop.permute.xlu0 %2526 }
 0x383   :  { %2668 = vst.msk [vmem:[#allocation4 + $0x188] sm:$0xff] %vm2618_vm8, %v2525_v63  ;;  %2669 = vst.msk [vmem:[#allocation4 + $0x190] sm:$0xff] %vm2618_vm8, %v2527_v4 }
 0x384   :  { %3198 = vrot.lane.b32.xlu1 %v3069_v3, %s9632_s14  ;;  %3200 = vrot.lane.b32.xlu0 %v3070_v2, %s9632_s14  ;;  %v3102_v2 = vld [vmem:[#allocation2 + $0x1fa] sm:$0xff] }
 0x386   :  { %v2529_v8 = vpop.permute.xlu1 %2528  ;;  %v2531_v13 = vpop.permute.xlu0 %2530 }
 0x387   :  { %2670 = vst.msk [vmem:[#allocation4 + $0x198] sm:$0xff] %vm2618_vm8, %v2529_v8  ;;  %2671 = vst.msk [vmem:[#allocation4 + $0x1a0] sm:$0xff] %vm2618_vm8, %v2531_v13 }
 0x388   :  { %3202 = vrot.lane.b32.xlu1 %v3071_v6, %s9632_s14  ;;  %3204 = vrot.lane.b32.xlu0 %v3072_v11, %s9632_s14  ;;  %v3103_v6 = vld [vmem:[#allocation2 + $0x202] sm:$0xff]  ;;  %v3104_v11 = vld [vmem:[#allocation2 + $0x212] sm:$0xff] }
 0x38a   :  { %v2533_v20 = vpop.permute.xlu1 %2532  ;;  %v2535_v28 = vpop.permute.xlu0 %2534 }
 0x38b   :  { %2672 = vst.msk [vmem:[#allocation4 + $0x1a8] sm:$0xff] %vm2618_vm8, %v2533_v20  ;;  %2673 = vst.msk [vmem:[#allocation4 + $0x1b0] sm:$0xff] %vm2618_vm8, %v2535_v28 }
 0x38c   :  { %3206 = vrot.lane.b32.xlu1 %v3073_v16, %s9632_s14  ;;  %3208 = vrot.lane.b32.xlu0 %v3074_v24, %s9632_s14  ;;  %v3105_v16 = vld [vmem:[#allocation2 + $0x21a] sm:$0xff]  ;;  %v3106_v24 = vld [vmem:[#allocation2 + $0x22a] sm:$0xff] }
 0x38e   :  { %v2537_v43 = vpop.permute.xlu1 %2536  ;;  %v2539_v58 = vpop.permute.xlu0 %2538 }
 0x38f   :  { %2674 = vst.msk [vmem:[#allocation4 + $0x1b8] sm:$0xff] %vm2618_vm8, %v2537_v43  ;;  %2675 = vst.msk [vmem:[#allocation4 + $0x1c0] sm:$0xff] %vm2618_vm8, %v2539_v58 }
 0x390   :  { %3210 = vrot.lane.b32.xlu1 %v3075_v35, %s9632_s14  ;;  %3212 = vrot.lane.b32.xlu0 %v3076_v51, %s9632_s14  ;;  %v3107_v35 = vld [vmem:[#allocation2 + $0x232] sm:$0xff] }
 0x391   :  { %v2725_v51 = vld [vmem:[#allocation2 + $0x259] sm:$0xff] }
 0x392   :  { %v2541_v1 = vpop.permute.xlu1 %2540  ;;  %v2543_v9 = vpop.permute.xlu0 %2542 }
 0x393   :  { %2676 = vst.msk [vmem:[#allocation4 + $0x1c8] sm:$0xff] %vm2618_vm8, %v2541_v1  ;;  %2677 = vst.msk [vmem:[#allocation4 + $0x1d0] sm:$0xff] %vm2618_vm8, %v2543_v9 }
 0x394   :  { %3214 = vrot.lane.b32.xlu1 %v3077_v60, %s9632_s14  ;;  %3216 = vrot.lane.b32.xlu0 %v3078_v5, %s9632_s14  ;;  %v2726_v60 = vld [vmem:[#allocation2 + $0x261] sm:$0xff] }
 0x395   :  { %v3108_v5 = vld [vmem:[#allocation2 + $0x242] sm:$0xff] }
 0x396   :  { %v2545_v21 = vpop.permute.xlu1 %2544  ;;  %v2547_v31 = vpop.permute.xlu0 %2546 }
 0x397   :  { %2678 = vst.msk [vmem:[#allocation4 + $0x1d8] sm:$0xff] %vm2618_vm8, %v2545_v21  ;;  %2679 = vst.msk [vmem:[#allocation4 + $0x1e0] sm:$0xff] %vm2618_vm8, %v2547_v31 }
 0x398   :  { %3218 = vrot.lane.b32.xlu1 %v3079_v14, %s9632_s14  ;;  %3220 = vrot.lane.b32.xlu0 %v3080_v53, %s9632_s14  ;;  %v3109_v14 = vld [vmem:[#allocation2 + $0x24a] sm:$0xff]  ;;  %v3110_v53 = vld [vmem:[#allocation2 + $0x25a] sm:$0xff] }
 0x39a   :  { %v2549_v17 = vpop.permute.xlu1 %2548  ;;  %v2551_v37 = vpop.permute.xlu0 %2550 }
 0x39b   :  { %2680 = vst.msk [vmem:[#allocation4 + $0x1e8] sm:$0xff] %vm2618_vm8, %v2549_v17  ;;  %2681 = vst.msk [vmem:[#allocation4 + $0x1f0] sm:$0xff] %vm2618_vm8, %v2551_v37 }
 0x39c   :  { %3222 = vrot.lane.b32.xlu1 %v3081_v45, %s9632_s14  ;;  %3224 = vrot.lane.b32.xlu0 %v3082_v0, %s9632_s14  ;;  %v3111_v45 = vld [vmem:[#allocation2 + $0x262] sm:$0xff]  ;;  %v2727_v0 = vld [vmem:[#allocation2 + $0x271] sm:$0xff] }
 0x39e   :  { %v2553_v61 = vpop.permute.xlu1 %2552  ;;  %v2812_v15 = vpop.permute.xlu0 %2811 }
 0x39f   :  { %2682 = vst.msk [vmem:[#allocation4 + $0x1f8] sm:$0xff] %vm2618_vm8, %v2553_v61  ;;  %vm7960_vm8 = vcmask 589312  }
 0x3a0   :  { %3226 = vrot.lane.b32.xlu1 %v3083_v25, %s9632_s14  ;;  %3004 = vst.msk [vmem:[#allocation4] sm:$0xff] %vm3003_vm10, %v2812_v15  ;;  %3228 = vrot.lane.b32.xlu0 %v3084_v10, %s9632_s14  ;;  %v2728_v25 = vld [vmem:[#allocation2 + $0x279] sm:$0xff]  ;;  %v2729_v10 = vld [vmem:[#allocation2 + $0x289] sm:$0xff] }
 0x3a2   :  { %v2814_v19 = vpop.permute.xlu1 %2813  ;;  %v2816_v23 = vpop.permute.xlu0 %2815 }
 0x3a3   :  { %3005 = vst.msk [vmem:[#allocation4 + $0x8] sm:$0xff] %vm3003_vm10, %v2814_v19  ;;  %3006 = vst.msk [vmem:[#allocation4 + $0x10] sm:$0xff] %vm3003_vm10, %v2816_v23 }
 0x3a4   :  { %3230 = vrot.lane.b32.xlu1 %v3085_v18, %s9632_s14  ;;  %3232 = vrot.lane.b32.xlu0 %v3086_v22, %s9632_s14  ;;  %v2730_v18 = vld [vmem:[#allocation2 + $0x291] sm:$0xff] }
 0x3a5   :  { %v3112_v22 = vld [vmem:[#allocation2 + $0x272] sm:$0xff] }
 0x3a6   :  { %v2818_v27 = vpop.permute.xlu1 %2817  ;;  %v2820_v30 = vpop.permute.xlu0 %2819 }
 0x3a7   :  { %3007 = vst.msk [vmem:[#allocation4 + $0x18] sm:$0xff] %vm3003_vm10, %v2818_v27  ;;  %3008 = vst.msk [vmem:[#allocation4 + $0x20] sm:$0xff] %vm3003_vm10, %v2820_v30 }
 0x3a8   :  { %3234 = vrot.lane.b32.xlu1 %v3087_v26, %s9632_s14  ;;  %3236 = vrot.lane.b32.xlu0 %v3088_v29, %s9632_s14  ;;  %v3113_v26 = vld [vmem:[#allocation2 + $0x27a] sm:$0xff]  ;;  %v3114_v29 = vld [vmem:[#allocation2 + $0x28a] sm:$0xff] }
 0x3aa   :  { %v2822_v33 = vpop.permute.xlu1 %2821  ;;  %v2824_v36 = vpop.permute.xlu0 %2823 }
 0x3ab   :  { %3009 = vst.msk [vmem:[#allocation4 + $0x28] sm:$0xff] %vm3003_vm10, %v2822_v33  ;;  %3010 = vst.msk [vmem:[#allocation4 + $0x30] sm:$0xff] %vm3003_vm10, %v2824_v36 }
 0x3ac   :  { %3238 = vrot.lane.b32.xlu1 %v3089_v32, %s9632_s14  ;;  %3240 = vrot.lane.b32.xlu0 %v3090_v34, %s9632_s14  ;;  %v3115_v32 = vld [vmem:[#allocation2 + $0x292] sm:$0xff]  ;;  %v2731_v34 = vld [vmem:[#allocation2 + $0x2a1] sm:$0xff] }
 0x3ae   :  { %v2826_v39 = vpop.permute.xlu1 %2825  ;;  %v2828_v41 = vpop.permute.xlu0 %2827 }
 0x3af   :  { %3011 = vst.msk [vmem:[#allocation4 + $0x38] sm:$0xff] %vm3003_vm10, %v2826_v39  ;;  %3012 = vst.msk [vmem:[#allocation4 + $0x40] sm:$0xff] %vm3003_vm10, %v2828_v41 }
 0x3b0   :  { %3242 = vrot.lane.b32.xlu1 %v3091_v38, %s9632_s14  ;;  %3244 = vrot.lane.b32.xlu0 %v3092_v40, %s9632_s14  ;;  %v2732_v38 = vld [vmem:[#allocation2 + $0x2a9] sm:$0xff]  ;;  %v2733_v40 = vld [vmem:[#allocation2 + $0x2b9] sm:$0xff] }
 0x3b2   :  { %v2830_v44 = vpop.permute.xlu1 %2829  ;;  %v2832_v47 = vpop.permute.xlu0 %2831 }
 0x3b3   :  { %3013 = vst.msk [vmem:[#allocation4 + $0x48] sm:$0xff] %vm3003_vm10, %v2830_v44  ;;  %3014 = vst.msk [vmem:[#allocation4 + $0x50] sm:$0xff] %vm3003_vm10, %v2832_v47 }
 0x3b4   :  { %3246 = vrot.lane.b32.xlu1 %v3093_v42, %s9632_s14  ;;  %3248 = vrot.lane.b32.xlu0 %v3094_v46, %s9632_s14  ;;  %v2734_v42 = vld [vmem:[#allocation2 + $0x2c1] sm:$0xff] }
 0x3b5   :  { %v3116_v46 = vld [vmem:[#allocation2 + $0x2a2] sm:$0xff] }
 0x3b6   :  { %v2834_v49 = vpop.permute.xlu1 %2833  ;;  %v2836_v52 = vpop.permute.xlu0 %2835 }
 0x3b7   :  { %3015 = vst.msk [vmem:[#allocation4 + $0x58] sm:$0xff] %vm3003_vm10, %v2834_v49  ;;  %3016 = vst.msk [vmem:[#allocation4 + $0x60] sm:$0xff] %vm3003_vm10, %v2836_v52 }
 0x3b8   :  { %3250 = vrot.lane.b32.xlu1 %v3095_v48, %s9632_s14  ;;  %3252 = vrot.lane.b32.xlu0 %v3096_v50, %s9632_s14  ;;  %v3117_v48 = vld [vmem:[#allocation2 + $0x2aa] sm:$0xff]  ;;  %v3118_v50 = vld [vmem:[#allocation2 + $0x2ba] sm:$0xff] }
 0x3ba   :  { %v2838_v54 = vpop.permute.xlu1 %2837  ;;  %v2840_v59 = vpop.permute.xlu0 %2839 }
 0x3bb   :  { %3017 = vst.msk [vmem:[#allocation4 + $0x68] sm:$0xff] %vm3003_vm10, %v2838_v54  ;;  %3018 = vst.msk [vmem:[#allocation4 + $0x70] sm:$0xff] %vm3003_vm10, %v2840_v59 }
 0x3bc   :  { %3254 = vrot.lane.b32.xlu1 %v3097_v12, %s9632_s14  ;;  %3256 = vrot.lane.b32.xlu0 %v3098_v55, %s9632_s14  ;;  %v3119_v12 = vld [vmem:[#allocation2 + $0x2c2] sm:$0xff]  ;;  %v2735_v55 = vld [vmem:[#allocation2 + $0x2d1] sm:$0xff] }
 0x3be   :  { %v2842_v57 = vpop.permute.xlu1 %2841  ;;  %v2844_v3 = vpop.permute.xlu0 %2843 }
 0x3bf   :  { %3019 = vst.msk [vmem:[#allocation4 + $0x78] sm:$0xff] %vm3003_vm10, %v2842_v57  ;;  %3020 = vst.msk [vmem:[#allocation4 + $0x80] sm:$0xff] %vm3003_vm10, %v2844_v3 }
 0x3c0   :  { %3258 = vrot.lane.b32.xlu1 %v3099_v56, %s9632_s14  ;;  %3260 = vrot.lane.b32.xlu0 %v3100_v7, %s9632_s14  ;;  %v2736_v56 = vld [vmem:[#allocation2 + $0x2d9] sm:$0xff] }
 0x3c2   :  { %v2846_v63 = vpop.permute.xlu1 %2845  ;;  %v2848_v4 = vpop.permute.xlu0 %2847 }
 0x3c3   :  { %3021 = vst.msk [vmem:[#allocation4 + $0x88] sm:$0xff] %vm3003_vm10, %v2846_v63  ;;  %3022 = vst.msk [vmem:[#allocation4 + $0x90] sm:$0xff] %vm3003_vm10, %v2848_v4  ;;  %v2737_v63 = vld [vmem:[#allocation2 + $0x2e9] sm:$0xff]  ;;  %v2738_v4 = vld [vmem:[#allocation2 + $0x2f1] sm:$0xff] }
 0x3c4   :  { %3262 = vrot.lane.b32.xlu1 %v3101_v62, %s9632_s14  ;;  %3264 = vrot.lane.b32.xlu0 %v3102_v2, %s9632_s14 }
 0x3c6   :  { %v2850_v8 = vpop.permute.xlu1 %2849  ;;  %v2852_v13 = vpop.permute.xlu0 %2851 }
 0x3c7   :  { %3023 = vst.msk [vmem:[#allocation4 + $0x98] sm:$0xff] %vm3003_vm10, %v2850_v8  ;;  %3024 = vst.msk [vmem:[#allocation4 + $0xa0] sm:$0xff] %vm3003_vm10, %v2852_v13 }
 0x3c8   :  { %3266 = vrot.lane.b32.xlu1 %v3103_v6, %s9632_s14  ;;  %3268 = vrot.lane.b32.xlu0 %v3104_v11, %s9632_s14 }
 0x3ca   :  { %v2854_v20 = vpop.permute.xlu1 %2853  ;;  %v2856_v28 = vpop.permute.xlu0 %2855 }
 0x3cb   :  { %3025 = vst.msk [vmem:[#allocation4 + $0xa8] sm:$0xff] %vm3003_vm10, %v2854_v20  ;;  %3026 = vst.msk [vmem:[#allocation4 + $0xb0] sm:$0xff] %vm3003_vm10, %v2856_v28 }
 0x3cc   :  { %3270 = vrot.lane.b32.xlu1 %v3105_v16, %s9632_s14  ;;  %3272 = vrot.lane.b32.xlu0 %v3106_v24, %s9632_s14  ;;  %v3120_v16 = vld [vmem:[#allocation2 + $0x2d2] sm:$0xff]  ;;  %v3121_v24 = vld [vmem:[#allocation2 + $0x2da] sm:$0xff] }
 0x3ce   :  { %v2858_v43 = vpop.permute.xlu1 %2857  ;;  %v2860_v58 = vpop.permute.xlu0 %2859 }
 0x3cf   :  { %3027 = vst.msk [vmem:[#allocation4 + $0xb8] sm:$0xff] %vm3003_vm10, %v2858_v43  ;;  %3028 = vst.msk [vmem:[#allocation4 + $0xc0] sm:$0xff] %vm3003_vm10, %v2860_v58  ;;  %v3122_v58 = vld [vmem:[#allocation2 + $0x2ea] sm:$0xff] }
 0x3d0   :  { %3274 = vrot.lane.b32.xlu1 %v3107_v35, %s9632_s14  ;;  %2895 = vrot.lane.b32.xlu0 %v2725_v51, %s9631_s21 }
 0x3d2   :  { %v2862_v1 = vpop.permute.xlu1 %2861  ;;  %v2864_v9 = vpop.permute.xlu0 %2863 }
 0x3d3   :  { %3029 = vst.msk [vmem:[#allocation4 + $0xc8] sm:$0xff] %vm3003_vm10, %v2862_v1  ;;  %3030 = vst.msk [vmem:[#allocation4 + $0xd0] sm:$0xff] %vm3003_vm10, %v2864_v9  ;;  %v3123_v1 = vld [vmem:[#allocation2 + $0x2f2] sm:$0xff] }
 0x3d4   :  { %2897 = vrot.lane.b32.xlu1 %v2726_v60, %s9631_s21  ;;  %3276 = vrot.lane.b32.xlu0 %v3108_v5, %s9632_s14 }
 0x3d6   :  { %v2866_v21 = vpop.permute.xlu1 %2865  ;;  %v2868_v31 = vpop.permute.xlu0 %2867 }
 0x3d7   :  { %3031 = vst.msk [vmem:[#allocation4 + $0xd8] sm:$0xff] %vm3003_vm10, %v2866_v21  ;;  %3032 = vst.msk [vmem:[#allocation4 + $0xe0] sm:$0xff] %vm3003_vm10, %v2868_v31 }
 0x3d8   :  { %3278 = vrot.lane.b32.xlu1 %v3109_v14, %s9632_s14  ;;  %3280 = vrot.lane.b32.xlu0 %v3110_v53, %s9632_s14  ;;  %v2739_v53 = vld [vmem:[#allocation2 + $0x301] sm:$0xff] }
 0x3da   :  { %v2870_v17 = vpop.permute.xlu1 %2869  ;;  %v2872_v37 = vpop.permute.xlu0 %2871 }
 0x3db   :  { %3033 = vst.msk [vmem:[#allocation4 + $0xe8] sm:$0xff] %vm3003_vm10, %v2870_v17  ;;  %3034 = vst.msk [vmem:[#allocation4 + $0xf0] sm:$0xff] %vm3003_vm10, %v2872_v37 }
 0x3dc   :  { %3282 = vrot.lane.b32.xlu1 %v3111_v45, %s9632_s14  ;;  %2899 = vrot.lane.b32.xlu0 %v2727_v0, %s9631_s21  ;;  %v2740_v45 = vld [vmem:[#allocation2 + $0x309] sm:$0xff] }
 0x3de   :  { %v2874_v61 = vpop.permute.xlu1 %2873  ;;  %v2876_v15 = vpop.permute.xlu0 %2875 }
 0x3df   :  { %3035 = vst.msk [vmem:[#allocation4 + $0xf8] sm:$0xff] %vm3003_vm10, %v2874_v61  ;;  %3036 = vst.msk [vmem:[#allocation4 + $0x100] sm:$0xff] %vm3003_vm10, %v2876_v15  ;;  %v2741_v61 = vld [vmem:[#allocation2 + $0x319] sm:$0xff]  ;;  %v2742_v15 = vld [vmem:[#allocation2 + $0x321] sm:$0xff] }
 0x3e0   :  { %2901 = vrot.lane.b32.xlu1 %v2728_v25, %s9631_s21  ;;  %2903 = vrot.lane.b32.xlu0 %v2729_v10, %s9631_s21 }
 0x3e2   :  { %v2878_v19 = vpop.permute.xlu1 %2877  ;;  %v2880_v23 = vpop.permute.xlu0 %2879 }
 0x3e3   :  { %3037 = vst.msk [vmem:[#allocation4 + $0x108] sm:$0xff] %vm3003_vm10, %v2878_v19  ;;  %3038 = vst.msk [vmem:[#allocation4 + $0x110] sm:$0xff] %vm3003_vm10, %v2880_v23 }
 0x3e4   :  { %2905 = vrot.lane.b32.xlu1 %v2730_v18, %s9631_s21  ;;  %3284 = vrot.lane.b32.xlu0 %v3112_v22, %s9632_s14 }
 0x3e6   :  { %v2882_v27 = vpop.permute.xlu1 %2881  ;;  %v2884_v30 = vpop.permute.xlu0 %2883 }
 0x3e7   :  { %3039 = vst.msk [vmem:[#allocation4 + $0x118] sm:$0xff] %vm3003_vm10, %v2882_v27  ;;  %3040 = vst.msk [vmem:[#allocation4 + $0x120] sm:$0xff] %vm3003_vm10, %v2884_v30 }
 0x3e8   :  { %3286 = vrot.lane.b32.xlu1 %v3113_v26, %s9632_s14  ;;  %3288 = vrot.lane.b32.xlu0 %v3114_v29, %s9632_s14  ;;  %v3124_v26 = vld [vmem:[#allocation2 + $0x302] sm:$0xff]  ;;  %v3125_v29 = vld [vmem:[#allocation2 + $0x30a] sm:$0xff] }
 0x3ea   :  { %v2886_v33 = vpop.permute.xlu1 %2885  ;;  %v2888_v36 = vpop.permute.xlu0 %2887 }
 0x3eb   :  { %3041 = vst.msk [vmem:[#allocation4 + $0x128] sm:$0xff] %vm3003_vm10, %v2886_v33  ;;  %3042 = vst.msk [vmem:[#allocation4 + $0x130] sm:$0xff] %vm3003_vm10, %v2888_v36  ;;  %v3126_v36 = vld [vmem:[#allocation2 + $0x31a] sm:$0xff] }
 0x3ec   :  { %3290 = vrot.lane.b32.xlu1 %v3115_v32, %s9632_s14  ;;  %2907 = vrot.lane.b32.xlu0 %v2731_v34, %s9631_s21 }
 0x3ee   :  { %v2890_v39 = vpop.permute.xlu1 %2889  ;;  %v2892_v41 = vpop.permute.xlu0 %2891 }
 0x3ef   :  { %3043 = vst.msk [vmem:[#allocation4 + $0x138] sm:$0xff] %vm3003_vm10, %v2890_v39  ;;  %3044 = vst.msk [vmem:[#allocation4 + $0x140] sm:$0xff] %vm3003_vm10, %v2892_v41  ;;  %v3127_v39 = vld [vmem:[#allocation2 + $0x322] sm:$0xff] }
 0x3f0   :  { %2909 = vrot.lane.b32.xlu1 %v2732_v38, %s9631_s21  ;;  %2911 = vrot.lane.b32.xlu0 %v2733_v40, %s9631_s21 }
 0x3f2   :  { %v2894_v44 = vpop.permute.xlu1 %2893  ;;  %v3197_v47 = vpop.permute.xlu0 %3196 }
 0x3f3   :  { %3045 = vst.msk [vmem:[#allocation4 + $0x148] sm:$0xff] %vm3003_vm10, %v2894_v44 }
 0x3f4   :  { %2913 = vrot.lane.b32.xlu1 %v2734_v42, %s9631_s21  ;;  %3389 = vst.msk [vmem:[#allocation4] sm:$0xff] %vm3388_vm11, %v3197_v47  ;;  %3292 = vrot.lane.b32.xlu0 %v3116_v46, %s9632_s14  ;;  %v2743_v46 = vld [vmem:[#allocation2 + $0x331] sm:$0xff] }
 0x3f6   :  { %v3199_v49 = vpop.permute.xlu1 %3198  ;;  %v3201_v52 = vpop.permute.xlu0 %3200 }
 0x3f7   :  { %3390 = vst.msk [vmem:[#allocation4 + $0x8] sm:$0xff] %vm3388_vm11, %v3199_v49  ;;  %3391 = vst.msk [vmem:[#allocation4 + $0x10] sm:$0xff] %vm3388_vm11, %v3201_v52 }
 0x3f8   :  { %3294 = vrot.lane.b32.xlu1 %v3117_v48, %s9632_s14  ;;  %3296 = vrot.lane.b32.xlu0 %v3118_v50, %s9632_s14  ;;  %v2744_v48 = vld [vmem:[#allocation2 + $0x339] sm:$0xff] }
 0x3fa   :  { %v3203_v54 = vpop.permute.xlu1 %3202  ;;  %v3205_v59 = vpop.permute.xlu0 %3204 }
 0x3fb   :  { %3392 = vst.msk [vmem:[#allocation4 + $0x18] sm:$0xff] %vm3388_vm11, %v3203_v54  ;;  %v3453_v57 = vld [vmem:[#allocation4] sm:$0xff]  ;;  %3393 = vst.msk [vmem:[#allocation4 + $0x20] sm:$0xff] %vm3388_vm11, %v3205_v59  ;;  %v2745_v54 = vld [vmem:[#allocation2 + $0x349] sm:$0xff] }
 0x3fc   :  { %3298 = vrot.lane.b32.xlu1 %v3119_v12, %s9632_s14  ;;  %2915 = vrot.lane.b32.xlu0 %v2735_v55, %s9631_s21  ;;  %v2746_v59 = vld [vmem:[#allocation2 + $0x351] sm:$0xff] }
 0x3fe   :  { %v3207_v7 = vpop.permute.xlu1 %3206  ;;  %v3454_v3 = vld [vmem:[#allocation4 + $0x8] sm:$0xff]  ;;  %v3209_v2 = vpop.permute.xlu0 %3208  ;;  %v3455_v6 = vld [vmem:[#allocation4 + $0x10] sm:$0xff] }
 0x3ff   :  { %3394 = vst.msk [vmem:[#allocation4 + $0x28] sm:$0xff] %vm3388_vm11, %v3207_v7  ;;  %v3517_v62 = vpack.c.bf16 %v3454_v3, %v3453_v57  ;;  %3395 = vst.msk [vmem:[#allocation4 + $0x30] sm:$0xff] %vm3388_vm11, %v3209_v2  ;;  %v3129_v2 = vld [vmem:[#allocation2 + $0x33a] sm:$0xff] }
 0x400   :  { %2917 = vrot.lane.b32.xlu1 %v2736_v56, %s9631_s21  ;;  %2919 = vrot.lane.b32.xlu0 %v2737_v63, %s9631_s21 }
 0x401   :  { %9453 = vmatprep.mubr.msk.bf16.mxu0 %vm3604_vm12, %v3517_v62  ;;  %v3128_v62 = vld [vmem:[#allocation2 + $0x332] sm:$0xff] }
 0x402   :  { %v3211_v8 = vpop.permute.xlu1 %3210  ;;  %v3456_v11 = vld [vmem:[#allocation4 + $0x18] sm:$0xff]  ;;  %v3213_v20 = vpop.permute.xlu0 %3212  ;;  %v3457_v28 = vld [vmem:[#allocation4 + $0x20] sm:$0xff] }
 0x403   :  { %3396 = vst.msk [vmem:[#allocation4 + $0x38] sm:$0xff] %vm3388_vm11, %v3211_v8  ;;  %v3518_v13 = vpack.c.bf16 %v3456_v11, %v3455_v6  ;;  %3397 = vst.msk [vmem:[#allocation4 + $0x40] sm:$0xff] %vm3388_vm11, %v3213_v20  ;;  %v3131_v20 = vld [vmem:[#allocation2 + $0x352] sm:$0xff] }
 0x404   :  { %2921 = vrot.lane.b32.xlu1 %v2738_v4, %s9631_s21  ;;  %3300 = vrot.lane.b32.xlu0 %v3120_v16, %s9632_s14 }
 0x405   :  { %9454 = vmatmul.mubr.msk.bf16.vlgmr.msra.gmra.mrb[0].mxu0 %vm3604_vm12, %v3518_v13  ;;  %v3130_v13 = vld [vmem:[#allocation2 + $0x34a] sm:$0xff] }
 0x406   :  { %v3215_v35 = vpop.permute.xlu1 %3214  ;;  %v3458_v43 = vld [vmem:[#allocation4 + $0x28] sm:$0xff]  ;;  %v3217_v60 = vpop.permute.xlu0 %3216  ;;  %v3459_v5 = vld [vmem:[#allocation4 + $0x30] sm:$0xff] }
 0x407   :  { %3398 = vst.msk [vmem:[#allocation4 + $0x48] sm:$0xff] %vm3388_vm11, %v3215_v35  ;;  %v3519_v51 = vpack.c.bf16 %v3458_v43, %v3457_v28  ;;  %3399 = vst.msk [vmem:[#allocation4 + $0x50] sm:$0xff] %vm3388_vm11, %v3217_v60 }
 0x408   :  { %3302 = vrot.lane.b32.xlu1 %v3121_v24, %s9632_s14  ;;  %3304 = vrot.lane.b32.xlu0 %v3122_v58, %s9632_s14 }
 0x409   :  { %9457 = vmatprep.mubr.msk.bf16.mxu0 %vm3604_vm12, %v3519_v51 }
 0x40a   :  { %v3219_v9 = vpop.permute.xlu1 %3218  ;;  %v3460_v14 = vld [vmem:[#allocation4 + $0x38] sm:$0xff]  ;;  %v3221_v31 = vpop.permute.xlu0 %3220  ;;  %v3461_v17 = vld [vmem:[#allocation4 + $0x40] sm:$0xff] }
 0x40b   :  { %3400 = vst.msk [vmem:[#allocation4 + $0x58] sm:$0xff] %vm3388_vm11, %v3219_v9  ;;  %v3520_v21 = vpack.c.bf16 %v3460_v14, %v3459_v5  ;;  %3401 = vst.msk [vmem:[#allocation4 + $0x60] sm:$0xff] %vm3388_vm11, %v3221_v31 }
 0x40c   :  { %3306 = vrot.lane.b32.xlu1 %v3123_v1, %s9632_s14  ;;  %2923 = vrot.lane.b32.xlu0 %v2739_v53, %s9631_s21 }
 0x40d   :  { %9458 = vmatmul.mubr.msk.bf16.gmra.mrb[4].mxu0 %vm3604_vm12, %v3520_v21 }
 0x40e   :  { %v3223_v0 = vpop.permute.xlu1 %3222  ;;  %v3462_v37 = vld [vmem:[#allocation4 + $0x48] sm:$0xff]  ;;  %v3225_v10 = vpop.permute.xlu0 %3224  ;;  %v3463_v18 = vld [vmem:[#allocation4 + $0x50] sm:$0xff] }
 0x40f   :  { %3402 = vst.msk [vmem:[#allocation4 + $0x68] sm:$0xff] %vm3388_vm11, %v3223_v0  ;;  %v3521_v25 = vpack.c.bf16 %v3462_v37, %v3461_v17  ;;  %3403 = vst.msk [vmem:[#allocation4 + $0x70] sm:$0xff] %vm3388_vm11, %v3225_v10 }
 0x410   :  { %2925 = vrot.lane.b32.xlu1 %v2740_v45, %s9631_s21  ;;  %2927 = vrot.lane.b32.xlu0 %v2741_v61, %s9631_s21 }
 0x411   :  { %9461 = vmatprep.mubr.msk.bf16.mxu0 %vm3604_vm12, %v3521_v25 }
 0x412   :  { %v3227_v19 = vpop.permute.xlu1 %3226  ;;  %v3464_v22 = vld [vmem:[#allocation4 + $0x58] sm:$0xff]  ;;  %v3229_v27 = vpop.permute.xlu0 %3228  ;;  %v3465_v30 = vld [vmem:[#allocation4 + $0x60] sm:$0xff] }
 0x413   :  { %3404 = vst.msk [vmem:[#allocation4 + $0x78] sm:$0xff] %vm3388_vm11, %v3227_v19  ;;  %v3522_v23 = vpack.c.bf16 %v3464_v22, %v3463_v18  ;;  %3405 = vst.msk [vmem:[#allocation4 + $0x80] sm:$0xff] %vm3388_vm11, %v3229_v27 }
 0x414   :  { %2929 = vrot.lane.b32.xlu1 %v2742_v15, %s9631_s21  ;;  %3308 = vrot.lane.b32.xlu0 %v3124_v26, %s9632_s14 }
 0x415   :  { %9462 = vmatmul.mubr.msk.bf16.gmra.mrb[8].mxu0 %vm3604_vm12, %v3522_v23 }
 0x416   :  { %v3231_v32 = vpop.permute.xlu1 %3230  ;;  %v3466_v33 = vld [vmem:[#allocation4 + $0x68] sm:$0xff]  ;;  %v3233_v38 = vpop.permute.xlu0 %3232  ;;  %v3467_v40 = vld [vmem:[#allocation4 + $0x70] sm:$0xff] }
 0x417   :  { %3406 = vst.msk [vmem:[#allocation4 + $0x88] sm:$0xff] %vm3388_vm11, %v3231_v32  ;;  %v3523_v34 = vpack.c.bf16 %v3466_v33, %v3465_v30  ;;  %3407 = vst.msk [vmem:[#allocation4 + $0x90] sm:$0xff] %vm3388_vm11, %v3233_v38 }
 0x418   :  { %3310 = vrot.lane.b32.xlu1 %v3125_v29, %s9632_s14  ;;  %3312 = vrot.lane.b32.xlu0 %v3126_v36, %s9632_s14 }
 0x419   :  { %9465 = vmatprep.mubr.msk.bf16.mxu0 %vm3604_vm12, %v3523_v34 }
 0x41a   :  { %v3235_v41 = vpop.permute.xlu1 %3234  ;;  %v3468_v42 = vld [vmem:[#allocation4 + $0x78] sm:$0xff]  ;;  %v3237_v47 = vpop.permute.xlu0 %3236  ;;  %v3469_v49 = vld [vmem:[#allocation4 + $0x80] sm:$0xff] }
 0x41b   :  { %3408 = vst.msk [vmem:[#allocation4 + $0x98] sm:$0xff] %vm3388_vm11, %v3235_v41  ;;  %v3524_v44 = vpack.c.bf16 %v3468_v42, %v3467_v40  ;;  %3409 = vst.msk [vmem:[#allocation4 + $0xa0] sm:$0xff] %vm3388_vm11, %v3237_v47 }
 0x41c   :  { %3314 = vrot.lane.b32.xlu1 %v3127_v39, %s9632_s14  ;;  %2931 = vrot.lane.b32.xlu0 %v2743_v46, %s9631_s21 }
 0x41d   :  { %9466 = vmatmul.mubr.msk.bf16.gmra.mrb[12].mxu0 %vm3604_vm12, %v3524_v44 }
 0x41e   :  { %v3239_v50 = vpop.permute.xlu1 %3238  ;;  %v3470_v52 = vld [vmem:[#allocation4 + $0x88] sm:$0xff]  ;;  %v3241_v55 = vpop.permute.xlu0 %3240  ;;  %v3471_v56 = vld [vmem:[#allocation4 + $0x90] sm:$0xff] }
 0x41f   :  { %3410 = vst.msk [vmem:[#allocation4 + $0xa8] sm:$0xff] %vm3388_vm11, %v3239_v50  ;;  %v3525_v12 = vpack.c.bf16 %v3470_v52, %v3469_v49  ;;  %3411 = vst.msk [vmem:[#allocation4 + $0xb0] sm:$0xff] %vm3388_vm11, %v3241_v55 }
 0x420   :  { %2933 = vrot.lane.b32.xlu1 %v2744_v48, %s9631_s21  ;;  %2935 = vrot.lane.b32.xlu0 %v2745_v54, %s9631_s21 }
 0x421   :  { %9469 = vmatprep.mubr.msk.bf16.mxu0 %vm3604_vm12, %v3525_v12 }
 0x422   :  { %v3243_v57 = vpop.permute.xlu1 %3242  ;;  %v3472_v7 = vld [vmem:[#allocation4 + $0x98] sm:$0xff]  ;;  %v3245_v63 = vpop.permute.xlu0 %3244  ;;  %v3473_v4 = vld [vmem:[#allocation4 + $0xa0] sm:$0xff] }
 0x423   :  { %3412 = vst.msk [vmem:[#allocation4 + $0xb8] sm:$0xff] %vm3388_vm11, %v3243_v57  ;;  %v3526_v3 = vpack.c.bf16 %v3472_v7, %v3471_v56  ;;  %3413 = vst.msk [vmem:[#allocation4 + $0xc0] sm:$0xff] %vm3388_vm11, %v3245_v63 }
 0x424   :  { %2937 = vrot.lane.b32.xlu1 %v2746_v59, %s9631_s21  ;;  %3316 = vrot.lane.b32.xlu0 %v3128_v62, %s9632_s14 }
 0x425   :  { %9470 = vmatmul.mubr.msk.bf16.gmra.mrb[16].mxu0 %vm3604_vm12, %v3526_v3 }
 0x426   :  { %v3247_v6 = vpop.permute.xlu1 %3246  ;;  %v3474_v8 = vld [vmem:[#allocation4 + $0xa8] sm:$0xff]  ;;  %v3249_v16 = vpop.permute.xlu0 %3248  ;;  %v3475_v24 = vld [vmem:[#allocation4 + $0xb0] sm:$0xff] }
 0x427   :  { %3414 = vst.msk [vmem:[#allocation4 + $0xc8] sm:$0xff] %vm3388_vm11, %v3247_v6  ;;  %v3527_v11 = vpack.c.bf16 %v3474_v8, %v3473_v4  ;;  %3415 = vst.msk [vmem:[#allocation4 + $0xd0] sm:$0xff] %vm3388_vm11, %v3249_v16  ;;  %v16639_v4 = vmov 0.0  }
 0x428   :  { %3318 = vrot.lane.b32.xlu1 %v3129_v2, %s9632_s14  ;;  %3320 = vrot.lane.b32.xlu0 %v3130_v13, %s9632_s14  ;;  %4664 = vst.msk [vmem:[#allocation3] sm:$0xff] %vm3994_vm13, %v16639_v4  ;;  %4665 = vst.msk [vmem:[#allocation3 + $0x8] sm:$0xff] %vm3994_vm13, %v16639_v4 }
 0x429   :  { %9473 = vmatprep.mubr.msk.bf16.mxu0 %vm3604_vm12, %v3527_v11  ;;  %4668 = vst.msk [vmem:[#allocation3 + $0x1b0] sm:$0xff] %vm3994_vm13, %v16639_v4  ;;  %4669 = vst.msk [vmem:[#allocation3 + $0x1b8] sm:$0xff] %vm3994_vm13, %v16639_v4 }
 0x42a   :  { %v3251_v28 = vpop.permute.xlu1 %3250  ;;  %v3476_v35 = vld [vmem:[#allocation4 + $0xb8] sm:$0xff]  ;;  %v3253_v51 = vpop.permute.xlu0 %3252  ;;  %v3477_v58 = vld [vmem:[#allocation4 + $0xc0] sm:$0xff]  ;;  %4672 = vst.msk [vmem:[#allocation3 + $0x198] sm:$0xff] %vm3994_vm13, %v16639_v4  ;;  %4673 = vst.msk [vmem:[#allocation3 + $0x1a0] sm:$0xff] %vm3994_vm13, %v16639_v4 }
 0x42b   :  { %3416 = vst.msk [vmem:[#allocation4 + $0xd8] sm:$0xff] %vm3388_vm11, %v3251_v28  ;;  %v3528_v43 = vpack.c.bf16 %v3476_v35, %v3475_v24  ;;  %3417 = vst.msk [vmem:[#allocation4 + $0xe0] sm:$0xff] %vm3388_vm11, %v3253_v51 }
 0x42c   :  { %3322 = vrot.lane.b32.xlu1 %v3131_v20, %s9632_s14  ;;  %4675 = vst.msk [vmem:[#allocation3 + $0x348] sm:$0xff] %vm3994_vm13, %v16639_v4  ;;  %4676 = vst.msk [vmem:[#allocation3 + $0x350] sm:$0xff] %vm3994_vm13, %v16639_v4 }
 0x42d   :  { %9474 = vmatmul.mubr.msk.bf16.gmra.mrb[20].mxu0 %vm3604_vm12, %v3528_v43 }
 0x42e   :  { %v3255_v60 = vpop.permute.xlu1 %3254  ;;  %v3478_v1 = vld [vmem:[#allocation4 + $0xc8] sm:$0xff]  ;;  %v3257_v9 = vpop.permute.xlu0 %3256  ;;  %v3479_v14 = vld [vmem:[#allocation4 + $0xd0] sm:$0xff] }
 0x42f   :  { %3418 = vst.msk [vmem:[#allocation4 + $0xe8] sm:$0xff] %vm3388_vm11, %v3255_v60  ;;  %v3529_v5 = vpack.c.bf16 %v3478_v1, %v3477_v58  ;;  %3419 = vst.msk [vmem:[#allocation4 + $0xf0] sm:$0xff] %vm3388_vm11, %v3257_v9 }
 0x431   :  { %9477 = vmatprep.mubr.msk.bf16.mxu0 %vm3604_vm12, %v3529_v5 }
 0x432   :  { %v3259_v21 = vpop.permute.xlu1 %3258  ;;  %v3480_v53 = vld [vmem:[#allocation4 + $0xd8] sm:$0xff]  ;;  %v3261_v45 = vpop.permute.xlu0 %3260  ;;  %v3481_v17 = vld [vmem:[#allocation4 + $0xe0] sm:$0xff] }
 0x433   :  { %3420 = vst.msk [vmem:[#allocation4 + $0xf8] sm:$0xff] %vm3388_vm11, %v3259_v21  ;;  %v3530_v31 = vpack.c.bf16 %v3480_v53, %v3479_v14  ;;  %3421 = vst.msk [vmem:[#allocation4 + $0x100] sm:$0xff] %vm3388_vm11, %v3261_v45 }
 0x435   :  { %9478 = vmatmul.mubr.msk.bf16.gmra.mrb[24].mxu0 %vm3604_vm12, %v3530_v31 }
 0x436   :  { %v3263_v0 = vpop.permute.xlu1 %3262  ;;  %v3482_v37 = vld [vmem:[#allocation4 + $0xe8] sm:$0xff]  ;;  %v3265_v61 = vpop.permute.xlu0 %3264  ;;  %v3483_v10 = vld [vmem:[#allocation4 + $0xf0] sm:$0xff] }
 0x437   :  { %3422 = vst.msk [vmem:[#allocation4 + $0x108] sm:$0xff] %vm3388_vm11, %v3263_v0  ;;  %v3531_v25 = vpack.c.bf16 %v3482_v37, %v3481_v17  ;;  %3423 = vst.msk [vmem:[#allocation4 + $0x110] sm:$0xff] %vm3388_vm11, %v3265_v61 }
 0x439   :  { %9481 = vmatprep.mubr.msk.bf16.mxu0 %vm3604_vm12, %v3531_v25 }
 0x43a   :  { %v3267_v15 = vpop.permute.xlu1 %3266  ;;  %v3484_v18 = vld [vmem:[#allocation4 + $0xf8] sm:$0xff]  ;;  %v3269_v22 = vpop.permute.xlu0 %3268  ;;  %v3485_v23 = vld [vmem:[#allocation4 + $0x100] sm:$0xff] }
 0x43b   :  { %3424 = vst.msk [vmem:[#allocation4 + $0x118] sm:$0xff] %vm3388_vm11, %v3267_v15  ;;  %v3532_v19 = vpack.c.bf16 %v3484_v18, %v3483_v10  ;;  %3425 = vst.msk [vmem:[#allocation4 + $0x120] sm:$0xff] %vm3388_vm11, %v3269_v22 }
 0x43d   :  { %9482 = vmatmul.mubr.msk.bf16.gmra.mrb[28].mxu0 %vm3604_vm12, %v3532_v19 }
 0x43e   :  { %v3271_v26 = vpop.permute.xlu1 %3270  ;;  %v3486_v27 = vld [vmem:[#allocation4 + $0x108] sm:$0xff]  ;;  %v3273_v30 = vpop.permute.xlu0 %3272  ;;  %v3487_v32 = vld [vmem:[#allocation4 + $0x110] sm:$0xff] }
 0x43f   :  { %3426 = vst.msk [vmem:[#allocation4 + $0x128] sm:$0xff] %vm3388_vm11, %v3271_v26  ;;  %v3533_v29 = vpack.c.bf16 %v3486_v27, %v3485_v23  ;;  %3427 = vst.msk [vmem:[#allocation4 + $0x130] sm:$0xff] %vm3388_vm11, %v3273_v30 }
 0x441   :  { %9485 = vmatprep.mubr.msk.bf16.mxu0 %vm3604_vm12, %v3533_v29 }
 0x442   :  { %v3275_v33 = vpop.permute.xlu1 %3274  ;;  %v3488_v34 = vld [vmem:[#allocation4 + $0x118] sm:$0xff]  ;;  %v2896_v38 = vpop.permute.xlu0 %2895  ;;  %v3489_v39 = vld [vmem:[#allocation4 + $0x120] sm:$0xff] }
 0x443   :  { %3428 = vst.msk [vmem:[#allocation4 + $0x138] sm:$0xff] %vm3388_vm11, %v3275_v33  ;;  %v3534_v36 = vpack.c.bf16 %v3488_v34, %v3487_v32 }
 0x444   :  { %3046 = vst.msk [vmem:[#allocation4 + $0x150] sm:$0xff] %vm3003_vm10, %v2896_v38 }
 0x445   :  { %9486 = vmatmul.mubr.msk.bf16.gmra.mrb[32].mxu0 %vm3604_vm12, %v3534_v36 }
 0x446   :  { %v2898_v40 = vpop.permute.xlu1 %2897  ;;  %v3490_v41 = vld [vmem:[#allocation4 + $0x128] sm:$0xff]  ;;  %v3277_v44 = vpop.permute.xlu0 %3276  ;;  %v3491_v46 = vld [vmem:[#allocation4 + $0x130] sm:$0xff] }
 0x447   :  { %3047 = vst.msk [vmem:[#allocation4 + $0x158] sm:$0xff] %vm3003_vm10, %v2898_v40  ;;  %v3535_v42 = vpack.c.bf16 %v3490_v41, %v3489_v39 }
 0x448   :  { %3429 = vst.msk [vmem:[#allocation4 + $0x140] sm:$0xff] %vm3388_vm11, %v3277_v44 }
 0x449   :  { %9489 = vmatprep.mubr.msk.bf16.mxu0 %vm3604_vm12, %v3535_v42 }
 0x44a   :  { %v3279_v47 = vpop.permute.xlu1 %3278  ;;  %v3492_v48 = vld [vmem:[#allocation4 + $0x138] sm:$0xff]  ;;  %v3281_v50 = vpop.permute.xlu0 %3280 }
 0x44b   :  { %3430 = vst.msk [vmem:[#allocation4 + $0x148] sm:$0xff] %vm3388_vm11, %v3279_v47  ;;  %v3536_v49 = vpack.c.bf16 %v3492_v48, %v3491_v46  ;;  %3431 = vst.msk [vmem:[#allocation4 + $0x150] sm:$0xff] %vm3388_vm11, %v3281_v50 }
 0x44d   :  { %9490 = vmatmul.mubr.msk.bf16.gmra.mrb[36].mxu0 %vm3604_vm12, %v3536_v49 }
 0x44e   :  { %v3283_v52 = vpop.permute.xlu1 %3282  ;;  %v2900_v12 = vpop.permute.xlu0 %2899 }
 0x44f   :  { %3432 = vst.msk [vmem:[#allocation4 + $0x158] sm:$0xff] %vm3388_vm11, %v3283_v52  ;;  %v3493_v54 = vld [vmem:[#allocation4 + $0x140] sm:$0xff] }
 0x450   :  { %3048 = vst.msk [vmem:[#allocation4 + $0x160] sm:$0xff] %vm3003_vm10, %v2900_v12 }
 0x452   :  { %v2902_v55 = vpop.permute.xlu1 %2901  ;;  %v3494_v59 = vld [vmem:[#allocation4 + $0x148] sm:$0xff]  ;;  %v2904_v57 = vpop.permute.xlu0 %2903  ;;  %v3495_v7 = vld [vmem:[#allocation4 + $0x150] sm:$0xff] }
 0x453   :  { %3049 = vst.msk [vmem:[#allocation4 + $0x168] sm:$0xff] %vm3003_vm10, %v2902_v55  ;;  %v3537_v56 = vpack.c.bf16 %v3494_v59, %v3493_v54  ;;  %3050 = vst.msk [vmem:[#allocation4 + $0x170] sm:$0xff] %vm3003_vm10, %v2904_v57 }
 0x455   :  { %9493 = vmatprep.mubr.msk.bf16.mxu0 %vm3604_vm12, %v3537_v56 }
 0x456   :  { %v2906_v3 = vpop.permute.xlu1 %2905  ;;  %v3496_v62 = vld [vmem:[#allocation4 + $0x158] sm:$0xff]  ;;  %v3285_v2 = vpop.permute.xlu0 %3284 }
 0x457   :  { %3051 = vst.msk [vmem:[#allocation4 + $0x178] sm:$0xff] %vm3003_vm10, %v2906_v3  ;;  %v3538_v63 = vpack.c.bf16 %v3496_v62, %v3495_v7 }
 0x458   :  { %3433 = vst.msk [vmem:[#allocation4 + $0x160] sm:$0xff] %vm3388_vm11, %v3285_v2 }
 0x459   :  { %9494 = vmatmul.mubr.msk.bf16.gmra.mrb[40].mxu0 %vm3604_vm12, %v3538_v63 }
 0x45a   :  { %v3287_v6 = vpop.permute.xlu1 %3286  ;;  %v3289_v8 = vpop.permute.xlu0 %3288 }
 0x45b   :  { %3434 = vst.msk [vmem:[#allocation4 + $0x168] sm:$0xff] %vm3388_vm11, %v3287_v6  ;;  %3435 = vst.msk [vmem:[#allocation4 + $0x170] sm:$0xff] %vm3388_vm11, %v3289_v8 }
 0x45e   :  { %v3291_v11 = vpop.permute.xlu1 %3290  ;;  %v2908_v13 = vpop.permute.xlu0 %2907 }
 0x45f   :  { %3436 = vst.msk [vmem:[#allocation4 + $0x178] sm:$0xff] %vm3388_vm11, %v3291_v11  ;;  %v3497_v16 = vld [vmem:[#allocation4 + $0x160] sm:$0xff] }
 0x460   :  { %3052 = vst.msk [vmem:[#allocation4 + $0x180] sm:$0xff] %vm3003_vm10, %v2908_v13 }
 0x462   :  { %v2910_v20 = vpop.permute.xlu1 %2909  ;;  %v3498_v24 = vld [vmem:[#allocation4 + $0x168] sm:$0xff]  ;;  %v2912_v35 = vpop.permute.xlu0 %2911  ;;  %v3499_v43 = vld [vmem:[#allocation4 + $0x170] sm:$0xff] }
 0x463   :  { %3053 = vst.msk [vmem:[#allocation4 + $0x188] sm:$0xff] %vm3003_vm10, %v2910_v20  ;;  %v3539_v28 = vpack.c.bf16 %v3498_v24, %v3497_v16  ;;  %3054 = vst.msk [vmem:[#allocation4 + $0x190] sm:$0xff] %vm3003_vm10, %v2912_v35 }
 0x465   :  { %9497 = vmatprep.mubr.msk.bf16.mxu0 %vm3604_vm12, %v3539_v28 }
 0x466   :  { %v2914_v51 = vpop.permute.xlu1 %2913  ;;  %v3500_v58 = vld [vmem:[#allocation4 + $0x178] sm:$0xff]  ;;  %v3293_v1 = vpop.permute.xlu0 %3292 }
 0x467   :  { %3055 = vst.msk [vmem:[#allocation4 + $0x198] sm:$0xff] %vm3003_vm10, %v2914_v51  ;;  %v3540_v60 = vpack.c.bf16 %v3500_v58, %v3499_v43 }
 0x468   :  { %3437 = vst.msk [vmem:[#allocation4 + $0x180] sm:$0xff] %vm3388_vm11, %v3293_v1 }
 0x469   :  { %9498 = vmatmul.mubr.msk.bf16.gmra.mrb[44].mxu0 %vm3604_vm12, %v3540_v60 }
 0x46a   :  { %v3295_v5 = vpop.permute.xlu1 %3294  ;;  %v3297_v9 = vpop.permute.xlu0 %3296 }
 0x46b   :  { %3438 = vst.msk [vmem:[#allocation4 + $0x188] sm:$0xff] %vm3388_vm11, %v3295_v5  ;;  %3439 = vst.msk [vmem:[#allocation4 + $0x190] sm:$0xff] %vm3388_vm11, %v3297_v9 }
 0x46e   :  { %v3299_v14 = vpop.permute.xlu1 %3298  ;;  %v2916_v21 = vpop.permute.xlu0 %2915 }
 0x46f   :  { %3440 = vst.msk [vmem:[#allocation4 + $0x198] sm:$0xff] %vm3388_vm11, %v3299_v14  ;;  %v3501_v53 = vld [vmem:[#allocation4 + $0x180] sm:$0xff] }
 0x470   :  { %3056 = vst.msk [vmem:[#allocation4 + $0x1a0] sm:$0xff] %vm3003_vm10, %v2916_v21 }
 0x472   :  { %v2918_v31 = vpop.permute.xlu1 %2917  ;;  %v3502_v45 = vld [vmem:[#allocation4 + $0x188] sm:$0xff]  ;;  %v2920_v0 = vpop.permute.xlu0 %2919  ;;  %v3503_v37 = vld [vmem:[#allocation4 + $0x190] sm:$0xff] }
 0x473   :  { %3057 = vst.msk [vmem:[#allocation4 + $0x1a8] sm:$0xff] %vm3003_vm10, %v2918_v31  ;;  %v3541_v17 = vpack.c.bf16 %v3502_v45, %v3501_v53  ;;  %3058 = vst.msk [vmem:[#allocation4 + $0x1b0] sm:$0xff] %vm3003_vm10, %v2920_v0 }
 0x475   :  { %9501 = vmatprep.mubr.msk.bf16.mxu0 %vm3604_vm12, %v3541_v17 }
 0x476   :  { %v2922_v25 = vpop.permute.xlu1 %2921  ;;  %v3504_v61 = vld [vmem:[#allocation4 + $0x198] sm:$0xff]  ;;  %v3301_v15 = vpop.permute.xlu0 %3300 }
 0x477   :  { %3059 = vst.msk [vmem:[#allocation4 + $0x1b8] sm:$0xff] %vm3003_vm10, %v2922_v25  ;;  %v3542_v10 = vpack.c.bf16 %v3504_v61, %v3503_v37 }
 0x478   :  { %3441 = vst.msk [vmem:[#allocation4 + $0x1a0] sm:$0xff] %vm3388_vm11, %v3301_v15 }
 0x479   :  { %9502 = vmatmul.mubr.msk.bf16.gmra.mrb[48].mxu0 %vm3604_vm12, %v3542_v10 }
 0x47a   :  { %v3303_v18 = vpop.permute.xlu1 %3302  ;;  %v3305_v19 = vpop.permute.xlu0 %3304 }
 0x47b   :  { %3442 = vst.msk [vmem:[#allocation4 + $0x1a8] sm:$0xff] %vm3388_vm11, %v3303_v18  ;;  %3443 = vst.msk [vmem:[#allocation4 + $0x1b0] sm:$0xff] %vm3388_vm11, %v3305_v19 }
 0x47e   :  { %v3307_v22 = vpop.permute.xlu1 %3306  ;;  %v2924_v23 = vpop.permute.xlu0 %2923 }
 0x47f   :  { %3444 = vst.msk [vmem:[#allocation4 + $0x1b8] sm:$0xff] %vm3388_vm11, %v3307_v22  ;;  %v3505_v26 = vld [vmem:[#allocation4 + $0x1a0] sm:$0xff] }
 0x480   :  { %3060 = vst.msk [vmem:[#allocation4 + $0x1c0] sm:$0xff] %vm3003_vm10, %v2924_v23 }
 0x482   :  { %v2926_v27 = vpop.permute.xlu1 %2925  ;;  %v3506_v29 = vld [vmem:[#allocation4 + $0x1a8] sm:$0xff]  ;;  %v2928_v32 = vpop.permute.xlu0 %2927  ;;  %v3507_v33 = vld [vmem:[#allocation4 + $0x1b0] sm:$0xff] }
 0x483   :  { %3061 = vst.msk [vmem:[#allocation4 + $0x1c8] sm:$0xff] %vm3003_vm10, %v2926_v27  ;;  %v3543_v30 = vpack.c.bf16 %v3506_v29, %v3505_v26  ;;  %3062 = vst.msk [vmem:[#allocation4 + $0x1d0] sm:$0xff] %vm3003_vm10, %v2928_v32 }
 0x485   :  { %9505 = vmatprep.mubr.msk.bf16.mxu0 %vm3604_vm12, %v3543_v30 }
 0x486   :  { %v2930_v34 = vpop.permute.xlu1 %2929  ;;  %v3508_v36 = vld [vmem:[#allocation4 + $0x1b8] sm:$0xff]  ;;  %v3309_v39 = vpop.permute.xlu0 %3308 }
 0x487   :  { %3063 = vst.msk [vmem:[#allocation4 + $0x1d8] sm:$0xff] %vm3003_vm10, %v2930_v34  ;;  %v3544_v38 = vpack.c.bf16 %v3508_v36, %v3507_v33 }
 0x488   :  { %3445 = vst.msk [vmem:[#allocation4 + $0x1c0] sm:$0xff] %vm3388_vm11, %v3309_v39 }
 0x489   :  { %9506 = vmatmul.mubr.msk.bf16.gmra.mrb[52].mxu0 %vm3604_vm12, %v3544_v38 }
 0x48a   :  { %v3311_v40 = vpop.permute.xlu1 %3310  ;;  %v3313_v41 = vpop.permute.xlu0 %3312 }
 0x48b   :  { %3446 = vst.msk [vmem:[#allocation4 + $0x1c8] sm:$0xff] %vm3388_vm11, %v3311_v40  ;;  %3447 = vst.msk [vmem:[#allocation4 + $0x1d0] sm:$0xff] %vm3388_vm11, %v3313_v41 }
 0x48e   :  { %v3315_v42 = vpop.permute.xlu1 %3314  ;;  %v2932_v44 = vpop.permute.xlu0 %2931 }
 0x48f   :  { %3448 = vst.msk [vmem:[#allocation4 + $0x1d8] sm:$0xff] %vm3388_vm11, %v3315_v42  ;;  %v3509_v46 = vld [vmem:[#allocation4 + $0x1c0] sm:$0xff] }
 0x490   :  { %3064 = vst.msk [vmem:[#allocation4 + $0x1e0] sm:$0xff] %vm3003_vm10, %v2932_v44 }
 0x492   :  { %v2934_v47 = vpop.permute.xlu1 %2933  ;;  %v3510_v48 = vld [vmem:[#allocation4 + $0x1c8] sm:$0xff]  ;;  %v2936_v50 = vpop.permute.xlu0 %2935  ;;  %v3511_v52 = vld [vmem:[#allocation4 + $0x1d0] sm:$0xff] }
 0x493   :  { %3065 = vst.msk [vmem:[#allocation4 + $0x1e8] sm:$0xff] %vm3003_vm10, %v2934_v47  ;;  %v3545_v49 = vpack.c.bf16 %v3510_v48, %v3509_v46  ;;  %3066 = vst.msk [vmem:[#allocation4 + $0x1f0] sm:$0xff] %vm3003_vm10, %v2936_v50 }
 0x495   :  { %9509 = vmatprep.mubr.msk.bf16.mxu0 %vm3604_vm12, %v3545_v49 }
 0x496   :  { %v2938_v12 = vpop.permute.xlu1 %2937  ;;  %v3512_v54 = vld [vmem:[#allocation4 + $0x1d8] sm:$0xff]  ;;  %v3317_v59 = vpop.permute.xlu0 %3316 }
 0x497   :  { %3067 = vst.msk [vmem:[#allocation4 + $0x1f8] sm:$0xff] %vm3003_vm10, %v2938_v12  ;;  %v3546_v55 = vpack.c.bf16 %v3512_v54, %v3511_v52 }
 0x498   :  { %3449 = vst.msk [vmem:[#allocation4 + $0x1e0] sm:$0xff] %vm3388_vm11, %v3317_v59 }
 0x499   :  { %9510 = vmatmul.mubr.msk.bf16.gmra.mrb[56].mxu0 %vm3604_vm12, %v3546_v55 }
 0x49a   :  { %v3319_v56 = vpop.permute.xlu1 %3318  ;;  %v3321_v57 = vpop.permute.xlu0 %3320 }
 0x49b   :  { %3450 = vst.msk [vmem:[#allocation4 + $0x1e8] sm:$0xff] %vm3388_vm11, %v3319_v56  ;;  %3451 = vst.msk [vmem:[#allocation4 + $0x1f0] sm:$0xff] %vm3388_vm11, %v3321_v57 }
 0x49e   :  { %v3323_v7 = vpop.permute.xlu1 %3322 }
 0x49f   :  { %3452 = vst.msk [vmem:[#allocation4 + $0x1f8] sm:$0xff] %vm3388_vm11, %v3323_v7  ;;  %v3513_v3 = vld [vmem:[#allocation4 + $0x1e0] sm:$0xff] }
 0x4a2   :  { %v3514_v62 = vld [vmem:[#allocation4 + $0x1e8] sm:$0xff]  ;;  %v3515_v2 = vld [vmem:[#allocation4 + $0x1f0] sm:$0xff] }
 0x4a3   :  { %v3547_v63 = vpack.c.bf16 %v3514_v62, %v3513_v3 }
 0x4a5   :  { %9513 = vmatprep.mubr.msk.bf16.mxu0 %vm3604_vm12, %v3547_v63 }
 0x4a6   :  { %v3516_v6 = vld [vmem:[#allocation4 + $0x1f8] sm:$0xff] }
 0x4a7   :  { %v3548_v8 = vpack.c.bf16 %v3516_v6, %v3515_v2 }
 0x4a9   :  { %9514 = vmatmul.mubr.msk.bf16.gmra.mrb[60].mxu0 %vm3604_vm12, %v3548_v8 }
 0x4d8   :  { %v11500_v11 = vpop.f32.mrb[0].mxu0 }
 0x4d9   :  { %v11502_v13 = vpop.f32.mrb[1].mxu0  ;;  %v3998_v43 = vsel %vm3994_vm13, %v11500_v11, 0.0 }
 0x4da   :  { %v11504_v16 = vpop.f32.mrb[2].mxu0  ;;  %v3995_v24 = vsel %vm3994_vm13, %v11502_v13, 0.0 }
 0x4db   :  { %v11506_v20 = vpop.f32.mrb[3].mxu0  ;;  %v4000_v58 = vsel %vm3994_vm13, %v11504_v16, 0.0 }
 0x4dc   :  { %v3996_v28 = vsel %vm3994_vm13, %v11506_v20, 0.0 }
 0x4dd   :  { %v3997_v35 = vadd.f32 %v3996_v28, %v3995_v24 }
 0x4df   :  { %v3999_v51 = vadd.f32 %v3998_v43, %v3997_v35 }
 0x4e0   :  { %v11516_v60 = vpop.f32.mrb[4].mxu0 }
 0x4e1   :  { %v11518_v1 = vpop.f32.mrb[5].mxu0  ;;  %v4001_v5 = vadd.f32 %v4000_v58, %v3999_v51  ;;  %v4006_v17 = vsel %vm3994_vm13, %v11516_v60, 0.0 }
 0x4e2   :  { %v4002_v9 = vsel %vm3994_vm13, %v11518_v1, 0.0  ;;  %v11522_v14 = vpop.f32.mrb[6].mxu0 }
 0x4e3   :  { %v4003_v21 = vadd.f32 %v4002_v9, %v4001_v5  ;;  %v11524_v53 = vpop.f32.mrb[7].mxu0  ;;  %v4008_v37 = vsel %vm3994_vm13, %v11522_v14, 0.0 }
 0x4e4   :  { %v4004_v31 = vsel %vm3994_vm13, %v11524_v53, 0.0 }
 0x4e5   :  { %v4005_v45 = vadd.f32 %v4004_v31, %v4003_v21 }
 0x4e7   :  { %v4007_v0 = vadd.f32 %v4006_v17, %v4005_v45 }
 0x4e8   :  { %v11532_v25 = vpop.f32.mrb[8].mxu0 }
 0x4e9   :  { %v11534_v61 = vpop.f32.mrb[9].mxu0  ;;  %v4009_v10 = vadd.f32 %v4008_v37, %v4007_v0  ;;  %v4014_v27 = vsel %vm3994_vm13, %v11532_v25, 0.0 }
 0x4ea   :  { %v4010_v15 = vsel %vm3994_vm13, %v11534_v61, 0.0  ;;  %v11538_v18 = vpop.f32.mrb[10].mxu0 }
 0x4eb   :  { %v4011_v19 = vadd.f32 %v4010_v15, %v4009_v10  ;;  %v11540_v22 = vpop.f32.mrb[11].mxu0  ;;  %v4016_v30 = vsel %vm3994_vm13, %v11538_v18, 0.0 }
 0x4ec   :  { %v4012_v23 = vsel %vm3994_vm13, %v11540_v22, 0.0 }
 0x4ed   :  { %v4013_v26 = vadd.f32 %v4012_v23, %v4011_v19 }
 0x4ef   :  { %v4015_v29 = vadd.f32 %v4014_v27, %v4013_v26 }
 0x4f0   :  { %v11548_v32 = vpop.f32.mrb[12].mxu0 }
 0x4f1   :  { %v11550_v33 = vpop.f32.mrb[13].mxu0  ;;  %v4017_v34 = vadd.f32 %v4016_v30, %v4015_v29  ;;  %v4022_v44 = vsel %vm3994_vm13, %v11548_v32, 0.0 }
 0x4f2   :  { %v4018_v36 = vsel %vm3994_vm13, %v11550_v33, 0.0  ;;  %v11554_v38 = vpop.f32.mrb[14].mxu0 }
 0x4f3   :  { %v4019_v39 = vadd.f32 %v4018_v36, %v4017_v34  ;;  %v11556_v40 = vpop.f32.mrb[15].mxu0  ;;  %v4024_v47 = vsel %vm3994_vm13, %v11554_v38, 0.0 }
 0x4f4   :  { %v4020_v41 = vsel %vm3994_vm13, %v11556_v40, 0.0 }
 0x4f5   :  { %v4021_v42 = vadd.f32 %v4020_v41, %v4019_v39 }
 0x4f7   :  { %v4023_v46 = vadd.f32 %v4022_v44, %v4021_v42 }
 0x4f8   :  { %v11564_v48 = vpop.f32.mrb[16].mxu0 }
 0x4f9   :  { %v11566_v49 = vpop.f32.mrb[17].mxu0  ;;  %v4025_v50 = vadd.f32 %v4024_v47, %v4023_v46  ;;  %v4030_v57 = vsel %vm3994_vm13, %v11564_v48, 0.0 }
 0x4fa   :  { %v4026_v52 = vsel %vm3994_vm13, %v11566_v49, 0.0  ;;  %v11570_v12 = vpop.f32.mrb[18].mxu0 }
 0x4fb   :  { %v4027_v54 = vadd.f32 %v4026_v52, %v4025_v50  ;;  %v11572_v55 = vpop.f32.mrb[19].mxu0  ;;  %v4032_v3 = vsel %vm3994_vm13, %v11570_v12, 0.0 }
 0x4fc   :  { %v4028_v59 = vsel %vm3994_vm13, %v11572_v55, 0.0 }
 0x4fd   :  { %v4029_v56 = vadd.f32 %v4028_v59, %v4027_v54 }
 0x4ff   :  { %v4031_v7 = vadd.f32 %v4030_v57, %v4029_v56 }
 0x500   :  { %v11580_v62 = vpop.f32.mrb[20].mxu0 }
 0x501   :  { %v11582_v63 = vpop.f32.mrb[21].mxu0  ;;  %v4033_v2 = vadd.f32 %v4032_v3, %v4031_v7  ;;  %v4038_v51 = vsel %vm3994_vm13, %v11580_v62, 0.0 }
 0x502   :  { %v4034_v6 = vsel %vm3994_vm13, %v11582_v63, 0.0  ;;  %v11586_v8 = vpop.f32.mrb[22].mxu0 }
 0x503   :  { %v4035_v24 = vadd.f32 %v4034_v6, %v4033_v2  ;;  %v11588_v28 = vpop.f32.mrb[23].mxu0  ;;  %v4040_v5 = vsel %vm3994_vm13, %v11586_v8, 0.0 }
 0x504   :  { %v4036_v35 = vsel %vm3994_vm13, %v11588_v28, 0.0 }
 0x505   :  { %v4037_v43 = vadd.f32 %v4036_v35, %v4035_v24 }
 0x507   :  { %v4039_v58 = vadd.f32 %v4038_v51, %v4037_v43 }
 0x508   :  { %v11596_v9 = vpop.f32.mrb[24].mxu0 }
 0x509   :  { %v11598_v21 = vpop.f32.mrb[25].mxu0  ;;  %v4041_v31 = vadd.f32 %v4040_v5, %v4039_v58  ;;  %v4046_v19 = vsel %vm3994_vm13, %v11596_v9, 0.0 }
 0x50a   :  { %v4042_v45 = vsel %vm3994_vm13, %v11598_v21, 0.0  ;;  %v11602_v17 = vpop.f32.mrb[26].mxu0 }
 0x50b   :  { %v4043_v0 = vadd.f32 %v4042_v45, %v4041_v31  ;;  %v11604_v37 = vpop.f32.mrb[27].mxu0  ;;  %v4048_v26 = vsel %vm3994_vm13, %v11602_v17, 0.0 }
 0x50c   :  { %v4044_v10 = vsel %vm3994_vm13, %v11604_v37, 0.0 }
 0x50d   :  { %v4045_v15 = vadd.f32 %v4044_v10, %v4043_v0 }
 0x50f   :  { %v4047_v23 = vadd.f32 %v4046_v19, %v4045_v15 }
 0x510   :  { %v11612_v27 = vpop.f32.mrb[28].mxu0 }
 0x511   :  { %v11614_v29 = vpop.f32.mrb[29].mxu0  ;;  %v4049_v30 = vadd.f32 %v4048_v26, %v4047_v23  ;;  %v4054_v46 = vsel %vm3994_vm13, %v11612_v27, 0.0 }
 0x512   :  { %v4050_v34 = vsel %vm3994_vm13, %v11614_v29, 0.0  ;;  %v11618_v36 = vpop.f32.mrb[30].mxu0 }
 0x513   :  { %v4051_v39 = vadd.f32 %v4050_v34, %v4049_v30  ;;  %v11620_v41 = vpop.f32.mrb[31].mxu0  ;;  %v4056_v50 = vsel %vm3994_vm13, %v11618_v36, 0.0 }
 0x514   :  { %v4052_v42 = vsel %vm3994_vm13, %v11620_v41, 0.0 }
 0x515   :  { %v4053_v44 = vadd.f32 %v4052_v42, %v4051_v39 }
 0x517   :  { %v4055_v47 = vadd.f32 %v4054_v46, %v4053_v44 }
 0x518   :  { %v11628_v52 = vpop.f32.mrb[32].mxu0 }
 0x519   :  { %v11630_v54 = vpop.f32.mrb[33].mxu0  ;;  %v4057_v59 = vadd.f32 %v4056_v50, %v4055_v47  ;;  %v4062_v24 = vsel %vm3994_vm13, %v11628_v52, 0.0 }
 0x51a   :  { %v4058_v56 = vsel %vm3994_vm13, %v11630_v54, 0.0  ;;  %v11634_v57 = vpop.f32.mrb[34].mxu0 }
 0x51b   :  { %v4059_v7 = vadd.f32 %v4058_v56, %v4057_v59  ;;  %v11636_v3 = vpop.f32.mrb[35].mxu0  ;;  %v4064_v43 = vsel %vm3994_vm13, %v11634_v57, 0.0 }
 0x51c   :  { %v4060_v2 = vsel %vm3994_vm13, %v11636_v3, 0.0 }
 0x51d   :  { %v4061_v6 = vadd.f32 %v4060_v2, %v4059_v7 }
 0x51f   :  { %v4063_v35 = vadd.f32 %v4062_v24, %v4061_v6 }
 0x520   :  { %v11644_v51 = vpop.f32.mrb[36].mxu0 }
 0x521   :  { %v11646_v58 = vpop.f32.mrb[37].mxu0  ;;  %v4065_v5 = vadd.f32 %v4064_v43, %v4063_v35  ;;  %v4070_v23 = vsel %vm3994_vm13, %v11644_v51, 0.0 }
 0x522   :  { %v4066_v31 = vsel %vm3994_vm13, %v11646_v58, 0.0  ;;  %v11650_v45 = vpop.f32.mrb[38].mxu0 }
 0x523   :  { %v4067_v0 = vadd.f32 %v4066_v31, %v4065_v5  ;;  %v11652_v10 = vpop.f32.mrb[39].mxu0  ;;  %v4072_v30 = vsel %vm3994_vm13, %v11650_v45, 0.0 }
 0x524   :  { %v4068_v15 = vsel %vm3994_vm13, %v11652_v10, 0.0 }
 0x525   :  { %v4069_v19 = vadd.f32 %v4068_v15, %v4067_v0 }
 0x527   :  { %v4071_v26 = vadd.f32 %v4070_v23, %v4069_v19 }
 0x529   :  { %v4073_v34 = vadd.f32 %v4072_v30, %v4071_v26 }
 0x52c   :  { %v11660_v39 = vpop.f32.mrb[40].mxu0 }
 0x52d   :  { %v11662_v42 = vpop.f32.mrb[41].mxu0  ;;  %v4078_v7 = vsel %vm3994_vm13, %v11660_v39, 0.0 }
 0x52e   :  { %v4074_v44 = vsel %vm3994_vm13, %v11662_v42, 0.0  ;;  %v11666_v46 = vpop.f32.mrb[42].mxu0 }
 0x52f   :  { %v4075_v47 = vadd.f32 %v4074_v44, %v4073_v34  ;;  %v11668_v50 = vpop.f32.mrb[43].mxu0  ;;  %v4080_v6 = vsel %vm3994_vm13, %v11666_v46, 0.0 }
 0x530   :  { %v4076_v59 = vsel %vm3994_vm13, %v11668_v50, 0.0 }
 0x531   :  { %v4077_v56 = vadd.f32 %v4076_v59, %v4075_v47 }
 0x533   :  { %v4079_v2 = vadd.f32 %v4078_v7, %v4077_v56 }
 0x535   :  { %v4081_v24 = vadd.f32 %v4080_v6, %v4079_v2 }
 0x53c   :  { %v11676_v35 = vpop.f32.mrb[44].mxu0 }
 0x53d   :  { %v11678_v43 = vpop.f32.mrb[45].mxu0  ;;  %v4086_v26 = vsel %vm3994_vm13, %v11676_v35, 0.0 }
 0x53e   :  { %v4082_v5 = vsel %vm3994_vm13, %v11678_v43, 0.0  ;;  %v11682_v31 = vpop.f32.mrb[46].mxu0 }
 0x53f   :  { %16640 = vst [vmem:[#allocation5_spill] sm:$0xff] %v11682_v31  ;;  %v4083_v0 = vadd.f32 %v4082_v5, %v4081_v24  ;;  %v11684_v15 = vpop.f32.mrb[47].mxu0  ;;  %v4088_v34 = vsel %vm3994_vm13, %v11682_v31, 0.0 }
 0x540   :  { %v4084_v19 = vsel %vm3994_vm13, %v11684_v15, 0.0 }
 0x541   :  { %v4085_v23 = vadd.f32 %v4084_v19, %v4083_v0 }
 0x543   :  { %v4087_v30 = vadd.f32 %v4086_v26, %v4085_v23 }
 0x545   :  { %v4089_v44 = vadd.f32 %v4088_v34, %v4087_v30 }
 0x54c   :  { %v11692_v47 = vpop.f32.mrb[48].mxu0 }
 0x54d   :  { %16641 = vst [vmem:[#allocation6_spill] sm:$0xff] %v11692_v47  ;;  %v11694_v59 = vpop.f32.mrb[49].mxu0  ;;  %v4094_v0 = vsel %vm3994_vm13, %v11692_v47, 0.0 }
 0x54e   :  { %16642 = vst [vmem:[#allocation7_spill] sm:$0xff] %v11694_v59  ;;  %v4090_v56 = vsel %vm3994_vm13, %v11694_v59, 0.0  ;;  %v11698_v7 = vpop.f32.mrb[50].mxu0 }
 0x54f   :  { %16643 = vst [vmem:[#allocation8_spill] sm:$0xff] %v11698_v7  ;;  %v4091_v2 = vadd.f32 %v4090_v56, %v4089_v44  ;;  %v11700_v6 = vpop.f32.mrb[51].mxu0  ;;  %v4096_v23 = vsel %vm3994_vm13, %v11698_v7, 0.0 }
 0x550   :  { %16644 = vst [vmem:[#allocation9_spill] sm:$0xff] %v11700_v6  ;;  %v4092_v24 = vsel %vm3994_vm13, %v11700_v6, 0.0 }
 0x551   :  { %v4093_v5 = vadd.f32 %v4092_v24, %v4091_v2 }
 0x553   :  { %v4095_v19 = vadd.f32 %v4094_v0, %v4093_v5 }
 0x555   :  { %v4097_v26 = vadd.f32 %v4096_v23, %v4095_v19 }
 0x55c   :  { %v11708_v30 = vpop.f32.mrb[52].mxu0 }
 0x55d   :  { %16645 = vst [vmem:[#allocation10_spill] sm:$0xff] %v11708_v30  ;;  %v11710_v34 = vpop.f32.mrb[53].mxu0  ;;  %v4102_v5 = vsel %vm3994_vm13, %v11708_v30, 0.0 }
 0x55e   :  { %16646 = vst [vmem:[#allocation11_spill] sm:$0xff] %v11710_v34  ;;  %v4098_v44 = vsel %vm3994_vm13, %v11710_v34, 0.0  ;;  %v11714_v56 = vpop.f32.mrb[54].mxu0 }
 0x55f   :  { %16647 = vst [vmem:[#allocation12_spill] sm:$0xff] %v11714_v56  ;;  %v4099_v4 = vadd.f32 %v4098_v44, %v4097_v26  ;;  %v11716_v6 = vpop.f32.mrb[55].mxu0  ;;  %v4104_v19 = vsel %vm3994_vm13, %v11714_v56, 0.0 }
 0x560   :  { %16648 = vst [vmem:[#allocation13_spill] sm:$0xff] %v11716_v6  ;;  %v4100_v2 = vsel %vm3994_vm13, %v11716_v6, 0.0 }
 0x561   :  { %v4101_v24 = vadd.f32 %v4100_v2, %v4099_v4 }
 0x563   :  { %v4103_v0 = vadd.f32 %v4102_v5, %v4101_v24 }
 0x565   :  { %v4105_v23 = vadd.f32 %v4104_v19, %v4103_v0 }
 0x56c   :  { %v11724_v7 = vpop.f32.mrb[56].mxu0 }
 0x56d   :  { %16649 = vst [vmem:[#allocation14_spill] sm:$0xff] %v11724_v7  ;;  %v11726_v34 = vpop.f32.mrb[57].mxu0  ;;  %v4110_v24 = vsel %vm3994_vm13, %v11724_v7, 0.0 }
 0x56e   :  { %16650 = vst [vmem:[#allocation15_spill] sm:$0xff] %v11726_v34  ;;  %v4106_v26 = vsel %vm3994_vm13, %v11726_v34, 0.0  ;;  %v11730_v44 = vpop.f32.mrb[58].mxu0 }
 0x56f   :  { %16651 = vst [vmem:[#allocation16_spill] sm:$0xff] %v11730_v44  ;;  %v4107_v47 = vadd.f32 %v4106_v26, %v4105_v23  ;;  %v11732_v6 = vpop.f32.mrb[59].mxu0  ;;  %v4112_v0 = vsel %vm3994_vm13, %v11730_v44, 0.0 }
 0x570   :  { %16652 = vst [vmem:[#allocation17_spill] sm:$0xff] %v11732_v6  ;;  %v4108_v4 = vsel %vm3994_vm13, %v11732_v6, 0.0 }
 0x571   :  { %v4109_v2 = vadd.f32 %v4108_v4, %v4107_v47 }
 0x573   :  { %v4111_v5 = vadd.f32 %v4110_v24, %v4109_v2 }
 0x575   :  { %v4113_v19 = vadd.f32 %v4112_v0, %v4111_v5 }
 0x57c   :  { %v11740_v56 = vpop.f32.mrb[60].mxu0 }
 0x57d   :  { %v11742_v34 = vpop.f32.mrb[61].mxu0  ;;  %v4118_v2 = vsel %vm3994_vm13, %v11740_v56, 0.0 }
 0x57e   :  { %16653 = vst [vmem:[#allocation18_spill] sm:$0xff] %v11742_v34  ;;  %v4114_v23 = vsel %vm3994_vm13, %v11742_v34, 0.0  ;;  %v11746_v26 = vpop.f32.mrb[62].mxu0 }
 0x57f   :  { %v4115_v30 = vadd.f32 %v4114_v23, %v4113_v19  ;;  %v11748_v6 = vpop.f32.mrb[63].mxu0  ;;  %v4120_v5 = vsel %vm3994_vm13, %v11746_v26, 0.0 }
 0x580   :  { %16654 = vst [vmem:[#allocation19_spill] sm:$0xff] %v11748_v6  ;;  %v4116_v47 = vsel %vm3994_vm13, %v11748_v6, 0.0 }
 0x581   :  { %v4117_v4 = vadd.f32 %v4116_v47, %v4115_v30 }
 0x583   :  { %v4119_v24 = vadd.f32 %v4118_v2, %v4117_v4  ;;  %v16665_v4 = vld [vmem:[#allocation6_spill] sm:$0xff]  ;;  %v16667_v2 = vld [vmem:[#allocation8_spill] sm:$0xff] }
 0x585   :  { %v4121_v0 = vadd.f32 %v4120_v5, %v4119_v24  ;;  %v16669_v24 = vld [vmem:[#allocation11_spill] sm:$0xff] }
 0x587   :  { %v4122_v44 = vrot.slane %v4121_v0, 4 }
 0x589   :  { %v4123_v7 = vadd.f32 %v4122_v44, %v4121_v0  ;;  %v16671_v0 = vld [vmem:[#allocation13_spill] sm:$0xff] }
 0x58b   :  { %v4124_v34 = vrot.slane %v4123_v7, 2 }
 0x58d   :  { %v4125_v59 = vadd.f32 %v4124_v34, %v4123_v7  ;;  %v16661_v7 = vld [vmem:[#allocation7_spill] sm:$0xff]  ;;  %v16663_v34 = vld [vmem:[#allocation9_spill] sm:$0xff] }
 0x58f   :  { %v4126_v31 = vrot.slane %v4125_v59, 1 }
 0x591   :  { %v4127_v19 = vadd.f32 %v4126_v31, %v4125_v59  ;;  %v16660_v59 = vld [vmem:[#allocation5_spill] sm:$0xff] }
 0x593   :  { %v11756_v23 = vmul.f32 0.001953125, %v4127_v19 }
 0x595   :  { %v11760_v6 = vsub.f32 %v11502_v13, %v11756_v23  ;;  %v11764_v30 = vsub.f32 %v11506_v20, %v11756_v23  ;;  %v11768_v47 = vsub.f32 %v11500_v11, %v11756_v23  ;;  %v11772_v44 = vsub.f32 %v11504_v16, %v11756_v23 }
 0x596   :  { %v11776_v31 = vsub.f32 %v11518_v1, %v11756_v23  ;;  %v11780_v13 = vsub.f32 %v11524_v53, %v11756_v23  ;;  %v11784_v20 = vsub.f32 %v11516_v60, %v11756_v23  ;;  %v11788_v11 = vsub.f32 %v11522_v14, %v11756_v23 }
 0x597   :  { %16655 = vst [vmem:[#allocation20_spill] sm:$0xff] %v11760_v6  ;;  %16656 = vst [vmem:[#allocation21_spill] sm:$0xff] %v11764_v30  ;;  %v11792_v16 = vsub.f32 %v11534_v61, %v11756_v23  ;;  %v11796_v1 = vsub.f32 %v11540_v22, %v11756_v23  ;;  %v11800_v53 = vsub.f32 %v11532_v25, %v11756_v23 }
 0x598   :  { %16657 = vst [vmem:[#allocation22_spill] sm:$0xff] %v11768_v47  ;;  %16658 = vst [vmem:[#allocation23_spill] sm:$0xff] %v11772_v44  ;;  %v11804_v60 = vsub.f32 %v11538_v18, %v11756_v23  ;;  %v11808_v14 = vsub.f32 %v11550_v33, %v11756_v23  ;;  %v11812_v61 = vsub.f32 %v11556_v40, %v11756_v23 }
 0x599   :  { %v11816_v22 = vsub.f32 %v11548_v32, %v11756_v23  ;;  %v11820_v25 = vsub.f32 %v11554_v38, %v11756_v23  ;;  %v11824_v18 = vsub.f32 %v11566_v49, %v11756_v23  ;;  %v11828_v33 = vsub.f32 %v11572_v55, %v11756_v23 }
 0x59a   :  { %v11832_v40 = vsub.f32 %v11564_v48, %v11756_v23  ;;  %v11836_v32 = vsub.f32 %v11570_v12, %v11756_v23  ;;  %v11840_v38 = vsub.f32 %v11582_v63, %v11756_v23  ;;  %v11844_v49 = vsub.f32 %v11588_v28, %v11756_v23 }
 0x59b   :  { %v11848_v55 = vsub.f32 %v11580_v62, %v11756_v23  ;;  %v11852_v48 = vsub.f32 %v11586_v8, %v11756_v23  ;;  %v11856_v12 = vsub.f32 %v11598_v21, %v11756_v23  ;;  %v11860_v63 = vsub.f32 %v11604_v37, %v11756_v23 }
 0x59c   :  { %v11864_v28 = vsub.f32 %v11596_v9, %v11756_v23  ;;  %v11868_v62 = vsub.f32 %v11602_v17, %v11756_v23  ;;  %v11872_v8 = vsub.f32 %v11614_v29, %v11756_v23  ;;  %v11876_v21 = vsub.f32 %v11620_v41, %v11756_v23 }
 0x59d   :  { %v11880_v37 = vsub.f32 %v11612_v27, %v11756_v23  ;;  %v11884_v9 = vsub.f32 %v11618_v36, %v11756_v23  ;;  %v11888_v17 = vsub.f32 %v11630_v54, %v11756_v23  ;;  %v11892_v29 = vsub.f32 %v11636_v3, %v11756_v23 }
 0x59e   :  { %16659 = vst [vmem:[#allocation24_spill] sm:$0xff] %v11864_v28  ;;  %v11896_v41 = vsub.f32 %v11628_v52, %v11756_v23  ;;  %v11900_v27 = vsub.f32 %v11634_v57, %v11756_v23  ;;  %v11904_v36 = vsub.f32 %v11646_v58, %v11756_v23  ;;  %v11908_v54 = vsub.f32 %v11652_v10, %v11756_v23 }
 0x59f   :  { %v11912_v3 = vsub.f32 %v11644_v51, %v11756_v23  ;;  %v11916_v52 = vsub.f32 %v11650_v45, %v11756_v23  ;;  %v11920_v57 = vsub.f32 %v11662_v42, %v11756_v23  ;;  %v11924_v58 = vsub.f32 %v11668_v50, %v11756_v23 }
 0x5a0   :  { %v11928_v10 = vsub.f32 %v11660_v39, %v11756_v23  ;;  %v11932_v51 = vsub.f32 %v11666_v46, %v11756_v23  ;;  %v11936_v45 = vsub.f32 %v11678_v43, %v11756_v23  ;;  %v11940_v42 = vsub.f32 %v11684_v15, %v11756_v23 }
 0x5a1   :  { %v11944_v50 = vsub.f32 %v11676_v35, %v11756_v23  ;;  %v11948_v39 = vsub.f32 %v16660_v59, %v11756_v23  ;;  %v11952_v46 = vsub.f32 %v16661_v7, %v11756_v23  ;;  %v11956_v43 = vsub.f32 %v16663_v34, %v11756_v23  ;;  %v16673_v59 = vld [vmem:[#allocation10_spill] sm:$0xff]  ;;  %v16675_v34 = vld [vmem:[#allocation12_spill] sm:$0xff] }
 0x5a2   :  { %v11960_v15 = vsub.f32 %v16665_v4, %v11756_v23  ;;  %v11964_v35 = vsub.f32 %v16667_v2, %v11756_v23  ;;  %v11968_v5 = vsub.f32 %v16669_v24, %v11756_v23  ;;  %v11972_v19 = vsub.f32 %v16671_v0, %v11756_v23 }
 0x5a3   :  { %16662 = vst [vmem:[#allocation5_spill] sm:$0xff] %v11952_v46  ;;  %16664 = vst [vmem:[#allocation7_spill] sm:$0xff] %v11956_v43  ;;  %v11976_v7 = vsub.f32 %v16673_v59, %v11756_v23  ;;  %v11980_v4 = vsub.f32 %v16675_v34, %v11756_v23 }
 0x5a4   :  { %16666 = vst [vmem:[#allocation9_spill] sm:$0xff] %v11960_v15  ;;  %16668 = vst [vmem:[#allocation6_spill] sm:$0xff] %v11964_v35  ;;  %v16677_v15 = vld [vmem:[#allocation15_spill] sm:$0xff]  ;;  %v16679_v35 = vld [vmem:[#allocation17_spill] sm:$0xff] }
 0x5a5   :  { %16670 = vst [vmem:[#allocation8_spill] sm:$0xff] %v11968_v5  ;;  %16672 = vst [vmem:[#allocation11_spill] sm:$0xff] %v11972_v19  ;;  %v11984_v2 = vsub.f32 %v16677_v15, %v11756_v23  ;;  %v11988_v24 = vsub.f32 %v16679_v35, %v11756_v23  ;;  %v16681_v5 = vld [vmem:[#allocation14_spill] sm:$0xff]  ;;  %v16683_v19 = vld [vmem:[#allocation16_spill] sm:$0xff]  ;;  %v12008_v35 = vsub.f32 %v11740_v56, %v11756_v23 }
 0x5a6   :  { %16674 = vst [vmem:[#allocation13_spill] sm:$0xff] %v11976_v7  ;;  %16676 = vst [vmem:[#allocation10_spill] sm:$0xff] %v11980_v4  ;;  %v11992_v0 = vsub.f32 %v16681_v5, %v11756_v23  ;;  %v11996_v59 = vsub.f32 %v16683_v19, %v11756_v23  ;;  %v16685_v7 = vld [vmem:[#allocation18_spill] sm:$0xff]  ;;  %v16687_v4 = vld [vmem:[#allocation19_spill] sm:$0xff]  ;;  %v12012_v5 = vsub.f32 %v11746_v26, %v11756_v23 }
 0x5a7   :  { %16678 = vst [vmem:[#allocation12_spill] sm:$0xff] %v11984_v2  ;;  %16680 = vst [vmem:[#allocation15_spill] sm:$0xff] %v11988_v24  ;;  %v12000_v34 = vsub.f32 %v16685_v7, %v11756_v23  ;;  %v12004_v15 = vsub.f32 %v16687_v4, %v11756_v23  ;;  %v4194_v19 = vmul.f32 %v11760_v6, %v11760_v6 }
 0x5a8   :  { %16682 = vst [vmem:[#allocation17_spill] sm:$0xff] %v11992_v0  ;;  %16684 = vst [vmem:[#allocation14_spill] sm:$0xff] %v11996_v59  ;;  %v4195_v59 = vmul.f32 %v11764_v30, %v11764_v30  ;;  %v4196_v7 = vmul.f32 %v11768_v47, %v11768_v47  ;;  %v4197_v4 = vmul.f32 %v11772_v44, %v11772_v44 }
 0x5a9   :  { %16686 = vst [vmem:[#allocation16_spill] sm:$0xff] %v12000_v34  ;;  %16688 = vst [vmem:[#allocation18_spill] sm:$0xff] %v12004_v15  ;;  %v4258_v15 = vsel %vm3994_vm13, %v4194_v19, 0.0  ;;  %v4198_v26 = vmul.f32 %v11776_v31, %v11776_v31  ;;  %v4199_v30 = vmul.f32 %v11780_v13, %v11780_v13  ;;  %v4200_v44 = vmul.f32 %v11784_v20, %v11784_v20 }
 0x5aa   :  { %16689 = vst [vmem:[#allocation19_spill] sm:$0xff] %v12008_v35  ;;  %16690 = vst [vmem:[#allocation25_spill] sm:$0xff] %v12012_v5  ;;  %v4259_v56 = vsel %vm3994_vm13, %v4195_v59, 0.0  ;;  %v4261_v23 = vsel %vm3994_vm13, %v4196_v7, 0.0  ;;  %v4263_v5 = vsel %vm3994_vm13, %v4197_v4, 0.0  ;;  %v4201_v59 = vmul.f32 %v11788_v11, %v11788_v11 }
 0x5ab   :  { %v4260_v35 = vadd.f32 %v4259_v56, %v4258_v15  ;;  %v4265_v19 = vsel %vm3994_vm13, %v4198_v26, 0.0  ;;  %v4267_v15 = vsel %vm3994_vm13, %v4199_v30, 0.0  ;;  %v4269_v7 = vsel %vm3994_vm13, %v4200_v44, 0.0 }
 0x5ac   :  { %v4205_v30 = vmul.f32 %v11804_v60, %v11804_v60  ;;  %v4206_v44 = vmul.f32 %v11808_v14, %v11808_v14 }
 0x5ad   :  { %v4262_v6 = vadd.f32 %v4261_v23, %v4260_v35  ;;  %v4202_v35 = vmul.f32 %v11792_v16, %v11792_v16 }
 0x5af   :  { %v4264_v47 = vadd.f32 %v4263_v5, %v4262_v6  ;;  %v4203_v6 = vmul.f32 %v11796_v1, %v11796_v1  ;;  %v4271_v5 = vsel %vm3994_vm13, %v4201_v59, 0.0  ;;  %v4273_v26 = vsel %vm3994_vm13, %v4202_v35, 0.0 }
 0x5b0   :  { %v4207_v59 = vmul.f32 %v11812_v61, %v11812_v61  ;;  %v4208_v35 = vmul.f32 %v11816_v22, %v11816_v22 }
 0x5b1   :  { %v4266_v34 = vadd.f32 %v4265_v19, %v4264_v47  ;;  %v4204_v47 = vmul.f32 %v11800_v53, %v11800_v53 }
 0x5b3   :  { %v4268_v56 = vadd.f32 %v4267_v15, %v4266_v34  ;;  %v4275_v34 = vsel %vm3994_vm13, %v4203_v6, 0.0  ;;  %v4209_v6 = vmul.f32 %v11820_v25, %v11820_v25 }
 0x5b5   :  { %v4270_v23 = vadd.f32 %v4269_v7, %v4268_v56  ;;  %v4277_v56 = vsel %vm3994_vm13, %v4204_v47, 0.0  ;;  %v4210_v47 = vmul.f32 %v11824_v18, %v11824_v18 }
 0x5b7   :  { %v4272_v4 = vadd.f32 %v4271_v5, %v4270_v23  ;;  %v4279_v23 = vsel %vm3994_vm13, %v4205_v30, 0.0  ;;  %v4211_v30 = vmul.f32 %v11828_v33, %v11828_v33 }
 0x5b9   :  { %v4274_v19 = vadd.f32 %v4273_v26, %v4272_v4  ;;  %v4281_v4 = vsel %vm3994_vm13, %v4206_v44, 0.0  ;;  %v4212_v44 = vmul.f32 %v11832_v40, %v11832_v40 }
 0x5bb   :  { %v4276_v15 = vadd.f32 %v4275_v34, %v4274_v19  ;;  %v4283_v19 = vsel %vm3994_vm13, %v4207_v59, 0.0  ;;  %v4213_v59 = vmul.f32 %v11836_v32, %v11836_v32 }
 0x5bd   :  { %v4278_v7 = vadd.f32 %v4277_v56, %v4276_v15  ;;  %v4285_v15 = vsel %vm3994_vm13, %v4208_v35, 0.0  ;;  %v4214_v35 = vmul.f32 %v11840_v38, %v11840_v38 }
 0x5bf   :  { %v4280_v5 = vadd.f32 %v4279_v23, %v4278_v7  ;;  %v4287_v7 = vsel %vm3994_vm13, %v4209_v6, 0.0  ;;  %v4215_v6 = vmul.f32 %v11844_v49, %v11844_v49 }
 0x5c1   :  { %v4282_v26 = vadd.f32 %v4281_v4, %v4280_v5  ;;  %v4289_v5 = vsel %vm3994_vm13, %v4210_v47, 0.0  ;;  %v4216_v47 = vmul.f32 %v11848_v55, %v11848_v55 }
 0x5c3   :  { %v4284_v34 = vadd.f32 %v4283_v19, %v4282_v26  ;;  %v4291_v26 = vsel %vm3994_vm13, %v4211_v30, 0.0  ;;  %v12083_v30 = vmul.f32 %v11852_v48, %v11852_v48 }
 0x5c5   :  { %v4286_v56 = vadd.f32 %v4285_v15, %v4284_v34  ;;  %v4293_v34 = vsel %vm3994_vm13, %v4212_v44, 0.0 }
 0x5c7   :  { %v4288_v23 = vadd.f32 %v4287_v7, %v4286_v56  ;;  %v4295_v56 = vsel %vm3994_vm13, %v4213_v59, 0.0  ;;  %v4301_v59 = vsel %vm3994_vm13, %v4216_v47, 0.0 }
 0x5c9   :  { %v4290_v4 = vadd.f32 %v4289_v5, %v4288_v23  ;;  %v4297_v23 = vsel %vm3994_vm13, %v4214_v35, 0.0  ;;  %v4219_v35 = vmul.f32 %v11860_v63, %v11860_v63 }
 0x5cb   :  { %v4292_v19 = vadd.f32 %v4291_v26, %v4290_v4  ;;  %v4299_v4 = vsel %vm3994_vm13, %v4215_v6, 0.0  ;;  %v12088_v26 = vmul.f32 %v11856_v12, %v11856_v12  ;;  %v4303_v6 = vsel %vm3994_vm13, %v12083_v30, 0.0 }
 0x5cd   :  { %v4294_v15 = vadd.f32 %v4293_v34, %v4292_v19  ;;  %v4944_v19 = vld [vmem:[#allocation3 + $0x1] sm:$0xff]  ;;  %v4305_v47 = vsel %vm3994_vm13, %v12088_v26, 0.0  ;;  %v4224_v26 = vmul.f32 %v11880_v37, %v11880_v37 }
 0x5ce   :  { %5072 = vrot.lane.b32.xlu0 %v4944_v19, %s9633_s1 }
 0x5cf   :  { %v4296_v7 = vadd.f32 %v4295_v56, %v4294_v15  ;;  %v16691_v15 = vmov 0.0  }
 0x5d0   :  { %4679 = vst.msk [vmem:[#allocation3] sm:$0x1] %vm4678_vm14, %v16691_v15  ;;  %4680 = vst.msk [vmem:[#allocation3 + $0x18] sm:$0x1] %vm4678_vm14, %v16691_v15 }
 0x5d1   :  { %v4298_v5 = vadd.f32 %v4297_v23, %v4296_v7  ;;  %4681 = vst.msk [vmem:[#allocation3 + $0x30] sm:$0x1] %vm4678_vm14, %v16691_v15  ;;  %4682 = vst.msk [vmem:[#allocation3 + $0x48] sm:$0x1] %vm4678_vm14, %v16691_v15  ;;  %v4220_v7 = vmul.f32 %v11864_v28, %v11864_v28 }
 0x5d2   :  { %4683 = vst.msk [vmem:[#allocation3 + $0x60] sm:$0x1] %vm4678_vm14, %v16691_v15  ;;  %4684 = vst.msk [vmem:[#allocation3 + $0x78] sm:$0x1] %vm4678_vm14, %v16691_v15 }
 0x5d3   :  { %v4300_v44 = vadd.f32 %v4299_v4, %v4298_v5  ;;  %4685 = vst.msk [vmem:[#allocation3 + $0x90] sm:$0x1] %vm4678_vm14, %v16691_v15  ;;  %4686 = vst.msk [vmem:[#allocation3 + $0xa8] sm:$0x1] %vm4678_vm14, %v16691_v15  ;;  %v4221_v5 = vmul.f32 %v11868_v62, %v11868_v62  ;;  %v4307_v4 = vsel %vm3994_vm13, %v4219_v35, 0.0  ;;  %v4309_v30 = vsel %vm3994_vm13, %v4220_v7, 0.0 }
 0x5d4   :  { %4687 = vst.msk [vmem:[#allocation3 + $0xc0] sm:$0x1] %vm4678_vm14, %v16691_v15  ;;  %4688 = vst.msk [vmem:[#allocation3 + $0xd8] sm:$0x1] %vm4678_vm14, %v16691_v15  ;;  %v4225_v35 = vmul.f32 %v11884_v9, %v11884_v9  ;;  %v4226_v7 = vmul.f32 %v11888_v17, %v11888_v17 }
 0x5d5   :  { %v12091_v34 = vadd.f32 %v4301_v59, %v4300_v44  ;;  %4689 = vst.msk [vmem:[#allocation3 + $0xf0] sm:$0x1] %vm4678_vm14, %v16691_v15  ;;  %4690 = vst.msk [vmem:[#allocation3 + $0x108] sm:$0x1] %vm4678_vm14, %v16691_v15  ;;  %v4222_v59 = vmul.f32 %v11872_v8, %v11872_v8 }
 0x5d6   :  { %4691 = vst.msk [vmem:[#allocation3 + $0x120] sm:$0x1] %vm4678_vm14, %v16691_v15  ;;  %4692 = vst.msk [vmem:[#allocation3 + $0x138] sm:$0x1] %vm4678_vm14, %v16691_v15 }
 0x5d7   :  { %4693 = vst.msk [vmem:[#allocation3 + $0x150] sm:$0x1] %vm4678_vm14, %v16691_v15  ;;  %4694 = vst.msk [vmem:[#allocation3 + $0x168] sm:$0x1] %vm4678_vm14, %v16691_v15  ;;  %v4304_v56 = vadd.f32 %v4303_v6, %v12091_v34  ;;  %v4223_v34 = vmul.f32 %v11876_v21, %v11876_v21  ;;  %v4311_v6 = vsel %vm3994_vm13, %v4221_v5, 0.0 }
 0x5d8   :  { %4695 = vst.msk [vmem:[#allocation3 + $0x180] sm:$0x1] %vm4678_vm14, %v16691_v15  ;;  %4696 = vst.msk [vmem:[#allocation3 + $0x198] sm:$0x1] %vm4678_vm14, %v16691_v15 }
 0x5d9   :  { %4697 = vst.msk [vmem:[#allocation3 + $0x1b0] sm:$0x1] %vm4678_vm14, %v16691_v15  ;;  %4698 = vst.msk [vmem:[#allocation3 + $0x1c8] sm:$0x1] %vm4678_vm14, %v16691_v15  ;;  %v4306_v23 = vadd.f32 %v4305_v47, %v4304_v56  ;;  %v4313_v56 = vsel %vm3994_vm13, %v4222_v59, 0.0  ;;  %v4319_v59 = vsel %vm3994_vm13, %v4225_v35, 0.0  ;;  %v4230_v35 = vmul.f32 %v11904_v36, %v11904_v36 }
 0x5da   :  { %4699 = vst.msk [vmem:[#allocation3 + $0x1e0] sm:$0x1] %vm4678_vm14, %v16691_v15  ;;  %4700 = vst.msk [vmem:[#allocation3 + $0x1f8] sm:$0x1] %vm4678_vm14, %v16691_v15 }
 0x5db   :  { %4701 = vst.msk [vmem:[#allocation3 + $0x210] sm:$0x1] %vm4678_vm14, %v16691_v15  ;;  %4702 = vst.msk [vmem:[#allocation3 + $0x228] sm:$0x1] %vm4678_vm14, %v16691_v15  ;;  %v4308_v44 = vadd.f32 %v4307_v4, %v4306_v23  ;;  %v4315_v23 = vsel %vm3994_vm13, %v4223_v34, 0.0  ;;  %v4321_v34 = vsel %vm3994_vm13, %v4226_v7, 0.0 }
 0x5dc   :  { %4703 = vst.msk [vmem:[#allocation3 + $0x240] sm:$0x1] %vm4678_vm14, %v16691_v15  ;;  %4704 = vst.msk [vmem:[#allocation3 + $0x258] sm:$0x1] %vm4678_vm14, %v16691_v15 }
 0x5dd   :  { %4705 = vst.msk [vmem:[#allocation3 + $0x270] sm:$0x1] %vm4678_vm14, %v16691_v15  ;;  %4706 = vst.msk [vmem:[#allocation3 + $0x288] sm:$0x1] %vm4678_vm14, %v16691_v15  ;;  %v4310_v19 = vadd.f32 %v4309_v30, %v4308_v44  ;;  %v4317_v44 = vsel %vm3994_vm13, %v4224_v26, 0.0  ;;  %v4229_v26 = vmul.f32 %v11900_v27, %v11900_v27 }
 0x5de   :  { %4707 = vst.msk [vmem:[#allocation3 + $0x2a0] sm:$0x1] %vm4678_vm14, %v16691_v15  ;;  %4708 = vst.msk [vmem:[#allocation3 + $0x2b8] sm:$0x1] %vm4678_vm14, %v16691_v15 }
 0x5df   :  { %4709 = vst.msk [vmem:[#allocation3 + $0x2d0] sm:$0x1] %vm4678_vm14, %v16691_v15  ;;  %4710 = vst.msk [vmem:[#allocation3 + $0x2e8] sm:$0x1] %vm4678_vm14, %v16691_v15  ;;  %v4312_v28 = vadd.f32 %v4311_v6, %v4310_v19  ;;  %v4228_v19 = vmul.f32 %v11896_v41, %v11896_v41  ;;  %v4327_v7 = vsel %vm3994_vm13, %v4229_v26, 0.0  ;;  %v4235_v26 = vmul.f32 %v11924_v58, %v11924_v58 }
 0x5e0   :  { %4711 = vst.msk [vmem:[#allocation3 + $0x300] sm:$0x1] %vm4678_vm14, %v16691_v15  ;;  %4712 = vst.msk [vmem:[#allocation3 + $0x318] sm:$0x1] %vm4678_vm14, %v16691_v15 }
 0x5e1   :  { %4713 = vst.msk [vmem:[#allocation3 + $0x330] sm:$0x1] %vm4678_vm14, %v16691_v15  ;;  %4714 = vst.msk [vmem:[#allocation3 + $0x348] sm:$0x1] %vm4678_vm14, %v16691_v15  ;;  %v4314_v47 = vadd.f32 %v4313_v56, %v4312_v28  ;;  %v4227_v28 = vmul.f32 %v11892_v29, %v11892_v29 }
 0x5e2   :  { %4716 = vst.msk [vmem:[#allocation3 + $0x29] sm:$0x1] %vm4678_vm14, %v16691_v15  ;;  %4717 = vst.msk [vmem:[#allocation3 + $0x41] sm:$0x1] %vm4678_vm14, %v16691_v15 }
 0x5e3   :  { %4718 = vst.msk [vmem:[#allocation3 + $0x59] sm:$0x1] %vm4678_vm14, %v16691_v15  ;;  %4719 = vst.msk [vmem:[#allocation3 + $0x71] sm:$0x1] %vm4678_vm14, %v16691_v15  ;;  %v4316_v4 = vadd.f32 %v4315_v23, %v4314_v47  ;;  %v4323_v56 = vsel %vm3994_vm13, %v4227_v28, 0.0  ;;  %v4325_v23 = vsel %vm3994_vm13, %v4228_v19, 0.0 }
 0x5e4   :  { %4720 = vst.msk [vmem:[#allocation3 + $0x89] sm:$0x1] %vm4678_vm14, %v16691_v15  ;;  %4721 = vst.msk [vmem:[#allocation3 + $0xa1] sm:$0x1] %vm4678_vm14, %v16691_v15  ;;  %v4329_v28 = vsel %vm3994_vm13, %v4230_v35, 0.0  ;;  %v4236_v35 = vmul.f32 %v11928_v10, %v11928_v10 }
 0x5e5   :  { %4722 = vst.msk [vmem:[#allocation3 + $0xb9] sm:$0x1] %vm4678_vm14, %v16691_v15  ;;  %4723 = vst.msk [vmem:[#allocation3 + $0xd1] sm:$0x1] %vm4678_vm14, %v16691_v15  ;;  %v4318_v5 = vadd.f32 %v4317_v44, %v4316_v4  ;;  %v4231_v44 = vmul.f32 %v11908_v54, %v11908_v54 }
 0x5e6   :  { %4724 = vst.msk [vmem:[#allocation3 + $0xe9] sm:$0x1] %vm4678_vm14, %v16691_v15  ;;  %4725 = vst.msk [vmem:[#allocation3 + $0x101] sm:$0x1] %vm4678_vm14, %v16691_v15 }
 0x5e7   :  { %4726 = vst.msk [vmem:[#allocation3 + $0x119] sm:$0x1] %vm4678_vm14, %v16691_v15  ;;  %4727 = vst.msk [vmem:[#allocation3 + $0x131] sm:$0x1] %vm4678_vm14, %v16691_v15  ;;  %v4320_v30 = vadd.f32 %v4319_v59, %v4318_v5  ;;  %v4232_v59 = vmul.f32 %v11912_v3, %v11912_v3  ;;  %v4331_v19 = vsel %vm3994_vm13, %v4231_v44, 0.0  ;;  %v4237_v44 = vmul.f32 %v11932_v51, %v11932_v51 }
 0x5e8   :  { %4728 = vst.msk [vmem:[#allocation3 + $0x149] sm:$0x1] %vm4678_vm14, %v16691_v15  ;;  %4729 = vst.msk [vmem:[#allocation3 + $0x161] sm:$0x1] %vm4678_vm14, %v16691_v15 }
 0x5e9   :  { %4730 = vst.msk [vmem:[#allocation3 + $0x179] sm:$0x1] %vm4678_vm14, %v16691_v15  ;;  %4731 = vst.msk [vmem:[#allocation3 + $0x191] sm:$0x1] %vm4678_vm14, %v16691_v15  ;;  %v4322_v6 = vadd.f32 %v4321_v34, %v4320_v30  ;;  %v4233_v34 = vmul.f32 %v11916_v52, %v11916_v52 }
 0x5ea   :  { %4734 = vst.msk [vmem:[#allocation3 + $0x1d9] sm:$0x1] %vm4678_vm14, %v16691_v15  ;;  %4735 = vst.msk [vmem:[#allocation3 + $0x1f1] sm:$0x1] %vm4678_vm14, %v16691_v15 }
 0x5eb   :  { %4736 = vst.msk [vmem:[#allocation3 + $0x209] sm:$0x1] %vm4678_vm14, %v16691_v15  ;;  %4737 = vst.msk [vmem:[#allocation3 + $0x221] sm:$0x1] %vm4678_vm14, %v16691_v15  ;;  %v4324_v47 = vadd.f32 %v4323_v56, %v4322_v6  ;;  %v4234_v56 = vmul.f32 %v11920_v57, %v11920_v57 }
 0x5ec   :  { %4738 = vst.msk [vmem:[#allocation3 + $0x239] sm:$0x1] %vm4678_vm14, %v16691_v15  ;;  %4739 = vst.msk [vmem:[#allocation3 + $0x251] sm:$0x1] %vm4678_vm14, %v16691_v15 }
 0x5ed   :  { %4740 = vst.msk [vmem:[#allocation3 + $0x269] sm:$0x1] %vm4678_vm14, %v16691_v15  ;;  %4741 = vst.msk [vmem:[#allocation3 + $0x281] sm:$0x1] %vm4678_vm14, %v16691_v15 }
 0x5ee   :  { %4742 = vst.msk [vmem:[#allocation3 + $0x299] sm:$0x1] %vm4678_vm14, %v16691_v15  ;;  %4743 = vst.msk [vmem:[#allocation3 + $0x2b1] sm:$0x1] %vm4678_vm14, %v16691_v15 }
 0x5ef   :  { %4744 = vst.msk [vmem:[#allocation3 + $0x2c9] sm:$0x1] %vm4678_vm14, %v16691_v15  ;;  %4745 = vst.msk [vmem:[#allocation3 + $0x2e1] sm:$0x1] %vm4678_vm14, %v16691_v15 }
 0x5f0   :  { %4746 = vst.msk [vmem:[#allocation3 + $0x2f9] sm:$0x1] %vm4678_vm14, %v16691_v15  ;;  %4747 = vst.msk [vmem:[#allocation3 + $0x311] sm:$0x1] %vm4678_vm14, %v16691_v15 }
 0x5f1   :  { %4748 = vst.msk [vmem:[#allocation3 + $0x329] sm:$0x1] %vm4678_vm14, %v16691_v15  ;;  %4749 = vst.msk [vmem:[#allocation3 + $0x341] sm:$0x1] %vm4678_vm14, %v16691_v15 }
 0x5f2   :  { %4667 = vst.msk [vmem:[#allocation3 + $0x10] sm:$0x3] %vm4666_vm15, %v16691_v15  ;;  %4670 = vst.msk [vmem:[#allocation3 + $0x1c0] sm:$0x3] %vm4666_vm15, %v16691_v15 }
 0x5f3   :  { %4674 = vst.msk [vmem:[#allocation3 + $0x1a8] sm:$0x3] %vm4666_vm15, %v16691_v15  ;;  %4677 = vst.msk [vmem:[#allocation3 + $0x358] sm:$0x3] %vm4666_vm15, %v16691_v15 }
 0x5f4   :  { %4715 = vst.msk [vmem:[#allocation3 + $0x11] sm:$0x1] %vm4678_vm14, %v16691_v15  ;;  %4732 = vst.msk [vmem:[#allocation3 + $0x1a9] sm:$0x1] %vm4678_vm14, %v16691_v15 }
 0x5f5   :  { %4733 = vst.msk [vmem:[#allocation3 + $0x1c1] sm:$0x1] %vm4678_vm14, %v16691_v15  ;;  %4750 = vst.msk [vmem:[#allocation3 + $0x359] sm:$0x1] %vm4678_vm14, %v16691_v15  ;;  %v4326_v15 = vadd.f32 %v4325_v23, %v4324_v47  ;;  %v4333_v47 = vsel %vm3994_vm13, %v4232_v59, 0.0  ;;  %v4238_v59 = vmul.f32 %v11936_v45, %v11936_v45 }
 0x5f7   :  { %v4328_v5 = vadd.f32 %v4327_v7, %v4326_v15  ;;  %v4337_v7 = vsel %vm3994_vm13, %v4234_v56, 0.0  ;;  %v4240_v56 = vmul.f32 %v11944_v50, %v11944_v50 }
 0x5f9   :  { %v4945_v4 = vld [vmem:[#allocation3 + $0x9] sm:$0xff]  ;;  %v4330_v30 = vadd.f32 %v4329_v28, %v4328_v5  ;;  %v4339_v28 = vsel %vm3994_vm13, %v4235_v26, 0.0  ;;  %v4241_v26 = vmul.f32 %v11948_v39, %v11948_v39 }
 0x5fa   :  { %5074 = vrot.lane.b32.xlu1 %v4945_v4, %s9633_s1  ;;  %v4335_v4 = vsel %vm3994_vm13, %v4233_v34, 0.0  ;;  %v4239_v34 = vmul.f32 %v11940_v42, %v11940_v42 }
 0x5fb   :  { %v4332_v6 = vadd.f32 %v4331_v19, %v4330_v30  ;;  %v4341_v19 = vsel %vm3994_vm13, %v4236_v35, 0.0  ;;  %v4242_v35 = vmul.f32 %v11952_v46, %v11952_v46 }
 0x5fd   :  { %v4334_v23 = vadd.f32 %v4333_v47, %v4332_v6  ;;  %v4343_v47 = vsel %vm3994_vm13, %v4237_v44, 0.0  ;;  %v4243_v44 = vmul.f32 %v11956_v43, %v11956_v43 }
 0x5ff   :  { %v4336_v15 = vadd.f32 %v4335_v4, %v4334_v23  ;;  %v4345_v4 = vsel %vm3994_vm13, %v4238_v59, 0.0  ;;  %v16692_v59 = vld [vmem:[#allocation9_spill] sm:$0xff] }
 0x601   :  { %v4338_v5 = vadd.f32 %v4337_v7, %v4336_v15  ;;  %v4347_v7 = vsel %vm3994_vm13, %v4239_v34, 0.0  ;;  %v16693_v34 = vld [vmem:[#allocation6_spill] sm:$0xff] }
 0x603   :  { %v4340_v30 = vadd.f32 %v4339_v28, %v4338_v5  ;;  %v4349_v28 = vsel %vm3994_vm13, %v4240_v56, 0.0  ;;  %v16694_v56 = vld [vmem:[#allocation8_spill] sm:$0xff] }
 0x605   :  { %v4342_v6 = vadd.f32 %v4341_v19, %v4340_v30  ;;  %v4351_v19 = vsel %vm3994_vm13, %v4241_v26, 0.0  ;;  %v16695_v26 = vld [vmem:[#allocation11_spill] sm:$0xff] }
 0x607   :  { %v4344_v23 = vadd.f32 %v4343_v47, %v4342_v6  ;;  %v4244_v47 = vmul.f32 %v16692_v59, %v16692_v59 }
 0x609   :  { %v4346_v15 = vadd.f32 %v4345_v4, %v4344_v23  ;;  %v4353_v23 = vsel %vm3994_vm13, %v4242_v35, 0.0  ;;  %v16696_v35 = vld [vmem:[#allocation13_spill] sm:$0xff] }
 0x60b   :  { %v4348_v5 = vadd.f32 %v4347_v7, %v4346_v15  ;;  %v4245_v15 = vmul.f32 %v16693_v34, %v16693_v34  ;;  %v4355_v7 = vsel %vm3994_vm13, %v4243_v44, 0.0  ;;  %v16697_v44 = vld [vmem:[#allocation10_spill] sm:$0xff] }
 0x60d   :  { %v4350_v30 = vadd.f32 %v4349_v28, %v4348_v5  ;;  %v4246_v5 = vmul.f32 %v16694_v56, %v16694_v56  ;;  %v4357_v28 = vsel %vm3994_vm13, %v4244_v47, 0.0 }
 0x60f   :  { %v4352_v6 = vadd.f32 %v4351_v19, %v4350_v30  ;;  %v4247_v30 = vmul.f32 %v16695_v26, %v16695_v26  ;;  %v4359_v19 = vsel %vm3994_vm13, %v4245_v15, 0.0 }
 0x611   :  { %v4354_v4 = vadd.f32 %v4353_v23, %v4352_v6  ;;  %v4248_v6 = vmul.f32 %v16696_v35, %v16696_v35  ;;  %v4361_v23 = vsel %vm3994_vm13, %v4246_v5, 0.0 }
 0x613   :  { %v4356_v46 = vadd.f32 %v4355_v7, %v4354_v4  ;;  %v4249_v4 = vmul.f32 %v16697_v44, %v16697_v44  ;;  %v4363_v7 = vsel %vm3994_vm13, %v4247_v30, 0.0  ;;  %v4365_v47 = vsel %vm3994_vm13, %v4248_v6, 0.0  ;;  %v16698_v30 = vld [vmem:[#allocation14_spill] sm:$0xff]  ;;  %v16699_v6 = vld [vmem:[#allocation16_spill] sm:$0xff] }
 0x615   :  { %v4358_v43 = vadd.f32 %v4357_v28, %v4356_v46  ;;  %v4250_v46 = vmul.f32 %v11984_v2, %v11984_v2  ;;  %v4367_v15 = vsel %vm3994_vm13, %v4249_v4, 0.0  ;;  %v16700_v4 = vld [vmem:[#allocation18_spill] sm:$0xff] }
 0x617   :  { %v4360_v59 = vadd.f32 %v4359_v19, %v4358_v43  ;;  %v4251_v43 = vmul.f32 %v11988_v24, %v11988_v24  ;;  %v4369_v5 = vsel %vm3994_vm13, %v4250_v46, 0.0  ;;  %v16701_v46 = vld [vmem:[#allocation19_spill] sm:$0xff] }
 0x619   :  { %v4362_v34 = vadd.f32 %v4361_v23, %v4360_v59  ;;  %v4252_v59 = vmul.f32 %v11992_v0, %v11992_v0 }
 0x61b   :  { %v4364_v56 = vadd.f32 %v4363_v7, %v4362_v34  ;;  %v4253_v34 = vmul.f32 %v16698_v30, %v16698_v30  ;;  %v4371_v7 = vsel %vm3994_vm13, %v4251_v43, 0.0  ;;  %v16702_v43 = vld [vmem:[#allocation25_spill] sm:$0xff] }
 0x61d   :  { %v4366_v28 = vadd.f32 %v4365_v47, %v4364_v56  ;;  %v4254_v56 = vmul.f32 %v16699_v6, %v16699_v6  ;;  %v4373_v47 = vsel %vm3994_vm13, %v4252_v59, 0.0 }
 0x61f   :  { %v4368_v19 = vadd.f32 %v4367_v15, %v4366_v28  ;;  %v4255_v28 = vmul.f32 %v16700_v4, %v16700_v4  ;;  %v4375_v15 = vsel %vm3994_vm13, %v4253_v34, 0.0 }
 0x621   :  { %v4370_v23 = vadd.f32 %v4369_v5, %v4368_v19  ;;  %v4256_v19 = vmul.f32 %v16701_v46, %v16701_v46  ;;  %v4377_v5 = vsel %vm3994_vm13, %v4254_v56, 0.0 }
 0x623   :  { %v4372_v2 = vadd.f32 %v4371_v7, %v4370_v23  ;;  %v4257_v23 = vmul.f32 %v16702_v43, %v16702_v43  ;;  %v4379_v7 = vsel %vm3994_vm13, %v4255_v28, 0.0  ;;  %v16703_v28 = vld [vmem:[#allocation20_spill] sm:$0xff] }
 0x625   :  { %v4374_v24 = vadd.f32 %v4373_v47, %v4372_v2  ;;  %v4381_v2 = vsel %vm3994_vm13, %v4256_v19, 0.0  ;;  %v4383_v47 = vsel %vm3994_vm13, %v4257_v23, 0.0  ;;  %v16704_v19 = vld [vmem:[#allocation21_spill] sm:$0xff] }
 0x626   :  { %v12389_v23 = vld [vmem:[%s16533_s3] ss:$0 sm:$0xff]  ;;  %s9635_s3 = smov 32  }
 0x627   :  { %v4376_v0 = vadd.f32 %v4375_v15, %v4374_v24  ;;  %16706 = vst [vmem:[#allocation18_spill] sm:$0xff] %v12389_v23 }
 0x629   :  { %v4378_v30 = vadd.f32 %v4377_v5, %v4376_v0 }
 0x62b   :  { %v4380_v6 = vadd.f32 %v4379_v7, %v4378_v30  ;;  %v12370_v30 = vld [vmem:[%s16532_s2] ss:$0 sm:$0xff]  ;;  %v16707_v7 = vld [vmem:[#allocation23_spill] sm:$0xff]  ;;  %s9634_s2 = smov 16  }
 0x62d   :  { %v4382_v59 = vadd.f32 %v4381_v2, %v4380_v6 }
 0x62f   :  { %v4384_v44 = vadd.f32 %v4383_v47, %v4382_v59 }
 0x631   :  { %v4385_v34 = vrot.slane %v4384_v44, 4 }
 0x633   :  { %v4386_v24 = vadd.f32 %v4385_v34, %v4384_v44 }
 0x635   :  { %v4387_v15 = vrot.slane %v4386_v24, 2 }
 0x637   :  { %v4388_v35 = vadd.f32 %v4387_v15, %v4386_v24 }
 0x639   :  { %v4389_v46 = vrot.slane %v4388_v35, 1 }
 0x63b   :  { %v4390_v26 = vadd.f32 %v4389_v46, %v4388_v35 }
 0x63d   :  { %v4391_v56 = vmul.f32 0.001953125, %v4390_v26  ;;  %v16705_v26 = vld [vmem:[#allocation22_spill] sm:$0xff] }
 0x63f   :  { %v4392_v0 = vadd.f32 1e-05, %v4391_v56 }
 0x641   :  { %9620 = vrsqrt.f32 %v4392_v0 }
 0x64b   :  { %v12365_v5 = vpop.eup %9620 }
 0x64c   :  { %v4455_v6 = vmul.f32 %v12365_v5, %v16700_v4  ;;  %v12376_v44 = vmul.f32 %v12365_v5, %v16703_v28  ;;  %v12380_v35 = vmul.f32 %v12365_v5, %v16704_v19  ;;  %v12384_v46 = vmul.f32 %v12365_v5, %v16705_v26  ;;  %v16709_v19 = vld [vmem:[#allocation5_spill] sm:$0xff]  ;;  %v16710_v26 = vld [vmem:[#allocation7_spill] sm:$0xff] }
 0x64d   :  { %v12393_v4 = vmul.f32 %v12365_v5, %v16707_v7  ;;  %v12397_v2 = vmul.f32 %v12365_v5, %v11776_v31  ;;  %v12401_v59 = vmul.f32 %v12365_v5, %v11780_v13  ;;  %v12405_v47 = vmul.f32 %v12365_v5, %v11784_v20  ;;  %v16711_v7 = vld [vmem:[#allocation9_spill] sm:$0xff] }
 0x64e   :  { %v4526_v34 = vmul.f32 %v12370_v30, %v4455_v6  ;;  %v12410_v24 = vmul.f32 %v12365_v5, %v11788_v11  ;;  %v12414_v15 = vmul.f32 %v12365_v5, %v11792_v16  ;;  %v12418_v31 = vmul.f32 %v12365_v5, %v11796_v1  ;;  %v16708_v6 = vld [vmem:[#allocation24_spill] sm:$0xff] }
 0x64f   :  { %v12422_v13 = vmul.f32 %v12365_v5, %v11800_v53  ;;  %v12426_v20 = vmul.f32 %v12365_v5, %v11804_v60  ;;  %v12430_v11 = vmul.f32 %v12365_v5, %v11808_v14  ;;  %v12434_v16 = vmul.f32 %v12365_v5, %v11812_v61 }
 0x650   :  { %v4597_v56 = vadd.f32 %v12389_v23, %v4526_v34  ;;  %v12439_v1 = vmul.f32 %v12365_v5, %v11816_v22  ;;  %v12443_v53 = vmul.f32 %v12365_v5, %v11820_v25  ;;  %v12447_v60 = vmul.f32 %v12365_v5, %v11824_v18  ;;  %v16713_v34 = vld [vmem:[#allocation6_spill] sm:$0xff] }
 0x651   :  { %v12451_v14 = vmul.f32 %v12365_v5, %v11828_v33  ;;  %v12455_v61 = vmul.f32 %v12365_v5, %v11832_v40  ;;  %v12459_v22 = vmul.f32 %v12365_v5, %v11836_v32  ;;  %v12463_v25 = vmul.f32 %v12365_v5, %v11840_v38  ;;  %v16721_v23 = vld [vmem:[#allocation10_spill] sm:$0xff] }
 0x652   :  { %v4661_v0 = vmax.f32 %v4597_v56, 0.0  ;;  %v12467_v18 = vmul.f32 %v12365_v5, %v11844_v49  ;;  %v12471_v33 = vmul.f32 %v12365_v5, %v11848_v55  ;;  %v12475_v40 = vmul.f32 %v12365_v5, %v11852_v48  ;;  %v16715_v56 = vld [vmem:[#allocation8_spill] sm:$0xff] }
 0x653   :  { %v12479_v32 = vmul.f32 %v12365_v5, %v11856_v12  ;;  %v12483_v38 = vmul.f32 %v12365_v5, %v11860_v63  ;;  %v12487_v49 = vmul.f32 %v12365_v5, %v16708_v6  ;;  %v12491_v55 = vmul.f32 %v12365_v5, %v11868_v62 }
 0x654   :  { %4813 = vst.msk [vmem:[#allocation3 + $0x321] sm:$0xff] %vm3994_vm13, %v4661_v0  ;;  %v12496_v48 = vmul.f32 %v12365_v5, %v11872_v8  ;;  %v12500_v12 = vmul.f32 %v12365_v5, %v11876_v21  ;;  %v12504_v63 = vmul.f32 %v12365_v5, %v11880_v37  ;;  %v12508_v28 = vmul.f32 %v12365_v5, %v11884_v9  ;;  %v16717_v0 = vld [vmem:[#allocation11_spill] sm:$0xff] }
 0x655   :  { %v12512_v62 = vmul.f32 %v12365_v5, %v11888_v17  ;;  %v12516_v8 = vmul.f32 %v12365_v5, %v11892_v29  ;;  %v12520_v21 = vmul.f32 %v12365_v5, %v11896_v41  ;;  %v12524_v37 = vmul.f32 %v12365_v5, %v11900_v27 }
 0x656   :  { %v12528_v9 = vmul.f32 %v12365_v5, %v11904_v36  ;;  %v12532_v17 = vmul.f32 %v12365_v5, %v11908_v54  ;;  %v12536_v29 = vmul.f32 %v12365_v5, %v11912_v3  ;;  %v12540_v41 = vmul.f32 %v12365_v5, %v11916_v52 }
 0x657   :  { %v12544_v27 = vmul.f32 %v12365_v5, %v11920_v57  ;;  %v12548_v36 = vmul.f32 %v12365_v5, %v11924_v58  ;;  %v12552_v54 = vmul.f32 %v12365_v5, %v11928_v10  ;;  %v12556_v3 = vmul.f32 %v12365_v5, %v11932_v51 }
 0x658   :  { %v12560_v52 = vmul.f32 %v12365_v5, %v11936_v45  ;;  %v12564_v57 = vmul.f32 %v12365_v5, %v11940_v42  ;;  %v12568_v58 = vmul.f32 %v12365_v5, %v11944_v50  ;;  %v12572_v10 = vmul.f32 %v12365_v5, %v11948_v39 }
 0x659   :  { %v12576_v51 = vmul.f32 %v12365_v5, %v16709_v19  ;;  %v12580_v45 = vmul.f32 %v12365_v5, %v16710_v26  ;;  %v12584_v42 = vmul.f32 %v12365_v5, %v16711_v7  ;;  %v12588_v50 = vmul.f32 %v12365_v5, %v16713_v34  ;;  %v16719_v19 = vld [vmem:[#allocation13_spill] sm:$0xff] }
 0x65a   :  { %v12592_v39 = vmul.f32 %v12365_v5, %v16715_v56  ;;  %v12596_v6 = vmul.f32 %v12365_v5, %v16717_v0  ;;  %v12600_v26 = vmul.f32 %v12365_v5, %v16719_v19  ;;  %v12604_v7 = vmul.f32 %v12365_v5, %v16721_v23 }
 0x65b   :  { %16712 = vst [vmem:[#allocation25_spill] sm:$0xff] %v12584_v42  ;;  %16714 = vst [vmem:[#allocation20_spill] sm:$0xff] %v12588_v50  ;;  %v16723_v42 = vld [vmem:[#allocation12_spill] sm:$0xff]  ;;  %v16724_v50 = vld [vmem:[#allocation15_spill] sm:$0xff] }
 0x65c   :  { %16716 = vst [vmem:[#allocation21_spill] sm:$0xff] %v12592_v39  ;;  %16718 = vst [vmem:[#allocation22_spill] sm:$0xff] %v12596_v6  ;;  %v12608_v34 = vmul.f32 %v12365_v5, %v16723_v42  ;;  %v12612_v56 = vmul.f32 %v12365_v5, %v16724_v50  ;;  %v16725_v39 = vld [vmem:[#allocation17_spill] sm:$0xff]  ;;  %v16726_v6 = vld [vmem:[#allocation14_spill] sm:$0xff]  ;;  %v12632_v50 = vmul.f32 %v12365_v5, %v16702_v43 }
 0x65d   :  { %16720 = vst [vmem:[#allocation23_spill] sm:$0xff] %v12600_v26  ;;  %16722 = vst [vmem:[#allocation24_spill] sm:$0xff] %v12604_v7  ;;  %v12616_v0 = vmul.f32 %v12365_v5, %v16725_v39  ;;  %v12620_v19 = vmul.f32 %v12365_v5, %v16726_v6  ;;  %v16727_v26 = vld [vmem:[#allocation16_spill] sm:$0xff]  ;;  %v16728_v7 = vld [vmem:[#allocation19_spill] sm:$0xff]  ;;  %v12636_v39 = vmul.f32 %v12370_v30, %v12376_v44 }
 0x65e   :  { %v12624_v23 = vmul.f32 %v12365_v5, %v16727_v26  ;;  %v12628_v42 = vmul.f32 %v12365_v5, %v16728_v7  ;;  %v12640_v6 = vmul.f32 %v12370_v30, %v12380_v35  ;;  %v12644_v26 = vmul.f32 %v12370_v30, %v12384_v46 }
 0x65f   :  { %v12648_v7 = vmul.f32 %v12370_v30, %v12393_v4  ;;  %v12652_v43 = vmul.f32 %v12370_v30, %v12397_v2  ;;  %v12656_v5 = vmul.f32 %v12370_v30, %v12401_v59  ;;  %v12660_v44 = vmul.f32 %v12370_v30, %v12405_v47 }
 0x660   :  { %v12664_v35 = vmul.f32 %v12370_v30, %v12410_v24  ;;  %v12668_v46 = vmul.f32 %v12370_v30, %v12414_v15  ;;  %v12672_v4 = vmul.f32 %v12370_v30, %v12418_v31  ;;  %v12676_v2 = vmul.f32 %v12370_v30, %v12422_v13 }
 0x661   :  { %v12680_v59 = vmul.f32 %v12370_v30, %v12426_v20  ;;  %v12684_v47 = vmul.f32 %v12370_v30, %v12430_v11  ;;  %v12688_v24 = vmul.f32 %v12370_v30, %v12434_v16  ;;  %v12692_v15 = vmul.f32 %v12370_v30, %v12439_v1 }
 0x662   :  { %v12696_v31 = vmul.f32 %v12370_v30, %v12443_v53  ;;  %v12700_v13 = vmul.f32 %v12370_v30, %v12447_v60  ;;  %v12704_v20 = vmul.f32 %v12370_v30, %v12451_v14  ;;  %v12708_v11 = vmul.f32 %v12370_v30, %v12455_v61 }
 0x663   :  { %v12712_v16 = vmul.f32 %v12370_v30, %v12459_v22  ;;  %v12716_v1 = vmul.f32 %v12370_v30, %v12463_v25  ;;  %v12720_v53 = vmul.f32 %v12370_v30, %v12467_v18  ;;  %v12724_v60 = vmul.f32 %v12370_v30, %v12471_v33 }
 0x664   :  { %v12728_v14 = vmul.f32 %v12370_v30, %v12475_v40  ;;  %v12732_v61 = vmul.f32 %v12370_v30, %v12479_v32  ;;  %v12736_v22 = vmul.f32 %v12370_v30, %v12483_v38  ;;  %v12740_v25 = vmul.f32 %v12370_v30, %v12487_v49 }
 0x665   :  { %v12744_v18 = vmul.f32 %v12370_v30, %v12491_v55  ;;  %v12748_v33 = vmul.f32 %v12370_v30, %v12496_v48  ;;  %v12752_v40 = vmul.f32 %v12370_v30, %v12500_v12  ;;  %v12756_v32 = vmul.f32 %v12370_v30, %v12504_v63 }
 0x666   :  { %v12760_v38 = vmul.f32 %v12370_v30, %v12508_v28  ;;  %v12764_v49 = vmul.f32 %v12370_v30, %v12512_v62  ;;  %v12768_v55 = vmul.f32 %v12370_v30, %v12516_v8  ;;  %v12772_v48 = vmul.f32 %v12370_v30, %v12520_v21 }
 0x667   :  { %v12776_v12 = vmul.f32 %v12370_v30, %v12524_v37  ;;  %v12780_v63 = vmul.f32 %v12370_v30, %v12528_v9  ;;  %v12784_v28 = vmul.f32 %v12370_v30, %v12532_v17  ;;  %v12788_v62 = vmul.f32 %v12370_v30, %v12536_v29 }
 0x668   :  { %v12792_v8 = vmul.f32 %v12370_v30, %v12540_v41  ;;  %v12796_v21 = vmul.f32 %v12370_v30, %v12544_v27  ;;  %v12800_v37 = vmul.f32 %v12370_v30, %v12548_v36  ;;  %v12804_v9 = vmul.f32 %v12370_v30, %v12552_v54 }
 0x669   :  { %v12808_v17 = vmul.f32 %v12370_v30, %v12556_v3  ;;  %v12812_v29 = vmul.f32 %v12370_v30, %v12560_v52  ;;  %v12816_v41 = vmul.f32 %v12370_v30, %v12564_v57  ;;  %v12820_v27 = vmul.f32 %v12370_v30, %v12568_v58  ;;  %v16734_v52 = vld [vmem:[#allocation25_spill] sm:$0xff] }
 0x66a   :  { %v12824_v36 = vmul.f32 %v12370_v30, %v12572_v10  ;;  %v12828_v54 = vmul.f32 %v12370_v30, %v12576_v51  ;;  %v12832_v3 = vmul.f32 %v12370_v30, %v12580_v45  ;;  %v12836_v57 = vmul.f32 %v12370_v30, %v16734_v52 }
 0x66b   :  { %16729 = vst [vmem:[#allocation5_spill] sm:$0xff] %v12816_v41  ;;  %16730 = vst [vmem:[#allocation7_spill] sm:$0xff] %v12820_v27  ;;  %v16735_v41 = vld [vmem:[#allocation20_spill] sm:$0xff]  ;;  %v16736_v27 = vld [vmem:[#allocation21_spill] sm:$0xff] }
 0x66c   :  { %16731 = vst [vmem:[#allocation9_spill] sm:$0xff] %v12824_v36  ;;  %16732 = vst [vmem:[#allocation6_spill] sm:$0xff] %v12828_v54  ;;  %v12840_v58 = vmul.f32 %v12370_v30, %v16735_v41  ;;  %v12844_v10 = vmul.f32 %v12370_v30, %v16736_v27  ;;  %v16737_v36 = vld [vmem:[#allocation22_spill] sm:$0xff]  ;;  %v16738_v54 = vld [vmem:[#allocation23_spill] sm:$0xff]  ;;  %v12860_v41 = vmul.f32 %v12370_v30, %v12608_v34 }
 0x66d   :  { %16733 = vst [vmem:[#allocation8_spill] sm:$0xff] %v12832_v3  ;;  %v12848_v51 = vmul.f32 %v12370_v30, %v16737_v36  ;;  %v12852_v45 = vmul.f32 %v12370_v30, %v16738_v54  ;;  %v16739_v3 = vld [vmem:[#allocation24_spill] sm:$0xff]  ;;  %v12864_v27 = vmul.f32 %v12370_v30, %v12612_v56  ;;  %v12868_v36 = vmul.f32 %v12370_v30, %v12616_v0 }
 0x66e   :  { %v12856_v52 = vmul.f32 %v12370_v30, %v16739_v3  ;;  %v12872_v54 = vmul.f32 %v12370_v30, %v12620_v19  ;;  %v12876_v3 = vmul.f32 %v12370_v30, %v12624_v23  ;;  %v12880_v34 = vmul.f32 %v12370_v30, %v12628_v42 }
 0x66f   :  { %16740 = vst [vmem:[#allocation11_spill] sm:$0xff] %v12864_v27  ;;  %v12884_v56 = vmul.f32 %v12370_v30, %v12632_v50  ;;  %v16741_v27 = vld [vmem:[#allocation18_spill] sm:$0xff] }
 0x670   :  { %v12888_v0 = vadd.f32 %v16741_v27, %v12636_v39  ;;  %v12892_v19 = vadd.f32 %v16741_v27, %v12640_v6  ;;  %v12896_v23 = vadd.f32 %v16741_v27, %v12644_v26  ;;  %v12900_v42 = vadd.f32 %v16741_v27, %v12648_v7 }
 0x671   :  { %v12904_v30 = vadd.f32 %v16741_v27, %v12652_v43  ;;  %v12908_v50 = vadd.f32 %v16741_v27, %v12656_v5  ;;  %v12912_v39 = vadd.f32 %v16741_v27, %v12660_v44  ;;  %v12916_v6 = vadd.f32 %v16741_v27, %v12664_v35 }
 0x672   :  { %v12920_v26 = vadd.f32 %v16741_v27, %v12668_v46  ;;  %v12924_v7 = vadd.f32 %v16741_v27, %v12672_v4  ;;  %v12928_v43 = vadd.f32 %v16741_v27, %v12676_v2  ;;  %v12932_v5 = vadd.f32 %v16741_v27, %v12680_v59 }
 0x673   :  { %v12936_v44 = vadd.f32 %v16741_v27, %v12684_v47  ;;  %v12940_v35 = vadd.f32 %v16741_v27, %v12688_v24  ;;  %v12944_v46 = vadd.f32 %v16741_v27, %v12692_v15  ;;  %v12948_v4 = vadd.f32 %v16741_v27, %v12696_v31 }
 0x674   :  { %v12952_v2 = vadd.f32 %v16741_v27, %v12700_v13  ;;  %v12956_v59 = vadd.f32 %v16741_v27, %v12704_v20  ;;  %v12960_v47 = vadd.f32 %v16741_v27, %v12708_v11  ;;  %v12964_v24 = vadd.f32 %v16741_v27, %v12712_v16 }
 0x675   :  { %v12968_v15 = vadd.f32 %v16741_v27, %v12716_v1  ;;  %v12972_v31 = vadd.f32 %v16741_v27, %v12720_v53  ;;  %v12976_v13 = vadd.f32 %v16741_v27, %v12724_v60  ;;  %v12980_v20 = vadd.f32 %v16741_v27, %v12728_v14  ;;  %v4816_v1 = vld [vmem:[#allocation3] sm:$0xff] }
 0x676   :  { %v12984_v11 = vadd.f32 %v16741_v27, %v12732_v61  ;;  %v12988_v16 = vadd.f32 %v16741_v27, %v12736_v22  ;;  %v12992_v53 = vadd.f32 %v16741_v27, %v12740_v25  ;;  %v12996_v60 = vadd.f32 %v16741_v27, %v12744_v18  ;;  %4880 = vst.msk [vmem:[#allocation4] sm:$0xff] %vm3994_vm13, %v4816_v1  ;;  %v16747_v1 = vld [vmem:[#allocation7_spill] sm:$0xff] }
 0x677   :  { %16742 = vst [vmem:[#allocation13_spill] sm:$0xff] %v12968_v15  ;;  %v4817_v15 = vld [vmem:[#allocation3 + $0x8] sm:$0xff]  ;;  %v13000_v14 = vadd.f32 %v16741_v27, %v12748_v33  ;;  %v13004_v61 = vadd.f32 %v16741_v27, %v12752_v40  ;;  %v13010_v22 = vadd.f32 %v16741_v27, %v12756_v32  ;;  %v13014_v25 = vadd.f32 %v16741_v27, %v12760_v38 }
 0x678   :  { %4881 = vst.msk [vmem:[#allocation4 + $0x8] sm:$0xff] %vm3994_vm13, %v4817_v15  ;;  %v13018_v18 = vadd.f32 %v16741_v27, %v12764_v49  ;;  %v13022_v33 = vadd.f32 %v16741_v27, %v12768_v55  ;;  %v13026_v40 = vadd.f32 %v16741_v27, %v12772_v48  ;;  %v13030_v32 = vadd.f32 %v16741_v27, %v12776_v12  ;;  %v16746_v15 = vld [vmem:[#allocation5_spill] sm:$0xff] }
 0x679   :  { %v13034_v38 = vadd.f32 %v16741_v27, %v12780_v63  ;;  %v13038_v49 = vadd.f32 %v16741_v27, %v12784_v28  ;;  %v13042_v55 = vadd.f32 %v16741_v27, %v12788_v62  ;;  %v13046_v48 = vadd.f32 %v16741_v27, %v12792_v8 }
 0x67a   :  { %v13050_v12 = vadd.f32 %v16741_v27, %v12796_v21  ;;  %v13054_v63 = vadd.f32 %v16741_v27, %v12800_v37  ;;  %v13058_v28 = vadd.f32 %v16741_v27, %v12804_v9  ;;  %v13062_v62 = vadd.f32 %v16741_v27, %v12808_v17 }
 0x67b   :  { %v13066_v8 = vadd.f32 %v16741_v27, %v12812_v29  ;;  %v13070_v21 = vadd.f32 %v16741_v27, %v16746_v15  ;;  %v13074_v37 = vadd.f32 %v16741_v27, %v16747_v1  ;;  %v13090_v15 = vadd.f32 %v16741_v27, %v12836_v57 }
 0x67c   :  { %16743 = vst [vmem:[#allocation10_spill] sm:$0xff] %v13054_v63  ;;  %16744 = vst [vmem:[#allocation12_spill] sm:$0xff] %v13058_v28  ;;  %v16748_v63 = vld [vmem:[#allocation9_spill] sm:$0xff]  ;;  %v16749_v28 = vld [vmem:[#allocation6_spill] sm:$0xff]  ;;  %v13094_v1 = vadd.f32 %v16741_v27, %v12840_v58  ;;  %v13110_v57 = vadd.f32 %v16741_v27, %v12856_v52  ;;  %v13114_v58 = vadd.f32 %v16741_v27, %v12860_v41 }
 0x67d   :  { %16745 = vst [vmem:[#allocation15_spill] sm:$0xff] %v13062_v62  ;;  %v13078_v9 = vadd.f32 %v16741_v27, %v16748_v63  ;;  %v13082_v17 = vadd.f32 %v16741_v27, %v16749_v28  ;;  %v16750_v62 = vld [vmem:[#allocation8_spill] sm:$0xff]  ;;  %v13098_v63 = vadd.f32 %v16741_v27, %v12844_v10  ;;  %v13102_v28 = vadd.f32 %v16741_v27, %v12848_v51 }
 0x67e   :  { %v13086_v29 = vadd.f32 %v16741_v27, %v16750_v62  ;;  %16751 = vst [vmem:[#allocation17_spill] sm:$0xff] %v13094_v1  ;;  %v13106_v62 = vadd.f32 %v16741_v27, %v12852_v45  ;;  %v16752_v1 = vld [vmem:[#allocation11_spill] sm:$0xff]  ;;  %v13122_v51 = vadd.f32 %v16741_v27, %v12868_v36  ;;  %v13126_v45 = vadd.f32 %v16741_v27, %v12872_v54 }
 0x67f   :  { %v13118_v10 = vadd.f32 %v16741_v27, %v16752_v1  ;;  %v13130_v52 = vadd.f32 %v16741_v27, %v12876_v3  ;;  %v13134_v41 = vadd.f32 %v16741_v27, %v12880_v34  ;;  %v13138_v1 = vadd.f32 %v16741_v27, %v12884_v56 }
 0x680   :  { %16754 = vst [vmem:[#allocation16_spill] sm:$0xff] %v13122_v51  ;;  %16755 = vst [vmem:[#allocation19_spill] sm:$0xff] %v13126_v45  ;;  %v4600_v36 = vmax.f32 %v12888_v0, 0.0  ;;  %v4602_v51 = vmax.f32 %v12896_v23, 0.0  ;;  %v4603_v54 = vmax.f32 %v12900_v42, 0.0  ;;  %v4604_v45 = vmax.f32 %v12904_v30, 0.0 }
 0x681   :  { %16753 = vst [vmem:[#allocation14_spill] sm:$0xff] %v13118_v10  ;;  %16756 = vst [vmem:[#allocation25_spill] sm:$0xff] %v13130_v52  ;;  %v4601_v10 = vmax.f32 %v12892_v19, 0.0  ;;  %v4605_v3 = vmax.f32 %v12908_v50, 0.0  ;;  %v4606_v52 = vmax.f32 %v12912_v39, 0.0  ;;  %v4607_v34 = vmax.f32 %v12916_v6, 0.0 }
 0x682   :  { %v4608_v27 = vmax.f32 %v12920_v26, 0.0  ;;  %v4609_v56 = vmax.f32 %v12924_v7, 0.0  ;;  %v4610_v0 = vmax.f32 %v12928_v43, 0.0  ;;  %4752 = vst.msk [vmem:[#allocation3 + $0x19] sm:$0xff] %vm3994_vm13, %v4600_v36  ;;  %4754 = vst.msk [vmem:[#allocation3 + $0x31] sm:$0xff] %vm3994_vm13, %v4602_v51  ;;  %v4611_v19 = vmax.f32 %v12932_v5, 0.0 }
 0x683   :  { %4753 = vst.msk [vmem:[#allocation3 + $0x21] sm:$0xff] %vm3994_vm13, %v4601_v10  ;;  %v4612_v23 = vmax.f32 %v12936_v44, 0.0  ;;  %v4613_v42 = vmax.f32 %v12940_v35, 0.0  ;;  %v4614_v30 = vmax.f32 %v12944_v46, 0.0  ;;  %4755 = vst.msk [vmem:[#allocation3 + $0x39] sm:$0xff] %vm3994_vm13, %v4603_v54  ;;  %v4615_v50 = vmax.f32 %v12948_v4, 0.0 }
 0x684   :  { %4756 = vst.msk [vmem:[#allocation3 + $0x49] sm:$0xff] %vm3994_vm13, %v4604_v45  ;;  %4757 = vst.msk [vmem:[#allocation3 + $0x51] sm:$0xff] %vm3994_vm13, %v4605_v3  ;;  %v4616_v39 = vmax.f32 %v12952_v2, 0.0  ;;  %v4617_v6 = vmax.f32 %v12956_v59, 0.0  ;;  %v4618_v26 = vmax.f32 %v12960_v47, 0.0  ;;  %v4619_v7 = vmax.f32 %v12964_v24, 0.0 }
 0x685   :  { %4758 = vst.msk [vmem:[#allocation3 + $0x61] sm:$0xff] %vm3994_vm13, %v4606_v52  ;;  %4759 = vst.msk [vmem:[#allocation3 + $0x69] sm:$0xff] %vm3994_vm13, %v4607_v34  ;;  %v16757_v43 = vld [vmem:[#allocation13_spill] sm:$0xff]  ;;  %v4621_v44 = vmax.f32 %v12972_v31, 0.0  ;;  %v4622_v35 = vmax.f32 %v12976_v13, 0.0  ;;  %v4623_v46 = vmax.f32 %v12980_v20, 0.0 }
 0x686   :  { %4760 = vst.msk [vmem:[#allocation3 + $0x79] sm:$0xff] %vm3994_vm13, %v4608_v27  ;;  %4761 = vst.msk [vmem:[#allocation3 + $0x81] sm:$0xff] %vm3994_vm13, %v4609_v56  ;;  %v4620_v5 = vmax.f32 %v16757_v43, 0.0  ;;  %v4624_v4 = vmax.f32 %v12984_v11, 0.0  ;;  %v4625_v2 = vmax.f32 %v12988_v16, 0.0  ;;  %v4626_v59 = vmax.f32 %v12992_v53, 0.0 }
 0x687   :  { %4762 = vst.msk [vmem:[#allocation3 + $0x91] sm:$0xff] %vm3994_vm13, %v4610_v0  ;;  %4763 = vst.msk [vmem:[#allocation3 + $0x99] sm:$0xff] %vm3994_vm13, %v4611_v19  ;;  %v4627_v47 = vmax.f32 %v12996_v60, 0.0  ;;  %v4628_v24 = vmax.f32 %v13000_v14, 0.0  ;;  %v4629_v31 = vmax.f32 %v13004_v61, 0.0  ;;  %v4630_v13 = vmax.f32 %v13010_v22, 0.0 }
 0x688   :  { %4764 = vst.msk [vmem:[#allocation3 + $0xa9] sm:$0xff] %vm3994_vm13, %v4612_v23  ;;  %4765 = vst.msk [vmem:[#allocation3 + $0xb1] sm:$0xff] %vm3994_vm13, %v4613_v42  ;;  %v4631_v20 = vmax.f32 %v13014_v25, 0.0  ;;  %v4632_v11 = vmax.f32 %v13018_v18, 0.0  ;;  %v4633_v16 = vmax.f32 %v13022_v33, 0.0  ;;  %v4634_v53 = vmax.f32 %v13026_v40, 0.0 }
 0x689   :  { %4766 = vst.msk [vmem:[#allocation3 + $0xc1] sm:$0xff] %vm3994_vm13, %v4614_v30  ;;  %4767 = vst.msk [vmem:[#allocation3 + $0xc9] sm:$0xff] %vm3994_vm13, %v4615_v50  ;;  %v4635_v14 = vmax.f32 %v13030_v32, 0.0  ;;  %v4636_v61 = vmax.f32 %v13034_v38, 0.0  ;;  %v4637_v22 = vmax.f32 %v13038_v49, 0.0  ;;  %v4638_v25 = vmax.f32 %v13042_v55, 0.0 }
 0x68a   :  { %4768 = vst.msk [vmem:[#allocation3 + $0xd9] sm:$0xff] %vm3994_vm13, %v4616_v39  ;;  %4769 = vst.msk [vmem:[#allocation3 + $0xe1] sm:$0xff] %vm3994_vm13, %v4617_v6  ;;  %v4947_v60 = vld [vmem:[#allocation3 + $0x21] sm:$0xff]  ;;  %v4946_v18 = vld [vmem:[#allocation3 + $0x19] sm:$0xff]  ;;  %v4639_v33 = vmax.f32 %v13046_v48, 0.0  ;;  %v4640_v40 = vmax.f32 %v13050_v12, 0.0 }
 0x68b   :  { %4770 = vst.msk [vmem:[#allocation3 + $0xf1] sm:$0xff] %vm3994_vm13, %v4618_v26  ;;  %4771 = vst.msk [vmem:[#allocation3 + $0xf9] sm:$0xff] %vm3994_vm13, %v4619_v7  ;;  %5078 = vrot.lane.b32.xlu1 %v4947_v60, %s9633_s1  ;;  %v16758_v32 = vld [vmem:[#allocation10_spill] sm:$0xff]  ;;  %v16759_v49 = vld [vmem:[#allocation12_spill] sm:$0xff]  ;;  %5076 = vrot.lane.b32.xlu0 %v4946_v18, %s9633_s1  ;;  %v4644_v48 = vmax.f32 %v13066_v8, 0.0  ;;  %v4645_v12 = vmax.f32 %v13070_v21, 0.0 }
 0x68c   :  { %4772 = vst.msk [vmem:[#allocation3 + $0x109] sm:$0xff] %vm3994_vm13, %v4620_v5  ;;  %4773 = vst.msk [vmem:[#allocation3 + $0x111] sm:$0xff] %vm3994_vm13, %v4621_v44  ;;  %v4641_v38 = vmax.f32 %v16758_v32, 0.0  ;;  %v4642_v10 = vmax.f32 %v16759_v49, 0.0  ;;  %v16760_v55 = vld [vmem:[#allocation15_spill] sm:$0xff]  ;;  %v4646_v45 = vmax.f32 %v13074_v37, 0.0 }
 0x68d   :  { %4774 = vst.msk [vmem:[#allocation3 + $0x121] sm:$0xff] %vm3994_vm13, %v4622_v35  ;;  %4775 = vst.msk [vmem:[#allocation3 + $0x129] sm:$0xff] %vm3994_vm13, %v4623_v46  ;;  %v4643_v51 = vmax.f32 %v16760_v55, 0.0  ;;  %v4647_v52 = vmax.f32 %v13078_v9, 0.0  ;;  %v4648_v36 = vmax.f32 %v13082_v17, 0.0  ;;  %v4649_v54 = vmax.f32 %v13086_v29, 0.0 }
 0x68e   :  { %4776 = vst.msk [vmem:[#allocation3 + $0x139] sm:$0xff] %vm3994_vm13, %v4624_v4  ;;  %4777 = vst.msk [vmem:[#allocation3 + $0x141] sm:$0xff] %vm3994_vm13, %v4625_v2  ;;  %v4650_v8 = vmax.f32 %v13090_v15, 0.0  ;;  %v16761_v21 = vld [vmem:[#allocation17_spill] sm:$0xff]  ;;  %v4652_v3 = vmax.f32 %v13098_v63, 0.0  ;;  %v4653_v9 = vmax.f32 %v13102_v28, 0.0 }
 0x68f   :  { %4778 = vst.msk [vmem:[#allocation3 + $0x151] sm:$0xff] %vm3994_vm13, %v4626_v59  ;;  %4779 = vst.msk [vmem:[#allocation3 + $0x159] sm:$0xff] %vm3994_vm13, %v4627_v47  ;;  %v4651_v37 = vmax.f32 %v16761_v21, 0.0  ;;  %v4654_v17 = vmax.f32 %v13106_v62, 0.0  ;;  %v4949_v29 = vld [vmem:[#allocation3 + $0x39] sm:$0xff]  ;;  %v4948_v15 = vld [vmem:[#allocation3 + $0x31] sm:$0xff]  ;;  %v5073_v62 = vpop.permute.xlu0 %5072 }
 0x690   :  { %4780 = vst.msk [vmem:[#allocation3 + $0x169] sm:$0xff] %vm3994_vm13, %v4628_v24  ;;  %4781 = vst.msk [vmem:[#allocation3 + $0x171] sm:$0xff] %vm3994_vm13, %v4629_v31  ;;  %v4655_v34 = vmax.f32 %v13110_v57, 0.0  ;;  %v4656_v27 = vmax.f32 %v13114_v58, 0.0  ;;  %v16762_v56 = vld [vmem:[#allocation14_spill] sm:$0xff]  ;;  %v16763_v0 = vld [vmem:[#allocation16_spill] sm:$0xff]  ;;  %5082 = vrot.lane.b32.xlu1 %v4949_v29, %s9633_s1  ;;  %5080 = vrot.lane.b32.xlu0 %v4948_v15, %s9633_s1  ;;  %v5075_v57 = vpop.permute.xlu1 %5074 }
 0x691   :  { %4782 = vst.msk [vmem:[#allocation3 + $0x181] sm:$0xff] %vm3994_vm13, %v4630_v13  ;;  %4783 = vst.msk [vmem:[#allocation3 + $0x189] sm:$0xff] %vm3994_vm13, %v4631_v20  ;;  %v4657_v63 = vmax.f32 %v16762_v56, 0.0  ;;  %v4658_v28 = vmax.f32 %v16763_v0, 0.0  ;;  %v16764_v19 = vld [vmem:[#allocation19_spill] sm:$0xff]  ;;  %v16765_v23 = vld [vmem:[#allocation25_spill] sm:$0xff] }
 0x692   :  { %4784 = vst.msk [vmem:[#allocation3 + $0x1c9] sm:$0xff] %vm3994_vm13, %v4632_v11  ;;  %4785 = vst.msk [vmem:[#allocation3 + $0x1d1] sm:$0xff] %vm3994_vm13, %v4633_v16  ;;  %v4659_v58 = vmax.f32 %v16764_v19, 0.0  ;;  %v4660_v42 = vmax.f32 %v16765_v23, 0.0  ;;  %v4662_v30 = vmax.f32 %v13134_v41, 0.0  ;;  %v4663_v50 = vmax.f32 %v13138_v1, 0.0 }
 0x693   :  { %4786 = vst.msk [vmem:[#allocation3 + $0x1e1] sm:$0xff] %vm3994_vm13, %v4634_v53  ;;  %4787 = vst.msk [vmem:[#allocation3 + $0x1e9] sm:$0xff] %vm3994_vm13, %v4635_v14  ;;  %v4951_v41 = vld [vmem:[#allocation3 + $0x51] sm:$0xff]  ;;  %v4950_v1 = vld [vmem:[#allocation3 + $0x49] sm:$0xff] }
 0x694   :  { %4788 = vst.msk [vmem:[#allocation3 + $0x1f9] sm:$0xff] %vm3994_vm13, %v4636_v61  ;;  %4789 = vst.msk [vmem:[#allocation3 + $0x201] sm:$0xff] %vm3994_vm13, %v4637_v22  ;;  %5086 = vrot.lane.b32.xlu1 %v4951_v41, %s9633_s1  ;;  %5084 = vrot.lane.b32.xlu0 %v4950_v1, %s9633_s1  ;;  %v4953_v39 = vld [vmem:[#allocation3 + $0x69] sm:$0xff]  ;;  %v4952_v6 = vld [vmem:[#allocation3 + $0x61] sm:$0xff] }
 0x695   :  { %4790 = vst.msk [vmem:[#allocation3 + $0x211] sm:$0xff] %vm3994_vm13, %v4638_v25  ;;  %4791 = vst.msk [vmem:[#allocation3 + $0x219] sm:$0xff] %vm3994_vm13, %v4639_v33  ;;  %v4955_v26 = vld [vmem:[#allocation3 + $0x81] sm:$0xff]  ;;  %v4954_v7 = vld [vmem:[#allocation3 + $0x79] sm:$0xff] }
 0x696   :  { %4792 = vst.msk [vmem:[#allocation3 + $0x229] sm:$0xff] %vm3994_vm13, %v4640_v40  ;;  %4793 = vst.msk [vmem:[#allocation3 + $0x231] sm:$0xff] %vm3994_vm13, %v4641_v38  ;;  %v4957_v43 = vld [vmem:[#allocation3 + $0x99] sm:$0xff]  ;;  %v4956_v5 = vld [vmem:[#allocation3 + $0x91] sm:$0xff] }
 0x697   :  { %4794 = vst.msk [vmem:[#allocation3 + $0x241] sm:$0xff] %vm3994_vm13, %v4642_v10  ;;  %4795 = vst.msk [vmem:[#allocation3 + $0x249] sm:$0xff] %vm3994_vm13, %v4643_v51  ;;  %v13280_v44 = vld [vmem:[#allocation3 + $0x20] sm:$0xff]  ;;  %v13282_v35 = vld [vmem:[#allocation3 + $0x18] sm:$0xff] }
 0x698   :  { %4796 = vst.msk [vmem:[#allocation3 + $0x259] sm:$0xff] %vm3994_vm13, %v4644_v48  ;;  %4797 = vst.msk [vmem:[#allocation3 + $0x261] sm:$0xff] %vm3994_vm13, %v4645_v12  ;;  %5090 = vrot.lane.b32.xlu1 %v4953_v39, %s9633_s1  ;;  %5088 = vrot.lane.b32.xlu0 %v4952_v6, %s9633_s1  ;;  %v13288_v46 = vld [vmem:[#allocation3 + $0x38] sm:$0xff]  ;;  %v13290_v4 = vld [vmem:[#allocation3 + $0x30] sm:$0xff] }
 0x699   :  { %4798 = vst.msk [vmem:[#allocation3 + $0x271] sm:$0xff] %vm3994_vm13, %v4646_v45  ;;  %4799 = vst.msk [vmem:[#allocation3 + $0x279] sm:$0xff] %vm3994_vm13, %v4647_v52  ;;  %v4959_v2 = vld [vmem:[#allocation3 + $0xb1] sm:$0xff]  ;;  %v13298_v47 = vld [vmem:[#allocation3 + $0x48] sm:$0xff] }
 0x69a   :  { %4800 = vst.msk [vmem:[#allocation3 + $0x289] sm:$0xff] %vm3994_vm13, %v4648_v36  ;;  %4801 = vst.msk [vmem:[#allocation3 + $0x291] sm:$0xff] %vm3994_vm13, %v4649_v54  ;;  %v13296_v59 = vld [vmem:[#allocation3 + $0x50] sm:$0xff]  ;;  %v13304_v31 = vld [vmem:[#allocation3 + $0x68] sm:$0xff] }
 0x69b   :  { %4802 = vst.msk [vmem:[#allocation3 + $0x2a1] sm:$0xff] %vm3994_vm13, %v4650_v8  ;;  %4803 = vst.msk [vmem:[#allocation3 + $0x2a9] sm:$0xff] %vm3994_vm13, %v4651_v37  ;;  %v4958_v24 = vld [vmem:[#allocation3 + $0xa9] sm:$0xff]  ;;  %v13306_v13 = vld [vmem:[#allocation3 + $0x60] sm:$0xff] }
 0x69c   :  { %4804 = vst.msk [vmem:[#allocation3 + $0x2b9] sm:$0xff] %vm3994_vm13, %v4652_v3  ;;  %4805 = vst.msk [vmem:[#allocation3 + $0x2c1] sm:$0xff] %vm3994_vm13, %v4653_v9  ;;  %5094 = vrot.lane.b32.xlu1 %v4955_v26, %s9633_s1  ;;  %5092 = vrot.lane.b32.xlu0 %v4954_v7, %s9633_s1  ;;  %v13314_v20 = vld [vmem:[#allocation3 + $0x80] sm:$0xff]  ;;  %v13316_v11 = vld [vmem:[#allocation3 + $0x78] sm:$0xff] }
 0x69d   :  { %4806 = vst.msk [vmem:[#allocation3 + $0x2d1] sm:$0xff] %vm3994_vm13, %v4654_v17  ;;  %4807 = vst.msk [vmem:[#allocation3 + $0x2d9] sm:$0xff] %vm3994_vm13, %v4655_v34  ;;  %v13322_v16 = vld [vmem:[#allocation3 + $0x98] sm:$0xff]  ;;  %v4961_v53 = vld [vmem:[#allocation3 + $0xc9] sm:$0xff] }
 0x69e   :  { %4808 = vst.msk [vmem:[#allocation3 + $0x2e9] sm:$0xff] %vm3994_vm13, %v4656_v27  ;;  %4809 = vst.msk [vmem:[#allocation3 + $0x2f1] sm:$0xff] %vm3994_vm13, %v4657_v63  ;;  %v13326_v60 = vld [vmem:[#allocation3 + $0x90] sm:$0xff]  ;;  %v4960_v14 = vld [vmem:[#allocation3 + $0xc1] sm:$0xff] }
 0x69f   :  { %4810 = vst.msk [vmem:[#allocation3 + $0x301] sm:$0xff] %vm3994_vm13, %v4658_v28  ;;  %4811 = vst.msk [vmem:[#allocation3 + $0x309] sm:$0xff] %vm3994_vm13, %v4659_v58  ;;  %v13330_v61 = vld [vmem:[#allocation3 + $0xb0] sm:$0xff]  ;;  %v13332_v22 = vld [vmem:[#allocation3 + $0xa8] sm:$0xff] }
 0x6a0   :  { %4812 = vst.msk [vmem:[#allocation3 + $0x319] sm:$0xff] %vm3994_vm13, %v4660_v42  ;;  %4814 = vst.msk [vmem:[#allocation3 + $0x331] sm:$0xff] %vm3994_vm13, %v4662_v30  ;;  %5098 = vrot.lane.b32.xlu1 %v4957_v43, %s9633_s1  ;;  %5096 = vrot.lane.b32.xlu0 %v4956_v5, %s9633_s1  ;;  %v13340_v25 = vld [vmem:[#allocation3 + $0xc8] sm:$0xff]  ;;  %v13342_v18 = vld [vmem:[#allocation3 + $0xc0] sm:$0xff] }
 0x6a1   :  { %4815 = vst.msk [vmem:[#allocation3 + $0x339] sm:$0xff] %vm3994_vm13, %v4663_v50  ;;  %4883 = vst.msk [vmem:[#allocation4 + $0x18] sm:$0xff] %vm3994_vm13, %v13280_v44  ;;  %v13348_v33 = vld [vmem:[#allocation3 + $0xe0] sm:$0xff]  ;;  %v13352_v32 = vld [vmem:[#allocation3 + $0xd8] sm:$0xff] }
 0x6a2   :  { %5265 = vst.msk [vmem:[#allocation4] sm:$0xff] %vm5264_vm0, %v5073_v62  ;;  %5266 = vst.msk [vmem:[#allocation4 + $0x8] sm:$0xff] %vm5264_vm0, %v5075_v57  ;;  %v4963_v40 = vld [vmem:[#allocation3 + $0xe1] sm:$0xff]  ;;  %v4962_v38 = vld [vmem:[#allocation3 + $0xd9] sm:$0xff] }
 0x6a3   :  { %4882 = vst.msk [vmem:[#allocation4 + $0x10] sm:$0xff] %vm3994_vm13, %v13282_v35  ;;  %4885 = vst.msk [vmem:[#allocation4 + $0x28] sm:$0xff] %vm3994_vm13, %v13288_v46  ;;  %v13356_v49 = vld [vmem:[#allocation3 + $0xf8] sm:$0xff]  ;;  %v13358_v10 = vld [vmem:[#allocation3 + $0xf0] sm:$0xff] }
 0x6a4   :  { %4884 = vst.msk [vmem:[#allocation4 + $0x20] sm:$0xff] %vm3994_vm13, %v13290_v4  ;;  %4887 = vst.msk [vmem:[#allocation4 + $0x38] sm:$0xff] %vm3994_vm13, %v13296_v59  ;;  %5102 = vrot.lane.b32.xlu1 %v4959_v2, %s9633_s1  ;;  %5100 = vrot.lane.b32.xlu0 %v4958_v24, %s9633_s1  ;;  %v13366_v55 = vld [vmem:[#allocation3 + $0x110] sm:$0xff]  ;;  %v13368_v51 = vld [vmem:[#allocation3 + $0x108] sm:$0xff] }
 0x6a5   :  { %4886 = vst.msk [vmem:[#allocation4 + $0x30] sm:$0xff] %vm3994_vm13, %v13298_v47  ;;  %4889 = vst.msk [vmem:[#allocation4 + $0x48] sm:$0xff] %vm3994_vm13, %v13304_v31  ;;  %v13374_v48 = vld [vmem:[#allocation3 + $0x128] sm:$0xff]  ;;  %v4965_v12 = vld [vmem:[#allocation3 + $0xf9] sm:$0xff] }
 0x6a6   :  { %4888 = vst.msk [vmem:[#allocation4 + $0x40] sm:$0xff] %vm3994_vm13, %v13306_v13  ;;  %4891 = vst.msk [vmem:[#allocation4 + $0x58] sm:$0xff] %vm3994_vm13, %v13314_v20  ;;  %v13378_v45 = vld [vmem:[#allocation3 + $0x120] sm:$0xff]  ;;  %v4964_v52 = vld [vmem:[#allocation3 + $0xf1] sm:$0xff] }
 0x6a7   :  { %4890 = vst.msk [vmem:[#allocation4 + $0x50] sm:$0xff] %vm3994_vm13, %v13316_v11  ;;  %4893 = vst.msk [vmem:[#allocation4 + $0x68] sm:$0xff] %vm3994_vm13, %v13322_v16  ;;  %v13382_v36 = vld [vmem:[#allocation3 + $0x140] sm:$0xff]  ;;  %v13384_v54 = vld [vmem:[#allocation3 + $0x138] sm:$0xff] }
 0x6a8   :  { %4892 = vst.msk [vmem:[#allocation4 + $0x60] sm:$0xff] %vm3994_vm13, %v13326_v60  ;;  %5106 = vrot.lane.b32.xlu1 %v4961_v53, %s9633_s1  ;;  %5104 = vrot.lane.b32.xlu0 %v4960_v14, %s9633_s1  ;;  %4895 = vst.msk [vmem:[#allocation4 + $0x78] sm:$0xff] %vm3994_vm13, %v13330_v61  ;;  %v13392_v8 = vld [vmem:[#allocation3 + $0x158] sm:$0xff]  ;;  %v13394_v21 = vld [vmem:[#allocation3 + $0x150] sm:$0xff] }
 0x6a9   :  { %4894 = vst.msk [vmem:[#allocation4 + $0x70] sm:$0xff] %vm3994_vm13, %v13332_v22  ;;  %4897 = vst.msk [vmem:[#allocation4 + $0x88] sm:$0xff] %vm3994_vm13, %v13340_v25  ;;  %v13400_v37 = vld [vmem:[#allocation3 + $0x170] sm:$0xff]  ;;  %v13404_v3 = vld [vmem:[#allocation3 + $0x168] sm:$0xff] }
 0x6aa   :  { %4896 = vst.msk [vmem:[#allocation4 + $0x80] sm:$0xff] %vm3994_vm13, %v13342_v18  ;;  %4899 = vst.msk [vmem:[#allocation4 + $0x98] sm:$0xff] %vm3994_vm13, %v13348_v33  ;;  %v4967_v9 = vld [vmem:[#allocation3 + $0x111] sm:$0xff]  ;;  %v4966_v17 = vld [vmem:[#allocation3 + $0x109] sm:$0xff] }
 0x6ab   :  { %4898 = vst.msk [vmem:[#allocation4 + $0x90] sm:$0xff] %vm3994_vm13, %v13352_v32  ;;  %4901 = vst.msk [vmem:[#allocation4 + $0xa8] sm:$0xff] %vm3994_vm13, %v13356_v49  ;;  %v13408_v29 = vld [vmem:[#allocation3 + $0x1d0] sm:$0xff]  ;;  %v13414_v15 = vld [vmem:[#allocation3 + $0x1c8] sm:$0xff] }
 0x6ac   :  { %5110 = vrot.lane.b32.xlu1 %v4963_v40, %s9633_s1  ;;  %5108 = vrot.lane.b32.xlu0 %v4962_v38, %s9633_s1  ;;  %4900 = vst.msk [vmem:[#allocation4 + $0xa0] sm:$0xff] %vm3994_vm13, %v13358_v10  ;;  %4903 = vst.msk [vmem:[#allocation4 + $0xb8] sm:$0xff] %vm3994_vm13, %v13366_v55  ;;  %v13418_v34 = vld [vmem:[#allocation3 + $0x1e8] sm:$0xff]  ;;  %v13420_v27 = vld [vmem:[#allocation3 + $0x1e0] sm:$0xff] }
 0x6ad   :  { %4902 = vst.msk [vmem:[#allocation4 + $0xb0] sm:$0xff] %vm3994_vm13, %v13368_v51  ;;  %4905 = vst.msk [vmem:[#allocation4 + $0xc8] sm:$0xff] %vm3994_vm13, %v13374_v48  ;;  %v4969_v56 = vld [vmem:[#allocation3 + $0x129] sm:$0xff]  ;;  %v13426_v63 = vld [vmem:[#allocation3 + $0x200] sm:$0xff] }
 0x6ae   :  { %4904 = vst.msk [vmem:[#allocation4 + $0xc0] sm:$0xff] %vm3994_vm13, %v13378_v45  ;;  %4907 = vst.msk [vmem:[#allocation4 + $0xd8] sm:$0xff] %vm3994_vm13, %v13382_v36  ;;  %v13428_v0 = vld [vmem:[#allocation3 + $0x1f8] sm:$0xff]  ;;  %v4968_v28 = vld [vmem:[#allocation3 + $0x121] sm:$0xff] }
 0x6af   :  { %4906 = vst.msk [vmem:[#allocation4 + $0xd0] sm:$0xff] %vm3994_vm13, %v13384_v54  ;;  %4909 = vst.msk [vmem:[#allocation4 + $0xe8] sm:$0xff] %vm3994_vm13, %v13392_v8  ;;  %v13434_v62 = vld [vmem:[#allocation3 + $0x218] sm:$0xff]  ;;  %v13436_v57 = vld [vmem:[#allocation3 + $0x210] sm:$0xff] }
 0x6b0   :  { %5114 = vrot.lane.b32.xlu1 %v4965_v12, %s9633_s1  ;;  %5112 = vrot.lane.b32.xlu0 %v4964_v52, %s9633_s1  ;;  %4908 = vst.msk [vmem:[#allocation4 + $0xe0] sm:$0xff] %vm3994_vm13, %v13394_v21  ;;  %4911 = vst.msk [vmem:[#allocation4 + $0xf8] sm:$0xff] %vm3994_vm13, %v13400_v37  ;;  %v4849_v19 = vld [vmem:[#allocation3 + $0x1b8] sm:$0xff]  ;;  %v13444_v58 = vld [vmem:[#allocation3 + $0x230] sm:$0xff] }
 0x6b1   :  { %4910 = vst.msk [vmem:[#allocation4 + $0xf0] sm:$0xff] %vm3994_vm13, %v13404_v3  ;;  %4915 = vst.msk [vmem:[#allocation4 + $0x118] sm:$0xff] %vm3994_vm13, %v13408_v29  ;;  %v13449_v23 = vld [vmem:[#allocation3 + $0x228] sm:$0xff]  ;;  %v13455_v50 = vld [vmem:[#allocation3 + $0x240] sm:$0xff] }
 0x6b2   :  { %4914 = vst.msk [vmem:[#allocation4 + $0x110] sm:$0xff] %vm3994_vm13, %v13414_v15  ;;  %4917 = vst.msk [vmem:[#allocation4 + $0x128] sm:$0xff] %vm3994_vm13, %v13418_v34  ;;  %v4971_v42 = vld [vmem:[#allocation3 + $0x141] sm:$0xff]  ;;  %v4970_v41 = vld [vmem:[#allocation3 + $0x139] sm:$0xff] }
 0x6b3   :  { %4916 = vst.msk [vmem:[#allocation4 + $0x120] sm:$0xff] %vm3994_vm13, %v13420_v27  ;;  %4919 = vst.msk [vmem:[#allocation4 + $0x138] sm:$0xff] %vm3994_vm13, %v13426_v63  ;;  %v13453_v30 = vld [vmem:[#allocation3 + $0x248] sm:$0xff]  ;;  %v4848_v1 = vld [vmem:[#allocation3 + $0x1b0] sm:$0xff] }
 0x6b4   :  { %5118 = vrot.lane.b32.xlu1 %v4967_v9, %s9633_s1  ;;  %5116 = vrot.lane.b32.xlu0 %v4966_v17, %s9633_s1  ;;  %4918 = vst.msk [vmem:[#allocation4 + $0x130] sm:$0xff] %vm3994_vm13, %v13428_v0  ;;  %4921 = vst.msk [vmem:[#allocation4 + $0x148] sm:$0xff] %vm3994_vm13, %v13434_v62  ;;  %v13461_v39 = vld [vmem:[#allocation3 + $0x260] sm:$0xff]  ;;  %v13468_v6 = vld [vmem:[#allocation3 + $0x258] sm:$0xff] }
 0x6b5   :  { %4920 = vst.msk [vmem:[#allocation4 + $0x140] sm:$0xff] %vm3994_vm13, %v13436_v57  ;;  %4913 = vst.msk [vmem:[#allocation4 + $0x108] sm:$0xff] %vm3994_vm13, %v4849_v19  ;;  %v13472_v26 = vld [vmem:[#allocation3 + $0x278] sm:$0xff]  ;;  %v13474_v7 = vld [vmem:[#allocation3 + $0x270] sm:$0xff] }
 0x6b6   :  { %4923 = vst.msk [vmem:[#allocation4 + $0x158] sm:$0xff] %vm3994_vm13, %v13444_v58  ;;  %4922 = vst.msk [vmem:[#allocation4 + $0x150] sm:$0xff] %vm3994_vm13, %v13449_v23  ;;  %v13480_v43 = vld [vmem:[#allocation3 + $0x290] sm:$0xff]  ;;  %v13482_v5 = vld [vmem:[#allocation3 + $0x288] sm:$0xff] }
 0x6b7   :  { %4925 = vst.msk [vmem:[#allocation4 + $0x168] sm:$0xff] %vm3994_vm13, %v13453_v30  ;;  %4924 = vst.msk [vmem:[#allocation4 + $0x160] sm:$0xff] %vm3994_vm13, %v13455_v50  ;;  %v4973_v2 = vld [vmem:[#allocation3 + $0x159] sm:$0xff]  ;;  %v4972_v24 = vld [vmem:[#allocation3 + $0x151] sm:$0xff] }
 0x6b8   :  { %5122 = vrot.lane.b32.xlu1 %v4969_v56, %s9633_s1  ;;  %5120 = vrot.lane.b32.xlu0 %v4968_v28, %s9633_s1  ;;  %4912 = vst.msk [vmem:[#allocation4 + $0x100] sm:$0xff] %vm3994_vm13, %v4848_v1  ;;  %4927 = vst.msk [vmem:[#allocation4 + $0x178] sm:$0xff] %vm3994_vm13, %v13461_v39  ;;  %v13488_v53 = vld [vmem:[#allocation3 + $0x2a8] sm:$0xff]  ;;  %v13494_v14 = vld [vmem:[#allocation3 + $0x2a0] sm:$0xff] }
 0x6b9   :  { %4926 = vst.msk [vmem:[#allocation4 + $0x170] sm:$0xff] %vm3994_vm13, %v13468_v6  ;;  %4929 = vst.msk [vmem:[#allocation4 + $0x188] sm:$0xff] %vm3994_vm13, %v13472_v26  ;;  %v13498_v40 = vld [vmem:[#allocation3 + $0x2c0] sm:$0xff]  ;;  %v13500_v38 = vld [vmem:[#allocation3 + $0x2b8] sm:$0xff] }
 0x6ba   :  { %4928 = vst.msk [vmem:[#allocation4 + $0x180] sm:$0xff] %vm3994_vm13, %v13474_v7  ;;  %4931 = vst.msk [vmem:[#allocation4 + $0x198] sm:$0xff] %vm3994_vm13, %v13480_v43  ;;  %v13506_v12 = vld [vmem:[#allocation3 + $0x2d8] sm:$0xff]  ;;  %v13508_v52 = vld [vmem:[#allocation3 + $0x2d0] sm:$0xff] }
 0x6bb   :  { %4930 = vst.msk [vmem:[#allocation4 + $0x190] sm:$0xff] %vm3994_vm13, %v13482_v5  ;;  %4933 = vst.msk [vmem:[#allocation4 + $0x1a8] sm:$0xff] %vm3994_vm13, %v13488_v53  ;;  %v4975_v9 = vld [vmem:[#allocation3 + $0x171] sm:$0xff]  ;;  %v4974_v17 = vld [vmem:[#allocation3 + $0x169] sm:$0xff] }
 0x6bc   :  { %5126 = vrot.lane.b32.xlu1 %v4971_v42, %s9633_s1  ;;  %5124 = vrot.lane.b32.xlu0 %v4970_v41, %s9633_s1  ;;  %4932 = vst.msk [vmem:[#allocation4 + $0x1a0] sm:$0xff] %vm3994_vm13, %v13494_v14  ;;  %4935 = vst.msk [vmem:[#allocation4 + $0x1b8] sm:$0xff] %vm3994_vm13, %v13498_v40  ;;  %v13514_v56 = vld [vmem:[#allocation3 + $0x2f0] sm:$0xff]  ;;  %v4977_v28 = vld [vmem:[#allocation3 + $0x1b9] sm:$0xff] }
 0x6bd   :  { %4934 = vst.msk [vmem:[#allocation4 + $0x1b0] sm:$0xff] %vm3994_vm13, %v13500_v38  ;;  %4937 = vst.msk [vmem:[#allocation4 + $0x1c8] sm:$0xff] %vm3994_vm13, %v13506_v12  ;;  %v13520_v19 = vld [vmem:[#allocation3 + $0x2e8] sm:$0xff]  ;;  %v4976_v42 = vld [vmem:[#allocation3 + $0x1b1] sm:$0xff] }
 0x6be   :  { %4936 = vst.msk [vmem:[#allocation4 + $0x1c0] sm:$0xff] %vm3994_vm13, %v13508_v52  ;;  %16766 = vst [vmem:[#allocation20_spill] sm:$0xff] %v13514_v56  ;;  %v13524_v41 = vld [vmem:[#allocation3 + $0x308] sm:$0xff]  ;;  %v13526_v1 = vld [vmem:[#allocation3 + $0x300] sm:$0xff] }
 0x6bf   :  { %4939 = vst.msk [vmem:[#allocation4 + $0x1d8] sm:$0xff] %vm3994_vm13, %v13514_v56  ;;  %16767 = vst [vmem:[#allocation21_spill] sm:$0xff] %v13520_v19 }
 0x6c0   :  { %5130 = vrot.lane.b32.xlu1 %v4973_v2, %s9633_s1  ;;  %5128 = vrot.lane.b32.xlu0 %v4972_v24, %s9633_s1  ;;  %4938 = vst.msk [vmem:[#allocation4 + $0x1d0] sm:$0xff] %vm3994_vm13, %v13520_v19  ;;  %16768 = vst [vmem:[#allocation22_spill] sm:$0xff] %v13524_v41  ;;  %v13532_v2 = vld [vmem:[#allocation3 + $0x320] sm:$0xff]  ;;  %v13534_v24 = vld [vmem:[#allocation3 + $0x318] sm:$0xff] }
 0x6c1   :  { %16769 = vst [vmem:[#allocation23_spill] sm:$0xff] %v13526_v1  ;;  %4941 = vst.msk [vmem:[#allocation4 + $0x1e8] sm:$0xff] %vm3994_vm13, %v13524_v41  ;;  %v4980_v41 = vld [vmem:[#allocation3 + $0x1e1] sm:$0xff]  ;;  %v4982_v19 = vld [vmem:[#allocation3 + $0x1f9] sm:$0xff] }
 0x6c2   :  { %4940 = vst.msk [vmem:[#allocation4 + $0x1e0] sm:$0xff] %vm3994_vm13, %v13526_v1  ;;  %16770 = vst [vmem:[#allocation24_spill] sm:$0xff] %v13532_v2  ;;  %v4981_v1 = vld [vmem:[#allocation3 + $0x1e9] sm:$0xff] }
 0x6c3   :  { %16771 = vst [vmem:[#allocation18_spill] sm:$0xff] %v13534_v24  ;;  %4943 = vst.msk [vmem:[#allocation4 + $0x1f8] sm:$0xff] %vm3994_vm13, %v13532_v2  ;;  %v4983_v2 = vld [vmem:[#allocation3 + $0x201] sm:$0xff] }
 0x6c4   :  { %5134 = vrot.lane.b32.xlu1 %v4975_v9, %s9633_s1  ;;  %5132 = vrot.lane.b32.xlu0 %v4974_v17, %s9633_s1  ;;  %4942 = vst.msk [vmem:[#allocation4 + $0x1f0] sm:$0xff] %vm3994_vm13, %v13534_v24  ;;  %v4979_v9 = vld [vmem:[#allocation3 + $0x1d1] sm:$0xff]  ;;  %v4978_v17 = vld [vmem:[#allocation3 + $0x1c9] sm:$0xff] }
 0x6c8   :  { %5138 = vrot.lane.b32.xlu1 %v4977_v28, %s9633_s1  ;;  %5136 = vrot.lane.b32.xlu0 %v4976_v42, %s9633_s1  ;;  %v4985_v28 = vld [vmem:[#allocation3 + $0x219] sm:$0xff]  ;;  %v4984_v42 = vld [vmem:[#allocation3 + $0x211] sm:$0xff] }
 0x6cc   :  { %5142 = vrot.lane.b32.xlu1 %v4979_v9, %s9633_s1  ;;  %5140 = vrot.lane.b32.xlu0 %v4978_v17, %s9633_s1  ;;  %v4987_v9 = vld [vmem:[#allocation3 + $0x231] sm:$0xff]  ;;  %v4986_v17 = vld [vmem:[#allocation3 + $0x229] sm:$0xff] }
 0x6d0   :  { %5146 = vrot.lane.b32.xlu1 %v4981_v1, %s9633_s1  ;;  %5144 = vrot.lane.b32.xlu0 %v4980_v41, %s9633_s1  ;;  %v4989_v1 = vld [vmem:[#allocation3 + $0x249] sm:$0xff]  ;;  %v4988_v41 = vld [vmem:[#allocation3 + $0x241] sm:$0xff] }
 0x6d4   :  { %5150 = vrot.lane.b32.xlu1 %v4983_v2, %s9633_s1  ;;  %5148 = vrot.lane.b32.xlu0 %v4982_v19, %s9633_s1  ;;  %v4991_v2 = vld [vmem:[#allocation3 + $0x261] sm:$0xff]  ;;  %v4990_v19 = vld [vmem:[#allocation3 + $0x259] sm:$0xff] }
 0x6d8   :  { %5154 = vrot.lane.b32.xlu1 %v4985_v28, %s9633_s1  ;;  %5152 = vrot.lane.b32.xlu0 %v4984_v42, %s9633_s1  ;;  %v4993_v28 = vld [vmem:[#allocation3 + $0x279] sm:$0xff]  ;;  %v4992_v42 = vld [vmem:[#allocation3 + $0x271] sm:$0xff] }
 0x6dc   :  { %5158 = vrot.lane.b32.xlu1 %v4987_v9, %s9633_s1  ;;  %5156 = vrot.lane.b32.xlu0 %v4986_v17, %s9633_s1  ;;  %v4995_v9 = vld [vmem:[#allocation3 + $0x291] sm:$0xff]  ;;  %v4994_v17 = vld [vmem:[#allocation3 + $0x289] sm:$0xff] }
 0x6e0   :  { %5162 = vrot.lane.b32.xlu1 %v4989_v1, %s9633_s1  ;;  %5160 = vrot.lane.b32.xlu0 %v4988_v41, %s9633_s1  ;;  %v4997_v1 = vld [vmem:[#allocation3 + $0x2a9] sm:$0xff]  ;;  %v4996_v41 = vld [vmem:[#allocation3 + $0x2a1] sm:$0xff] }
 0x6e4   :  { %5166 = vrot.lane.b32.xlu1 %v4991_v2, %s9633_s1  ;;  %5164 = vrot.lane.b32.xlu0 %v4990_v19, %s9633_s1  ;;  %v4999_v2 = vld [vmem:[#allocation3 + $0x2c1] sm:$0xff]  ;;  %v4998_v19 = vld [vmem:[#allocation3 + $0x2b9] sm:$0xff] }
 0x6e8   :  { %5170 = vrot.lane.b32.xlu1 %v4993_v28, %s9633_s1  ;;  %5168 = vrot.lane.b32.xlu0 %v4992_v42, %s9633_s1  ;;  %v5001_v28 = vld [vmem:[#allocation3 + $0x2d9] sm:$0xff]  ;;  %v5000_v42 = vld [vmem:[#allocation3 + $0x2d1] sm:$0xff] }
 0x6ec   :  { %5174 = vrot.lane.b32.xlu1 %v4995_v9, %s9633_s1  ;;  %5172 = vrot.lane.b32.xlu0 %v4994_v17, %s9633_s1  ;;  %v5003_v9 = vld [vmem:[#allocation3 + $0x2f1] sm:$0xff]  ;;  %v5002_v17 = vld [vmem:[#allocation3 + $0x2e9] sm:$0xff] }
 0x6f0   :  { %5178 = vrot.lane.b32.xlu1 %v4997_v1, %s9633_s1  ;;  %5176 = vrot.lane.b32.xlu0 %v4996_v41, %s9633_s1 }
 0x6f4   :  { %5182 = vrot.lane.b32.xlu1 %v4999_v2, %s9633_s1  ;;  %5180 = vrot.lane.b32.xlu0 %v4998_v19, %s9633_s1  ;;  %v5005_v2 = vld [vmem:[#allocation3 + $0x309] sm:$0xff]  ;;  %v5004_v19 = vld [vmem:[#allocation3 + $0x301] sm:$0xff] }
 0x6f8   :  { %5186 = vrot.lane.b32.xlu1 %v5001_v28, %s9633_s1  ;;  %5184 = vrot.lane.b32.xlu0 %v5000_v42, %s9633_s1 }
 0x6fc   :  { %5190 = vrot.lane.b32.xlu1 %v5003_v9, %s9633_s1  ;;  %5188 = vrot.lane.b32.xlu0 %v5002_v17, %s9633_s1  ;;  %v5007_v9 = vld [vmem:[#allocation3 + $0x321] sm:$0xff]  ;;  %v5006_v17 = vld [vmem:[#allocation3 + $0x319] sm:$0xff] }
 0x6fd   :  { %v5079_v1 = vpop.permute.xlu1 %5078  ;;  %v5077_v41 = vpop.permute.xlu0 %5076 }
 0x6fe   :  { %5268 = vst.msk [vmem:[#allocation4 + $0x18] sm:$0xff] %vm5264_vm0, %v5079_v1  ;;  %5267 = vst.msk [vmem:[#allocation4 + $0x10] sm:$0xff] %vm5264_vm0, %v5077_v41  ;;  %v5330_v1 = vld [vmem:[#allocation3 + $0xa] sm:$0xff]  ;;  %v5329_v41 = vld [vmem:[#allocation3 + $0x2] sm:$0xff] }
 0x700   :  { %5194 = vrot.lane.b32.xlu1 %v5005_v2, %s9633_s1  ;;  %5192 = vrot.lane.b32.xlu0 %v5004_v19, %s9633_s1 }
 0x702   :  { %v5083_v28 = vpop.permute.xlu1 %5082  ;;  %v5081_v42 = vpop.permute.xlu0 %5080 }
 0x703   :  { %5270 = vst.msk [vmem:[#allocation4 + $0x28] sm:$0xff] %vm5264_vm0, %v5083_v28  ;;  %5269 = vst.msk [vmem:[#allocation4 + $0x20] sm:$0xff] %vm5264_vm0, %v5081_v42  ;;  %v5332_v28 = vld [vmem:[#allocation3 + $0x22] sm:$0xff]  ;;  %v5331_v42 = vld [vmem:[#allocation3 + $0x1a] sm:$0xff] }
 0x704   :  { %5198 = vrot.lane.b32.xlu1 %v5007_v9, %s9633_s1  ;;  %5196 = vrot.lane.b32.xlu0 %v5006_v17, %s9633_s1  ;;  %v5333_v17 = vld [vmem:[#allocation3 + $0x32] sm:$0xff] }
 0x706   :  { %v5087_v24 = vpop.permute.xlu1 %5086  ;;  %v5085_v56 = vpop.permute.xlu0 %5084 }
 0x707   :  { %5272 = vst.msk [vmem:[#allocation4 + $0x38] sm:$0xff] %vm5264_vm0, %v5087_v24  ;;  %5271 = vst.msk [vmem:[#allocation4 + $0x30] sm:$0xff] %vm5264_vm0, %v5085_v56  ;;  %v5334_v56 = vld [vmem:[#allocation3 + $0x3a] sm:$0xff] }
 0x708   :  { %5459 = vrot.lane.b32.xlu1 %v5330_v1, %s9634_s2  ;;  %5457 = vrot.lane.b32.xlu0 %v5329_v41, %s9634_s2 }
 0x70a   :  { %v5091_v2 = vpop.permute.xlu1 %5090  ;;  %v5089_v19 = vpop.permute.xlu0 %5088 }
 0x70b   :  { %5274 = vst.msk [vmem:[#allocation4 + $0x48] sm:$0xff] %vm5264_vm0, %v5091_v2  ;;  %5273 = vst.msk [vmem:[#allocation4 + $0x40] sm:$0xff] %vm5264_vm0, %v5089_v19  ;;  %v5336_v2 = vld [vmem:[#allocation3 + $0x52] sm:$0xff]  ;;  %v5335_v19 = vld [vmem:[#allocation3 + $0x4a] sm:$0xff] }
 0x70c   :  { %5463 = vrot.lane.b32.xlu1 %v5332_v28, %s9634_s2  ;;  %5461 = vrot.lane.b32.xlu0 %v5331_v42, %s9634_s2 }
 0x70e   :  { %v5095_v24 = vpop.permute.xlu1 %5094  ;;  %v5093_v9 = vpop.permute.xlu0 %5092 }
 0x70f   :  { %5276 = vst.msk [vmem:[#allocation4 + $0x58] sm:$0xff] %vm5264_vm0, %v5095_v24  ;;  %5275 = vst.msk [vmem:[#allocation4 + $0x50] sm:$0xff] %vm5264_vm0, %v5093_v9  ;;  %v5338_v24 = vld [vmem:[#allocation3 + $0x6a] sm:$0xff]  ;;  %v5337_v9 = vld [vmem:[#allocation3 + $0x62] sm:$0xff] }
 0x710   :  { %5467 = vrot.lane.b32.xlu1 %v5334_v56, %s9634_s2  ;;  %5465 = vrot.lane.b32.xlu0 %v5333_v17, %s9634_s2 }
 0x712   :  { %v5099_v1 = vpop.permute.xlu1 %5098  ;;  %v5097_v41 = vpop.permute.xlu0 %5096 }
 0x713   :  { %5278 = vst.msk [vmem:[#allocation4 + $0x68] sm:$0xff] %vm5264_vm0, %v5099_v1  ;;  %5277 = vst.msk [vmem:[#allocation4 + $0x60] sm:$0xff] %vm5264_vm0, %v5097_v41  ;;  %v5340_v1 = vld [vmem:[#allocation3 + $0x82] sm:$0xff]  ;;  %v5339_v41 = vld [vmem:[#allocation3 + $0x7a] sm:$0xff] }
 0x714   :  { %5471 = vrot.lane.b32.xlu1 %v5336_v2, %s9634_s2  ;;  %5469 = vrot.lane.b32.xlu0 %v5335_v19, %s9634_s2 }
 0x716   :  { %v5103_v28 = vpop.permute.xlu1 %5102  ;;  %v5101_v42 = vpop.permute.xlu0 %5100 }
 0x717   :  { %5280 = vst.msk [vmem:[#allocation4 + $0x78] sm:$0xff] %vm5264_vm0, %v5103_v28  ;;  %5279 = vst.msk [vmem:[#allocation4 + $0x70] sm:$0xff] %vm5264_vm0, %v5101_v42  ;;  %v5342_v28 = vld [vmem:[#allocation3 + $0x9a] sm:$0xff]  ;;  %v5341_v42 = vld [vmem:[#allocation3 + $0x92] sm:$0xff] }
 0x718   :  { %5475 = vrot.lane.b32.xlu1 %v5338_v24, %s9634_s2  ;;  %5473 = vrot.lane.b32.xlu0 %v5337_v9, %s9634_s2 }
 0x71a   :  { %v5107_v56 = vpop.permute.xlu1 %5106  ;;  %v5105_v17 = vpop.permute.xlu0 %5104 }
 0x71b   :  { %5282 = vst.msk [vmem:[#allocation4 + $0x88] sm:$0xff] %vm5264_vm0, %v5107_v56  ;;  %5281 = vst.msk [vmem:[#allocation4 + $0x80] sm:$0xff] %vm5264_vm0, %v5105_v17  ;;  %v5344_v56 = vld [vmem:[#allocation3 + $0xb2] sm:$0xff]  ;;  %v5343_v17 = vld [vmem:[#allocation3 + $0xaa] sm:$0xff] }
 0x71c   :  { %5479 = vrot.lane.b32.xlu1 %v5340_v1, %s9634_s2  ;;  %5477 = vrot.lane.b32.xlu0 %v5339_v41, %s9634_s2 }
 0x71e   :  { %v5111_v2 = vpop.permute.xlu1 %5110  ;;  %v5109_v19 = vpop.permute.xlu0 %5108 }
 0x71f   :  { %5284 = vst.msk [vmem:[#allocation4 + $0x98] sm:$0xff] %vm5264_vm0, %v5111_v2  ;;  %5283 = vst.msk [vmem:[#allocation4 + $0x90] sm:$0xff] %vm5264_vm0, %v5109_v19  ;;  %v5346_v2 = vld [vmem:[#allocation3 + $0xca] sm:$0xff]  ;;  %v5345_v19 = vld [vmem:[#allocation3 + $0xc2] sm:$0xff] }
 0x720   :  { %5483 = vrot.lane.b32.xlu1 %v5342_v28, %s9634_s2  ;;  %5481 = vrot.lane.b32.xlu0 %v5341_v42, %s9634_s2 }
 0x722   :  { %v5115_v24 = vpop.permute.xlu1 %5114  ;;  %v5113_v9 = vpop.permute.xlu0 %5112 }
 0x723   :  { %5286 = vst.msk [vmem:[#allocation4 + $0xa8] sm:$0xff] %vm5264_vm0, %v5115_v24  ;;  %5285 = vst.msk [vmem:[#allocation4 + $0xa0] sm:$0xff] %vm5264_vm0, %v5113_v9  ;;  %v5348_v24 = vld [vmem:[#allocation3 + $0xe2] sm:$0xff]  ;;  %v5347_v9 = vld [vmem:[#allocation3 + $0xda] sm:$0xff] }
 0x724   :  { %5487 = vrot.lane.b32.xlu1 %v5344_v56, %s9634_s2  ;;  %5485 = vrot.lane.b32.xlu0 %v5343_v17, %s9634_s2 }
 0x726   :  { %v5119_v1 = vpop.permute.xlu1 %5118  ;;  %v5117_v41 = vpop.permute.xlu0 %5116 }
 0x727   :  { %5288 = vst.msk [vmem:[#allocation4 + $0xb8] sm:$0xff] %vm5264_vm0, %v5119_v1  ;;  %5287 = vst.msk [vmem:[#allocation4 + $0xb0] sm:$0xff] %vm5264_vm0, %v5117_v41  ;;  %v5350_v1 = vld [vmem:[#allocation3 + $0xfa] sm:$0xff]  ;;  %v5349_v41 = vld [vmem:[#allocation3 + $0xf2] sm:$0xff] }
 0x728   :  { %5491 = vrot.lane.b32.xlu1 %v5346_v2, %s9634_s2  ;;  %5489 = vrot.lane.b32.xlu0 %v5345_v19, %s9634_s2 }
 0x72a   :  { %v5123_v28 = vpop.permute.xlu1 %5122  ;;  %v5121_v42 = vpop.permute.xlu0 %5120 }
 0x72b   :  { %5290 = vst.msk [vmem:[#allocation4 + $0xc8] sm:$0xff] %vm5264_vm0, %v5123_v28  ;;  %5289 = vst.msk [vmem:[#allocation4 + $0xc0] sm:$0xff] %vm5264_vm0, %v5121_v42  ;;  %v5352_v28 = vld [vmem:[#allocation3 + $0x112] sm:$0xff]  ;;  %v5351_v42 = vld [vmem:[#allocation3 + $0x10a] sm:$0xff] }
 0x72c   :  { %5495 = vrot.lane.b32.xlu1 %v5348_v24, %s9634_s2  ;;  %5493 = vrot.lane.b32.xlu0 %v5347_v9, %s9634_s2 }
 0x72e   :  { %v5127_v56 = vpop.permute.xlu1 %5126  ;;  %v5125_v17 = vpop.permute.xlu0 %5124 }
 0x72f   :  { %5292 = vst.msk [vmem:[#allocation4 + $0xd8] sm:$0xff] %vm5264_vm0, %v5127_v56  ;;  %5291 = vst.msk [vmem:[#allocation4 + $0xd0] sm:$0xff] %vm5264_vm0, %v5125_v17  ;;  %v5354_v56 = vld [vmem:[#allocation3 + $0x12a] sm:$0xff]  ;;  %v5353_v17 = vld [vmem:[#allocation3 + $0x122] sm:$0xff] }
 0x730   :  { %5499 = vrot.lane.b32.xlu1 %v5350_v1, %s9634_s2  ;;  %5497 = vrot.lane.b32.xlu0 %v5349_v41, %s9634_s2 }
 0x732   :  { %v5131_v2 = vpop.permute.xlu1 %5130  ;;  %v5129_v19 = vpop.permute.xlu0 %5128 }
 0x733   :  { %5294 = vst.msk [vmem:[#allocation4 + $0xe8] sm:$0xff] %vm5264_vm0, %v5131_v2  ;;  %5293 = vst.msk [vmem:[#allocation4 + $0xe0] sm:$0xff] %vm5264_vm0, %v5129_v19  ;;  %v5356_v2 = vld [vmem:[#allocation3 + $0x142] sm:$0xff]  ;;  %v5355_v19 = vld [vmem:[#allocation3 + $0x13a] sm:$0xff] }
 0x734   :  { %5503 = vrot.lane.b32.xlu1 %v5352_v28, %s9634_s2  ;;  %5501 = vrot.lane.b32.xlu0 %v5351_v42, %s9634_s2 }
 0x736   :  { %v5135_v24 = vpop.permute.xlu1 %5134  ;;  %v5133_v9 = vpop.permute.xlu0 %5132 }
 0x737   :  { %5296 = vst.msk [vmem:[#allocation4 + $0xf8] sm:$0xff] %vm5264_vm0, %v5135_v24  ;;  %5295 = vst.msk [vmem:[#allocation4 + $0xf0] sm:$0xff] %vm5264_vm0, %v5133_v9  ;;  %v5358_v24 = vld [vmem:[#allocation3 + $0x15a] sm:$0xff]  ;;  %v5357_v9 = vld [vmem:[#allocation3 + $0x152] sm:$0xff] }
 0x738   :  { %5507 = vrot.lane.b32.xlu1 %v5354_v56, %s9634_s2  ;;  %5505 = vrot.lane.b32.xlu0 %v5353_v17, %s9634_s2 }
 0x73a   :  { %v5139_v1 = vpop.permute.xlu1 %5138  ;;  %v5137_v41 = vpop.permute.xlu0 %5136 }
 0x73b   :  { %5298 = vst.msk [vmem:[#allocation4 + $0x108] sm:$0xff] %vm5264_vm0, %v5139_v1  ;;  %5297 = vst.msk [vmem:[#allocation4 + $0x100] sm:$0xff] %vm5264_vm0, %v5137_v41  ;;  %v5360_v1 = vld [vmem:[#allocation3 + $0x172] sm:$0xff]  ;;  %v5359_v41 = vld [vmem:[#allocation3 + $0x16a] sm:$0xff] }
 0x73c   :  { %5511 = vrot.lane.b32.xlu1 %v5356_v2, %s9634_s2  ;;  %5509 = vrot.lane.b32.xlu0 %v5355_v19, %s9634_s2  ;;  %v5362_v2 = vld [vmem:[#allocation3 + $0x1ba] sm:$0xff]  ;;  %v5361_v19 = vld [vmem:[#allocation3 + $0x1b2] sm:$0xff] }
 0x73e   :  { %v5143_v28 = vpop.permute.xlu1 %5142  ;;  %v5141_v42 = vpop.permute.xlu0 %5140 }
 0x73f   :  { %5300 = vst.msk [vmem:[#allocation4 + $0x118] sm:$0xff] %vm5264_vm0, %v5143_v28  ;;  %5299 = vst.msk [vmem:[#allocation4 + $0x110] sm:$0xff] %vm5264_vm0, %v5141_v42 }
 0x740   :  { %5515 = vrot.lane.b32.xlu1 %v5358_v24, %s9634_s2  ;;  %5513 = vrot.lane.b32.xlu0 %v5357_v9, %s9634_s2 }
 0x742   :  { %v5147_v56 = vpop.permute.xlu1 %5146  ;;  %v5145_v17 = vpop.permute.xlu0 %5144 }
 0x743   :  { %5302 = vst.msk [vmem:[#allocation4 + $0x128] sm:$0xff] %vm5264_vm0, %v5147_v56  ;;  %5301 = vst.msk [vmem:[#allocation4 + $0x120] sm:$0xff] %vm5264_vm0, %v5145_v17  ;;  %v5364_v56 = vld [vmem:[#allocation3 + $0x1d2] sm:$0xff]  ;;  %v5363_v17 = vld [vmem:[#allocation3 + $0x1ca] sm:$0xff] }
 0x744   :  { %5519 = vrot.lane.b32.xlu1 %v5360_v1, %s9634_s2  ;;  %5517 = vrot.lane.b32.xlu0 %v5359_v41, %s9634_s2 }
 0x746   :  { %v5151_v28 = vpop.permute.xlu1 %5150  ;;  %v5149_v42 = vpop.permute.xlu0 %5148 }
 0x747   :  { %5304 = vst.msk [vmem:[#allocation4 + $0x138] sm:$0xff] %vm5264_vm0, %v5151_v28  ;;  %5303 = vst.msk [vmem:[#allocation4 + $0x130] sm:$0xff] %vm5264_vm0, %v5149_v42 }
 0x748   :  { %5523 = vrot.lane.b32.xlu1 %v5362_v2, %s9634_s2  ;;  %5521 = vrot.lane.b32.xlu0 %v5361_v19, %s9634_s2  ;;  %v5366_v2 = vld [vmem:[#allocation3 + $0x1ea] sm:$0xff]  ;;  %v5365_v19 = vld [vmem:[#allocation3 + $0x1e2] sm:$0xff] }
 0x74a   :  { %v5155_v24 = vpop.permute.xlu1 %5154  ;;  %v5153_v9 = vpop.permute.xlu0 %5152 }
 0x74b   :  { %5306 = vst.msk [vmem:[#allocation4 + $0x148] sm:$0xff] %vm5264_vm0, %v5155_v24  ;;  %5305 = vst.msk [vmem:[#allocation4 + $0x140] sm:$0xff] %vm5264_vm0, %v5153_v9  ;;  %v5368_v24 = vld [vmem:[#allocation3 + $0x202] sm:$0xff]  ;;  %v5367_v9 = vld [vmem:[#allocation3 + $0x1fa] sm:$0xff] }
 0x74c   :  { %5527 = vrot.lane.b32.xlu1 %v5364_v56, %s9634_s2  ;;  %5525 = vrot.lane.b32.xlu0 %v5363_v17, %s9634_s2 }
 0x74e   :  { %v5159_v1 = vpop.permute.xlu1 %5158  ;;  %v5157_v41 = vpop.permute.xlu0 %5156 }
 0x74f   :  { %5308 = vst.msk [vmem:[#allocation4 + $0x158] sm:$0xff] %vm5264_vm0, %v5159_v1  ;;  %5307 = vst.msk [vmem:[#allocation4 + $0x150] sm:$0xff] %vm5264_vm0, %v5157_v41  ;;  %v5370_v1 = vld [vmem:[#allocation3 + $0x21a] sm:$0xff]  ;;  %v5369_v41 = vld [vmem:[#allocation3 + $0x212] sm:$0xff] }
 0x750   :  { %5531 = vrot.lane.b32.xlu1 %v5366_v2, %s9634_s2  ;;  %5529 = vrot.lane.b32.xlu0 %v5365_v19, %s9634_s2 }
 0x752   :  { %v5163_v28 = vpop.permute.xlu1 %5162  ;;  %v5161_v42 = vpop.permute.xlu0 %5160 }
 0x753   :  { %5310 = vst.msk [vmem:[#allocation4 + $0x168] sm:$0xff] %vm5264_vm0, %v5163_v28  ;;  %5309 = vst.msk [vmem:[#allocation4 + $0x160] sm:$0xff] %vm5264_vm0, %v5161_v42  ;;  %v5372_v28 = vld [vmem:[#allocation3 + $0x232] sm:$0xff]  ;;  %v5371_v42 = vld [vmem:[#allocation3 + $0x22a] sm:$0xff] }
 0x754   :  { %5535 = vrot.lane.b32.xlu1 %v5368_v24, %s9634_s2  ;;  %5533 = vrot.lane.b32.xlu0 %v5367_v9, %s9634_s2 }
 0x756   :  { %v5167_v56 = vpop.permute.xlu1 %5166  ;;  %v5165_v17 = vpop.permute.xlu0 %5164 }
 0x757   :  { %5312 = vst.msk [vmem:[#allocation4 + $0x178] sm:$0xff] %vm5264_vm0, %v5167_v56  ;;  %5311 = vst.msk [vmem:[#allocation4 + $0x170] sm:$0xff] %vm5264_vm0, %v5165_v17  ;;  %v5374_v56 = vld [vmem:[#allocation3 + $0x24a] sm:$0xff]  ;;  %v5373_v17 = vld [vmem:[#allocation3 + $0x242] sm:$0xff] }
 0x758   :  { %5539 = vrot.lane.b32.xlu1 %v5370_v1, %s9634_s2  ;;  %5537 = vrot.lane.b32.xlu0 %v5369_v41, %s9634_s2 }
 0x75a   :  { %v5171_v2 = vpop.permute.xlu1 %5170  ;;  %v5169_v19 = vpop.permute.xlu0 %5168 }
 0x75b   :  { %5314 = vst.msk [vmem:[#allocation4 + $0x188] sm:$0xff] %vm5264_vm0, %v5171_v2  ;;  %5313 = vst.msk [vmem:[#allocation4 + $0x180] sm:$0xff] %vm5264_vm0, %v5169_v19  ;;  %v5376_v2 = vld [vmem:[#allocation3 + $0x262] sm:$0xff]  ;;  %v5375_v19 = vld [vmem:[#allocation3 + $0x25a] sm:$0xff] }
 0x75c   :  { %5543 = vrot.lane.b32.xlu1 %v5372_v28, %s9634_s2  ;;  %5541 = vrot.lane.b32.xlu0 %v5371_v42, %s9634_s2 }
 0x75e   :  { %v5175_v24 = vpop.permute.xlu1 %5174  ;;  %v5173_v9 = vpop.permute.xlu0 %5172 }
 0x75f   :  { %5316 = vst.msk [vmem:[#allocation4 + $0x198] sm:$0xff] %vm5264_vm0, %v5175_v24  ;;  %5315 = vst.msk [vmem:[#allocation4 + $0x190] sm:$0xff] %vm5264_vm0, %v5173_v9  ;;  %v5378_v24 = vld [vmem:[#allocation3 + $0x27a] sm:$0xff]  ;;  %v5377_v9 = vld [vmem:[#allocation3 + $0x272] sm:$0xff] }
 0x760   :  { %5547 = vrot.lane.b32.xlu1 %v5374_v56, %s9634_s2  ;;  %5545 = vrot.lane.b32.xlu0 %v5373_v17, %s9634_s2 }
 0x762   :  { %v5179_v1 = vpop.permute.xlu1 %5178  ;;  %v5177_v41 = vpop.permute.xlu0 %5176 }
 0x763   :  { %5318 = vst.msk [vmem:[#allocation4 + $0x1a8] sm:$0xff] %vm5264_vm0, %v5179_v1  ;;  %5317 = vst.msk [vmem:[#allocation4 + $0x1a0] sm:$0xff] %vm5264_vm0, %v5177_v41  ;;  %v5380_v1 = vld [vmem:[#allocation3 + $0x292] sm:$0xff]  ;;  %v5379_v41 = vld [vmem:[#allocation3 + $0x28a] sm:$0xff] }
 0x764   :  { %5551 = vrot.lane.b32.xlu1 %v5376_v2, %s9634_s2  ;;  %5549 = vrot.lane.b32.xlu0 %v5375_v19, %s9634_s2 }
 0x766   :  { %v5183_v28 = vpop.permute.xlu1 %5182  ;;  %v5181_v42 = vpop.permute.xlu0 %5180 }
 0x767   :  { %5320 = vst.msk [vmem:[#allocation4 + $0x1b8] sm:$0xff] %vm5264_vm0, %v5183_v28  ;;  %5319 = vst.msk [vmem:[#allocation4 + $0x1b0] sm:$0xff] %vm5264_vm0, %v5181_v42  ;;  %v5382_v28 = vld [vmem:[#allocation3 + $0x2aa] sm:$0xff]  ;;  %v5381_v42 = vld [vmem:[#allocation3 + $0x2a2] sm:$0xff] }
 0x768   :  { %5555 = vrot.lane.b32.xlu1 %v5378_v24, %s9634_s2  ;;  %5553 = vrot.lane.b32.xlu0 %v5377_v9, %s9634_s2 }
 0x76a   :  { %v5187_v56 = vpop.permute.xlu1 %5186  ;;  %v5185_v17 = vpop.permute.xlu0 %5184 }
 0x76b   :  { %5322 = vst.msk [vmem:[#allocation4 + $0x1c8] sm:$0xff] %vm5264_vm0, %v5187_v56  ;;  %5321 = vst.msk [vmem:[#allocation4 + $0x1c0] sm:$0xff] %vm5264_vm0, %v5185_v17  ;;  %v5384_v56 = vld [vmem:[#allocation3 + $0x2c2] sm:$0xff]  ;;  %v5383_v17 = vld [vmem:[#allocation3 + $0x2ba] sm:$0xff] }
 0x76c   :  { %5559 = vrot.lane.b32.xlu1 %v5380_v1, %s9634_s2  ;;  %5557 = vrot.lane.b32.xlu0 %v5379_v41, %s9634_s2 }
 0x76e   :  { %v5191_v2 = vpop.permute.xlu1 %5190  ;;  %v5189_v19 = vpop.permute.xlu0 %5188 }
 0x76f   :  { %5324 = vst.msk [vmem:[#allocation4 + $0x1d8] sm:$0xff] %vm5264_vm0, %v5191_v2  ;;  %5323 = vst.msk [vmem:[#allocation4 + $0x1d0] sm:$0xff] %vm5264_vm0, %v5189_v19  ;;  %v5386_v2 = vld [vmem:[#allocation3 + $0x2da] sm:$0xff]  ;;  %v5385_v19 = vld [vmem:[#allocation3 + $0x2d2] sm:$0xff] }
 0x770   :  { %5563 = vrot.lane.b32.xlu1 %v5382_v28, %s9634_s2  ;;  %5561 = vrot.lane.b32.xlu0 %v5381_v42, %s9634_s2 }
 0x772   :  { %v5195_v24 = vpop.permute.xlu1 %5194  ;;  %v5193_v9 = vpop.permute.xlu0 %5192 }
 0x773   :  { %5326 = vst.msk [vmem:[#allocation4 + $0x1e8] sm:$0xff] %vm5264_vm0, %v5195_v24  ;;  %5325 = vst.msk [vmem:[#allocation4 + $0x1e0] sm:$0xff] %vm5264_vm0, %v5193_v9  ;;  %v5388_v24 = vld [vmem:[#allocation3 + $0x2f2] sm:$0xff]  ;;  %v5387_v9 = vld [vmem:[#allocation3 + $0x2ea] sm:$0xff] }
 0x774   :  { %5567 = vrot.lane.b32.xlu1 %v5384_v56, %s9634_s2  ;;  %5565 = vrot.lane.b32.xlu0 %v5383_v17, %s9634_s2 }
 0x776   :  { %v5199_v1 = vpop.permute.xlu1 %5198  ;;  %v5197_v41 = vpop.permute.xlu0 %5196 }
 0x777   :  { %5328 = vst.msk [vmem:[#allocation4 + $0x1f8] sm:$0xff] %vm5264_vm0, %v5199_v1  ;;  %5327 = vst.msk [vmem:[#allocation4 + $0x1f0] sm:$0xff] %vm5264_vm0, %v5197_v41  ;;  %v5390_v1 = vld [vmem:[#allocation3 + $0x30a] sm:$0xff]  ;;  %v5389_v41 = vld [vmem:[#allocation3 + $0x302] sm:$0xff] }
 0x778   :  { %5571 = vrot.lane.b32.xlu1 %v5386_v2, %s9634_s2  ;;  %5569 = vrot.lane.b32.xlu0 %v5385_v19, %s9634_s2 }
 0x77a   :  { %v5460_v28 = vpop.permute.xlu1 %5459  ;;  %v5458_v42 = vpop.permute.xlu0 %5457 }
 0x77b   :  { %5651 = vst.msk [vmem:[#allocation4 + $0x8] sm:$0xff] %vm5649_vm1, %v5460_v28  ;;  %5650 = vst.msk [vmem:[#allocation4] sm:$0xff] %vm5649_vm1, %v5458_v42  ;;  %v5392_v28 = vld [vmem:[#allocation3 + $0x322] sm:$0xff]  ;;  %v5391_v42 = vld [vmem:[#allocation3 + $0x31a] sm:$0xff] }
 0x77c   :  { %5575 = vrot.lane.b32.xlu1 %v5388_v24, %s9634_s2  ;;  %5573 = vrot.lane.b32.xlu0 %v5387_v9, %s9634_s2 }
 0x77e   :  { %v5464_v56 = vpop.permute.xlu1 %5463  ;;  %v5462_v17 = vpop.permute.xlu0 %5461 }
 0x77f   :  { %5653 = vst.msk [vmem:[#allocation4 + $0x18] sm:$0xff] %vm5649_vm1, %v5464_v56  ;;  %5652 = vst.msk [vmem:[#allocation4 + $0x10] sm:$0xff] %vm5649_vm1, %v5462_v17 }
 0x780   :  { %5579 = vrot.lane.b32.xlu1 %v5390_v1, %s9634_s2  ;;  %5577 = vrot.lane.b32.xlu0 %v5389_v41, %s9634_s2 }
 0x782   :  { %v5468_v2 = vpop.permute.xlu1 %5467  ;;  %v5466_v19 = vpop.permute.xlu0 %5465 }
 0x783   :  { %5655 = vst.msk [vmem:[#allocation4 + $0x28] sm:$0xff] %vm5649_vm1, %v5468_v2  ;;  %5654 = vst.msk [vmem:[#allocation4 + $0x20] sm:$0xff] %vm5649_vm1, %v5466_v19 }
 0x784   :  { %5583 = vrot.lane.b32.xlu1 %v5392_v28, %s9634_s2  ;;  %5581 = vrot.lane.b32.xlu0 %v5391_v42, %s9634_s2 }
 0x786   :  { %v5472_v24 = vpop.permute.xlu1 %5471  ;;  %v5470_v9 = vpop.permute.xlu0 %5469 }
 0x787   :  { %5657 = vst.msk [vmem:[#allocation4 + $0x38] sm:$0xff] %vm5649_vm1, %v5472_v24  ;;  %5656 = vst.msk [vmem:[#allocation4 + $0x30] sm:$0xff] %vm5649_vm1, %v5470_v9 }
 0x788   :  { %5844 = vrot.lane.b32.xlu1 %v13280_v44, %s9626_s10  ;;  %5842 = vrot.lane.b32.xlu0 %v13282_v35, %s9626_s10 }
 0x78a   :  { %v5476_v56 = vpop.permute.xlu1 %5475  ;;  %v5474_v17 = vpop.permute.xlu0 %5473 }
 0x78b   :  { %5659 = vst.msk [vmem:[#allocation4 + $0x48] sm:$0xff] %vm5649_vm1, %v5476_v56  ;;  %5658 = vst.msk [vmem:[#allocation4 + $0x40] sm:$0xff] %vm5649_vm1, %v5474_v17 }
 0x78c   :  { %5848 = vrot.lane.b32.xlu1 %v13288_v46, %s9626_s10  ;;  %5846 = vrot.lane.b32.xlu0 %v13290_v4, %s9626_s10 }
 0x78e   :  { %v5480_v1 = vpop.permute.xlu1 %5479  ;;  %v5478_v41 = vpop.permute.xlu0 %5477 }
 0x78f   :  { %5661 = vst.msk [vmem:[#allocation4 + $0x58] sm:$0xff] %vm5649_vm1, %v5480_v1  ;;  %5660 = vst.msk [vmem:[#allocation4 + $0x50] sm:$0xff] %vm5649_vm1, %v5478_v41  ;;  %v16776_v1 = vld [vmem:[#allocation24_spill] sm:$0xff]  ;;  %v16777_v41 = vld [vmem:[#allocation18_spill] sm:$0xff] }
 0x790   :  { %5852 = vrot.lane.b32.xlu1 %v13296_v59, %s9626_s10  ;;  %5850 = vrot.lane.b32.xlu0 %v13298_v47, %s9626_s10 }
 0x792   :  { %v5484_v44 = vpop.permute.xlu1 %5483  ;;  %v5482_v35 = vpop.permute.xlu0 %5481 }
 0x793   :  { %5663 = vst.msk [vmem:[#allocation4 + $0x68] sm:$0xff] %vm5649_vm1, %v5484_v44  ;;  %5662 = vst.msk [vmem:[#allocation4 + $0x60] sm:$0xff] %vm5649_vm1, %v5482_v35 }
 0x794   :  { %5856 = vrot.lane.b32.xlu1 %v13304_v31, %s9626_s10  ;;  %5854 = vrot.lane.b32.xlu0 %v13306_v13, %s9626_s10 }
 0x796   :  { %v5488_v46 = vpop.permute.xlu1 %5487  ;;  %v5486_v4 = vpop.permute.xlu0 %5485 }
 0x797   :  { %5665 = vst.msk [vmem:[#allocation4 + $0x78] sm:$0xff] %vm5649_vm1, %v5488_v46  ;;  %5664 = vst.msk [vmem:[#allocation4 + $0x70] sm:$0xff] %vm5649_vm1, %v5486_v4  ;;  %v5777_v46 = vld [vmem:[#allocation3 + $0x338] sm:$0xff]  ;;  %v5776_v4 = vld [vmem:[#allocation3 + $0x330] sm:$0xff] }
 0x798   :  { %5860 = vrot.lane.b32.xlu1 %v13314_v20, %s9626_s10  ;;  %5858 = vrot.lane.b32.xlu0 %v13316_v11, %s9626_s10 }
 0x79a   :  { %v5492_v59 = vpop.permute.xlu1 %5491  ;;  %v5490_v47 = vpop.permute.xlu0 %5489 }
 0x79b   :  { %5667 = vst.msk [vmem:[#allocation4 + $0x88] sm:$0xff] %vm5649_vm1, %v5492_v59  ;;  %5666 = vst.msk [vmem:[#allocation4 + $0x80] sm:$0xff] %vm5649_vm1, %v5490_v47 }
 0x79c   :  { %5864 = vrot.lane.b32.xlu1 %v13322_v16, %s9626_s10  ;;  %5862 = vrot.lane.b32.xlu0 %v13326_v60, %s9626_s10 }
 0x79e   :  { %v5496_v31 = vpop.permute.xlu1 %5495  ;;  %v5494_v13 = vpop.permute.xlu0 %5493 }
 0x79f   :  { %5669 = vst.msk [vmem:[#allocation4 + $0x98] sm:$0xff] %vm5649_vm1, %v5496_v31  ;;  %5668 = vst.msk [vmem:[#allocation4 + $0x90] sm:$0xff] %vm5649_vm1, %v5494_v13  ;;  %v6100_v31 = vld [vmem:[#allocation3 + $0x21] sm:$0xff]  ;;  %v6099_v13 = vld [vmem:[#allocation3 + $0x19] sm:$0xff] }
 0x7a0   :  { %5868 = vrot.lane.b32.xlu1 %v13330_v61, %s9626_s10  ;;  %5866 = vrot.lane.b32.xlu0 %v13332_v22, %s9626_s10 }
 0x7a2   :  { %v5500_v20 = vpop.permute.xlu1 %5499  ;;  %v5498_v11 = vpop.permute.xlu0 %5497 }
 0x7a3   :  { %5671 = vst.msk [vmem:[#allocation4 + $0xa8] sm:$0xff] %vm5649_vm1, %v5500_v20  ;;  %5670 = vst.msk [vmem:[#allocation4 + $0xa0] sm:$0xff] %vm5649_vm1, %v5498_v11 }
 0x7a4   :  { %5872 = vrot.lane.b32.xlu1 %v13340_v25, %s9626_s10  ;;  %5870 = vrot.lane.b32.xlu0 %v13342_v18, %s9626_s10 }
 0x7a6   :  { %v5504_v16 = vpop.permute.xlu1 %5503  ;;  %v5502_v60 = vpop.permute.xlu0 %5501 }
 0x7a7   :  { %5673 = vst.msk [vmem:[#allocation4 + $0xb8] sm:$0xff] %vm5649_vm1, %v5504_v16  ;;  %5672 = vst.msk [vmem:[#allocation4 + $0xb0] sm:$0xff] %vm5649_vm1, %v5502_v60  ;;  %v13898_v16 = vld [vmem:[#allocation3 + $0x39] sm:$0xff]  ;;  %v13900_v60 = vld [vmem:[#allocation3 + $0x31] sm:$0xff] }
 0x7a8   :  { %5876 = vrot.lane.b32.xlu1 %v13348_v33, %s9626_s10  ;;  %5874 = vrot.lane.b32.xlu0 %v13352_v32, %s9626_s10 }
 0x7aa   :  { %v5508_v61 = vpop.permute.xlu1 %5507  ;;  %v5506_v22 = vpop.permute.xlu0 %5505 }
 0x7ab   :  { %5675 = vst.msk [vmem:[#allocation4 + $0xc8] sm:$0xff] %vm5649_vm1, %v5508_v61  ;;  %5674 = vst.msk [vmem:[#allocation4 + $0xc0] sm:$0xff] %vm5649_vm1, %v5506_v22 }
 0x7ac   :  { %5880 = vrot.lane.b32.xlu1 %v13356_v49, %s9626_s10  ;;  %5878 = vrot.lane.b32.xlu0 %v13358_v10, %s9626_s10 }
 0x7ae   :  { %v5512_v25 = vpop.permute.xlu1 %5511  ;;  %v5510_v18 = vpop.permute.xlu0 %5509 }
 0x7af   :  { %5677 = vst.msk [vmem:[#allocation4 + $0xd8] sm:$0xff] %vm5649_vm1, %v5512_v25  ;;  %5676 = vst.msk [vmem:[#allocation4 + $0xd0] sm:$0xff] %vm5649_vm1, %v5510_v18  ;;  %v13908_v25 = vld [vmem:[#allocation3 + $0x51] sm:$0xff]  ;;  %v13910_v18 = vld [vmem:[#allocation3 + $0x49] sm:$0xff] }
 0x7b0   :  { %5884 = vrot.lane.b32.xlu1 %v13366_v55, %s9626_s10  ;;  %5882 = vrot.lane.b32.xlu0 %v13368_v51, %s9626_s10 }
 0x7b2   :  { %v5516_v33 = vpop.permute.xlu1 %5515  ;;  %v5514_v32 = vpop.permute.xlu0 %5513 }
 0x7b3   :  { %5679 = vst.msk [vmem:[#allocation4 + $0xe8] sm:$0xff] %vm5649_vm1, %v5516_v33  ;;  %5678 = vst.msk [vmem:[#allocation4 + $0xe0] sm:$0xff] %vm5649_vm1, %v5514_v32 }
 0x7b4   :  { %5888 = vrot.lane.b32.xlu1 %v13374_v48, %s9626_s10  ;;  %5886 = vrot.lane.b32.xlu0 %v13378_v45, %s9626_s10 }
 0x7b6   :  { %v5520_v49 = vpop.permute.xlu1 %5519  ;;  %v5518_v10 = vpop.permute.xlu0 %5517 }
 0x7b7   :  { %5681 = vst.msk [vmem:[#allocation4 + $0xf8] sm:$0xff] %vm5649_vm1, %v5520_v49  ;;  %5680 = vst.msk [vmem:[#allocation4 + $0xf0] sm:$0xff] %vm5649_vm1, %v5518_v10  ;;  %v13918_v49 = vld [vmem:[#allocation3 + $0x69] sm:$0xff]  ;;  %v13920_v10 = vld [vmem:[#allocation3 + $0x61] sm:$0xff] }
 0x7b8   :  { %5892 = vrot.lane.b32.xlu1 %v13382_v36, %s9626_s10  ;;  %5890 = vrot.lane.b32.xlu0 %v13384_v54, %s9626_s10 }
 0x7ba   :  { %v5524_v55 = vpop.permute.xlu1 %5523  ;;  %v5522_v51 = vpop.permute.xlu0 %5521 }
 0x7bb   :  { %5683 = vst.msk [vmem:[#allocation4 + $0x108] sm:$0xff] %vm5649_vm1, %v5524_v55  ;;  %5682 = vst.msk [vmem:[#allocation4 + $0x100] sm:$0xff] %vm5649_vm1, %v5522_v51 }
 0x7bc   :  { %5896 = vrot.lane.b32.xlu1 %v13392_v8, %s9626_s10  ;;  %5894 = vrot.lane.b32.xlu0 %v13394_v21, %s9626_s10  ;;  %v5745_v8 = vld [vmem:[#allocation3 + $0x188] sm:$0xff]  ;;  %v5744_v21 = vld [vmem:[#allocation3 + $0x180] sm:$0xff] }
 0x7be   :  { %v5528_v48 = vpop.permute.xlu1 %5527  ;;  %v5526_v45 = vpop.permute.xlu0 %5525 }
 0x7bf   :  { %5685 = vst.msk [vmem:[#allocation4 + $0x118] sm:$0xff] %vm5649_vm1, %v5528_v48  ;;  %5684 = vst.msk [vmem:[#allocation4 + $0x110] sm:$0xff] %vm5649_vm1, %v5526_v45  ;;  %v13928_v48 = vld [vmem:[#allocation3 + $0x81] sm:$0xff]  ;;  %v13930_v45 = vld [vmem:[#allocation3 + $0x79] sm:$0xff] }
 0x7c0   :  { %5900 = vrot.lane.b32.xlu1 %v13400_v37, %s9626_s10  ;;  %5898 = vrot.lane.b32.xlu0 %v13404_v3, %s9626_s10 }
 0x7c2   :  { %v5532_v36 = vpop.permute.xlu1 %5531  ;;  %v5530_v54 = vpop.permute.xlu0 %5529 }
 0x7c3   :  { %5687 = vst.msk [vmem:[#allocation4 + $0x128] sm:$0xff] %vm5649_vm1, %v5532_v36  ;;  %5686 = vst.msk [vmem:[#allocation4 + $0x120] sm:$0xff] %vm5649_vm1, %v5530_v54 }
 0x7c4   :  { %5904 = vrot.lane.b32.xlu1 %v5745_v8, %s9626_s10  ;;  %5902 = vrot.lane.b32.xlu0 %v5744_v21, %s9626_s10  ;;  %v13938_v8 = vld [vmem:[#allocation3 + $0x99] sm:$0xff]  ;;  %v13940_v21 = vld [vmem:[#allocation3 + $0x91] sm:$0xff] }
 0x7c6   :  { %v5536_v2 = vpop.permute.xlu1 %5535  ;;  %v5534_v19 = vpop.permute.xlu0 %5533 }
 0x7c7   :  { %5689 = vst.msk [vmem:[#allocation4 + $0x138] sm:$0xff] %vm5649_vm1, %v5536_v2  ;;  %5688 = vst.msk [vmem:[#allocation4 + $0x130] sm:$0xff] %vm5649_vm1, %v5534_v19 }
 0x7c8   :  { %5908 = vrot.lane.b32.xlu1 %v13408_v29, %s9626_s10  ;;  %5906 = vrot.lane.b32.xlu0 %v13414_v15, %s9626_s10 }
 0x7ca   :  { %v5540_v37 = vpop.permute.xlu1 %5539  ;;  %v5538_v3 = vpop.permute.xlu0 %5537 }
 0x7cb   :  { %5691 = vst.msk [vmem:[#allocation4 + $0x148] sm:$0xff] %vm5649_vm1, %v5540_v37  ;;  %5690 = vst.msk [vmem:[#allocation4 + $0x140] sm:$0xff] %vm5649_vm1, %v5538_v3  ;;  %v13948_v37 = vld [vmem:[#allocation3 + $0xb1] sm:$0xff]  ;;  %v13950_v3 = vld [vmem:[#allocation3 + $0xa9] sm:$0xff] }
 0x7cc   :  { %5912 = vrot.lane.b32.xlu1 %v13418_v34, %s9626_s10  ;;  %5910 = vrot.lane.b32.xlu0 %v13420_v27, %s9626_s10 }
 0x7ce   :  { %v5544_v28 = vpop.permute.xlu1 %5543  ;;  %v5542_v42 = vpop.permute.xlu0 %5541 }
 0x7cf   :  { %5693 = vst.msk [vmem:[#allocation4 + $0x158] sm:$0xff] %vm5649_vm1, %v5544_v28  ;;  %5692 = vst.msk [vmem:[#allocation4 + $0x150] sm:$0xff] %vm5649_vm1, %v5542_v42 }
 0x7d0   :  { %5916 = vrot.lane.b32.xlu1 %v13426_v63, %s9626_s10  ;;  %5914 = vrot.lane.b32.xlu0 %v13428_v0, %s9626_s10 }
 0x7d2   :  { %v5548_v29 = vpop.permute.xlu1 %5547  ;;  %v5546_v15 = vpop.permute.xlu0 %5545 }
 0x7d3   :  { %5695 = vst.msk [vmem:[#allocation4 + $0x168] sm:$0xff] %vm5649_vm1, %v5548_v29  ;;  %5694 = vst.msk [vmem:[#allocation4 + $0x160] sm:$0xff] %vm5649_vm1, %v5546_v15  ;;  %v13958_v29 = vld [vmem:[#allocation3 + $0xc9] sm:$0xff]  ;;  %v13960_v15 = vld [vmem:[#allocation3 + $0xc1] sm:$0xff] }
 0x7d4   :  { %5920 = vrot.lane.b32.xlu1 %v13434_v62, %s9626_s10  ;;  %5918 = vrot.lane.b32.xlu0 %v13436_v57, %s9626_s10 }
 0x7d6   :  { %v5552_v34 = vpop.permute.xlu1 %5551  ;;  %v5550_v27 = vpop.permute.xlu0 %5549 }
 0x7d7   :  { %5697 = vst.msk [vmem:[#allocation4 + $0x178] sm:$0xff] %vm5649_vm1, %v5552_v34  ;;  %5696 = vst.msk [vmem:[#allocation4 + $0x170] sm:$0xff] %vm5649_vm1, %v5550_v27 }
 0x7d8   :  { %5924 = vrot.lane.b32.xlu1 %v13444_v58, %s9626_s10  ;;  %5922 = vrot.lane.b32.xlu0 %v13449_v23, %s9626_s10 }
 0x7da   :  { %v5556_v63 = vpop.permute.xlu1 %5555  ;;  %v5554_v0 = vpop.permute.xlu0 %5553 }
 0x7db   :  { %5699 = vst.msk [vmem:[#allocation4 + $0x188] sm:$0xff] %vm5649_vm1, %v5556_v63  ;;  %5698 = vst.msk [vmem:[#allocation4 + $0x180] sm:$0xff] %vm5649_vm1, %v5554_v0  ;;  %v13968_v63 = vld [vmem:[#allocation3 + $0xe1] sm:$0xff]  ;;  %v13970_v0 = vld [vmem:[#allocation3 + $0xd9] sm:$0xff] }
 0x7dc   :  { %5928 = vrot.lane.b32.xlu1 %v13453_v30, %s9626_s10  ;;  %5926 = vrot.lane.b32.xlu0 %v13455_v50, %s9626_s10 }
 0x7de   :  { %v5560_v62 = vpop.permute.xlu1 %5559  ;;  %v5558_v57 = vpop.permute.xlu0 %5557 }
 0x7df   :  { %5701 = vst.msk [vmem:[#allocation4 + $0x198] sm:$0xff] %vm5649_vm1, %v5560_v62  ;;  %5700 = vst.msk [vmem:[#allocation4 + $0x190] sm:$0xff] %vm5649_vm1, %v5558_v57 }
 0x7e0   :  { %5932 = vrot.lane.b32.xlu1 %v13461_v39, %s9626_s10  ;;  %5930 = vrot.lane.b32.xlu0 %v13468_v6, %s9626_s10 }
 0x7e2   :  { %v5564_v58 = vpop.permute.xlu1 %5563  ;;  %v5562_v23 = vpop.permute.xlu0 %5561 }
 0x7e3   :  { %5703 = vst.msk [vmem:[#allocation4 + $0x1a8] sm:$0xff] %vm5649_vm1, %v5564_v58  ;;  %5702 = vst.msk [vmem:[#allocation4 + $0x1a0] sm:$0xff] %vm5649_vm1, %v5562_v23  ;;  %v13978_v58 = vld [vmem:[#allocation3 + $0xf9] sm:$0xff]  ;;  %v13980_v23 = vld [vmem:[#allocation3 + $0xf1] sm:$0xff] }
 0x7e4   :  { %5936 = vrot.lane.b32.xlu1 %v13472_v26, %s9626_s10  ;;  %5934 = vrot.lane.b32.xlu0 %v13474_v7, %s9626_s10 }
 0x7e6   :  { %v5568_v30 = vpop.permute.xlu1 %5567  ;;  %v5566_v50 = vpop.permute.xlu0 %5565 }
 0x7e7   :  { %5705 = vst.msk [vmem:[#allocation4 + $0x1b8] sm:$0xff] %vm5649_vm1, %v5568_v30  ;;  %5704 = vst.msk [vmem:[#allocation4 + $0x1b0] sm:$0xff] %vm5649_vm1, %v5566_v50 }
 0x7e8   :  { %5940 = vrot.lane.b32.xlu1 %v13480_v43, %s9626_s10  ;;  %5938 = vrot.lane.b32.xlu0 %v13482_v5, %s9626_s10 }
 0x7ea   :  { %v5572_v39 = vpop.permute.xlu1 %5571  ;;  %v5570_v6 = vpop.permute.xlu0 %5569 }
 0x7eb   :  { %5707 = vst.msk [vmem:[#allocation4 + $0x1c8] sm:$0xff] %vm5649_vm1, %v5572_v39  ;;  %5706 = vst.msk [vmem:[#allocation4 + $0x1c0] sm:$0xff] %vm5649_vm1, %v5570_v6  ;;  %v13988_v39 = vld [vmem:[#allocation3 + $0x111] sm:$0xff]  ;;  %v13990_v6 = vld [vmem:[#allocation3 + $0x109] sm:$0xff] }
 0x7ec   :  { %5944 = vrot.lane.b32.xlu1 %v13488_v53, %s9626_s10  ;;  %5942 = vrot.lane.b32.xlu0 %v13494_v14, %s9626_s10 }
 0x7ee   :  { %v5576_v26 = vpop.permute.xlu1 %5575  ;;  %v5574_v7 = vpop.permute.xlu0 %5573 }
 0x7ef   :  { %5709 = vst.msk [vmem:[#allocation4 + $0x1d8] sm:$0xff] %vm5649_vm1, %v5576_v26  ;;  %5708 = vst.msk [vmem:[#allocation4 + $0x1d0] sm:$0xff] %vm5649_vm1, %v5574_v7 }
 0x7f0   :  { %5948 = vrot.lane.b32.xlu1 %v13498_v40, %s9626_s10  ;;  %5946 = vrot.lane.b32.xlu0 %v13500_v38, %s9626_s10  ;;  %v16772_v40 = vld [vmem:[#allocation20_spill] sm:$0xff]  ;;  %v16773_v38 = vld [vmem:[#allocation21_spill] sm:$0xff] }
 0x7f2   :  { %v5580_v43 = vpop.permute.xlu1 %5579  ;;  %v5578_v5 = vpop.permute.xlu0 %5577 }
 0x7f3   :  { %5711 = vst.msk [vmem:[#allocation4 + $0x1e8] sm:$0xff] %vm5649_vm1, %v5580_v43  ;;  %5710 = vst.msk [vmem:[#allocation4 + $0x1e0] sm:$0xff] %vm5649_vm1, %v5578_v5  ;;  %v6484_v43 = vld [vmem:[#allocation3 + $0x1a] sm:$0xff] }
 0x7f4   :  { %5952 = vrot.lane.b32.xlu1 %v13506_v12, %s9626_s10  ;;  %5950 = vrot.lane.b32.xlu0 %v13508_v52, %s9626_s10  ;;  %v16774_v12 = vld [vmem:[#allocation22_spill] sm:$0xff]  ;;  %v16775_v52 = vld [vmem:[#allocation23_spill] sm:$0xff] }
 0x7f5   :  { %v13998_v5 = vld [vmem:[#allocation3 + $0x121] sm:$0xff] }
 0x7f6   :  { %v5584_v53 = vpop.permute.xlu1 %5583  ;;  %v5582_v14 = vpop.permute.xlu0 %5581 }
 0x7f7   :  { %5713 = vst.msk [vmem:[#allocation4 + $0x1f8] sm:$0xff] %vm5649_vm1, %v5584_v53  ;;  %5712 = vst.msk [vmem:[#allocation4 + $0x1f0] sm:$0xff] %vm5649_vm1, %v5582_v14 }
 0x7f8   :  { %5956 = vrot.lane.b32.xlu1 %v16772_v40, %s9626_s10  ;;  %5954 = vrot.lane.b32.xlu0 %v16773_v38, %s9626_s10  ;;  %v6486_v40 = vld [vmem:[#allocation3 + $0x32] sm:$0xff]  ;;  %v6485_v38 = vld [vmem:[#allocation3 + $0x22] sm:$0xff] }
 0x7fa   :  { %v5845_v24 = vpop.permute.xlu1 %5844  ;;  %v5843_v9 = vpop.permute.xlu0 %5842 }
 0x7fb   :  { %6036 = vst.msk [vmem:[#allocation4 + $0x8] sm:$0xff] %vm6034_vm2, %v5845_v24  ;;  %6035 = vst.msk [vmem:[#allocation4] sm:$0xff] %vm6034_vm2, %v5843_v9 }
 0x7fc   :  { %5960 = vrot.lane.b32.xlu1 %v16774_v12, %s9626_s10  ;;  %5958 = vrot.lane.b32.xlu0 %v16775_v52, %s9626_s10  ;;  %v6870_v12 = vld [vmem:[#allocation3 + $0x30] sm:$0xff]  ;;  %v6487_v52 = vld [vmem:[#allocation3 + $0x3a] sm:$0xff] }
 0x7fe   :  { %v5849_v56 = vpop.permute.xlu1 %5848  ;;  %v5847_v17 = vpop.permute.xlu0 %5846 }
 0x7ff   :  { %6038 = vst.msk [vmem:[#allocation4 + $0x18] sm:$0xff] %vm6034_vm2, %v5849_v56  ;;  %6037 = vst.msk [vmem:[#allocation4 + $0x10] sm:$0xff] %vm6034_vm2, %v5847_v17  ;;  %v6872_v56 = vld [vmem:[#allocation3 + $0x48] sm:$0xff]  ;;  %v6871_v17 = vld [vmem:[#allocation3 + $0x38] sm:$0xff] }
 0x800   :  { %5964 = vrot.lane.b32.xlu1 %v16776_v1, %s9626_s10  ;;  %5962 = vrot.lane.b32.xlu0 %v16777_v41, %s9626_s10  ;;  %v9615_v1 = vld [vmem:[%s16534_s4] sm:$0xff]  }
 0x801   :  { %9517 = vmatprep.subr.bf16.mxu1 %v9615_v1 }
 0x802   :  { %v5853_v44 = vpop.permute.xlu1 %5852  ;;  %v5851_v35 = vpop.permute.xlu0 %5850  ;;  %9518 = vmatpush3.bf16.msra.mxu1 %v9615_v1  ;;  %v6495_v1 = vld [vmem:[#allocation3 + $0x9a] sm:$0xff] }
 0x803   :  { %6040 = vst.msk [vmem:[#allocation4 + $0x28] sm:$0xff] %vm6034_vm2, %v5853_v44  ;;  %6039 = vst.msk [vmem:[#allocation4 + $0x20] sm:$0xff] %vm6034_vm2, %v5851_v35  ;;  %v9616_v35 = vld [vmem:[%s16534_s4 + $0x8] sm:$0xff]  }
 0x804   :  { %5968 = vrot.lane.b32.xlu1 %v5777_v46, %s9626_s10  ;;  %5966 = vrot.lane.b32.xlu0 %v5776_v4, %s9626_s10  ;;  %s9636_s10 = smov 40  }
 0x805   :  { %9519 = vmatprep.subr.bf16.mxu1 %v9616_v35 }
 0x806   :  { %v5857_v59 = vpop.permute.xlu1 %5856  ;;  %v5855_v47 = vpop.permute.xlu0 %5854  ;;  %9520 = vmatpush3.bf16.msra.mxu1 %v9616_v35  ;;  %v6880_v35 = vld [vmem:[#allocation3 + $0xa8] sm:$0xff] }
 0x807   :  { %6042 = vst.msk [vmem:[#allocation4 + $0x38] sm:$0xff] %vm6034_vm2, %v5857_v59  ;;  %6041 = vst.msk [vmem:[#allocation4 + $0x30] sm:$0xff] %vm6034_vm2, %v5855_v47  ;;  %v6873_v59 = vld [vmem:[#allocation3 + $0x50] sm:$0xff] }
 0x808   :  { %6229 = vrot.lane.b32.xlu1 %v6100_v31, %s9635_s3  ;;  %6227 = vrot.lane.b32.xlu0 %v6099_v13, %s9635_s3  ;;  %v9617_v47 = vld [vmem:[%s16534_s4 + $0x10] sm:$0xff]  }
 0x809   :  { %9521 = vmatprep.subr.bf16.mxu1 %v9617_v47 }
 0x80a   :  { %v5861_v20 = vpop.permute.xlu1 %5860  ;;  %v5859_v11 = vpop.permute.xlu0 %5858  ;;  %9522 = vmatpush3.bf16.msra.mxu1 %v9617_v47  ;;  %v6881_v47 = vld [vmem:[#allocation3 + $0xb0] sm:$0xff] }
 0x80b   :  { %6044 = vst.msk [vmem:[#allocation4 + $0x48] sm:$0xff] %vm6034_vm2, %v5861_v20  ;;  %6043 = vst.msk [vmem:[#allocation4 + $0x40] sm:$0xff] %vm6034_vm2, %v5859_v11  ;;  %v9618_v20 = vld [vmem:[%s16534_s4 + $0x18] sm:$0xff]  }
 0x80c   :  { %6233 = vrot.lane.b32.xlu1 %v13898_v16, %s9635_s3  ;;  %6231 = vrot.lane.b32.xlu0 %v13900_v60, %s9635_s3 }
 0x80d   :  { %9523 = vmatprep.subr.bf16.mxu1 %v9618_v20 }
 0x80e   :  { %v5865_v61 = vpop.permute.xlu1 %5864  ;;  %v5863_v22 = vpop.permute.xlu0 %5862  ;;  %9524 = vmatpush3.bf16.msra.mxu1 %v9618_v20 }
 0x80f   :  { %6046 = vst.msk [vmem:[#allocation4 + $0x58] sm:$0xff] %vm6034_vm2, %v5865_v61  ;;  %6045 = vst.msk [vmem:[#allocation4 + $0x50] sm:$0xff] %vm6034_vm2, %v5863_v22 }
 0x810   :  { %6237 = vrot.lane.b32.xlu1 %v13908_v25, %s9635_s3  ;;  %6235 = vrot.lane.b32.xlu0 %v13910_v18, %s9635_s3 }
 0x812   :  { %v5869_v33 = vpop.permute.xlu1 %5868  ;;  %v5867_v32 = vpop.permute.xlu0 %5866 }
 0x813   :  { %6048 = vst.msk [vmem:[#allocation4 + $0x68] sm:$0xff] %vm6034_vm2, %v5869_v33  ;;  %6047 = vst.msk [vmem:[#allocation4 + $0x60] sm:$0xff] %vm6034_vm2, %v5867_v32  ;;  %v7642_v33 = vld [vmem:[#allocation3 + $0x4a] sm:$0xff] }
 0x814   :  { %6241 = vrot.lane.b32.xlu1 %v13918_v49, %s9635_s3  ;;  %6239 = vrot.lane.b32.xlu0 %v13920_v10, %s9635_s3 }
 0x816   :  { %v5873_v55 = vpop.permute.xlu1 %5872  ;;  %v5871_v51 = vpop.permute.xlu0 %5870 }
 0x817   :  { %6050 = vst.msk [vmem:[#allocation4 + $0x78] sm:$0xff] %vm6034_vm2, %v5873_v55  ;;  %6049 = vst.msk [vmem:[#allocation4 + $0x70] sm:$0xff] %vm6034_vm2, %v5871_v51  ;;  %v7643_v55 = vld [vmem:[#allocation3 + $0x52] sm:$0xff] }
 0x818   :  { %6245 = vrot.lane.b32.xlu1 %v13928_v48, %s9635_s3  ;;  %6243 = vrot.lane.b32.xlu0 %v13930_v45, %s9635_s3 }
 0x81a   :  { %v5877_v36 = vpop.permute.xlu1 %5876  ;;  %v5875_v54 = vpop.permute.xlu0 %5874 }
 0x81b   :  { %6052 = vst.msk [vmem:[#allocation4 + $0x88] sm:$0xff] %vm6034_vm2, %v5877_v36  ;;  %6051 = vst.msk [vmem:[#allocation4 + $0x80] sm:$0xff] %vm6034_vm2, %v5875_v54  ;;  %v6490_v54 = vld [vmem:[#allocation3 + $0x62] sm:$0xff] }
 0x81c   :  { %6249 = vrot.lane.b32.xlu1 %v13938_v8, %s9635_s3  ;;  %6247 = vrot.lane.b32.xlu0 %v13940_v21, %s9635_s3 }
 0x81e   :  { %v5881_v2 = vpop.permute.xlu1 %5880  ;;  %v5879_v19 = vpop.permute.xlu0 %5878 }
 0x81f   :  { %6054 = vst.msk [vmem:[#allocation4 + $0x98] sm:$0xff] %vm6034_vm2, %v5881_v2  ;;  %6053 = vst.msk [vmem:[#allocation4 + $0x90] sm:$0xff] %vm6034_vm2, %v5879_v19 }
 0x820   :  { %6253 = vrot.lane.b32.xlu1 %v13948_v37, %s9635_s3  ;;  %6251 = vrot.lane.b32.xlu0 %v13950_v3, %s9635_s3 }
 0x822   :  { %v5885_v28 = vpop.permute.xlu1 %5884  ;;  %v5883_v42 = vpop.permute.xlu0 %5882 }
 0x823   :  { %6056 = vst.msk [vmem:[#allocation4 + $0xa8] sm:$0xff] %vm6034_vm2, %v5885_v28  ;;  %6055 = vst.msk [vmem:[#allocation4 + $0xa0] sm:$0xff] %vm6034_vm2, %v5883_v42  ;;  %v6874_v28 = vld [vmem:[#allocation3 + $0x60] sm:$0xff]  ;;  %v6491_v42 = vld [vmem:[#allocation3 + $0x6a] sm:$0xff] }
 0x824   :  { %6257 = vrot.lane.b32.xlu1 %v13958_v29, %s9635_s3  ;;  %6255 = vrot.lane.b32.xlu0 %v13960_v15, %s9635_s3 }
 0x826   :  { %v5889_v34 = vpop.permute.xlu1 %5888  ;;  %v5887_v27 = vpop.permute.xlu0 %5886 }
 0x827   :  { %6058 = vst.msk [vmem:[#allocation4 + $0xb8] sm:$0xff] %vm6034_vm2, %v5889_v34  ;;  %6057 = vst.msk [vmem:[#allocation4 + $0xb0] sm:$0xff] %vm6034_vm2, %v5887_v27 }
 0x828   :  { %6261 = vrot.lane.b32.xlu1 %v13968_v63, %s9635_s3  ;;  %6259 = vrot.lane.b32.xlu0 %v13970_v0, %s9635_s3 }
 0x82a   :  { %v5893_v62 = vpop.permute.xlu1 %5892  ;;  %v5891_v57 = vpop.permute.xlu0 %5890 }
 0x82b   :  { %6060 = vst.msk [vmem:[#allocation4 + $0xc8] sm:$0xff] %vm6034_vm2, %v5893_v62  ;;  %6059 = vst.msk [vmem:[#allocation4 + $0xc0] sm:$0xff] %vm6034_vm2, %v5891_v57  ;;  %v6876_v62 = vld [vmem:[#allocation3 + $0x78] sm:$0xff]  ;;  %v6875_v57 = vld [vmem:[#allocation3 + $0x68] sm:$0xff] }
 0x82c   :  { %6265 = vrot.lane.b32.xlu1 %v13978_v58, %s9635_s3  ;;  %6263 = vrot.lane.b32.xlu0 %v13980_v23, %s9635_s3 }
 0x82e   :  { %v5897_v30 = vpop.permute.xlu1 %5896  ;;  %v5895_v50 = vpop.permute.xlu0 %5894 }
 0x82f   :  { %6062 = vst.msk [vmem:[#allocation4 + $0xd8] sm:$0xff] %vm6034_vm2, %v5897_v30  ;;  %6061 = vst.msk [vmem:[#allocation4 + $0xd0] sm:$0xff] %vm6034_vm2, %v5895_v50 }
 0x830   :  { %6269 = vrot.lane.b32.xlu1 %v13988_v39, %s9635_s3  ;;  %6267 = vrot.lane.b32.xlu0 %v13990_v6, %s9635_s3 }
 0x832   :  { %v5901_v26 = vpop.permute.xlu1 %5900  ;;  %v5899_v7 = vpop.permute.xlu0 %5898 }
 0x833   :  { %6064 = vst.msk [vmem:[#allocation4 + $0xe8] sm:$0xff] %vm6034_vm2, %v5901_v26  ;;  %6063 = vst.msk [vmem:[#allocation4 + $0xe0] sm:$0xff] %vm6034_vm2, %v5899_v7  ;;  %v6877_v26 = vld [vmem:[#allocation3 + $0x80] sm:$0xff] }
 0x834   :  { %6612 = vrot.lane.b32.xlu1 %v6484_v43, %s9636_s10  ;;  %6271 = vrot.lane.b32.xlu0 %v13998_v5, %s9635_s3 }
 0x836   :  { %v5905_v53 = vpop.permute.xlu1 %5904  ;;  %v5903_v14 = vpop.permute.xlu0 %5902 }
 0x837   :  { %6066 = vst.msk [vmem:[#allocation4 + $0xf8] sm:$0xff] %vm6034_vm2, %v5905_v53  ;;  %6065 = vst.msk [vmem:[#allocation4 + $0xf0] sm:$0xff] %vm6034_vm2, %v5903_v14 }
 0x838   :  { %6616 = vrot.lane.b32.xlu1 %v6486_v40, %s9636_s10  ;;  %6614 = vrot.lane.b32.xlu0 %v6485_v38, %s9636_s10 }
 0x83a   :  { %v5909_v24 = vpop.permute.xlu1 %5908  ;;  %v5907_v9 = vpop.permute.xlu0 %5906 }
 0x83b   :  { %6068 = vst.msk [vmem:[#allocation4 + $0x108] sm:$0xff] %vm6034_vm2, %v5909_v24  ;;  %6067 = vst.msk [vmem:[#allocation4 + $0x100] sm:$0xff] %vm6034_vm2, %v5907_v9  ;;  %v7647_v24 = vld [vmem:[#allocation3 + $0x82] sm:$0xff] }
 0x83c   :  { %6998 = vrot.lane.b32.xlu1 %v6870_v12, %s9628_s18  ;;  %6618 = vrot.lane.b32.xlu0 %v6487_v52, %s9636_s10  ;;  %v6494_v12 = vld [vmem:[#allocation3 + $0x92] sm:$0xff] }
 0x83e   :  { %v5913_v41 = vpop.permute.xlu1 %5912  ;;  %v5911_v44 = vpop.permute.xlu0 %5910 }
 0x83f   :  { %6070 = vst.msk [vmem:[#allocation4 + $0x118] sm:$0xff] %vm6034_vm2, %v5913_v41  ;;  %6069 = vst.msk [vmem:[#allocation4 + $0x110] sm:$0xff] %vm6034_vm2, %v5911_v44 }
 0x840   :  { %7002 = vrot.lane.b32.xlu1 %v6872_v56, %s9628_s18  ;;  %7000 = vrot.lane.b32.xlu0 %v6871_v17, %s9628_s18  ;;  %v6878_v17 = vld [vmem:[#allocation3 + $0x90] sm:$0xff] }
 0x842   :  { %v5917_v46 = vpop.permute.xlu1 %5916  ;;  %v5915_v4 = vpop.permute.xlu0 %5914 }
 0x843   :  { %6072 = vst.msk [vmem:[#allocation4 + $0x128] sm:$0xff] %vm6034_vm2, %v5917_v46  ;;  %6071 = vst.msk [vmem:[#allocation4 + $0x120] sm:$0xff] %vm6034_vm2, %v5915_v4  ;;  %v6879_v46 = vld [vmem:[#allocation3 + $0x98] sm:$0xff] }
 0x844   :  { %7383 = vrot.lane.b32.xlu1 %v13900_v60, %s9637_s24  ;;  %7004 = vrot.lane.b32.xlu0 %v6873_v59, %s9628_s18 }
 0x846   :  { %v5921_v31 = vpop.permute.xlu1 %5920  ;;  %v5919_v13 = vpop.permute.xlu0 %5918 }
 0x847   :  { %6074 = vst.msk [vmem:[#allocation4 + $0x138] sm:$0xff] %vm6034_vm2, %v5921_v31  ;;  %6073 = vst.msk [vmem:[#allocation4 + $0x130] sm:$0xff] %vm6034_vm2, %v5919_v13 }
 0x848   :  { %7387 = vrot.lane.b32.xlu1 %v13910_v18, %s9637_s24  ;;  %7385 = vrot.lane.b32.xlu0 %v13898_v16, %s9637_s24  ;;  %v9619_v16 = vld [vmem:[%s16534_s4 + $0x20] ss:$0 sps:$4 sm:$0xff]  }
 0x849   :  { %9592 = vmatprep.subr.msk.bf16.mxu1 %vm8254_vm3, %v9619_v16  ;;  %v8256_v18 = vsel %vm8254_vm3, %v9619_v16, 0 }
 0x84a   :  { %v5925_v11 = vpop.permute.xlu1 %5924  ;;  %v5923_v60 = vpop.permute.xlu0 %5922  ;;  %9526 = vmatpush3.bf16.msra.mxu1 %v8256_v18  ;;  %v6498_v18 = vld [vmem:[#allocation3 + $0xc2] sm:$0xff] }
 0x84b   :  { %6076 = vst.msk [vmem:[#allocation4 + $0x148] sm:$0xff] %vm6034_vm2, %v5925_v11  ;;  %6075 = vst.msk [vmem:[#allocation4 + $0x140] sm:$0xff] %vm6034_vm2, %v5923_v60 }
 0x84c   :  { %7768 = vrot.lane.b32.xlu1 %v6486_v40, %s9638_s29  ;;  %7389 = vrot.lane.b32.xlu0 %v13908_v25, %s9637_s24 }
 0x84e   :  { %v5929_v61 = vpop.permute.xlu1 %5928  ;;  %v5927_v22 = vpop.permute.xlu0 %5926 }
 0x84f   :  { %6078 = vst.msk [vmem:[#allocation4 + $0x158] sm:$0xff] %vm6034_vm2, %v5929_v61  ;;  %6077 = vst.msk [vmem:[#allocation4 + $0x150] sm:$0xff] %vm6034_vm2, %v5927_v22  ;;  %v7651_v61 = vld [vmem:[#allocation3 + $0xb2] sm:$0xff] }
 0x850   :  { %7772 = vrot.lane.b32.xlu1 %v7642_v33, %s9638_s29  ;;  %7770 = vrot.lane.b32.xlu0 %v6487_v52, %s9638_s29 }
 0x852   :  { %v5933_v25 = vpop.permute.xlu1 %5932  ;;  %v5931_v32 = vpop.permute.xlu0 %5930 }
 0x853   :  { %6080 = vst.msk [vmem:[#allocation4 + $0x168] sm:$0xff] %vm6034_vm2, %v5933_v25  ;;  %6079 = vst.msk [vmem:[#allocation4 + $0x160] sm:$0xff] %vm6034_vm2, %v5931_v32  ;;  %v6882_v32 = vld [vmem:[#allocation3 + $0xc0] sm:$0xff] }
 0x854   :  { %6620 = vrot.lane.b32.xlu1 %v7642_v33, %s9636_s10  ;;  %7774 = vrot.lane.b32.xlu0 %v7643_v55, %s9638_s29 }
 0x856   :  { %v5937_v51 = vpop.permute.xlu1 %5936  ;;  %v5935_v36 = vpop.permute.xlu0 %5934 }
 0x857   :  { %6082 = vst.msk [vmem:[#allocation4 + $0x178] sm:$0xff] %vm6034_vm2, %v5937_v51  ;;  %6081 = vst.msk [vmem:[#allocation4 + $0x170] sm:$0xff] %vm6034_vm2, %v5935_v36 }
 0x858   :  { %6624 = vrot.lane.b32.xlu1 %v6490_v54, %s9636_s10  ;;  %6622 = vrot.lane.b32.xlu0 %v7643_v55, %s9636_s10  ;;  %v6499_v55 = vld [vmem:[#allocation3 + $0xca] sm:$0xff] }
 0x85a   :  { %v5941_v2 = vpop.permute.xlu1 %5940  ;;  %v5939_v19 = vpop.permute.xlu0 %5938 }
 0x85b   :  { %6084 = vst.msk [vmem:[#allocation4 + $0x188] sm:$0xff] %vm6034_vm2, %v5941_v2  ;;  %6083 = vst.msk [vmem:[#allocation4 + $0x180] sm:$0xff] %vm6034_vm2, %v5939_v19  ;;  %v6883_v2 = vld [vmem:[#allocation3 + $0xc8] sm:$0xff] }
 0x85c   :  { %7006 = vrot.lane.b32.xlu1 %v6874_v28, %s9628_s18  ;;  %6626 = vrot.lane.b32.xlu0 %v6491_v42, %s9636_s10 }
 0x85e   :  { %v5945_v34 = vpop.permute.xlu1 %5944  ;;  %v5943_v27 = vpop.permute.xlu0 %5942 }
 0x85f   :  { %6086 = vst.msk [vmem:[#allocation4 + $0x198] sm:$0xff] %vm6034_vm2, %v5945_v34  ;;  %6085 = vst.msk [vmem:[#allocation4 + $0x190] sm:$0xff] %vm6034_vm2, %v5943_v27 }
 0x860   :  { %7010 = vrot.lane.b32.xlu1 %v6876_v62, %s9628_s18  ;;  %7008 = vrot.lane.b32.xlu0 %v6875_v57, %s9628_s18 }
 0x862   :  { %v5949_v30 = vpop.permute.xlu1 %5948  ;;  %v5947_v50 = vpop.permute.xlu0 %5946 }
 0x863   :  { %6088 = vst.msk [vmem:[#allocation4 + $0x1a8] sm:$0xff] %vm6034_vm2, %v5949_v30  ;;  %6087 = vst.msk [vmem:[#allocation4 + $0x1a0] sm:$0xff] %vm6034_vm2, %v5947_v50 }
 0x864   :  { %7391 = vrot.lane.b32.xlu1 %v13920_v10, %s9637_s24  ;;  %7012 = vrot.lane.b32.xlu0 %v6877_v26, %s9628_s18  ;;  %v7655_v26 = vld [vmem:[#allocation3 + $0xe2] sm:$0xff] }
 0x866   :  { %v5953_v7 = vpop.permute.xlu1 %5952  ;;  %v5951_v43 = vpop.permute.xlu0 %5950 }
 0x867   :  { %6090 = vst.msk [vmem:[#allocation4 + $0x1b8] sm:$0xff] %vm6034_vm2, %v5953_v7  ;;  %6089 = vst.msk [vmem:[#allocation4 + $0x1b0] sm:$0xff] %vm6034_vm2, %v5951_v43  ;;  %v6502_v43 = vld [vmem:[#allocation3 + $0xf2] sm:$0xff] }
 0x868   :  { %7395 = vrot.lane.b32.xlu1 %v13930_v45, %s9637_s24  ;;  %7393 = vrot.lane.b32.xlu0 %v13918_v49, %s9637_s24  ;;  %v7646_v45 = vld [vmem:[#allocation3 + $0x7a] sm:$0xff] }
 0x86a   :  { %v5957_v53 = vpop.permute.xlu1 %5956  ;;  %v5955_v14 = vpop.permute.xlu0 %5954 }
 0x86b   :  { %6092 = vst.msk [vmem:[#allocation4 + $0x1c8] sm:$0xff] %vm6034_vm2, %v5957_v53  ;;  %6091 = vst.msk [vmem:[#allocation4 + $0x1c0] sm:$0xff] %vm6034_vm2, %v5955_v14 }
 0x86c   :  { %7776 = vrot.lane.b32.xlu1 %v6490_v54, %s9638_s29  ;;  %7397 = vrot.lane.b32.xlu0 %v13928_v48, %s9637_s24  ;;  %v6884_v54 = vld [vmem:[#allocation3 + $0xd8] sm:$0xff] }
 0x86e   :  { %v5961_v10 = vpop.permute.xlu1 %5960  ;;  %v5959_v40 = vpop.permute.xlu0 %5958 }
 0x86f   :  { %6094 = vst.msk [vmem:[#allocation4 + $0x1d8] sm:$0xff] %vm6034_vm2, %v5961_v10  ;;  %6093 = vst.msk [vmem:[#allocation4 + $0x1d0] sm:$0xff] %vm6034_vm2, %v5959_v40  ;;  %v6886_v10 = vld [vmem:[#allocation3 + $0xf0] sm:$0xff]  ;;  %v6503_v40 = vld [vmem:[#allocation3 + $0xfa] sm:$0xff] }
 0x870   :  { %7780 = vrot.lane.b32.xlu1 %v7646_v45, %s9638_s29  ;;  %7778 = vrot.lane.b32.xlu0 %v6491_v42, %s9638_s29  ;;  %v6885_v42 = vld [vmem:[#allocation3 + $0xe0] sm:$0xff] }
 0x872   :  { %v5965_v49 = vpop.permute.xlu1 %5964  ;;  %v5963_v38 = vpop.permute.xlu0 %5962 }
 0x873   :  { %6096 = vst.msk [vmem:[#allocation4 + $0x1e8] sm:$0xff] %vm6034_vm2, %v5965_v49  ;;  %6095 = vst.msk [vmem:[#allocation4 + $0x1e0] sm:$0xff] %vm6034_vm2, %v5963_v38  ;;  %v6888_v38 = vld [vmem:[#allocation3 + $0x108] sm:$0xff] }
 0x874   :  { %6628 = vrot.lane.b32.xlu1 %v7646_v45, %s9636_s10  ;;  %7782 = vrot.lane.b32.xlu0 %v7647_v24, %s9638_s29 }
 0x876   :  { %v5969_v48 = vpop.permute.xlu1 %5968  ;;  %v5967_v9 = vpop.permute.xlu0 %5966 }
 0x877   :  { %6098 = vst.msk [vmem:[#allocation4 + $0x1f8] sm:$0xff] %vm6034_vm2, %v5969_v48  ;;  %6097 = vst.msk [vmem:[#allocation4 + $0x1f0] sm:$0xff] %vm6034_vm2, %v5967_v9 }
 0x878   :  { %6632 = vrot.lane.b32.xlu1 %v6494_v12, %s9636_s10  ;;  %6630 = vrot.lane.b32.xlu0 %v7647_v24, %s9636_s10  ;;  %v6887_v24 = vld [vmem:[#allocation3 + $0xf8] sm:$0xff] }
 0x87a   :  { %v6230_v52 = vpop.permute.xlu1 %6229  ;;  %v6228_v56 = vpop.permute.xlu0 %6227 }
 0x87b   :  { %6421 = vst.msk [vmem:[#allocation4 + $0x8] sm:$0xff] %vm6419_vm4, %v6230_v52  ;;  %6420 = vst.msk [vmem:[#allocation4] sm:$0xff] %vm6419_vm4, %v6228_v56 }
 0x87c   :  { %7014 = vrot.lane.b32.xlu1 %v6878_v17, %s9628_s18  ;;  %6634 = vrot.lane.b32.xlu0 %v6495_v1, %s9636_s10 }
 0x87e   :  { %v6234_v41 = vpop.permute.xlu1 %6233  ;;  %v6232_v44 = vpop.permute.xlu0 %6231 }
 0x87f   :  { %6423 = vst.msk [vmem:[#allocation4 + $0x18] sm:$0xff] %vm6419_vm4, %v6234_v41  ;;  %6422 = vst.msk [vmem:[#allocation4 + $0x10] sm:$0xff] %vm6419_vm4, %v6232_v44 }
 0x880   :  { %7018 = vrot.lane.b32.xlu1 %v6880_v35, %s9628_s18  ;;  %7016 = vrot.lane.b32.xlu0 %v6879_v46, %s9628_s18 }
 0x882   :  { %v6238_v4 = vpop.permute.xlu1 %6237  ;;  %v6236_v59 = vpop.permute.xlu0 %6235 }
 0x883   :  { %6425 = vst.msk [vmem:[#allocation4 + $0x28] sm:$0xff] %vm6419_vm4, %v6238_v4  ;;  %6424 = vst.msk [vmem:[#allocation4 + $0x20] sm:$0xff] %vm6419_vm4, %v6236_v59  ;;  %v7658_v4 = vld [vmem:[#allocation3 + $0x10a] sm:$0xff] }
 0x884   :  { %7399 = vrot.lane.b32.xlu1 %v13940_v21, %s9637_s24  ;;  %7020 = vrot.lane.b32.xlu0 %v6881_v47, %s9628_s18 }
 0x886   :  { %v6242_v31 = vpop.permute.xlu1 %6241  ;;  %v6240_v13 = vpop.permute.xlu0 %6239 }
 0x887   :  { %6427 = vst.msk [vmem:[#allocation4 + $0x38] sm:$0xff] %vm6419_vm4, %v6242_v31  ;;  %6426 = vst.msk [vmem:[#allocation4 + $0x30] sm:$0xff] %vm6419_vm4, %v6240_v13  ;;  %v6122_v31 = vld [vmem:[#allocation3 + $0x129] sm:$0xff]  ;;  %v7659_v13 = vld [vmem:[#allocation3 + $0x112] sm:$0xff] }
 0x888   :  { %7403 = vrot.lane.b32.xlu1 %v13950_v3, %s9637_s24  ;;  %7401 = vrot.lane.b32.xlu0 %v13938_v8, %s9637_s24  ;;  %v7650_v3 = vld [vmem:[#allocation3 + $0xaa] sm:$0xff] }
 0x88a   :  { %v6246_v20 = vpop.permute.xlu1 %6245  ;;  %v6244_v11 = vpop.permute.xlu0 %6243 }
 0x88b   :  { %6429 = vst.msk [vmem:[#allocation4 + $0x48] sm:$0xff] %vm6419_vm4, %v6246_v20  ;;  %6428 = vst.msk [vmem:[#allocation4 + $0x40] sm:$0xff] %vm6419_vm4, %v6244_v11 }
 0x88c   :  { %7784 = vrot.lane.b32.xlu1 %v6494_v12, %s9638_s29  ;;  %7405 = vrot.lane.b32.xlu0 %v13948_v37, %s9637_s24  ;;  %v6889_v12 = vld [vmem:[#allocation3 + $0x110] sm:$0xff] }
 0x88e   :  { %v6250_v21 = vpop.permute.xlu1 %6249  ;;  %v6248_v60 = vpop.permute.xlu0 %6247 }
 0x88f   :  { %6431 = vst.msk [vmem:[#allocation4 + $0x58] sm:$0xff] %vm6419_vm4, %v6250_v21  ;;  %6430 = vst.msk [vmem:[#allocation4 + $0x50] sm:$0xff] %vm6419_vm4, %v6248_v60 }
 0x890   :  { %7788 = vrot.lane.b32.xlu1 %v7650_v3, %s9638_s29  ;;  %7786 = vrot.lane.b32.xlu0 %v6495_v1, %s9638_s29 }
 0x892   :  { %v6254_v8 = vpop.permute.xlu1 %6253  ;;  %v6252_v16 = vpop.permute.xlu0 %6251 }
 0x893   :  { %6433 = vst.msk [vmem:[#allocation4 + $0x68] sm:$0xff] %vm6419_vm4, %v6254_v8  ;;  %6432 = vst.msk [vmem:[#allocation4 + $0x60] sm:$0xff] %vm6419_vm4, %v6252_v16  ;;  %v6506_v8 = vld [vmem:[#allocation3 + $0x122] sm:$0xff] }
 0x894   :  { %6636 = vrot.lane.b32.xlu1 %v7650_v3, %s9636_s10  ;;  %7790 = vrot.lane.b32.xlu0 %v7651_v61, %s9638_s29  ;;  %v6507_v3 = vld [vmem:[#allocation3 + $0x12a] sm:$0xff] }
 0x896   :  { %v6258_v37 = vpop.permute.xlu1 %6257  ;;  %v6256_v22 = vpop.permute.xlu0 %6255 }
 0x897   :  { %6435 = vst.msk [vmem:[#allocation4 + $0x78] sm:$0xff] %vm6419_vm4, %v6258_v37  ;;  %6434 = vst.msk [vmem:[#allocation4 + $0x70] sm:$0xff] %vm6419_vm4, %v6256_v22  ;;  %v6891_v37 = vld [vmem:[#allocation3 + $0x128] sm:$0xff]  ;;  %v6890_v22 = vld [vmem:[#allocation3 + $0x120] sm:$0xff] }
 0x898   :  { %6640 = vrot.lane.b32.xlu1 %v6498_v18, %s9636_s10  ;;  %6638 = vrot.lane.b32.xlu0 %v7651_v61, %s9636_s10 }
 0x89a   :  { %v6262_v33 = vpop.permute.xlu1 %6261  ;;  %v6260_v25 = vpop.permute.xlu0 %6259 }
 0x89b   :  { %6437 = vst.msk [vmem:[#allocation4 + $0x88] sm:$0xff] %vm6419_vm4, %v6262_v33  ;;  %6436 = vst.msk [vmem:[#allocation4 + $0x80] sm:$0xff] %vm6419_vm4, %v6260_v25  ;;  %v6893_v25 = vld [vmem:[#allocation3 + $0x140] sm:$0xff] }
 0x89c   :  { %7022 = vrot.lane.b32.xlu1 %v6882_v32, %s9628_s18  ;;  %6642 = vrot.lane.b32.xlu0 %v6499_v55, %s9636_s10  ;;  %v6892_v32 = vld [vmem:[#allocation3 + $0x138] sm:$0xff] }
 0x89e   :  { %v6266_v51 = vpop.permute.xlu1 %6265  ;;  %v6264_v36 = vpop.permute.xlu0 %6263 }
 0x89f   :  { %6439 = vst.msk [vmem:[#allocation4 + $0x98] sm:$0xff] %vm6419_vm4, %v6266_v51  ;;  %6438 = vst.msk [vmem:[#allocation4 + $0x90] sm:$0xff] %vm6419_vm4, %v6264_v36 }
 0x8a0   :  { %7026 = vrot.lane.b32.xlu1 %v6884_v54, %s9628_s18  ;;  %7024 = vrot.lane.b32.xlu0 %v6883_v2, %s9628_s18 }
 0x8a2   :  { %v6270_v19 = vpop.permute.xlu1 %6269  ;;  %v6268_v28 = vpop.permute.xlu0 %6267 }
 0x8a3   :  { %6441 = vst.msk [vmem:[#allocation4 + $0xa8] sm:$0xff] %vm6419_vm4, %v6270_v19  ;;  %6440 = vst.msk [vmem:[#allocation4 + $0xa0] sm:$0xff] %vm6419_vm4, %v6268_v28  ;;  %v7278_v28 = vld [vmem:[#allocation3 + $0x141] sm:$0xff] }
 0x8a4   :  { %7407 = vrot.lane.b32.xlu1 %v13960_v15, %s9637_s24  ;;  %7028 = vrot.lane.b32.xlu0 %v6885_v42, %s9628_s18  ;;  %v7277_v42 = vld [vmem:[#allocation3 + $0x139] sm:$0xff] }
 0x8a6   :  { %v6613_v34 = vpop.permute.xlu1 %6612  ;;  %v6272_v27 = vpop.permute.xlu0 %6271 }
 0x8a7   :  { %6805 = vst.msk [vmem:[#allocation4] sm:$0xff] %vm6804_vm5, %v6613_v34 }
 0x8a8   :  { %6442 = vst.msk [vmem:[#allocation4 + $0xb0] sm:$0xff] %vm6419_vm4, %v6272_v27  ;;  %7411 = vrot.lane.b32.xlu1 %v13970_v0, %s9637_s24  ;;  %7409 = vrot.lane.b32.xlu0 %v13958_v29, %s9637_s24  ;;  %v7654_v0 = vld [vmem:[#allocation3 + $0xda] sm:$0xff] }
 0x8aa   :  { %v6617_v62 = vpop.permute.xlu1 %6616  ;;  %v6615_v57 = vpop.permute.xlu0 %6614 }
 0x8ab   :  { %6807 = vst.msk [vmem:[#allocation4 + $0x10] sm:$0xff] %vm6804_vm5, %v6617_v62  ;;  %6806 = vst.msk [vmem:[#allocation4 + $0x8] sm:$0xff] %vm6804_vm5, %v6615_v57 }
 0x8ac   :  { %7792 = vrot.lane.b32.xlu1 %v6498_v18, %s9638_s29  ;;  %7413 = vrot.lane.b32.xlu0 %v13968_v63, %s9637_s24 }
 0x8ae   :  { %v6999_v15 = vpop.permute.xlu1 %6998  ;;  %v6619_v30 = vpop.permute.xlu0 %6618 }
 0x8af   :  { %7191 = vst.msk [vmem:[#allocation4] sm:$0xff] %vm7190_vm6, %v6999_v15 }
 0x8b0   :  { %6808 = vst.msk [vmem:[#allocation4 + $0x18] sm:$0xff] %vm6804_vm5, %v6619_v30  ;;  %7796 = vrot.lane.b32.xlu1 %v7654_v0, %s9638_s29  ;;  %7794 = vrot.lane.b32.xlu0 %v6499_v55, %s9638_s29 }
 0x8b2   :  { %v7003_v29 = vpop.permute.xlu1 %7002  ;;  %v7001_v50 = vpop.permute.xlu0 %7000 }
 0x8b3   :  { %7193 = vst.msk [vmem:[#allocation4 + $0x10] sm:$0xff] %vm7190_vm6, %v7003_v29  ;;  %7192 = vst.msk [vmem:[#allocation4 + $0x8] sm:$0xff] %vm7190_vm6, %v7001_v50  ;;  %v7663_v29 = vld [vmem:[#allocation3 + $0x142] sm:$0xff]  ;;  %v7662_v50 = vld [vmem:[#allocation3 + $0x13a] sm:$0xff] }
 0x8b4   :  { %6644 = vrot.lane.b32.xlu1 %v7654_v0, %s9636_s10  ;;  %7798 = vrot.lane.b32.xlu0 %v7655_v26, %s9638_s29 }
 0x8b6   :  { %v7384_v63 = vpop.permute.xlu1 %7383  ;;  %v7005_v7 = vpop.permute.xlu0 %7004 }
 0x8b7   :  { %7576 = vst.msk [vmem:[#allocation4] sm:$0xff] %vm7575_vm7, %v7384_v63 }
 0x8b8   :  { %7194 = vst.msk [vmem:[#allocation4 + $0x18] sm:$0xff] %vm7190_vm6, %v7005_v7  ;;  %6648 = vrot.lane.b32.xlu1 %v6502_v43, %s9636_s10  ;;  %6646 = vrot.lane.b32.xlu0 %v7655_v26, %s9636_s10 }
 0x8ba   :  { %v7388_v53 = vpop.permute.xlu1 %7387  ;;  %v7386_v14 = vpop.permute.xlu0 %7385 }
 0x8bb   :  { %7578 = vst.msk [vmem:[#allocation4 + $0x10] sm:$0xff] %vm7575_vm7, %v7388_v53  ;;  %7577 = vst.msk [vmem:[#allocation4 + $0x8] sm:$0xff] %vm7575_vm7, %v7386_v14  ;;  %v6126_v53 = vld [vmem:[#allocation3 + $0x159] sm:$0xff]  ;;  %v6125_v14 = vld [vmem:[#allocation3 + $0x151] sm:$0xff] }
 0x8bc   :  { %7030 = vrot.lane.b32.xlu1 %v6886_v10, %s9628_s18  ;;  %6650 = vrot.lane.b32.xlu0 %v6503_v40, %s9636_s10 }
 0x8be   :  { %v7769_v45 = vpop.permute.xlu1 %7768  ;;  %v7390_v49 = vpop.permute.xlu0 %7389 }
 0x8bf   :  { %7961 = vst.msk [vmem:[#allocation4] sm:$0xff] %vm7960_vm8, %v7769_v45 }
 0x8c0   :  { %7579 = vst.msk [vmem:[#allocation4 + $0x18] sm:$0xff] %vm7575_vm7, %v7390_v49  ;;  %7034 = vrot.lane.b32.xlu1 %v6888_v38, %s9628_s18  ;;  %7032 = vrot.lane.b32.xlu0 %v6887_v24, %s9628_s18  ;;  %v6511_v38 = vld [vmem:[#allocation3 + $0x15a] sm:$0xff]  ;;  %v6510_v24 = vld [vmem:[#allocation3 + $0x152] sm:$0xff] }
 0x8c2   :  { %v7773_v48 = vpop.permute.xlu1 %7772  ;;  %v7771_v9 = vpop.permute.xlu0 %7770 }
 0x8c3   :  { %7963 = vst.msk [vmem:[#allocation4 + $0x10] sm:$0xff] %vm7960_vm8, %v7773_v48  ;;  %7962 = vst.msk [vmem:[#allocation4 + $0x8] sm:$0xff] %vm7960_vm8, %v7771_v9 }
 0x8c4   :  { %7415 = vrot.lane.b32.xlu1 %v13980_v23, %s9637_s24  ;;  %7036 = vrot.lane.b32.xlu0 %v6889_v12, %s9628_s18  ;;  %v6895_v12 = vld [vmem:[#allocation3 + $0x158] sm:$0xff] }
 0x8c6   :  { %v6621_v52 = vpop.permute.xlu1 %6620  ;;  %v7775_v56 = vpop.permute.xlu0 %7774  ;;  %v8025_v41 = vld [vmem:[#allocation4] sm:$0xff] }
 0x8c7   :  { %6809 = vst.msk [vmem:[#allocation4 + $0x20] sm:$0xff] %vm6804_vm5, %v6621_v52  ;;  %v6894_v52 = vld [vmem:[#allocation3 + $0x150] sm:$0xff] }
 0x8c8   :  { %7964 = vst.msk [vmem:[#allocation4 + $0x18] sm:$0xff] %vm7960_vm8, %v7775_v56  ;;  %7419 = vrot.lane.b32.xlu1 %v13990_v6, %s9637_s24  ;;  %7417 = vrot.lane.b32.xlu0 %v13978_v58, %s9637_s24 }
 0x8ca   :  { %v6625_v17 = vpop.permute.xlu1 %6624  ;;  %v6623_v1 = vpop.permute.xlu0 %6622  ;;  %v8026_v44 = vld [vmem:[#allocation4 + $0x8] sm:$0xff]  ;;  %v8027_v58 = vld [vmem:[#allocation4 + $0x10] sm:$0xff] }
 0x8cb   :  { %6811 = vst.msk [vmem:[#allocation4 + $0x30] sm:$0xff] %vm6804_vm5, %v6625_v17  ;;  %6810 = vst.msk [vmem:[#allocation4 + $0x28] sm:$0xff] %vm6804_vm5, %v6623_v1  ;;  %v8089_v23 = vpack.c.bf16 %v8026_v44, %v8025_v41  ;;  %v6897_v44 = vld [vmem:[#allocation3 + $0x170] sm:$0xff] }
 0x8cc   :  { %7800 = vrot.lane.b32.xlu1 %v6502_v43, %s9638_s29  ;;  %7421 = vrot.lane.b32.xlu0 %v13988_v39, %s9637_s24 }
 0x8cd   :  { %9527 = vmatprep.mubr.msk.bf16.mxu1 %vm8157_vm9, %v8089_v23  ;;  %v6896_v23 = vld [vmem:[#allocation3 + $0x168] sm:$0xff] }
 0x8ce   :  { %v7007_v6 = vpop.permute.xlu1 %7006  ;;  %v6627_v35 = vpop.permute.xlu0 %6626 }
 0x8cf   :  { %v8028_v46 = vld [vmem:[#allocation4 + $0x18] sm:$0xff]  ;;  %7195 = vst.msk [vmem:[#allocation4 + $0x20] sm:$0xff] %vm7190_vm6, %v7007_v6 }
 0x8d0   :  { %6812 = vst.msk [vmem:[#allocation4 + $0x38] sm:$0xff] %vm6804_vm5, %v6627_v35  ;;  %v8090_v59 = vpack.c.bf16 %v8028_v46, %v8027_v58  ;;  %7804 = vrot.lane.b32.xlu1 %v7658_v4, %s9638_s29  ;;  %7802 = vrot.lane.b32.xlu0 %v6503_v40, %s9638_s29 }
 0x8d2   :  { %9528 = vmatmul.mubr.msk.bf16.vlgmr.msra.gmra.mrb[0].mxu1 %vm8157_vm9, %v8090_v59  ;;  %v7011_v47 = vpop.permute.xlu1 %7010  ;;  %v7009_v39 = vpop.permute.xlu0 %7008 }
 0x8d3   :  { %7197 = vst.msk [vmem:[#allocation4 + $0x30] sm:$0xff] %vm7190_vm6, %v7011_v47  ;;  %7196 = vst.msk [vmem:[#allocation4 + $0x28] sm:$0xff] %vm7190_vm6, %v7009_v39 }
 0x8d4   :  { %6273 = vrot.lane.b32.xlu1 %v6122_v31, %s9635_s3  ;;  %7806 = vrot.lane.b32.xlu0 %v7659_v13, %s9638_s29 }
 0x8d6   :  { %v7392_v20 = vpop.permute.xlu1 %7391  ;;  %v7013_v11 = vpop.permute.xlu0 %7012 }
 0x8d7   :  { %7580 = vst.msk [vmem:[#allocation4 + $0x20] sm:$0xff] %vm7575_vm7, %v7392_v20 }
 0x8d8   :  { %7198 = vst.msk [vmem:[#allocation4 + $0x38] sm:$0xff] %vm7190_vm6, %v7013_v11  ;;  %6654 = vrot.lane.b32.xlu1 %v7659_v13, %s9636_s10  ;;  %6652 = vrot.lane.b32.xlu0 %v7658_v4, %s9636_s10  ;;  %v7281_v13 = vld [vmem:[#allocation3 + $0x169] sm:$0xff] }
 0x8da   :  { %v7396_v21 = vpop.permute.xlu1 %7395  ;;  %v7394_v60 = vpop.permute.xlu0 %7393 }
 0x8db   :  { %7582 = vst.msk [vmem:[#allocation4 + $0x30] sm:$0xff] %vm7575_vm7, %v7396_v21  ;;  %7581 = vst.msk [vmem:[#allocation4 + $0x28] sm:$0xff] %vm7575_vm7, %v7394_v60 }
 0x8dc   :  { %6658 = vrot.lane.b32.xlu1 %v6507_v3, %s9636_s10  ;;  %6656 = vrot.lane.b32.xlu0 %v6506_v8, %s9636_s10 }
 0x8de   :  { %v7777_v16 = vpop.permute.xlu1 %7776  ;;  %v7398_v61 = vpop.permute.xlu0 %7397 }
 0x8df   :  { %7965 = vst.msk [vmem:[#allocation4 + $0x20] sm:$0xff] %vm7960_vm8, %v7777_v16 }
 0x8e0   :  { %7583 = vst.msk [vmem:[#allocation4 + $0x38] sm:$0xff] %vm7575_vm7, %v7398_v61  ;;  %7040 = vrot.lane.b32.xlu1 %v6891_v37, %s9628_s18  ;;  %7038 = vrot.lane.b32.xlu0 %v6890_v22, %s9628_s18 }
 0x8e2   :  { %v7781_v18 = vpop.permute.xlu1 %7780  ;;  %v7779_v33 = vpop.permute.xlu0 %7778 }
 0x8e3   :  { %7967 = vst.msk [vmem:[#allocation4 + $0x30] sm:$0xff] %vm7960_vm8, %v7781_v18  ;;  %7966 = vst.msk [vmem:[#allocation4 + $0x28] sm:$0xff] %vm7960_vm8, %v7779_v33  ;;  %v6130_v18 = vld [vmem:[#allocation3 + $0x189] sm:$0xff]  ;;  %v6129_v33 = vld [vmem:[#allocation3 + $0x181] sm:$0xff] }
 0x8e4   :  { %7044 = vrot.lane.b32.xlu1 %v6893_v25, %s9628_s18  ;;  %7042 = vrot.lane.b32.xlu0 %v6892_v32, %s9628_s18 }
 0x8e6   :  { %v6629_v55 = vpop.permute.xlu1 %6628  ;;  %v7783_v51 = vpop.permute.xlu0 %7782  ;;  %v8029_v2 = vld [vmem:[#allocation4 + $0x20] sm:$0xff] }
 0x8e7   :  { %6813 = vst.msk [vmem:[#allocation4 + $0x40] sm:$0xff] %vm6804_vm5, %v6629_v55 }
 0x8e8   :  { %7968 = vst.msk [vmem:[#allocation4 + $0x38] sm:$0xff] %vm7960_vm8, %v7783_v51  ;;  %7425 = vrot.lane.b32.xlu1 %v6122_v31, %s9637_s24  ;;  %7423 = vrot.lane.b32.xlu0 %v13998_v5, %s9637_s24  ;;  %v7282_v31 = vld [vmem:[#allocation3 + $0x171] sm:$0xff] }
 0x8ea   :  { %v6633_v36 = vpop.permute.xlu1 %6632  ;;  %v6631_v54 = vpop.permute.xlu0 %6630  ;;  %v8030_v19 = vld [vmem:[#allocation4 + $0x28] sm:$0xff]  ;;  %v8031_v5 = vld [vmem:[#allocation4 + $0x30] sm:$0xff] }
 0x8eb   :  { %6815 = vst.msk [vmem:[#allocation4 + $0x50] sm:$0xff] %vm6804_vm5, %v6633_v36  ;;  %6814 = vst.msk [vmem:[#allocation4 + $0x48] sm:$0xff] %vm6804_vm5, %v6631_v54  ;;  %v8091_v34 = vpack.c.bf16 %v8030_v19, %v8029_v2  ;;  %v6515_v2 = vld [vmem:[#allocation3 + $0x18a] sm:$0xff]  ;;  %v6514_v19 = vld [vmem:[#allocation3 + $0x182] sm:$0xff] }
 0x8ec   :  { %7429 = vrot.lane.b32.xlu1 %v7278_v28, %s9637_s24  ;;  %7427 = vrot.lane.b32.xlu0 %v7277_v42, %s9637_s24 }
 0x8ed   :  { %9531 = vmatprep.mubr.msk.bf16.mxu1 %vm8157_vm9, %v8091_v34 }
 0x8ee   :  { %v7015_v27 = vpop.permute.xlu1 %7014  ;;  %v6635_v62 = vpop.permute.xlu0 %6634 }
 0x8ef   :  { %v8032_v57 = vld [vmem:[#allocation4 + $0x38] sm:$0xff]  ;;  %7199 = vst.msk [vmem:[#allocation4 + $0x40] sm:$0xff] %vm7190_vm6, %v7015_v27 }
 0x8f0   :  { %6816 = vst.msk [vmem:[#allocation4 + $0x58] sm:$0xff] %vm6804_vm5, %v6635_v62  ;;  %v8092_v15 = vpack.c.bf16 %v8032_v57, %v8031_v5  ;;  %7810 = vrot.lane.b32.xlu1 %v6507_v3, %s9638_s29  ;;  %7808 = vrot.lane.b32.xlu0 %v6506_v8, %s9638_s29  ;;  %v7667_v3 = vld [vmem:[#allocation3 + $0x172] sm:$0xff]  ;;  %v7666_v8 = vld [vmem:[#allocation3 + $0x16a] sm:$0xff]  ;;  %v6898_v57 = vld [vmem:[#allocation3 + $0x180] sm:$0xff] }
 0x8f1   :  { %v6899_v5 = vld [vmem:[#allocation3 + $0x188] sm:$0xff] }
 0x8f2   :  { %9532 = vmatmul.mubr.msk.bf16.gmra.mrb[4].mxu1 %vm8157_vm9, %v8092_v15  ;;  %v7019_v30 = vpop.permute.xlu1 %7018  ;;  %v7017_v0 = vpop.permute.xlu0 %7016 }
 0x8f3   :  { %7201 = vst.msk [vmem:[#allocation4 + $0x50] sm:$0xff] %vm7190_vm6, %v7019_v30  ;;  %7200 = vst.msk [vmem:[#allocation4 + $0x48] sm:$0xff] %vm7190_vm6, %v7017_v0  ;;  %v6901_v30 = vld [vmem:[#allocation3 + $0x1a0] sm:$0xff]  ;;  %v6900_v0 = vld [vmem:[#allocation3 + $0x198] sm:$0xff] }
 0x8f4   :  { %7814 = vrot.lane.b32.xlu1 %v7663_v29, %s9638_s29  ;;  %7812 = vrot.lane.b32.xlu0 %v7662_v50, %s9638_s29 }
 0x8f6   :  { %v7400_v26 = vpop.permute.xlu1 %7399  ;;  %v7021_v63 = vpop.permute.xlu0 %7020 }
 0x8f7   :  { %7584 = vst.msk [vmem:[#allocation4 + $0x40] sm:$0xff] %vm7575_vm7, %v7400_v26 }
 0x8f8   :  { %7202 = vst.msk [vmem:[#allocation4 + $0x58] sm:$0xff] %vm7190_vm6, %v7021_v63  ;;  %6277 = vrot.lane.b32.xlu1 %v7278_v28, %s9635_s3  ;;  %6275 = vrot.lane.b32.xlu0 %v7277_v42, %s9635_s3 }
 0x8fa   :  { %v7404_v7 = vpop.permute.xlu1 %7403  ;;  %v7402_v43 = vpop.permute.xlu0 %7401 }
 0x8fb   :  { %7586 = vst.msk [vmem:[#allocation4 + $0x50] sm:$0xff] %vm7575_vm7, %v7404_v7  ;;  %7585 = vst.msk [vmem:[#allocation4 + $0x48] sm:$0xff] %vm7575_vm7, %v7402_v43  ;;  %v7286_v7 = vld [vmem:[#allocation3 + $0x1a1] sm:$0xff]  ;;  %v7285_v43 = vld [vmem:[#allocation3 + $0x199] sm:$0xff] }
 0x8fc   :  { %6281 = vrot.lane.b32.xlu1 %v6126_v53, %s9635_s3  ;;  %6279 = vrot.lane.b32.xlu0 %v6125_v14, %s9635_s3 }
 0x8fe   :  { %v7785_v10 = vpop.permute.xlu1 %7784  ;;  %v7406_v40 = vpop.permute.xlu0 %7405 }
 0x8ff   :  { %7969 = vst.msk [vmem:[#allocation4 + $0x40] sm:$0xff] %vm7960_vm8, %v7785_v10 }
 0x900   :  { %7587 = vst.msk [vmem:[#allocation4 + $0x58] sm:$0xff] %vm7575_vm7, %v7406_v40  ;;  %6662 = vrot.lane.b32.xlu1 %v7663_v29, %s9636_s10  ;;  %6660 = vrot.lane.b32.xlu0 %v7662_v50, %s9636_s10 }
 0x902   :  { %v7789_v45 = vpop.permute.xlu1 %7788  ;;  %v7787_v49 = vpop.permute.xlu0 %7786 }
 0x903   :  { %7971 = vst.msk [vmem:[#allocation4 + $0x50] sm:$0xff] %vm7960_vm8, %v7789_v45  ;;  %7970 = vst.msk [vmem:[#allocation4 + $0x48] sm:$0xff] %vm7960_vm8, %v7787_v49  ;;  %v7671_v45 = vld [vmem:[#allocation3 + $0x1a2] sm:$0xff]  ;;  %v7670_v49 = vld [vmem:[#allocation3 + $0x19a] sm:$0xff] }
 0x904   :  { %6666 = vrot.lane.b32.xlu1 %v6511_v38, %s9636_s10  ;;  %6664 = vrot.lane.b32.xlu0 %v6510_v24, %s9636_s10 }
 0x906   :  { %v6637_v48 = vpop.permute.xlu1 %6636  ;;  %v7791_v9 = vpop.permute.xlu0 %7790  ;;  %v8033_v1 = vld [vmem:[#allocation4 + $0x40] sm:$0xff] }
 0x907   :  { %6817 = vst.msk [vmem:[#allocation4 + $0x60] sm:$0xff] %vm6804_vm5, %v6637_v48 }
 0x908   :  { %7972 = vst.msk [vmem:[#allocation4 + $0x58] sm:$0xff] %vm7960_vm8, %v7791_v9  ;;  %7048 = vrot.lane.b32.xlu1 %v6895_v12, %s9628_s18  ;;  %7046 = vrot.lane.b32.xlu0 %v6894_v52, %s9628_s18  ;;  %v6132_v12 = vld [vmem:[#allocation3 + $0x1d1] sm:$0xff]  ;;  %v6131_v52 = vld [vmem:[#allocation3 + $0x1c9] sm:$0xff] }
 0x90a   :  { %v6641_v56 = vpop.permute.xlu1 %6640  ;;  %v6639_v17 = vpop.permute.xlu0 %6638  ;;  %v8034_v41 = vld [vmem:[#allocation4 + $0x48] sm:$0xff]  ;;  %v8035_v46 = vld [vmem:[#allocation4 + $0x50] sm:$0xff] }
 0x90b   :  { %6819 = vst.msk [vmem:[#allocation4 + $0x70] sm:$0xff] %vm6804_vm5, %v6641_v56  ;;  %6818 = vst.msk [vmem:[#allocation4 + $0x68] sm:$0xff] %vm6804_vm5, %v6639_v17  ;;  %v8093_v6 = vpack.c.bf16 %v8034_v41, %v8033_v1 }
 0x90c   :  { %7052 = vrot.lane.b32.xlu1 %v6897_v44, %s9628_s18  ;;  %7050 = vrot.lane.b32.xlu0 %v6896_v23, %s9628_s18  ;;  %v6134_v44 = vld [vmem:[#allocation3 + $0x1e9] sm:$0xff]  ;;  %v6133_v23 = vld [vmem:[#allocation3 + $0x1e1] sm:$0xff] }
 0x90d   :  { %9535 = vmatprep.mubr.msk.bf16.mxu1 %vm8157_vm9, %v8093_v6 }
 0x90e   :  { %v7023_v35 = vpop.permute.xlu1 %7022  ;;  %v6643_v58 = vpop.permute.xlu0 %6642 }
 0x90f   :  { %v8036_v4 = vld [vmem:[#allocation4 + $0x58] sm:$0xff]  ;;  %7203 = vst.msk [vmem:[#allocation4 + $0x60] sm:$0xff] %vm7190_vm6, %v7023_v35 }
 0x910   :  { %6820 = vst.msk [vmem:[#allocation4 + $0x78] sm:$0xff] %vm6804_vm5, %v6643_v58  ;;  %v8094_v59 = vpack.c.bf16 %v8036_v4, %v8035_v46  ;;  %7433 = vrot.lane.b32.xlu1 %v6126_v53, %s9637_s24  ;;  %7431 = vrot.lane.b32.xlu0 %v6125_v14, %s9637_s24 }
 0x912   :  { %9536 = vmatmul.mubr.msk.bf16.gmra.mrb[8].mxu1 %vm8157_vm9, %v8094_v59  ;;  %v7027_v47 = vpop.permute.xlu1 %7026  ;;  %v7025_v39 = vpop.permute.xlu0 %7024  ;;  %v6517_v59 = vld [vmem:[#allocation3 + $0x1d2] sm:$0xff] }
 0x913   :  { %7205 = vst.msk [vmem:[#allocation4 + $0x70] sm:$0xff] %vm7190_vm6, %v7027_v47  ;;  %7204 = vst.msk [vmem:[#allocation4 + $0x68] sm:$0xff] %vm7190_vm6, %v7025_v39  ;;  %v6516_v47 = vld [vmem:[#allocation3 + $0x1ca] sm:$0xff] }
 0x914   :  { %7437 = vrot.lane.b32.xlu1 %v7282_v31, %s9637_s24  ;;  %7435 = vrot.lane.b32.xlu0 %v7281_v13, %s9637_s24 }
 0x916   :  { %v7408_v20 = vpop.permute.xlu1 %7407  ;;  %v7029_v11 = vpop.permute.xlu0 %7028 }
 0x917   :  { %7588 = vst.msk [vmem:[#allocation4 + $0x60] sm:$0xff] %vm7575_vm7, %v7408_v20  ;;  %v6519_v20 = vld [vmem:[#allocation3 + $0x1ea] sm:$0xff] }
 0x918   :  { %7206 = vst.msk [vmem:[#allocation4 + $0x78] sm:$0xff] %vm7190_vm6, %v7029_v11  ;;  %7818 = vrot.lane.b32.xlu1 %v6511_v38, %s9638_s29  ;;  %7816 = vrot.lane.b32.xlu0 %v6510_v24, %s9638_s29  ;;  %v6518_v11 = vld [vmem:[#allocation3 + $0x1e2] sm:$0xff] }
 0x91a   :  { %v7412_v21 = vpop.permute.xlu1 %7411  ;;  %v7410_v60 = vpop.permute.xlu0 %7409 }
 0x91b   :  { %7590 = vst.msk [vmem:[#allocation4 + $0x70] sm:$0xff] %vm7575_vm7, %v7412_v21  ;;  %7589 = vst.msk [vmem:[#allocation4 + $0x68] sm:$0xff] %vm7575_vm7, %v7410_v60 }
 0x91c   :  { %7822 = vrot.lane.b32.xlu1 %v7667_v3, %s9638_s29  ;;  %7820 = vrot.lane.b32.xlu0 %v7666_v8, %s9638_s29 }
 0x91e   :  { %v7793_v16 = vpop.permute.xlu1 %7792  ;;  %v7414_v61 = vpop.permute.xlu0 %7413 }
 0x91f   :  { %7973 = vst.msk [vmem:[#allocation4 + $0x60] sm:$0xff] %vm7960_vm8, %v7793_v16 }
 0x920   :  { %7591 = vst.msk [vmem:[#allocation4 + $0x78] sm:$0xff] %vm7575_vm7, %v7414_v61  ;;  %6285 = vrot.lane.b32.xlu1 %v7282_v31, %s9635_s3  ;;  %6283 = vrot.lane.b32.xlu0 %v7281_v13, %s9635_s3 }
 0x922   :  { %v7797_v37 = vpop.permute.xlu1 %7796  ;;  %v7795_v22 = vpop.permute.xlu0 %7794 }
 0x923   :  { %7975 = vst.msk [vmem:[#allocation4 + $0x70] sm:$0xff] %vm7960_vm8, %v7797_v37  ;;  %7974 = vst.msk [vmem:[#allocation4 + $0x68] sm:$0xff] %vm7960_vm8, %v7795_v22  ;;  %v6905_v37 = vld [vmem:[#allocation3 + $0x200] sm:$0xff]  ;;  %v6904_v22 = vld [vmem:[#allocation3 + $0x1f8] sm:$0xff] }
 0x924   :  { %6289 = vrot.lane.b32.xlu1 %v6130_v18, %s9635_s3  ;;  %6287 = vrot.lane.b32.xlu0 %v6129_v33, %s9635_s3 }
 0x926   :  { %v6645_v25 = vpop.permute.xlu1 %6644  ;;  %v7799_v32 = vpop.permute.xlu0 %7798  ;;  %v8037_v36 = vld [vmem:[#allocation4 + $0x60] sm:$0xff] }
 0x927   :  { %6821 = vst.msk [vmem:[#allocation4 + $0x80] sm:$0xff] %vm6804_vm5, %v6645_v25 }
 0x928   :  { %7976 = vst.msk [vmem:[#allocation4 + $0x78] sm:$0xff] %vm7960_vm8, %v7799_v32  ;;  %6670 = vrot.lane.b32.xlu1 %v7667_v3, %s9636_s10  ;;  %6668 = vrot.lane.b32.xlu0 %v7666_v8, %s9636_s10  ;;  %v6903_v3 = vld [vmem:[#allocation3 + $0x1e8] sm:$0xff]  ;;  %v6902_v8 = vld [vmem:[#allocation3 + $0x1e0] sm:$0xff] }
 0x92a   :  { %v6649_v55 = vpop.permute.xlu1 %6648  ;;  %v6647_v51 = vpop.permute.xlu0 %6646  ;;  %v8038_v54 = vld [vmem:[#allocation4 + $0x68] sm:$0xff]  ;;  %v8039_v27 = vld [vmem:[#allocation4 + $0x70] sm:$0xff] }
 0x92b   :  { %6823 = vst.msk [vmem:[#allocation4 + $0x90] sm:$0xff] %vm6804_vm5, %v6649_v55  ;;  %6822 = vst.msk [vmem:[#allocation4 + $0x88] sm:$0xff] %vm6804_vm5, %v6647_v51  ;;  %v8095_v28 = vpack.c.bf16 %v8038_v54, %v8037_v36  ;;  %v7290_v55 = vld [vmem:[#allocation3 + $0x201] sm:$0xff]  ;;  %v7289_v51 = vld [vmem:[#allocation3 + $0x1f9] sm:$0xff] }
 0x92c   :  { %6674 = vrot.lane.b32.xlu1 %v6515_v2, %s9636_s10  ;;  %6672 = vrot.lane.b32.xlu0 %v6514_v19, %s9636_s10 }
 0x92d   :  { %9539 = vmatprep.mubr.msk.bf16.mxu1 %vm8157_vm9, %v8095_v28 }
 0x92e   :  { %v7031_v42 = vpop.permute.xlu1 %7030  ;;  %v6651_v34 = vpop.permute.xlu0 %6650 }
 0x92f   :  { %v8040_v62 = vld [vmem:[#allocation4 + $0x78] sm:$0xff]  ;;  %7207 = vst.msk [vmem:[#allocation4 + $0x80] sm:$0xff] %vm7190_vm6, %v7031_v42 }
 0x930   :  { %6824 = vst.msk [vmem:[#allocation4 + $0x98] sm:$0xff] %vm6804_vm5, %v6651_v34  ;;  %v8096_v15 = vpack.c.bf16 %v8040_v62, %v8039_v27  ;;  %7056 = vrot.lane.b32.xlu1 %v6899_v5, %s9628_s18  ;;  %7054 = vrot.lane.b32.xlu0 %v6898_v57, %s9628_s18  ;;  %v7675_v34 = vld [vmem:[#allocation3 + $0x202] sm:$0xff]  ;;  %v7674_v27 = vld [vmem:[#allocation3 + $0x1fa] sm:$0xff] }
 0x932   :  { %9540 = vmatmul.mubr.msk.bf16.gmra.mrb[12].mxu1 %vm8157_vm9, %v8096_v15  ;;  %v7035_v29 = vpop.permute.xlu1 %7034  ;;  %v7033_v50 = vpop.permute.xlu0 %7032 }
 0x933   :  { %7209 = vst.msk [vmem:[#allocation4 + $0x90] sm:$0xff] %vm7190_vm6, %v7035_v29  ;;  %7208 = vst.msk [vmem:[#allocation4 + $0x88] sm:$0xff] %vm7190_vm6, %v7033_v50 }
 0x934   :  { %7060 = vrot.lane.b32.xlu1 %v6901_v30, %s9628_s18  ;;  %7058 = vrot.lane.b32.xlu0 %v6900_v0, %s9628_s18 }
 0x936   :  { %v7416_v26 = vpop.permute.xlu1 %7415  ;;  %v7037_v63 = vpop.permute.xlu0 %7036 }
 0x937   :  { %7592 = vst.msk [vmem:[#allocation4 + $0x80] sm:$0xff] %vm7575_vm7, %v7416_v26  ;;  %v6138_v26 = vld [vmem:[#allocation3 + $0x219] sm:$0xff] }
 0x938   :  { %7210 = vst.msk [vmem:[#allocation4 + $0x98] sm:$0xff] %vm7190_vm6, %v7037_v63  ;;  %7441 = vrot.lane.b32.xlu1 %v6130_v18, %s9637_s24  ;;  %7439 = vrot.lane.b32.xlu0 %v6129_v33, %s9637_s24  ;;  %v6137_v63 = vld [vmem:[#allocation3 + $0x211] sm:$0xff] }
 0x93a   :  { %v7420_v53 = vpop.permute.xlu1 %7419  ;;  %v7418_v14 = vpop.permute.xlu0 %7417 }
 0x93b   :  { %7594 = vst.msk [vmem:[#allocation4 + $0x90] sm:$0xff] %vm7575_vm7, %v7420_v53  ;;  %7593 = vst.msk [vmem:[#allocation4 + $0x88] sm:$0xff] %vm7575_vm7, %v7418_v14 }
 0x93c   :  { %7445 = vrot.lane.b32.xlu1 %v7286_v7, %s9637_s24  ;;  %7443 = vrot.lane.b32.xlu0 %v7285_v43, %s9637_s24 }
 0x93e   :  { %v7801_v10 = vpop.permute.xlu1 %7800  ;;  %v7422_v40 = vpop.permute.xlu0 %7421 }
 0x93f   :  { %7977 = vst.msk [vmem:[#allocation4 + $0x80] sm:$0xff] %vm7960_vm8, %v7801_v10  ;;  %v6523_v10 = vld [vmem:[#allocation3 + $0x21a] sm:$0xff] }
 0x940   :  { %7595 = vst.msk [vmem:[#allocation4 + $0x98] sm:$0xff] %vm7575_vm7, %v7422_v40  ;;  %7826 = vrot.lane.b32.xlu1 %v6515_v2, %s9638_s29  ;;  %7824 = vrot.lane.b32.xlu0 %v6514_v19, %s9638_s29  ;;  %v6522_v40 = vld [vmem:[#allocation3 + $0x212] sm:$0xff] }
 0x942   :  { %v7805_v38 = vpop.permute.xlu1 %7804  ;;  %v7803_v24 = vpop.permute.xlu0 %7802 }
 0x943   :  { %7979 = vst.msk [vmem:[#allocation4 + $0x90] sm:$0xff] %vm7960_vm8, %v7805_v38  ;;  %7978 = vst.msk [vmem:[#allocation4 + $0x88] sm:$0xff] %vm7960_vm8, %v7803_v24  ;;  %v6907_v38 = vld [vmem:[#allocation3 + $0x218] sm:$0xff]  ;;  %v6906_v24 = vld [vmem:[#allocation3 + $0x210] sm:$0xff] }
 0x944   :  { %7830 = vrot.lane.b32.xlu1 %v7671_v45, %s9638_s29  ;;  %7828 = vrot.lane.b32.xlu0 %v7670_v49, %s9638_s29 }
 0x946   :  { %v6274_v48 = vpop.permute.xlu1 %6273  ;;  %v7807_v9 = vpop.permute.xlu0 %7806  ;;  %v8041_v1 = vld [vmem:[#allocation4 + $0x80] sm:$0xff] }
 0x947   :  { %6443 = vst.msk [vmem:[#allocation4 + $0xb8] sm:$0xff] %vm6419_vm4, %v6274_v48 }
 0x948   :  { %7980 = vst.msk [vmem:[#allocation4 + $0x98] sm:$0xff] %vm7960_vm8, %v7807_v9  ;;  %6293 = vrot.lane.b32.xlu1 %v6132_v12, %s9635_s3  ;;  %6291 = vrot.lane.b32.xlu0 %v6131_v52, %s9635_s3  ;;  %v6909_v12 = vld [vmem:[#allocation3 + $0x230] sm:$0xff]  ;;  %v6908_v52 = vld [vmem:[#allocation3 + $0x228] sm:$0xff] }
 0x94a   :  { %v6655_v56 = vpop.permute.xlu1 %6654  ;;  %v6653_v17 = vpop.permute.xlu0 %6652  ;;  %v8042_v41 = vld [vmem:[#allocation4 + $0x88] sm:$0xff]  ;;  %v8043_v46 = vld [vmem:[#allocation4 + $0x90] sm:$0xff] }
 0x94b   :  { %6826 = vst.msk [vmem:[#allocation4 + $0xa8] sm:$0xff] %vm6804_vm5, %v6655_v56  ;;  %6825 = vst.msk [vmem:[#allocation4 + $0xa0] sm:$0xff] %vm6804_vm5, %v6653_v17  ;;  %v8097_v6 = vpack.c.bf16 %v8042_v41, %v8041_v1 }
 0x94c   :  { %6297 = vrot.lane.b32.xlu1 %v6134_v44, %s9635_s3  ;;  %6295 = vrot.lane.b32.xlu0 %v6133_v23, %s9635_s3 }
 0x94d   :  { %9543 = vmatprep.mubr.msk.bf16.mxu1 %vm8157_vm9, %v8097_v6 }
 0x94e   :  { %v6659_v35 = vpop.permute.xlu1 %6658  ;;  %v6657_v58 = vpop.permute.xlu0 %6656 }
 0x94f   :  { %v8044_v4 = vld [vmem:[#allocation4 + $0x98] sm:$0xff]  ;;  %6828 = vst.msk [vmem:[#allocation4 + $0xb8] sm:$0xff] %vm6804_vm5, %v6659_v35  ;;  %6827 = vst.msk [vmem:[#allocation4 + $0xb0] sm:$0xff] %vm6804_vm5, %v6657_v58 }
 0x950   :  { %v8098_v39 = vpack.c.bf16 %v8044_v4, %v8043_v46  ;;  %6678 = vrot.lane.b32.xlu1 %v6517_v59, %s9636_s10  ;;  %6676 = vrot.lane.b32.xlu0 %v6516_v47, %s9636_s10  ;;  %v7679_v47 = vld [vmem:[#allocation3 + $0x232] sm:$0xff] }
 0x952   :  { %9544 = vmatmul.mubr.msk.bf16.gmra.mrb[16].mxu1 %vm8157_vm9, %v8098_v39  ;;  %v7041_v31 = vpop.permute.xlu1 %7040  ;;  %v7039_v13 = vpop.permute.xlu0 %7038  ;;  %v7678_v39 = vld [vmem:[#allocation3 + $0x22a] sm:$0xff] }
 0x953   :  { %7212 = vst.msk [vmem:[#allocation4 + $0xa8] sm:$0xff] %vm7190_vm6, %v7041_v31  ;;  %7211 = vst.msk [vmem:[#allocation4 + $0xa0] sm:$0xff] %vm7190_vm6, %v7039_v13 }
 0x954   :  { %6682 = vrot.lane.b32.xlu1 %v6519_v20, %s9636_s10  ;;  %6680 = vrot.lane.b32.xlu0 %v6518_v11, %s9636_s10 }
 0x956   :  { %v7045_v21 = vpop.permute.xlu1 %7044  ;;  %v7043_v60 = vpop.permute.xlu0 %7042 }
 0x957   :  { %7214 = vst.msk [vmem:[#allocation4 + $0xb8] sm:$0xff] %vm7190_vm6, %v7045_v21  ;;  %7213 = vst.msk [vmem:[#allocation4 + $0xb0] sm:$0xff] %vm7190_vm6, %v7043_v60 }
 0x958   :  { %7064 = vrot.lane.b32.xlu1 %v6903_v3, %s9628_s18  ;;  %7062 = vrot.lane.b32.xlu0 %v6902_v8, %s9628_s18 }
 0x95a   :  { %v7426_v16 = vpop.permute.xlu1 %7425  ;;  %v7424_v61 = vpop.permute.xlu0 %7423 }
 0x95b   :  { %7597 = vst.msk [vmem:[#allocation4 + $0xa8] sm:$0xff] %vm7575_vm7, %v7426_v16  ;;  %7596 = vst.msk [vmem:[#allocation4 + $0xa0] sm:$0xff] %vm7575_vm7, %v7424_v61  ;;  %v6142_v16 = vld [vmem:[#allocation3 + $0x249] sm:$0xff]  ;;  %v6141_v61 = vld [vmem:[#allocation3 + $0x241] sm:$0xff] }
 0x95c   :  { %7068 = vrot.lane.b32.xlu1 %v6905_v37, %s9628_s18  ;;  %7066 = vrot.lane.b32.xlu0 %v6904_v22, %s9628_s18 }
 0x95e   :  { %v7430_v18 = vpop.permute.xlu1 %7429  ;;  %v7428_v33 = vpop.permute.xlu0 %7427 }
 0x95f   :  { %7599 = vst.msk [vmem:[#allocation4 + $0xb8] sm:$0xff] %vm7575_vm7, %v7430_v18  ;;  %7598 = vst.msk [vmem:[#allocation4 + $0xb0] sm:$0xff] %vm7575_vm7, %v7428_v33 }
 0x960   :  { %7449 = vrot.lane.b32.xlu1 %v6134_v44, %s9637_s24  ;;  %7447 = vrot.lane.b32.xlu0 %v6133_v23, %s9637_s24  ;;  %v7294_v44 = vld [vmem:[#allocation3 + $0x231] sm:$0xff]  ;;  %v7293_v23 = vld [vmem:[#allocation3 + $0x229] sm:$0xff] }
 0x962   :  { %v7811_v25 = vpop.permute.xlu1 %7810  ;;  %v7809_v32 = vpop.permute.xlu0 %7808 }
 0x963   :  { %7982 = vst.msk [vmem:[#allocation4 + $0xa8] sm:$0xff] %vm7960_vm8, %v7811_v25  ;;  %7981 = vst.msk [vmem:[#allocation4 + $0xa0] sm:$0xff] %vm7960_vm8, %v7809_v32  ;;  %v6527_v25 = vld [vmem:[#allocation3 + $0x24a] sm:$0xff]  ;;  %v6526_v32 = vld [vmem:[#allocation3 + $0x242] sm:$0xff] }
 0x964   :  { %7453 = vrot.lane.b32.xlu1 %v7290_v55, %s9637_s24  ;;  %7451 = vrot.lane.b32.xlu0 %v7289_v51, %s9637_s24 }
 0x966   :  { %v7815_v36 = vpop.permute.xlu1 %7814  ;;  %v7813_v54 = vpop.permute.xlu0 %7812 }
 0x967   :  { %7984 = vst.msk [vmem:[#allocation4 + $0xb8] sm:$0xff] %vm7960_vm8, %v7815_v36  ;;  %7983 = vst.msk [vmem:[#allocation4 + $0xb0] sm:$0xff] %vm7960_vm8, %v7813_v54 }
 0x968   :  { %7834 = vrot.lane.b32.xlu1 %v6519_v20, %s9638_s29  ;;  %7832 = vrot.lane.b32.xlu0 %v6518_v11, %s9638_s29 }
 0x96a   :  { %v6278_v2 = vpop.permute.xlu1 %6277  ;;  %v6276_v19 = vpop.permute.xlu0 %6275  ;;  %v8045_v28 = vld [vmem:[#allocation4 + $0xa0] sm:$0xff]  ;;  %v8046_v42 = vld [vmem:[#allocation4 + $0xa8] sm:$0xff] }
 0x96b   :  { %6445 = vst.msk [vmem:[#allocation4 + $0xc8] sm:$0xff] %vm6419_vm4, %v6278_v2  ;;  %6444 = vst.msk [vmem:[#allocation4 + $0xc0] sm:$0xff] %vm6419_vm4, %v6276_v19  ;;  %v8099_v62 = vpack.c.bf16 %v8046_v42, %v8045_v28  ;;  %v6911_v19 = vld [vmem:[#allocation3 + $0x248] sm:$0xff]  ;;  %v6910_v28 = vld [vmem:[#allocation3 + $0x240] sm:$0xff] }
 0x96c   :  { %7838 = vrot.lane.b32.xlu1 %v7675_v34, %s9638_s29  ;;  %7836 = vrot.lane.b32.xlu0 %v7674_v27, %s9638_s29 }
 0x96d   :  { %9547 = vmatprep.mubr.msk.bf16.mxu1 %vm8157_vm9, %v8099_v62 }
 0x96e   :  { %v6282_v5 = vpop.permute.xlu1 %6281  ;;  %v6280_v57 = vpop.permute.xlu0 %6279  ;;  %v8047_v15 = vld [vmem:[#allocation4 + $0xb0] sm:$0xff]  ;;  %v8048_v30 = vld [vmem:[#allocation4 + $0xb8] sm:$0xff] }
 0x96f   :  { %6447 = vst.msk [vmem:[#allocation4 + $0xd8] sm:$0xff] %vm6419_vm4, %v6282_v5  ;;  %6446 = vst.msk [vmem:[#allocation4 + $0xd0] sm:$0xff] %vm6419_vm4, %v6280_v57  ;;  %v8100_v0 = vpack.c.bf16 %v8048_v30, %v8047_v15  ;;  %v6913_v30 = vld [vmem:[#allocation3 + $0x260] sm:$0xff] }
 0x970   :  { %6301 = vrot.lane.b32.xlu1 %v7290_v55, %s9635_s3  ;;  %6299 = vrot.lane.b32.xlu0 %v7289_v51, %s9635_s3 }
 0x971   :  { %9548 = vmatmul.mubr.msk.bf16.gmra.mrb[20].mxu1 %vm8157_vm9, %v8100_v0  ;;  %v6912_v0 = vld [vmem:[#allocation3 + $0x258] sm:$0xff] }
 0x972   :  { %v6663_v29 = vpop.permute.xlu1 %6662  ;;  %v6661_v50 = vpop.permute.xlu0 %6660 }
 0x973   :  { %6830 = vst.msk [vmem:[#allocation4 + $0xc8] sm:$0xff] %vm6804_vm5, %v6663_v29  ;;  %6829 = vst.msk [vmem:[#allocation4 + $0xc0] sm:$0xff] %vm6804_vm5, %v6661_v50 }
 0x974   :  { %6305 = vrot.lane.b32.xlu1 %v6138_v26, %s9635_s3  ;;  %6303 = vrot.lane.b32.xlu0 %v6137_v63, %s9635_s3 }
 0x976   :  { %v6667_v7 = vpop.permute.xlu1 %6666  ;;  %v6665_v43 = vpop.permute.xlu0 %6664 }
 0x977   :  { %6832 = vst.msk [vmem:[#allocation4 + $0xd8] sm:$0xff] %vm6804_vm5, %v6667_v7  ;;  %6831 = vst.msk [vmem:[#allocation4 + $0xd0] sm:$0xff] %vm6804_vm5, %v6665_v43 }
 0x978   :  { %6686 = vrot.lane.b32.xlu1 %v7675_v34, %s9636_s10  ;;  %6684 = vrot.lane.b32.xlu0 %v7674_v27, %s9636_s10 }
 0x97a   :  { %v7049_v53 = vpop.permute.xlu1 %7048  ;;  %v7047_v14 = vpop.permute.xlu0 %7046 }
 0x97b   :  { %7216 = vst.msk [vmem:[#allocation4 + $0xc8] sm:$0xff] %vm7190_vm6, %v7049_v53  ;;  %7215 = vst.msk [vmem:[#allocation4 + $0xc0] sm:$0xff] %vm7190_vm6, %v7047_v14  ;;  %v7298_v14 = vld [vmem:[#allocation3 + $0x261] sm:$0xff] }
 0x97c   :  { %6690 = vrot.lane.b32.xlu1 %v6523_v10, %s9636_s10  ;;  %6688 = vrot.lane.b32.xlu0 %v6522_v40, %s9636_s10 }
 0x97e   :  { %v7053_v45 = vpop.permute.xlu1 %7052  ;;  %v7051_v49 = vpop.permute.xlu0 %7050 }
 0x97f   :  { %7218 = vst.msk [vmem:[#allocation4 + $0xd8] sm:$0xff] %vm7190_vm6, %v7053_v45  ;;  %7217 = vst.msk [vmem:[#allocation4 + $0xd0] sm:$0xff] %vm7190_vm6, %v7051_v49 }
 0x980   :  { %7072 = vrot.lane.b32.xlu1 %v6907_v38, %s9628_s18  ;;  %7070 = vrot.lane.b32.xlu0 %v6906_v24, %s9628_s18 }
 0x982   :  { %v7434_v48 = vpop.permute.xlu1 %7433  ;;  %v7432_v9 = vpop.permute.xlu0 %7431 }
 0x983   :  { %7601 = vst.msk [vmem:[#allocation4 + $0xc8] sm:$0xff] %vm7575_vm7, %v7434_v48  ;;  %7600 = vst.msk [vmem:[#allocation4 + $0xc0] sm:$0xff] %vm7575_vm7, %v7432_v9  ;;  %v7683_v9 = vld [vmem:[#allocation3 + $0x262] sm:$0xff] }
 0x984   :  { %7076 = vrot.lane.b32.xlu1 %v6909_v12, %s9628_s18  ;;  %7074 = vrot.lane.b32.xlu0 %v6908_v52, %s9628_s18  ;;  %v7682_v12 = vld [vmem:[#allocation3 + $0x25a] sm:$0xff] }
 0x986   :  { %v7438_v56 = vpop.permute.xlu1 %7437  ;;  %v7436_v17 = vpop.permute.xlu0 %7435 }
 0x987   :  { %7603 = vst.msk [vmem:[#allocation4 + $0xd8] sm:$0xff] %vm7575_vm7, %v7438_v56  ;;  %7602 = vst.msk [vmem:[#allocation4 + $0xd0] sm:$0xff] %vm7575_vm7, %v7436_v17 }
 0x988   :  { %7457 = vrot.lane.b32.xlu1 %v6138_v26, %s9637_s24  ;;  %7455 = vrot.lane.b32.xlu0 %v6137_v63, %s9637_s24 }
 0x98a   :  { %v7819_v1 = vpop.permute.xlu1 %7818  ;;  %v7817_v41 = vpop.permute.xlu0 %7816 }
 0x98b   :  { %7986 = vst.msk [vmem:[#allocation4 + $0xc8] sm:$0xff] %vm7960_vm8, %v7819_v1  ;;  %7985 = vst.msk [vmem:[#allocation4 + $0xc0] sm:$0xff] %vm7960_vm8, %v7817_v41 }
 0x98c   :  { %7461 = vrot.lane.b32.xlu1 %v7294_v44, %s9637_s24  ;;  %7459 = vrot.lane.b32.xlu0 %v7293_v23, %s9637_s24 }
 0x98e   :  { %v7823_v6 = vpop.permute.xlu1 %7822  ;;  %v7821_v35 = vpop.permute.xlu0 %7820 }
 0x98f   :  { %7988 = vst.msk [vmem:[#allocation4 + $0xd8] sm:$0xff] %vm7960_vm8, %v7823_v6  ;;  %7987 = vst.msk [vmem:[#allocation4 + $0xd0] sm:$0xff] %vm7960_vm8, %v7821_v35  ;;  %v6146_v35 = vld [vmem:[#allocation3 + $0x279] sm:$0xff] }
 0x990   :  { %7842 = vrot.lane.b32.xlu1 %v6523_v10, %s9638_s29  ;;  %7840 = vrot.lane.b32.xlu0 %v6522_v40, %s9638_s29  ;;  %v7297_v10 = vld [vmem:[#allocation3 + $0x259] sm:$0xff] }
 0x992   :  { %v6286_v58 = vpop.permute.xlu1 %6285  ;;  %v6284_v46 = vpop.permute.xlu0 %6283  ;;  %v8049_v4 = vld [vmem:[#allocation4 + $0xc0] sm:$0xff]  ;;  %v8050_v59 = vld [vmem:[#allocation4 + $0xc8] sm:$0xff] }
 0x993   :  { %6449 = vst.msk [vmem:[#allocation4 + $0xe8] sm:$0xff] %vm6419_vm4, %v6286_v58  ;;  %6448 = vst.msk [vmem:[#allocation4 + $0xe0] sm:$0xff] %vm6419_vm4, %v6284_v46  ;;  %v8101_v31 = vpack.c.bf16 %v8050_v59, %v8049_v4  ;;  %v6145_v58 = vld [vmem:[#allocation3 + $0x271] sm:$0xff] }
 0x994   :  { %7846 = vrot.lane.b32.xlu1 %v7679_v47, %s9638_s29  ;;  %7844 = vrot.lane.b32.xlu0 %v7678_v39, %s9638_s29 }
 0x995   :  { %9551 = vmatprep.mubr.msk.bf16.mxu1 %vm8157_vm9, %v8101_v31 }
 0x996   :  { %v6290_v13 = vpop.permute.xlu1 %6289  ;;  %v6288_v20 = vpop.permute.xlu0 %6287  ;;  %v8051_v11 = vld [vmem:[#allocation4 + $0xd0] sm:$0xff]  ;;  %v8052_v21 = vld [vmem:[#allocation4 + $0xd8] sm:$0xff] }
 0x997   :  { %6451 = vst.msk [vmem:[#allocation4 + $0xf8] sm:$0xff] %vm6419_vm4, %v6290_v13  ;;  %6450 = vst.msk [vmem:[#allocation4 + $0xf0] sm:$0xff] %vm6419_vm4, %v6288_v20  ;;  %v8102_v60 = vpack.c.bf16 %v8052_v21, %v8051_v11 }
 0x998   :  { %6309 = vrot.lane.b32.xlu1 %v7294_v44, %s9635_s3  ;;  %6307 = vrot.lane.b32.xlu0 %v7293_v23, %s9635_s3 }
 0x999   :  { %9552 = vmatmul.mubr.msk.bf16.gmra.mrb[24].mxu1 %vm8157_vm9, %v8102_v60 }
 0x99a   :  { %v6671_v3 = vpop.permute.xlu1 %6670  ;;  %v6669_v8 = vpop.permute.xlu0 %6668 }
 0x99b   :  { %6834 = vst.msk [vmem:[#allocation4 + $0xe8] sm:$0xff] %vm6804_vm5, %v6671_v3  ;;  %6833 = vst.msk [vmem:[#allocation4 + $0xe0] sm:$0xff] %vm6804_vm5, %v6669_v8 }
 0x99c   :  { %6313 = vrot.lane.b32.xlu1 %v6142_v16, %s9635_s3  ;;  %6311 = vrot.lane.b32.xlu0 %v6141_v61, %s9635_s3 }
 0x99e   :  { %v6675_v37 = vpop.permute.xlu1 %6674  ;;  %v6673_v22 = vpop.permute.xlu0 %6672 }
 0x99f   :  { %6836 = vst.msk [vmem:[#allocation4 + $0xf8] sm:$0xff] %vm6804_vm5, %v6675_v37  ;;  %6835 = vst.msk [vmem:[#allocation4 + $0xf0] sm:$0xff] %vm6804_vm5, %v6673_v22 }
 0x9a0   :  { %6694 = vrot.lane.b32.xlu1 %v7679_v47, %s9636_s10  ;;  %6692 = vrot.lane.b32.xlu0 %v7678_v39, %s9636_s10 }
 0x9a2   :  { %v7057_v18 = vpop.permute.xlu1 %7056  ;;  %v7055_v33 = vpop.permute.xlu0 %7054 }
 0x9a3   :  { %7220 = vst.msk [vmem:[#allocation4 + $0xe8] sm:$0xff] %vm7190_vm6, %v7057_v18  ;;  %7219 = vst.msk [vmem:[#allocation4 + $0xe0] sm:$0xff] %vm7190_vm6, %v7055_v33 }
 0x9a4   :  { %6698 = vrot.lane.b32.xlu1 %v6527_v25, %s9636_s10  ;;  %6696 = vrot.lane.b32.xlu0 %v6526_v32, %s9636_s10 }
 0x9a5   :  { %v14421_v55 = vpop.f32.mrb[0].mxu1 }
 0x9a6   :  { %v14423_v51 = vpop.f32.mrb[1].mxu1  ;;  %v7061_v36 = vpop.permute.xlu1 %7060  ;;  %v8550_v15 = vsel %vm3994_vm13, %v14421_v55, 0.0 }
 0x9a7   :  { %v7059_v54 = vpop.permute.xlu0 %7058  ;;  %7222 = vst.msk [vmem:[#allocation4 + $0xf8] sm:$0xff] %vm7190_vm6, %v7061_v36  ;;  %v14427_v2 = vpop.f32.mrb[2].mxu1  ;;  %v8547_v34 = vsel %vm3994_vm13, %v14423_v51, 0.0  ;;  %v6914_v36 = vld [vmem:[#allocation3 + $0x270] sm:$0xff] }
 0x9a8   :  { %7221 = vst.msk [vmem:[#allocation4 + $0xf0] sm:$0xff] %vm7190_vm6, %v7059_v54  ;;  %v14429_v42 = vpop.f32.mrb[3].mxu1  ;;  %7080 = vrot.lane.b32.xlu1 %v6911_v19, %s9628_s18  ;;  %7078 = vrot.lane.b32.xlu0 %v6910_v28, %s9628_s18  ;;  %v8552_v50 = vsel %vm3994_vm13, %v14427_v2, 0.0  ;;  %v6917_v28 = vld [vmem:[#allocation3 + $0x290] sm:$0xff] }
 0x9a9   :  { %v8548_v27 = vsel %vm3994_vm13, %v14429_v42, 0.0 }
 0x9aa   :  { %v8549_v62 = vadd.f32 %v8548_v27, %v8547_v34  ;;  %v7442_v5 = vpop.permute.xlu1 %7441  ;;  %v6916_v34 = vld [vmem:[#allocation3 + $0x288] sm:$0xff] }
 0x9ab   :  { %v7440_v57 = vpop.permute.xlu0 %7439  ;;  %7605 = vst.msk [vmem:[#allocation4 + $0xe8] sm:$0xff] %vm7575_vm7, %v7442_v5 }
 0x9ac   :  { %7604 = vst.msk [vmem:[#allocation4 + $0xe0] sm:$0xff] %vm7575_vm7, %v7440_v57  ;;  %v8551_v29 = vadd.f32 %v8550_v15, %v8549_v62  ;;  %7084 = vrot.lane.b32.xlu1 %v6913_v30, %s9628_s18  ;;  %7082 = vrot.lane.b32.xlu0 %v6912_v0, %s9628_s18  ;;  %v7302_v15 = vld [vmem:[#allocation3 + $0x291] sm:$0xff]  ;;  %v7301_v30 = vld [vmem:[#allocation3 + $0x289] sm:$0xff] }
 0x9ae   :  { %v7446_v26 = vpop.permute.xlu1 %7445  ;;  %v8553_v7 = vadd.f32 %v8552_v50, %v8551_v29 }
 0x9af   :  { %v7444_v63 = vpop.permute.xlu0 %7443  ;;  %7607 = vst.msk [vmem:[#allocation4 + $0xf8] sm:$0xff] %vm7575_vm7, %v7446_v26 }
 0x9b0   :  { %7606 = vst.msk [vmem:[#allocation4 + $0xf0] sm:$0xff] %vm7575_vm7, %v7444_v63  ;;  %7465 = vrot.lane.b32.xlu1 %v6142_v16, %s9637_s24  ;;  %7463 = vrot.lane.b32.xlu0 %v6141_v61, %s9637_s24  ;;  %v6531_v16 = vld [vmem:[#allocation3 + $0x27a] sm:$0xff]  ;;  %v6530_v61 = vld [vmem:[#allocation3 + $0x272] sm:$0xff] }
 0x9b2   :  { %v7827_v43 = vpop.permute.xlu1 %7826 }
 0x9b3   :  { %v7825_v53 = vpop.permute.xlu0 %7824  ;;  %7990 = vst.msk [vmem:[#allocation4 + $0xe8] sm:$0xff] %vm7960_vm8, %v7827_v43  ;;  %v7687_v43 = vld [vmem:[#allocation3 + $0x292] sm:$0xff] }
 0x9b4   :  { %7989 = vst.msk [vmem:[#allocation4 + $0xe0] sm:$0xff] %vm7960_vm8, %v7825_v53  ;;  %7469 = vrot.lane.b32.xlu1 %v7298_v14, %s9637_s24  ;;  %7467 = vrot.lane.b32.xlu0 %v7297_v10, %s9637_s24  ;;  %v7686_v53 = vld [vmem:[#allocation3 + $0x28a] sm:$0xff] }
 0x9b6   :  { %v7831_v40 = vpop.permute.xlu1 %7830 }
 0x9b7   :  { %v7829_v45 = vpop.permute.xlu0 %7828  ;;  %7992 = vst.msk [vmem:[#allocation4 + $0xf8] sm:$0xff] %vm7960_vm8, %v7831_v40 }
 0x9b8   :  { %7991 = vst.msk [vmem:[#allocation4 + $0xf0] sm:$0xff] %vm7960_vm8, %v7829_v45  ;;  %7850 = vrot.lane.b32.xlu1 %v6527_v25, %s9638_s29  ;;  %7848 = vrot.lane.b32.xlu0 %v6526_v32, %s9638_s29  ;;  %v6915_v32 = vld [vmem:[#allocation3 + $0x278] sm:$0xff] }
 0x9ba   :  { %v6294_v49 = vpop.permute.xlu1 %6293  ;;  %v8054_v48 = vld [vmem:[#allocation4 + $0xe8] sm:$0xff] }
 0x9bb   :  { %v6292_v38 = vpop.permute.xlu0 %6291  ;;  %v8053_v24 = vld [vmem:[#allocation4 + $0xe0] sm:$0xff]  ;;  %6453 = vst.msk [vmem:[#allocation4 + $0x108] sm:$0xff] %vm6419_vm4, %v6294_v49 }
 0x9bc   :  { %6452 = vst.msk [vmem:[#allocation4 + $0x100] sm:$0xff] %vm6419_vm4, %v6292_v38  ;;  %v8103_v52 = vpack.c.bf16 %v8054_v48, %v8053_v24  ;;  %7854 = vrot.lane.b32.xlu1 %v7683_v9, %s9638_s29  ;;  %7852 = vrot.lane.b32.xlu0 %v7682_v12, %s9638_s29 }
 0x9be   :  { %9555 = vmatprep.mubr.msk.bf16.mxu1 %vm8157_vm9, %v8103_v52  ;;  %v6298_v56 = vpop.permute.xlu1 %6297  ;;  %v8056_v41 = vld [vmem:[#allocation4 + $0xf8] sm:$0xff] }
 0x9bf   :  { %v6296_v17 = vpop.permute.xlu0 %6295  ;;  %v8055_v1 = vld [vmem:[#allocation4 + $0xf0] sm:$0xff]  ;;  %6455 = vst.msk [vmem:[#allocation4 + $0x118] sm:$0xff] %vm6419_vm4, %v6298_v56 }
 0x9c0   :  { %6454 = vst.msk [vmem:[#allocation4 + $0x110] sm:$0xff] %vm6419_vm4, %v6296_v17  ;;  %v8104_v44 = vpack.c.bf16 %v8056_v41, %v8055_v1  ;;  %6317 = vrot.lane.b32.xlu1 %v7298_v14, %s9635_s3  ;;  %6315 = vrot.lane.b32.xlu0 %v7297_v10, %s9635_s3 }
 0x9c2   :  { %9556 = vmatmul.mubr.msk.bf16.gmra.mrb[28].mxu1 %vm8157_vm9, %v8104_v44  ;;  %v6679_v23 = vpop.permute.xlu1 %6678 }
 0x9c3   :  { %v6677_v6 = vpop.permute.xlu0 %6676  ;;  %6838 = vst.msk [vmem:[#allocation4 + $0x108] sm:$0xff] %vm6804_vm5, %v6679_v23 }
 0x9c4   :  { %6837 = vst.msk [vmem:[#allocation4 + $0x100] sm:$0xff] %vm6804_vm5, %v6677_v6  ;;  %6321 = vrot.lane.b32.xlu1 %v6146_v35, %s9635_s3  ;;  %6319 = vrot.lane.b32.xlu0 %v6145_v58, %s9635_s3  ;;  %v6150_v6 = vld [vmem:[#allocation3 + $0x2a9] sm:$0xff] }
 0x9c5   :  { %v14471_v46 = vpop.f32.mrb[4].mxu1 }
 0x9c6   :  { %v14473_v4 = vpop.f32.mrb[5].mxu1  ;;  %v6683_v47 = vpop.permute.xlu1 %6682  ;;  %v8558_v8 = vsel %vm3994_vm13, %v14471_v46, 0.0 }
 0x9c7   :  { %v8554_v59 = vsel %vm3994_vm13, %v14473_v4, 0.0  ;;  %v6681_v39 = vpop.permute.xlu0 %6680  ;;  %6840 = vst.msk [vmem:[#allocation4 + $0x118] sm:$0xff] %vm6804_vm5, %v6683_v47  ;;  %v14479_v13 = vpop.f32.mrb[6].mxu1 }
 0x9c8   :  { %v8555_v31 = vadd.f32 %v8554_v59, %v8553_v7  ;;  %6839 = vst.msk [vmem:[#allocation4 + $0x110] sm:$0xff] %vm6804_vm5, %v6681_v39  ;;  %v14481_v20 = vpop.f32.mrb[7].mxu1  ;;  %6702 = vrot.lane.b32.xlu1 %v7683_v9, %s9636_s10  ;;  %6700 = vrot.lane.b32.xlu0 %v7682_v12, %s9636_s10  ;;  %v8560_v22 = vsel %vm3994_vm13, %v14479_v13, 0.0 }
 0x9c9   :  { %v8556_v11 = vsel %vm3994_vm13, %v14481_v20, 0.0 }
 0x9ca   :  { %v8557_v21 = vadd.f32 %v8556_v11, %v8555_v31  ;;  %v7065_v60 = vpop.permute.xlu1 %7064 }
 0x9cb   :  { %v7063_v3 = vpop.permute.xlu0 %7062  ;;  %7224 = vst.msk [vmem:[#allocation4 + $0x108] sm:$0xff] %vm7190_vm6, %v7065_v60  ;;  %v6535_v60 = vld [vmem:[#allocation3 + $0x2aa] sm:$0xff] }
 0x9cc   :  { %7223 = vst.msk [vmem:[#allocation4 + $0x100] sm:$0xff] %vm7190_vm6, %v7063_v3  ;;  %v8559_v37 = vadd.f32 %v8558_v8, %v8557_v21  ;;  %6706 = vrot.lane.b32.xlu1 %v6531_v16, %s9636_s10  ;;  %6704 = vrot.lane.b32.xlu0 %v6530_v61, %s9636_s10  ;;  %v6534_v3 = vld [vmem:[#allocation3 + $0x2a2] sm:$0xff] }
 0x9ce   :  { %v7069_v18 = vpop.permute.xlu1 %7068  ;;  %v8561_v25 = vadd.f32 %v8560_v22, %v8559_v37  ;;  %v6918_v37 = vld [vmem:[#allocation3 + $0x2a0] sm:$0xff] }
 0x9cf   :  { %v7067_v33 = vpop.permute.xlu0 %7066  ;;  %7226 = vst.msk [vmem:[#allocation4 + $0x118] sm:$0xff] %vm7190_vm6, %v7069_v18 }
 0x9d0   :  { %7225 = vst.msk [vmem:[#allocation4 + $0x110] sm:$0xff] %vm7190_vm6, %v7067_v33  ;;  %7088 = vrot.lane.b32.xlu1 %v6915_v32, %s9628_s18  ;;  %7086 = vrot.lane.b32.xlu0 %v6914_v36, %s9628_s18  ;;  %v6921_v33 = vld [vmem:[#allocation3 + $0x2c0] sm:$0xff] }
 0x9d2   :  { %v7450_v54 = vpop.permute.xlu1 %7449 }
 0x9d3   :  { %v7448_v19 = vpop.permute.xlu0 %7447  ;;  %7609 = vst.msk [vmem:[#allocation4 + $0x108] sm:$0xff] %vm7575_vm7, %v7450_v54 }
 0x9d4   :  { %7608 = vst.msk [vmem:[#allocation4 + $0x100] sm:$0xff] %vm7575_vm7, %v7448_v19  ;;  %7092 = vrot.lane.b32.xlu1 %v6917_v28, %s9628_s18  ;;  %7090 = vrot.lane.b32.xlu0 %v6916_v34, %s9628_s18  ;;  %v7306_v28 = vld [vmem:[#allocation3 + $0x2c1] sm:$0xff]  ;;  %v7305_v34 = vld [vmem:[#allocation3 + $0x2b9] sm:$0xff] }
 0x9d6   :  { %v7454_v27 = vpop.permute.xlu1 %7453 }
 0x9d7   :  { %v7452_v62 = vpop.permute.xlu0 %7451  ;;  %7611 = vst.msk [vmem:[#allocation4 + $0x118] sm:$0xff] %vm7575_vm7, %v7454_v27 }
 0x9d8   :  { %7610 = vst.msk [vmem:[#allocation4 + $0x110] sm:$0xff] %vm7575_vm7, %v7452_v62  ;;  %7473 = vrot.lane.b32.xlu1 %v6146_v35, %s9637_s24  ;;  %7471 = vrot.lane.b32.xlu0 %v6145_v58, %s9637_s24  ;;  %v6149_v35 = vld [vmem:[#allocation3 + $0x2a1] sm:$0xff] }
 0x9da   :  { %v7835_v5 = vpop.permute.xlu1 %7834 }
 0x9db   :  { %v7833_v57 = vpop.permute.xlu0 %7832  ;;  %7994 = vst.msk [vmem:[#allocation4 + $0x108] sm:$0xff] %vm7960_vm8, %v7835_v5 }
 0x9dc   :  { %7993 = vst.msk [vmem:[#allocation4 + $0x100] sm:$0xff] %vm7960_vm8, %v7833_v57  ;;  %7477 = vrot.lane.b32.xlu1 %v7302_v15, %s9637_s24  ;;  %7475 = vrot.lane.b32.xlu0 %v7301_v30, %s9637_s24 }
 0x9de   :  { %v7839_v0 = vpop.permute.xlu1 %7838 }
 0x9df   :  { %v7837_v29 = vpop.permute.xlu0 %7836  ;;  %7996 = vst.msk [vmem:[#allocation4 + $0x118] sm:$0xff] %vm7960_vm8, %v7839_v0 }
 0x9e0   :  { %7995 = vst.msk [vmem:[#allocation4 + $0x110] sm:$0xff] %vm7960_vm8, %v7837_v29  ;;  %7858 = vrot.lane.b32.xlu1 %v6531_v16, %s9638_s29  ;;  %7856 = vrot.lane.b32.xlu0 %v6530_v61, %s9638_s29  ;;  %v6919_v61 = vld [vmem:[#allocation3 + $0x2a8] sm:$0xff] }
 0x9e2   :  { %v6302_v50 = vpop.permute.xlu1 %6301  ;;  %v8058_v7 = vld [vmem:[#allocation4 + $0x108] sm:$0xff] }
 0x9e3   :  { %v6300_v26 = vpop.permute.xlu0 %6299  ;;  %v8057_v63 = vld [vmem:[#allocation4 + $0x100] sm:$0xff]  ;;  %6457 = vst.msk [vmem:[#allocation4 + $0x128] sm:$0xff] %vm6419_vm4, %v6302_v50 }
 0x9e4   :  { %6456 = vst.msk [vmem:[#allocation4 + $0x120] sm:$0xff] %vm6419_vm4, %v6300_v26  ;;  %v8105_v14 = vpack.c.bf16 %v8058_v7, %v8057_v63  ;;  %7862 = vrot.lane.b32.xlu1 %v7687_v43, %s9638_s29  ;;  %7860 = vrot.lane.b32.xlu0 %v7686_v53, %s9638_s29 }
 0x9e5   :  { %v14519_v10 = vpop.f32.mrb[8].mxu1 }
 0x9e6   :  { %v14521_v40 = vpop.f32.mrb[9].mxu1  ;;  %9559 = vmatprep.mubr.msk.bf16.mxu1 %vm8157_vm9, %v8105_v14  ;;  %v6306_v49 = vpop.permute.xlu1 %6305  ;;  %v8060_v48 = vld [vmem:[#allocation4 + $0x118] sm:$0xff]  ;;  %v8566_v23 = vsel %vm3994_vm13, %v14519_v10, 0.0 }
 0x9e7   :  { %v8562_v45 = vsel %vm3994_vm13, %v14521_v40, 0.0  ;;  %v6304_v38 = vpop.permute.xlu0 %6303  ;;  %v8059_v24 = vld [vmem:[#allocation4 + $0x110] sm:$0xff]  ;;  %6459 = vst.msk [vmem:[#allocation4 + $0x138] sm:$0xff] %vm6419_vm4, %v6306_v49  ;;  %v14528_v12 = vpop.f32.mrb[10].mxu1  ;;  %v7690_v49 = vld [vmem:[#allocation3 + $0x2ba] sm:$0xff] }
 0x9e8   :  { %v8563_v9 = vadd.f32 %v8562_v45, %v8561_v25  ;;  %6458 = vst.msk [vmem:[#allocation4 + $0x130] sm:$0xff] %vm6419_vm4, %v6304_v38  ;;  %v8106_v52 = vpack.c.bf16 %v8060_v48, %v8059_v24  ;;  %v14530_v56 = vpop.f32.mrb[11].mxu1  ;;  %6325 = vrot.lane.b32.xlu1 %v7302_v15, %s9635_s3  ;;  %6323 = vrot.lane.b32.xlu0 %v7301_v30, %s9635_s3  ;;  %v8568_v59 = vsel %vm3994_vm13, %v14528_v12, 0.0  ;;  %v6920_v25 = vld [vmem:[#allocation3 + $0x2b8] sm:$0xff]  ;;  %v7691_v45 = vld [vmem:[#allocation3 + $0x2c2] sm:$0xff] }
 0x9e9   :  { %v8564_v17 = vsel %vm3994_vm13, %v14530_v56, 0.0 }
 0x9ea   :  { %9560 = vmatmul.mubr.msk.bf16.gmra.mrb[32].mxu1 %vm8157_vm9, %v8106_v52  ;;  %v8565_v1 = vadd.f32 %v8564_v17, %v8563_v9  ;;  %v6687_v41 = vpop.permute.xlu1 %6686 }
 0x9eb   :  { %v6685_v44 = vpop.permute.xlu0 %6684  ;;  %6842 = vst.msk [vmem:[#allocation4 + $0x128] sm:$0xff] %vm6804_vm5, %v6687_v41 }
 0x9ec   :  { %6841 = vst.msk [vmem:[#allocation4 + $0x120] sm:$0xff] %vm6804_vm5, %v6685_v44  ;;  %v8567_v58 = vadd.f32 %v8566_v23, %v8565_v1  ;;  %6329 = vrot.lane.b32.xlu1 %v6150_v6, %s9635_s3  ;;  %6327 = vrot.lane.b32.xlu0 %v6149_v35, %s9635_s3 }
 0x9ee   :  { %v6691_v47 = vpop.permute.xlu1 %6690  ;;  %v8569_v31 = vadd.f32 %v8568_v59, %v8567_v58  ;;  %v6153_v58 = vld [vmem:[#allocation3 + $0x2d1] sm:$0xff] }
 0x9ef   :  { %v6689_v39 = vpop.permute.xlu0 %6688  ;;  %6844 = vst.msk [vmem:[#allocation4 + $0x138] sm:$0xff] %vm6804_vm5, %v6691_v47 }
 0x9f0   :  { %6843 = vst.msk [vmem:[#allocation4 + $0x130] sm:$0xff] %vm6804_vm5, %v6689_v39  ;;  %6710 = vrot.lane.b32.xlu1 %v7687_v43, %s9636_s10  ;;  %6708 = vrot.lane.b32.xlu0 %v7686_v53, %s9636_s10 }
 0x9f2   :  { %v7073_v11 = vpop.permute.xlu1 %7072 }
 0x9f3   :  { %v7071_v21 = vpop.permute.xlu0 %7070  ;;  %7228 = vst.msk [vmem:[#allocation4 + $0x128] sm:$0xff] %vm7190_vm6, %v7073_v11  ;;  %v6539_v11 = vld [vmem:[#allocation3 + $0x2da] sm:$0xff] }
 0x9f4   :  { %7227 = vst.msk [vmem:[#allocation4 + $0x120] sm:$0xff] %vm7190_vm6, %v7071_v21  ;;  %6714 = vrot.lane.b32.xlu1 %v6535_v60, %s9636_s10  ;;  %6712 = vrot.lane.b32.xlu0 %v6534_v3, %s9636_s10  ;;  %v6538_v21 = vld [vmem:[#allocation3 + $0x2d2] sm:$0xff] }
 0x9f6   :  { %v7077_v8 = vpop.permute.xlu1 %7076 }
 0x9f7   :  { %v7075_v16 = vpop.permute.xlu0 %7074  ;;  %7230 = vst.msk [vmem:[#allocation4 + $0x138] sm:$0xff] %vm7190_vm6, %v7077_v8  ;;  %v6923_v8 = vld [vmem:[#allocation3 + $0x2d8] sm:$0xff] }
 0x9f8   :  { %7229 = vst.msk [vmem:[#allocation4 + $0x130] sm:$0xff] %vm7190_vm6, %v7075_v16  ;;  %7096 = vrot.lane.b32.xlu1 %v6919_v61, %s9628_s18  ;;  %7094 = vrot.lane.b32.xlu0 %v6918_v37, %s9628_s18  ;;  %v6922_v16 = vld [vmem:[#allocation3 + $0x2d0] sm:$0xff] }
 0x9fa   :  { %v7458_v22 = vpop.permute.xlu1 %7457 }
 0x9fb   :  { %v7456_v18 = vpop.permute.xlu0 %7455  ;;  %7613 = vst.msk [vmem:[#allocation4 + $0x128] sm:$0xff] %vm7575_vm7, %v7458_v22  ;;  %v6925_v22 = vld [vmem:[#allocation3 + $0x2f0] sm:$0xff] }
 0x9fc   :  { %7612 = vst.msk [vmem:[#allocation4 + $0x120] sm:$0xff] %vm7575_vm7, %v7456_v18  ;;  %7100 = vrot.lane.b32.xlu1 %v6921_v33, %s9628_s18  ;;  %7098 = vrot.lane.b32.xlu0 %v6920_v25, %s9628_s18  ;;  %v6924_v18 = vld [vmem:[#allocation3 + $0x2e8] sm:$0xff] }
 0x9fe   :  { %v7462_v32 = vpop.permute.xlu1 %7461 }
 0x9ff   :  { %v7460_v36 = vpop.permute.xlu0 %7459  ;;  %7615 = vst.msk [vmem:[#allocation4 + $0x138] sm:$0xff] %vm7575_vm7, %v7462_v32 }
 0xa00   :  { %7614 = vst.msk [vmem:[#allocation4 + $0x130] sm:$0xff] %vm7575_vm7, %v7460_v36  ;;  %7481 = vrot.lane.b32.xlu1 %v6150_v6, %s9637_s24  ;;  %7479 = vrot.lane.b32.xlu0 %v6149_v35, %s9637_s24  ;;  %v6154_v35 = vld [vmem:[#allocation3 + $0x2d9] sm:$0xff] }
 0xa02   :  { %v7843_v54 = vpop.permute.xlu1 %7842 }
 0xa03   :  { %v7841_v19 = vpop.permute.xlu0 %7840  ;;  %7998 = vst.msk [vmem:[#allocation4 + $0x128] sm:$0xff] %vm7960_vm8, %v7843_v54 }
 0xa04   :  { %7997 = vst.msk [vmem:[#allocation4 + $0x120] sm:$0xff] %vm7960_vm8, %v7841_v19  ;;  %7485 = vrot.lane.b32.xlu1 %v7306_v28, %s9637_s24  ;;  %7483 = vrot.lane.b32.xlu0 %v7305_v34, %s9637_s24 }
 0xa05   :  { %v14569_v27 = vpop.f32.mrb[12].mxu1 }
 0xa06   :  { %v14571_v62 = vpop.f32.mrb[13].mxu1  ;;  %v7847_v57 = vpop.permute.xlu1 %7846  ;;  %v8574_v14 = vsel %vm3994_vm13, %v14569_v27, 0.0 }
 0xa07   :  { %v8570_v5 = vsel %vm3994_vm13, %v14571_v62, 0.0  ;;  %v7845_v15 = vpop.permute.xlu0 %7844  ;;  %8000 = vst.msk [vmem:[#allocation4 + $0x138] sm:$0xff] %vm7960_vm8, %v7847_v57  ;;  %v14577_v0 = vpop.f32.mrb[14].mxu1 }
 0xa08   :  { %v8571_v30 = vadd.f32 %v8570_v5, %v8569_v31  ;;  %7999 = vst.msk [vmem:[#allocation4 + $0x130] sm:$0xff] %vm7960_vm8, %v7845_v15  ;;  %v14579_v29 = vpop.f32.mrb[15].mxu1  ;;  %7866 = vrot.lane.b32.xlu1 %v6535_v60, %s9638_s29  ;;  %7864 = vrot.lane.b32.xlu0 %v6534_v3, %s9638_s29  ;;  %v8576_v48 = vsel %vm3994_vm13, %v14577_v0, 0.0 }
 0xa09   :  { %v8572_v50 = vsel %vm3994_vm13, %v14579_v29, 0.0 }
 0xa0a   :  { %v8573_v26 = vadd.f32 %v8572_v50, %v8571_v30  ;;  %v6310_v63 = vpop.permute.xlu1 %6309  ;;  %v8062_v53 = vld [vmem:[#allocation4 + $0x128] sm:$0xff] }
 0xa0b   :  { %v6308_v7 = vpop.permute.xlu0 %6307  ;;  %v8061_v43 = vld [vmem:[#allocation4 + $0x120] sm:$0xff]  ;;  %6461 = vst.msk [vmem:[#allocation4 + $0x148] sm:$0xff] %vm6419_vm4, %v6310_v63  ;;  %v7309_v63 = vld [vmem:[#allocation3 + $0x2e9] sm:$0xff] }
 0xa0c   :  { %6460 = vst.msk [vmem:[#allocation4 + $0x140] sm:$0xff] %vm6419_vm4, %v6308_v7  ;;  %v8107_v38 = vpack.c.bf16 %v8062_v53, %v8061_v43  ;;  %v8575_v24 = vadd.f32 %v8574_v14, %v8573_v26  ;;  %7870 = vrot.lane.b32.xlu1 %v7691_v45, %s9638_s29  ;;  %7868 = vrot.lane.b32.xlu0 %v7690_v49, %s9638_s29  ;;  %v7310_v26 = vld [vmem:[#allocation3 + $0x2f1] sm:$0xff] }
 0xa0e   :  { %9563 = vmatprep.mubr.msk.bf16.mxu1 %vm8157_vm9, %v8107_v38  ;;  %v6314_v9 = vpop.permute.xlu1 %6313  ;;  %v8064_v1 = vld [vmem:[#allocation4 + $0x138] sm:$0xff]  ;;  %v8577_v41 = vadd.f32 %v8576_v48, %v8575_v24 }
 0xa0f   :  { %v6312_v52 = vpop.permute.xlu0 %6311  ;;  %v8063_v17 = vld [vmem:[#allocation4 + $0x130] sm:$0xff]  ;;  %6463 = vst.msk [vmem:[#allocation4 + $0x158] sm:$0xff] %vm6419_vm4, %v6314_v9 }
 0xa10   :  { %6462 = vst.msk [vmem:[#allocation4 + $0x150] sm:$0xff] %vm6419_vm4, %v6312_v52  ;;  %v8108_v44 = vpack.c.bf16 %v8064_v1, %v8063_v17  ;;  %6333 = vrot.lane.b32.xlu1 %v7306_v28, %s9635_s3  ;;  %6331 = vrot.lane.b32.xlu0 %v7305_v34, %s9635_s3  ;;  %v7695_v9 = vld [vmem:[#allocation3 + $0x2f2] sm:$0xff]  ;;  %v7694_v52 = vld [vmem:[#allocation3 + $0x2ea] sm:$0xff] }
 0xa12   :  { %9564 = vmatmul.mubr.msk.bf16.gmra.mrb[36].mxu1 %vm8157_vm9, %v8108_v44  ;;  %v6695_v23 = vpop.permute.xlu1 %6694 }
 0xa13   :  { %v6693_v6 = vpop.permute.xlu0 %6692  ;;  %6846 = vst.msk [vmem:[#allocation4 + $0x148] sm:$0xff] %vm6804_vm5, %v6695_v23 }
 0xa14   :  { %6845 = vst.msk [vmem:[#allocation4 + $0x140] sm:$0xff] %vm6804_vm5, %v6693_v6  ;;  %6337 = vrot.lane.b32.xlu1 %v6154_v35, %s9635_s3  ;;  %6335 = vrot.lane.b32.xlu0 %v6153_v58, %s9635_s3 }
 0xa16   :  { %v6699_v59 = vpop.permute.xlu1 %6698 }
 0xa17   :  { %v6697_v47 = vpop.permute.xlu0 %6696  ;;  %6848 = vst.msk [vmem:[#allocation4 + $0x158] sm:$0xff] %vm6804_vm5, %v6699_v59  ;;  %v6158_v59 = vld [vmem:[#allocation3 + $0x309] sm:$0xff] }
 0xa18   :  { %6847 = vst.msk [vmem:[#allocation4 + $0x150] sm:$0xff] %vm6804_vm5, %v6697_v47  ;;  %6718 = vrot.lane.b32.xlu1 %v7691_v45, %s9636_s10  ;;  %6716 = vrot.lane.b32.xlu0 %v7690_v49, %s9636_s10  ;;  %v6157_v47 = vld [vmem:[#allocation3 + $0x301] sm:$0xff] }
 0xa1a   :  { %v7081_v39 = vpop.permute.xlu1 %7080 }
 0xa1b   :  { %v7079_v31 = vpop.permute.xlu0 %7078  ;;  %7232 = vst.msk [vmem:[#allocation4 + $0x148] sm:$0xff] %vm7190_vm6, %v7081_v39 }
 0xa1c   :  { %7231 = vst.msk [vmem:[#allocation4 + $0x140] sm:$0xff] %vm7190_vm6, %v7079_v31  ;;  %6722 = vrot.lane.b32.xlu1 %v6539_v11, %s9636_s10  ;;  %6720 = vrot.lane.b32.xlu0 %v6538_v21, %s9636_s10 }
 0xa1e   :  { %v7085_v60 = vpop.permute.xlu1 %7084 }
 0xa1f   :  { %v7083_v3 = vpop.permute.xlu0 %7082  ;;  %7234 = vst.msk [vmem:[#allocation4 + $0x158] sm:$0xff] %vm7190_vm6, %v7085_v60  ;;  %v6543_v60 = vld [vmem:[#allocation3 + $0x30a] sm:$0xff] }
 0xa20   :  { %7233 = vst.msk [vmem:[#allocation4 + $0x150] sm:$0xff] %vm7190_vm6, %v7083_v3  ;;  %7104 = vrot.lane.b32.xlu1 %v6923_v8, %s9628_s18  ;;  %7102 = vrot.lane.b32.xlu0 %v6922_v16, %s9628_s18  ;;  %v6542_v3 = vld [vmem:[#allocation3 + $0x302] sm:$0xff] }
 0xa22   :  { %v7466_v61 = vpop.permute.xlu1 %7465 }
 0xa23   :  { %v7464_v37 = vpop.permute.xlu0 %7463  ;;  %7617 = vst.msk [vmem:[#allocation4 + $0x148] sm:$0xff] %vm7575_vm7, %v7466_v61 }
 0xa24   :  { %7616 = vst.msk [vmem:[#allocation4 + $0x140] sm:$0xff] %vm7575_vm7, %v7464_v37  ;;  %7108 = vrot.lane.b32.xlu1 %v6925_v22, %s9628_s18  ;;  %7106 = vrot.lane.b32.xlu0 %v6924_v18, %s9628_s18 }
 0xa25   :  { %v14619_v33 = vpop.f32.mrb[16].mxu1 }
 0xa26   :  { %v14621_v25 = vpop.f32.mrb[17].mxu1  ;;  %v7470_v36 = vpop.permute.xlu1 %7469  ;;  %v8582_v50 = vsel %vm3994_vm13, %v14619_v33, 0.0 }
 0xa27   :  { %v8578_v32 = vsel %vm3994_vm13, %v14621_v25, 0.0  ;;  %v7468_v54 = vpop.permute.xlu0 %7467  ;;  %7619 = vst.msk [vmem:[#allocation4 + $0x158] sm:$0xff] %vm7575_vm7, %v7470_v36  ;;  %v14627_v28 = vpop.f32.mrb[18].mxu1  ;;  %v6927_v36 = vld [vmem:[#allocation3 + $0x308] sm:$0xff] }
 0xa28   :  { %v8579_v19 = vadd.f32 %v8578_v32, %v8577_v41  ;;  %7618 = vst.msk [vmem:[#allocation4 + $0x150] sm:$0xff] %vm7575_vm7, %v7468_v54  ;;  %v14629_v34 = vpop.f32.mrb[19].mxu1  ;;  %7489 = vrot.lane.b32.xlu1 %v6154_v35, %s9637_s24  ;;  %7487 = vrot.lane.b32.xlu0 %v6153_v58, %s9637_s24  ;;  %v8584_v43 = vsel %vm3994_vm13, %v14627_v28, 0.0  ;;  %v6926_v54 = vld [vmem:[#allocation3 + $0x300] sm:$0xff] }
 0xa29   :  { %v8580_v5 = vsel %vm3994_vm13, %v14629_v34, 0.0 }
 0xa2a   :  { %v8581_v57 = vadd.f32 %v8580_v5, %v8579_v19  ;;  %v7851_v15 = vpop.permute.xlu1 %7850 }
 0xa2b   :  { %v7849_v30 = vpop.permute.xlu0 %7848  ;;  %8002 = vst.msk [vmem:[#allocation4 + $0x148] sm:$0xff] %vm7960_vm8, %v7851_v15 }
 0xa2c   :  { %8001 = vst.msk [vmem:[#allocation4 + $0x140] sm:$0xff] %vm7960_vm8, %v7849_v30  ;;  %v8583_v7 = vadd.f32 %v8582_v50, %v8581_v57  ;;  %7493 = vrot.lane.b32.xlu1 %v7310_v26, %s9637_s24  ;;  %7491 = vrot.lane.b32.xlu0 %v7309_v63, %s9637_s24 }
 0xa2e   :  { %v7855_v53 = vpop.permute.xlu1 %7854  ;;  %v8585_v45 = vadd.f32 %v8584_v43, %v8583_v7 }
 0xa2f   :  { %v7853_v14 = vpop.permute.xlu0 %7852  ;;  %8004 = vst.msk [vmem:[#allocation4 + $0x158] sm:$0xff] %vm7960_vm8, %v7855_v53 }
 0xa30   :  { %8003 = vst.msk [vmem:[#allocation4 + $0x150] sm:$0xff] %vm7960_vm8, %v7853_v14  ;;  %7874 = vrot.lane.b32.xlu1 %v6539_v11, %s9638_s29  ;;  %7872 = vrot.lane.b32.xlu0 %v6538_v21, %s9638_s29 }
 0xa32   :  { %v6318_v49 = vpop.permute.xlu1 %6317  ;;  %v8066_v48 = vld [vmem:[#allocation4 + $0x148] sm:$0xff] }
 0xa33   :  { %v6316_v38 = vpop.permute.xlu0 %6315  ;;  %v8065_v24 = vld [vmem:[#allocation4 + $0x140] sm:$0xff]  ;;  %6465 = vst.msk [vmem:[#allocation4 + $0x168] sm:$0xff] %vm6419_vm4, %v6318_v49 }
 0xa34   :  { %6464 = vst.msk [vmem:[#allocation4 + $0x160] sm:$0xff] %vm6419_vm4, %v6316_v38  ;;  %v8109_v17 = vpack.c.bf16 %v8066_v48, %v8065_v24  ;;  %7878 = vrot.lane.b32.xlu1 %v7695_v9, %s9638_s29  ;;  %7876 = vrot.lane.b32.xlu0 %v7694_v52, %s9638_s29  ;;  %v7314_v24 = vld [vmem:[#allocation3 + $0x321] sm:$0xff]  ;;  %v7313_v48 = vld [vmem:[#allocation3 + $0x319] sm:$0xff] }
 0xa36   :  { %9567 = vmatprep.mubr.msk.bf16.mxu1 %vm8157_vm9, %v8109_v17  ;;  %v6322_v1 = vpop.permute.xlu1 %6321  ;;  %v8068_v23 = vld [vmem:[#allocation4 + $0x158] sm:$0xff] }
 0xa37   :  { %v6320_v41 = vpop.permute.xlu0 %6319  ;;  %v8067_v44 = vld [vmem:[#allocation4 + $0x150] sm:$0xff]  ;;  %6467 = vst.msk [vmem:[#allocation4 + $0x178] sm:$0xff] %vm6419_vm4, %v6322_v1 }
 0xa38   :  { %6466 = vst.msk [vmem:[#allocation4 + $0x170] sm:$0xff] %vm6419_vm4, %v6320_v41  ;;  %v8110_v6 = vpack.c.bf16 %v8068_v23, %v8067_v44  ;;  %6341 = vrot.lane.b32.xlu1 %v7310_v26, %s9635_s3  ;;  %6339 = vrot.lane.b32.xlu0 %v7309_v63, %s9635_s3  ;;  %v6929_v26 = vld [vmem:[#allocation3 + $0x320] sm:$0xff]  ;;  %v6928_v63 = vld [vmem:[#allocation3 + $0x318] sm:$0xff] }
 0xa39   :  { %v7699_v23 = vld [vmem:[#allocation3 + $0x322] sm:$0xff] }
 0xa3a   :  { %9568 = vmatmul.mubr.msk.bf16.gmra.mrb[40].mxu1 %vm8157_vm9, %v8110_v6  ;;  %v6703_v35 = vpop.permute.xlu1 %6702  ;;  %v7698_v6 = vld [vmem:[#allocation3 + $0x31a] sm:$0xff] }
 0xa3b   :  { %v6701_v58 = vpop.permute.xlu0 %6700  ;;  %6850 = vst.msk [vmem:[#allocation4 + $0x168] sm:$0xff] %vm6804_vm5, %v6703_v35 }
 0xa3c   :  { %6849 = vst.msk [vmem:[#allocation4 + $0x160] sm:$0xff] %vm6804_vm5, %v6701_v58  ;;  %6345 = vrot.lane.b32.xlu1 %v6158_v59, %s9635_s3  ;;  %6343 = vrot.lane.b32.xlu0 %v6157_v47, %s9635_s3 }
 0xa3e   :  { %v6707_v39 = vpop.permute.xlu1 %6706 }
 0xa3f   :  { %v6705_v31 = vpop.permute.xlu0 %6704  ;;  %6852 = vst.msk [vmem:[#allocation4 + $0x178] sm:$0xff] %vm6804_vm5, %v6707_v39 }
 0xa40   :  { %6851 = vst.msk [vmem:[#allocation4 + $0x170] sm:$0xff] %vm6804_vm5, %v6705_v31  ;;  %6726 = vrot.lane.b32.xlu1 %v7695_v9, %s9636_s10  ;;  %6724 = vrot.lane.b32.xlu0 %v7694_v52, %s9636_s10 }
 0xa42   :  { %v7089_v11 = vpop.permute.xlu1 %7088 }
 0xa43   :  { %v7087_v21 = vpop.permute.xlu0 %7086  ;;  %7236 = vst.msk [vmem:[#allocation4 + $0x168] sm:$0xff] %vm7190_vm6, %v7089_v11 }
 0xa44   :  { %7235 = vst.msk [vmem:[#allocation4 + $0x160] sm:$0xff] %vm7190_vm6, %v7087_v21  ;;  %6730 = vrot.lane.b32.xlu1 %v6543_v60, %s9636_s10  ;;  %6728 = vrot.lane.b32.xlu0 %v6542_v3, %s9636_s10  ;;  %v14669_v8 = vpop.f32.mrb[20].mxu1 }
 0xa45   :  { %v14671_v16 = vpop.f32.mrb[21].mxu1  ;;  %v8590_v50 = vsel %vm3994_vm13, %v14669_v8, 0.0 }
 0xa46   :  { %v8586_v61 = vsel %vm3994_vm13, %v14671_v16, 0.0  ;;  %v7093_v37 = vpop.permute.xlu1 %7092  ;;  %v14677_v32 = vpop.f32.mrb[22].mxu1 }
 0xa47   :  { %v7091_v22 = vpop.permute.xlu0 %7090  ;;  %v8587_v18 = vadd.f32 %v8586_v61, %v8585_v45  ;;  %7238 = vst.msk [vmem:[#allocation4 + $0x178] sm:$0xff] %vm7190_vm6, %v7093_v37  ;;  %v14679_v19 = vpop.f32.mrb[23].mxu1  ;;  %v8592_v43 = vsel %vm3994_vm13, %v14677_v32, 0.0 }
 0xa48   :  { %7237 = vst.msk [vmem:[#allocation4 + $0x170] sm:$0xff] %vm7190_vm6, %v7091_v22  ;;  %7112 = vrot.lane.b32.xlu1 %v6927_v36, %s9628_s18  ;;  %7110 = vrot.lane.b32.xlu0 %v6926_v54, %s9628_s18  ;;  %v8588_v5 = vsel %vm3994_vm13, %v14679_v19, 0.0  ;;  %v6547_v36 = vld [vmem:[#allocation3 + $0x33a] sm:$0xff]  ;;  %v6546_v54 = vld [vmem:[#allocation3 + $0x332] sm:$0xff] }
 0xa49   :  { %v8589_v57 = vadd.f32 %v8588_v5, %v8587_v18 }
 0xa4a   :  { %v7474_v15 = vpop.permute.xlu1 %7473 }
 0xa4b   :  { %v7472_v30 = vpop.permute.xlu0 %7471  ;;  %7621 = vst.msk [vmem:[#allocation4 + $0x168] sm:$0xff] %vm7575_vm7, %v7474_v15  ;;  %v8591_v7 = vadd.f32 %v8590_v50, %v8589_v57 }
 0xa4c   :  { %7620 = vst.msk [vmem:[#allocation4 + $0x160] sm:$0xff] %vm7575_vm7, %v7472_v30  ;;  %7116 = vrot.lane.b32.xlu1 %v6929_v26, %s9628_s18  ;;  %7114 = vrot.lane.b32.xlu0 %v6928_v63, %s9628_s18 }
 0xa4d   :  { %v14693_v45 = vadd.f32 %v8592_v43, %v8591_v7  ;;  %v6931_v7 = vld [vmem:[#allocation3 + $0x338] sm:$0xff]  ;;  %v6930_v43 = vld [vmem:[#allocation3 + $0x330] sm:$0xff] }
 0xa4e   :  { %v7478_v53 = vpop.permute.xlu1 %7477 }
 0xa4f   :  { %v7476_v14 = vpop.permute.xlu0 %7475  ;;  %7623 = vst.msk [vmem:[#allocation4 + $0x178] sm:$0xff] %vm7575_vm7, %v7478_v53 }
 0xa50   :  { %7622 = vst.msk [vmem:[#allocation4 + $0x170] sm:$0xff] %vm7575_vm7, %v7476_v14  ;;  %7497 = vrot.lane.b32.xlu1 %v6158_v59, %s9637_s24  ;;  %7495 = vrot.lane.b32.xlu0 %v6157_v47, %s9637_s24 }
 0xa52   :  { %v7859_v49 = vpop.permute.xlu1 %7858 }
 0xa53   :  { %v7857_v38 = vpop.permute.xlu0 %7856  ;;  %8006 = vst.msk [vmem:[#allocation4 + $0x168] sm:$0xff] %vm7960_vm8, %v7859_v49  ;;  %v6933_v49 = vld [vmem:[#allocation3 + $0x350] sm:$0xff] }
 0xa54   :  { %8005 = vst.msk [vmem:[#allocation4 + $0x160] sm:$0xff] %vm7960_vm8, %v7857_v38  ;;  %7501 = vrot.lane.b32.xlu1 %v7314_v24, %s9637_s24  ;;  %7499 = vrot.lane.b32.xlu0 %v7313_v48, %s9637_s24  ;;  %v6932_v38 = vld [vmem:[#allocation3 + $0x348] sm:$0xff] }
 0xa56   :  { %v7863_v9 = vpop.permute.xlu1 %7862 }
 0xa57   :  { %v7861_v52 = vpop.permute.xlu0 %7860  ;;  %8008 = vst.msk [vmem:[#allocation4 + $0x178] sm:$0xff] %vm7960_vm8, %v7863_v9 }
 0xa58   :  { %8007 = vst.msk [vmem:[#allocation4 + $0x170] sm:$0xff] %vm7960_vm8, %v7861_v52  ;;  %7882 = vrot.lane.b32.xlu1 %v6543_v60, %s9638_s29  ;;  %7880 = vrot.lane.b32.xlu0 %v6542_v3, %s9638_s29  ;;  %v6162_v60 = vld [vmem:[#allocation3 + $0x339] sm:$0xff]  ;;  %v6161_v3 = vld [vmem:[#allocation3 + $0x331] sm:$0xff] }
 0xa5a   :  { %v6326_v17 = vpop.permute.xlu1 %6325  ;;  %v8070_v44 = vld [vmem:[#allocation4 + $0x168] sm:$0xff] }
 0xa5b   :  { %v6324_v1 = vpop.permute.xlu0 %6323  ;;  %v8069_v41 = vld [vmem:[#allocation4 + $0x160] sm:$0xff]  ;;  %6469 = vst.msk [vmem:[#allocation4 + $0x188] sm:$0xff] %vm6419_vm4, %v6326_v17 }
 0xa5c   :  { %6468 = vst.msk [vmem:[#allocation4 + $0x180] sm:$0xff] %vm6419_vm4, %v6324_v1  ;;  %v8111_v35 = vpack.c.bf16 %v8070_v44, %v8069_v41  ;;  %7886 = vrot.lane.b32.xlu1 %v7699_v23, %s9638_s29  ;;  %7884 = vrot.lane.b32.xlu0 %v7698_v6, %s9638_s29 }
 0xa5e   :  { %9571 = vmatprep.mubr.msk.bf16.mxu1 %vm8157_vm9, %v8111_v35  ;;  %v6330_v58 = vpop.permute.xlu1 %6329  ;;  %v8072_v39 = vld [vmem:[#allocation4 + $0x178] sm:$0xff] }
 0xa5f   :  { %v6328_v59 = vpop.permute.xlu0 %6327  ;;  %v8071_v47 = vld [vmem:[#allocation4 + $0x170] sm:$0xff]  ;;  %6471 = vst.msk [vmem:[#allocation4 + $0x198] sm:$0xff] %vm6419_vm4, %v6330_v58 }
 0xa60   :  { %6470 = vst.msk [vmem:[#allocation4 + $0x190] sm:$0xff] %vm6419_vm4, %v6328_v59  ;;  %v8112_v31 = vpack.c.bf16 %v8072_v39, %v8071_v47  ;;  %6349 = vrot.lane.b32.xlu1 %v7314_v24, %s9635_s3  ;;  %6347 = vrot.lane.b32.xlu0 %v7313_v48, %s9635_s3  ;;  %v7703_v39 = vld [vmem:[#allocation3 + $0x352] sm:$0xff] }
 0xa62   :  { %9572 = vmatmul.mubr.msk.bf16.gmra.mrb[44].mxu1 %vm8157_vm9, %v8112_v31  ;;  %v6711_v11 = vpop.permute.xlu1 %6710  ;;  %v7702_v31 = vld [vmem:[#allocation3 + $0x34a] sm:$0xff] }
 0xa63   :  { %v6709_v21 = vpop.permute.xlu0 %6708  ;;  %6854 = vst.msk [vmem:[#allocation4 + $0x188] sm:$0xff] %vm6804_vm5, %v6711_v11 }
 0xa64   :  { %6853 = vst.msk [vmem:[#allocation4 + $0x180] sm:$0xff] %vm6804_vm5, %v6709_v21  ;;  %6353 = vrot.lane.b32.xlu1 %v6162_v60, %s9635_s3  ;;  %6351 = vrot.lane.b32.xlu0 %v6161_v3, %s9635_s3 }
 0xa66   :  { %v6715_v61 = vpop.permute.xlu1 %6714 }
 0xa67   :  { %v6713_v37 = vpop.permute.xlu0 %6712  ;;  %6856 = vst.msk [vmem:[#allocation4 + $0x198] sm:$0xff] %vm6804_vm5, %v6715_v61 }
 0xa68   :  { %6855 = vst.msk [vmem:[#allocation4 + $0x190] sm:$0xff] %vm6804_vm5, %v6713_v37  ;;  %6734 = vrot.lane.b32.xlu1 %v7699_v23, %s9636_s10  ;;  %6732 = vrot.lane.b32.xlu0 %v7698_v6, %s9636_s10  ;;  %v7318_v23 = vld [vmem:[#allocation3 + $0x351] sm:$0xff]  ;;  %v7317_v6 = vld [vmem:[#allocation3 + $0x349] sm:$0xff] }
 0xa6a   :  { %v7097_v22 = vpop.permute.xlu1 %7096 }
 0xa6b   :  { %v7095_v18 = vpop.permute.xlu0 %7094  ;;  %7240 = vst.msk [vmem:[#allocation4 + $0x188] sm:$0xff] %vm7190_vm6, %v7097_v22 }
 0xa6c   :  { %7239 = vst.msk [vmem:[#allocation4 + $0x180] sm:$0xff] %vm7190_vm6, %v7095_v18  ;;  %6738 = vrot.lane.b32.xlu1 %v6547_v36, %s9636_s10  ;;  %6736 = vrot.lane.b32.xlu0 %v6546_v54, %s9636_s10  ;;  %v14729_v5 = vpop.f32.mrb[24].mxu1 }
 0xa6d   :  { %v14731_v57 = vpop.f32.mrb[25].mxu1  ;;  %v8598_v9 = vsel %vm3994_vm13, %v14729_v5, 0.0 }
 0xa6e   :  { %v8594_v15 = vsel %vm3994_vm13, %v14731_v57, 0.0  ;;  %v7101_v30 = vpop.permute.xlu1 %7100  ;;  %v14738_v63 = vpop.f32.mrb[26].mxu1 }
 0xa6f   :  { %v7099_v50 = vpop.permute.xlu0 %7098  ;;  %v8595_v26 = vadd.f32 %v8594_v15, %v14693_v45  ;;  %7242 = vst.msk [vmem:[#allocation4 + $0x198] sm:$0xff] %vm7190_vm6, %v7101_v30  ;;  %v14740_v53 = vpop.f32.mrb[27].mxu1  ;;  %v8600_v17 = vsel %vm3994_vm13, %v14738_v63, 0.0 }
 0xa70   :  { %7241 = vst.msk [vmem:[#allocation4 + $0x190] sm:$0xff] %vm7190_vm6, %v7099_v50  ;;  %7120 = vrot.lane.b32.xlu1 %v6931_v7, %s9628_s18  ;;  %7118 = vrot.lane.b32.xlu0 %v6930_v43, %s9628_s18  ;;  %v8596_v14 = vsel %vm3994_vm13, %v14740_v53, 0.0 }
 0xa71   :  { %v8597_v45 = vadd.f32 %v8596_v14, %v8595_v26 }
 0xa72   :  { %v7482_v24 = vpop.permute.xlu1 %7481 }
 0xa73   :  { %v7480_v48 = vpop.permute.xlu0 %7479  ;;  %7625 = vst.msk [vmem:[#allocation4 + $0x188] sm:$0xff] %vm7575_vm7, %v7482_v24  ;;  %v8599_v52 = vadd.f32 %v8598_v9, %v8597_v45 }
 0xa74   :  { %7624 = vst.msk [vmem:[#allocation4 + $0x180] sm:$0xff] %vm7575_vm7, %v7480_v48  ;;  %7124 = vrot.lane.b32.xlu1 %v6933_v49, %s9628_s18  ;;  %7122 = vrot.lane.b32.xlu0 %v6932_v38, %s9628_s18 }
 0xa75   :  { %v8601_v44 = vadd.f32 %v8600_v17, %v8599_v52 }
 0xa76   :  { %v7486_v1 = vpop.permute.xlu1 %7485 }
 0xa77   :  { %v7484_v41 = vpop.permute.xlu0 %7483  ;;  %7627 = vst.msk [vmem:[#allocation4 + $0x198] sm:$0xff] %vm7575_vm7, %v7486_v1 }
 0xa78   :  { %7626 = vst.msk [vmem:[#allocation4 + $0x190] sm:$0xff] %vm7575_vm7, %v7484_v41  ;;  %7505 = vrot.lane.b32.xlu1 %v6162_v60, %s9637_s24  ;;  %7503 = vrot.lane.b32.xlu0 %v6161_v3, %s9637_s24 }
 0xa7a   :  { %v7867_v35 = vpop.permute.xlu1 %7866 }
 0xa7b   :  { %v7865_v58 = vpop.permute.xlu0 %7864  ;;  %8010 = vst.msk [vmem:[#allocation4 + $0x188] sm:$0xff] %vm7960_vm8, %v7867_v35 }
 0xa7c   :  { %8009 = vst.msk [vmem:[#allocation4 + $0x180] sm:$0xff] %vm7960_vm8, %v7865_v58  ;;  %7509 = vrot.lane.b32.xlu1 %v7318_v23, %s9637_s24  ;;  %7507 = vrot.lane.b32.xlu0 %v7317_v6, %s9637_s24 }
 0xa7e   :  { %v7871_v59 = vpop.permute.xlu1 %7870 }
 0xa7f   :  { %v7869_v47 = vpop.permute.xlu0 %7868  ;;  %8012 = vst.msk [vmem:[#allocation4 + $0x198] sm:$0xff] %vm7960_vm8, %v7871_v59 }
 0xa80   :  { %8011 = vst.msk [vmem:[#allocation4 + $0x190] sm:$0xff] %vm7960_vm8, %v7869_v47  ;;  %7890 = vrot.lane.b32.xlu1 %v6547_v36, %s9638_s29  ;;  %7888 = vrot.lane.b32.xlu0 %v6546_v54, %s9638_s29 }
 0xa82   :  { %v6334_v11 = vpop.permute.xlu1 %6333  ;;  %v8074_v3 = vld [vmem:[#allocation4 + $0x188] sm:$0xff] }
 0xa83   :  { %v6332_v21 = vpop.permute.xlu0 %6331  ;;  %v8073_v60 = vld [vmem:[#allocation4 + $0x180] sm:$0xff]  ;;  %6473 = vst.msk [vmem:[#allocation4 + $0x1a8] sm:$0xff] %vm6419_vm4, %v6334_v11 }
 0xa84   :  { %6472 = vst.msk [vmem:[#allocation4 + $0x1a0] sm:$0xff] %vm6419_vm4, %v6332_v21  ;;  %v8113_v61 = vpack.c.bf16 %v8074_v3, %v8073_v60  ;;  %7894 = vrot.lane.b32.xlu1 %v7703_v39, %s9638_s29  ;;  %7892 = vrot.lane.b32.xlu0 %v7702_v31, %s9638_s29 }
 0xa86   :  { %9575 = vmatprep.mubr.msk.bf16.mxu1 %vm8157_vm9, %v8113_v61  ;;  %v6338_v37 = vpop.permute.xlu1 %6337  ;;  %v8076_v36 = vld [vmem:[#allocation4 + $0x198] sm:$0xff] }
 0xa87   :  { %v6336_v22 = vpop.permute.xlu0 %6335  ;;  %v8075_v18 = vld [vmem:[#allocation4 + $0x190] sm:$0xff]  ;;  %6475 = vst.msk [vmem:[#allocation4 + $0x1b8] sm:$0xff] %vm6419_vm4, %v6338_v37 }
 0xa88   :  { %6474 = vst.msk [vmem:[#allocation4 + $0x1b0] sm:$0xff] %vm6419_vm4, %v6336_v22  ;;  %v8114_v54 = vpack.c.bf16 %v8076_v36, %v8075_v18 }
 0xa8a   :  { %9576 = vmatmul.mubr.msk.bf16.gmra.mrb[48].mxu1 %vm8157_vm9, %v8114_v54  ;;  %v6719_v15 = vpop.permute.xlu1 %6718 }
 0xa8b   :  { %v6717_v30 = vpop.permute.xlu0 %6716  ;;  %6858 = vst.msk [vmem:[#allocation4 + $0x1a8] sm:$0xff] %vm6804_vm5, %v6719_v15 }
 0xa8c   :  { %6857 = vst.msk [vmem:[#allocation4 + $0x1a0] sm:$0xff] %vm6804_vm5, %v6717_v30 }
 0xa8e   :  { %v6723_v50 = vpop.permute.xlu1 %6722 }
 0xa8f   :  { %v6721_v26 = vpop.permute.xlu0 %6720  ;;  %6860 = vst.msk [vmem:[#allocation4 + $0x1b8] sm:$0xff] %vm6804_vm5, %v6723_v50 }
 0xa90   :  { %6859 = vst.msk [vmem:[#allocation4 + $0x1b0] sm:$0xff] %vm6804_vm5, %v6721_v26 }
 0xa92   :  { %v7105_v7 = vpop.permute.xlu1 %7104 }
 0xa93   :  { %v7103_v43 = vpop.permute.xlu0 %7102  ;;  %7244 = vst.msk [vmem:[#allocation4 + $0x1a8] sm:$0xff] %vm7190_vm6, %v7105_v7 }
 0xa94   :  { %7243 = vst.msk [vmem:[#allocation4 + $0x1a0] sm:$0xff] %vm7190_vm6, %v7103_v43 }
 0xa95   :  { %v14780_v14 = vpop.f32.mrb[28].mxu1 }
 0xa96   :  { %v14782_v49 = vpop.f32.mrb[29].mxu1  ;;  %v7109_v45 = vpop.permute.xlu1 %7108  ;;  %v8606_v6 = vsel %vm3994_vm13, %v14780_v14, 0.0 }
 0xa97   :  { %v8602_v38 = vsel %vm3994_vm13, %v14782_v49, 0.0  ;;  %v7107_v24 = vpop.permute.xlu0 %7106  ;;  %7246 = vst.msk [vmem:[#allocation4 + $0x1b8] sm:$0xff] %vm7190_vm6, %v7109_v45  ;;  %v14788_v9 = vpop.f32.mrb[30].mxu1 }
 0xa98   :  { %v8603_v48 = vadd.f32 %v8602_v38, %v8601_v44  ;;  %7245 = vst.msk [vmem:[#allocation4 + $0x1b0] sm:$0xff] %vm7190_vm6, %v7107_v24  ;;  %v14790_v52 = vpop.f32.mrb[31].mxu1  ;;  %v8608_v35 = vsel %vm3994_vm13, %v14788_v9, 0.0 }
 0xa99   :  { %v8604_v17 = vsel %vm3994_vm13, %v14790_v52, 0.0 }
 0xa9a   :  { %v8605_v1 = vadd.f32 %v8604_v17, %v8603_v48  ;;  %v7490_v41 = vpop.permute.xlu1 %7489 }
 0xa9b   :  { %v7488_v23 = vpop.permute.xlu0 %7487  ;;  %7629 = vst.msk [vmem:[#allocation4 + $0x1a8] sm:$0xff] %vm7575_vm7, %v7490_v41 }
 0xa9c   :  { %7628 = vst.msk [vmem:[#allocation4 + $0x1a0] sm:$0xff] %vm7575_vm7, %v7488_v23  ;;  %v8607_v44 = vadd.f32 %v8606_v6, %v8605_v1 }
 0xa9e   :  { %v7494_v58 = vpop.permute.xlu1 %7493  ;;  %v8609_v47 = vadd.f32 %v8608_v35, %v8607_v44 }
 0xa9f   :  { %v7492_v59 = vpop.permute.xlu0 %7491  ;;  %7631 = vst.msk [vmem:[#allocation4 + $0x1b8] sm:$0xff] %vm7575_vm7, %v7494_v58 }
 0xaa0   :  { %7630 = vst.msk [vmem:[#allocation4 + $0x1b0] sm:$0xff] %vm7575_vm7, %v7492_v59 }
 0xaa2   :  { %v7875_v39 = vpop.permute.xlu1 %7874 }
 0xaa3   :  { %v7873_v31 = vpop.permute.xlu0 %7872  ;;  %8014 = vst.msk [vmem:[#allocation4 + $0x1a8] sm:$0xff] %vm7960_vm8, %v7875_v39 }
 0xaa4   :  { %8013 = vst.msk [vmem:[#allocation4 + $0x1a0] sm:$0xff] %vm7960_vm8, %v7873_v31 }
 0xaa6   :  { %v7879_v11 = vpop.permute.xlu1 %7878 }
 0xaa7   :  { %v7877_v21 = vpop.permute.xlu0 %7876  ;;  %8016 = vst.msk [vmem:[#allocation4 + $0x1b8] sm:$0xff] %vm7960_vm8, %v7879_v11 }
 0xaa8   :  { %8015 = vst.msk [vmem:[#allocation4 + $0x1b0] sm:$0xff] %vm7960_vm8, %v7877_v21 }
 0xaaa   :  { %v6342_v60 = vpop.permute.xlu1 %6341  ;;  %v8078_v37 = vld [vmem:[#allocation4 + $0x1a8] sm:$0xff] }
 0xaab   :  { %v6340_v3 = vpop.permute.xlu0 %6339  ;;  %v8077_v61 = vld [vmem:[#allocation4 + $0x1a0] sm:$0xff]  ;;  %6477 = vst.msk [vmem:[#allocation4 + $0x1c8] sm:$0xff] %vm6419_vm4, %v6342_v60 }
 0xaac   :  { %6476 = vst.msk [vmem:[#allocation4 + $0x1c0] sm:$0xff] %vm6419_vm4, %v6340_v3  ;;  %v8115_v22 = vpack.c.bf16 %v8078_v37, %v8077_v61 }
 0xaae   :  { %9579 = vmatprep.mubr.msk.bf16.mxu1 %vm8157_vm9, %v8115_v22  ;;  %v6346_v18 = vpop.permute.xlu1 %6345  ;;  %v8080_v15 = vld [vmem:[#allocation4 + $0x1b8] sm:$0xff] }
 0xaaf   :  { %v6344_v36 = vpop.permute.xlu0 %6343  ;;  %v8079_v54 = vld [vmem:[#allocation4 + $0x1b0] sm:$0xff]  ;;  %6479 = vst.msk [vmem:[#allocation4 + $0x1d8] sm:$0xff] %vm6419_vm4, %v6346_v18 }
 0xab0   :  { %6478 = vst.msk [vmem:[#allocation4 + $0x1d0] sm:$0xff] %vm6419_vm4, %v6344_v36  ;;  %v8116_v30 = vpack.c.bf16 %v8080_v15, %v8079_v54 }
 0xab2   :  { %9580 = vmatmul.mubr.msk.bf16.gmra.mrb[52].mxu1 %vm8157_vm9, %v8116_v30  ;;  %v6727_v50 = vpop.permute.xlu1 %6726 }
 0xab3   :  { %v6725_v26 = vpop.permute.xlu0 %6724  ;;  %6862 = vst.msk [vmem:[#allocation4 + $0x1c8] sm:$0xff] %vm6804_vm5, %v6727_v50 }
 0xab4   :  { %6861 = vst.msk [vmem:[#allocation4 + $0x1c0] sm:$0xff] %vm6804_vm5, %v6725_v26 }
 0xab6   :  { %v6731_v7 = vpop.permute.xlu1 %6730 }
 0xab7   :  { %v6729_v43 = vpop.permute.xlu0 %6728  ;;  %6864 = vst.msk [vmem:[#allocation4 + $0x1d8] sm:$0xff] %vm6804_vm5, %v6731_v7 }
 0xab8   :  { %6863 = vst.msk [vmem:[#allocation4 + $0x1d0] sm:$0xff] %vm6804_vm5, %v6729_v43 }
 0xaba   :  { %v7113_v38 = vpop.permute.xlu1 %7112 }
 0xabb   :  { %v7111_v45 = vpop.permute.xlu0 %7110  ;;  %7248 = vst.msk [vmem:[#allocation4 + $0x1c8] sm:$0xff] %vm7190_vm6, %v7113_v38 }
 0xabc   :  { %7247 = vst.msk [vmem:[#allocation4 + $0x1c0] sm:$0xff] %vm7190_vm6, %v7111_v45 }
 0xabd   :  { %v14818_v24 = vpop.f32.mrb[32].mxu1 }
 0xabe   :  { %v14820_v48 = vpop.f32.mrb[33].mxu1  ;;  %v7117_v1 = vpop.permute.xlu1 %7116  ;;  %v8614_v31 = vsel %vm3994_vm13, %v14818_v24, 0.0 }
 0xabf   :  { %v8610_v17 = vsel %vm3994_vm13, %v14820_v48, 0.0  ;;  %v7115_v41 = vpop.permute.xlu0 %7114  ;;  %7250 = vst.msk [vmem:[#allocation4 + $0x1d8] sm:$0xff] %vm7190_vm6, %v7117_v1  ;;  %v14826_v6 = vpop.f32.mrb[34].mxu1 }
 0xac0   :  { %v8611_v23 = vadd.f32 %v8610_v17, %v8609_v47  ;;  %7249 = vst.msk [vmem:[#allocation4 + $0x1d0] sm:$0xff] %vm7190_vm6, %v7115_v41  ;;  %v14828_v44 = vpop.f32.mrb[35].mxu1  ;;  %v8616_v11 = vsel %vm3994_vm13, %v14826_v6, 0.0 }
 0xac1   :  { %v8612_v35 = vsel %vm3994_vm13, %v14828_v44, 0.0 }
 0xac2   :  { %v8613_v58 = vadd.f32 %v8612_v35, %v8611_v23  ;;  %v7498_v59 = vpop.permute.xlu1 %7497 }
 0xac3   :  { %v7496_v39 = vpop.permute.xlu0 %7495  ;;  %7633 = vst.msk [vmem:[#allocation4 + $0x1c8] sm:$0xff] %vm7575_vm7, %v7498_v59 }
 0xac4   :  { %7632 = vst.msk [vmem:[#allocation4 + $0x1c0] sm:$0xff] %vm7575_vm7, %v7496_v39  ;;  %v8615_v47 = vadd.f32 %v8614_v31, %v8613_v58 }
 0xac6   :  { %v7502_v21 = vpop.permute.xlu1 %7501  ;;  %v8617_v3 = vadd.f32 %v8616_v11, %v8615_v47 }
 0xac7   :  { %v7500_v60 = vpop.permute.xlu0 %7499  ;;  %7635 = vst.msk [vmem:[#allocation4 + $0x1d8] sm:$0xff] %vm7575_vm7, %v7502_v21 }
 0xac8   :  { %7634 = vst.msk [vmem:[#allocation4 + $0x1d0] sm:$0xff] %vm7575_vm7, %v7500_v60 }
 0xaca   :  { %v7883_v61 = vpop.permute.xlu1 %7882 }
 0xacb   :  { %v7881_v37 = vpop.permute.xlu0 %7880  ;;  %8018 = vst.msk [vmem:[#allocation4 + $0x1c8] sm:$0xff] %vm7960_vm8, %v7883_v61 }
 0xacc   :  { %8017 = vst.msk [vmem:[#allocation4 + $0x1c0] sm:$0xff] %vm7960_vm8, %v7881_v37 }
 0xace   :  { %v7887_v22 = vpop.permute.xlu1 %7886 }
 0xacf   :  { %v7885_v18 = vpop.permute.xlu0 %7884  ;;  %8020 = vst.msk [vmem:[#allocation4 + $0x1d8] sm:$0xff] %vm7960_vm8, %v7887_v22 }
 0xad0   :  { %8019 = vst.msk [vmem:[#allocation4 + $0x1d0] sm:$0xff] %vm7960_vm8, %v7885_v18 }
 0xad2   :  { %v6350_v36 = vpop.permute.xlu1 %6349  ;;  %v8082_v30 = vld [vmem:[#allocation4 + $0x1c8] sm:$0xff] }
 0xad3   :  { %v6348_v54 = vpop.permute.xlu0 %6347  ;;  %v8081_v15 = vld [vmem:[#allocation4 + $0x1c0] sm:$0xff]  ;;  %6481 = vst.msk [vmem:[#allocation4 + $0x1e8] sm:$0xff] %vm6419_vm4, %v6350_v36 }
 0xad4   :  { %6480 = vst.msk [vmem:[#allocation4 + $0x1e0] sm:$0xff] %vm6419_vm4, %v6348_v54  ;;  %v8117_v50 = vpack.c.bf16 %v8082_v30, %v8081_v15 }
 0xad6   :  { %9583 = vmatprep.mubr.msk.bf16.mxu1 %vm8157_vm9, %v8117_v50  ;;  %v6354_v26 = vpop.permute.xlu1 %6353  ;;  %v8084_v38 = vld [vmem:[#allocation4 + $0x1d8] sm:$0xff] }
 0xad7   :  { %v6352_v7 = vpop.permute.xlu0 %6351  ;;  %v8083_v43 = vld [vmem:[#allocation4 + $0x1d0] sm:$0xff]  ;;  %6483 = vst.msk [vmem:[#allocation4 + $0x1f8] sm:$0xff] %vm6419_vm4, %v6354_v26 }
 0xad8   :  { %6482 = vst.msk [vmem:[#allocation4 + $0x1f0] sm:$0xff] %vm6419_vm4, %v6352_v7  ;;  %v8118_v45 = vpack.c.bf16 %v8084_v38, %v8083_v43 }
 0xada   :  { %9584 = vmatmul.mubr.msk.bf16.gmra.mrb[56].mxu1 %vm8157_vm9, %v8118_v45  ;;  %v6735_v17 = vpop.permute.xlu1 %6734 }
 0xadb   :  { %v6733_v1 = vpop.permute.xlu0 %6732  ;;  %6866 = vst.msk [vmem:[#allocation4 + $0x1e8] sm:$0xff] %vm6804_vm5, %v6735_v17 }
 0xadc   :  { %6865 = vst.msk [vmem:[#allocation4 + $0x1e0] sm:$0xff] %vm6804_vm5, %v6733_v1 }
 0xade   :  { %v6739_v41 = vpop.permute.xlu1 %6738 }
 0xadf   :  { %v6737_v23 = vpop.permute.xlu0 %6736  ;;  %6868 = vst.msk [vmem:[#allocation4 + $0x1f8] sm:$0xff] %vm6804_vm5, %v6739_v41 }
 0xae0   :  { %6867 = vst.msk [vmem:[#allocation4 + $0x1f0] sm:$0xff] %vm6804_vm5, %v6737_v23 }
 0xae2   :  { %v7121_v35 = vpop.permute.xlu1 %7120 }
 0xae3   :  { %v7119_v58 = vpop.permute.xlu0 %7118  ;;  %7252 = vst.msk [vmem:[#allocation4 + $0x1e8] sm:$0xff] %vm7190_vm6, %v7121_v35 }
 0xae4   :  { %7251 = vst.msk [vmem:[#allocation4 + $0x1e0] sm:$0xff] %vm7190_vm6, %v7119_v58 }
 0xae5   :  { %v14856_v59 = vpop.f32.mrb[36].mxu1 }
 0xae6   :  { %v14858_v39 = vpop.f32.mrb[37].mxu1  ;;  %v7125_v47 = vpop.permute.xlu1 %7124  ;;  %v8622_v54 = vsel %vm3994_vm13, %v14856_v59, 0.0 }
 0xae7   :  { %v8618_v31 = vsel %vm3994_vm13, %v14858_v39, 0.0  ;;  %v7123_v11 = vpop.permute.xlu0 %7122  ;;  %7254 = vst.msk [vmem:[#allocation4 + $0x1f8] sm:$0xff] %vm7190_vm6, %v7125_v47  ;;  %v14864_v60 = vpop.f32.mrb[38].mxu1 }
 0xae8   :  { %v8619_v21 = vadd.f32 %v8618_v31, %v8617_v3  ;;  %7253 = vst.msk [vmem:[#allocation4 + $0x1f0] sm:$0xff] %vm7190_vm6, %v7123_v11  ;;  %v14866_v61 = vpop.f32.mrb[39].mxu1  ;;  %v8624_v15 = vsel %vm3994_vm13, %v14864_v60, 0.0 }
 0xae9   :  { %v8620_v37 = vsel %vm3994_vm13, %v14866_v61, 0.0 }
 0xaea   :  { %v8621_v22 = vadd.f32 %v8620_v37, %v8619_v21  ;;  %v7506_v18 = vpop.permute.xlu1 %7505 }
 0xaeb   :  { %v7504_v36 = vpop.permute.xlu0 %7503  ;;  %7637 = vst.msk [vmem:[#allocation4 + $0x1e8] sm:$0xff] %vm7575_vm7, %v7506_v18 }
 0xaec   :  { %7636 = vst.msk [vmem:[#allocation4 + $0x1e0] sm:$0xff] %vm7575_vm7, %v7504_v36  ;;  %v8623_v3 = vadd.f32 %v8622_v54, %v8621_v22 }
 0xaee   :  { %v7510_v30 = vpop.permute.xlu1 %7509  ;;  %v8625_v26 = vadd.f32 %v8624_v15, %v8623_v3 }
 0xaef   :  { %v7508_v50 = vpop.permute.xlu0 %7507  ;;  %7639 = vst.msk [vmem:[#allocation4 + $0x1f8] sm:$0xff] %vm7575_vm7, %v7510_v30 }
 0xaf0   :  { %7638 = vst.msk [vmem:[#allocation4 + $0x1f0] sm:$0xff] %vm7575_vm7, %v7508_v50 }
 0xaf2   :  { %v7891_v7 = vpop.permute.xlu1 %7890 }
 0xaf3   :  { %v7889_v43 = vpop.permute.xlu0 %7888  ;;  %8022 = vst.msk [vmem:[#allocation4 + $0x1e8] sm:$0xff] %vm7960_vm8, %v7891_v7 }
 0xaf4   :  { %8021 = vst.msk [vmem:[#allocation4 + $0x1e0] sm:$0xff] %vm7960_vm8, %v7889_v43 }
 0xaf6   :  { %v7895_v38 = vpop.permute.xlu1 %7894 }
 0xaf7   :  { %v7893_v45 = vpop.permute.xlu0 %7892  ;;  %8024 = vst.msk [vmem:[#allocation4 + $0x1f8] sm:$0xff] %vm7960_vm8, %v7895_v38 }
 0xaf8   :  { %8023 = vst.msk [vmem:[#allocation4 + $0x1f0] sm:$0xff] %vm7960_vm8, %v7893_v45 }
 0xafa   :  { %v8086_v1 = vld [vmem:[#allocation4 + $0x1e8] sm:$0xff] }
 0xafb   :  { %v8085_v17 = vld [vmem:[#allocation4 + $0x1e0] sm:$0xff] }
 0xafc   :  { %v8119_v41 = vpack.c.bf16 %v8086_v1, %v8085_v17 }
 0xafe   :  { %9587 = vmatprep.mubr.msk.bf16.mxu1 %vm8157_vm9, %v8119_v41  ;;  %v8088_v35 = vld [vmem:[#allocation4 + $0x1f8] sm:$0xff] }
 0xaff   :  { %v8087_v23 = vld [vmem:[#allocation4 + $0x1f0] sm:$0xff] }
 0xb00   :  { %v8120_v58 = vpack.c.bf16 %v8088_v35, %v8087_v23 }
 0xb02   :  { %9588 = vmatmul.mubr.msk.bf16.gmra.mrb[60].mxu1 %vm8157_vm9, %v8120_v58 }
 0xb0d   :  { %v14884_v31 = vpop.f32.mrb[40].mxu1 }
 0xb0e   :  { %v14886_v47 = vpop.f32.mrb[41].mxu1  ;;  %v8630_v54 = vsel %vm3994_vm13, %v14884_v31, 0.0 }
 0xb0f   :  { %v8626_v11 = vsel %vm3994_vm13, %v14886_v47, 0.0  ;;  %v14890_v21 = vpop.f32.mrb[42].mxu1 }
 0xb10   :  { %v8627_v37 = vadd.f32 %v8626_v11, %v8625_v26  ;;  %v14892_v22 = vpop.f32.mrb[43].mxu1  ;;  %v8632_v15 = vsel %vm3994_vm13, %v14890_v21, 0.0 }
 0xb11   :  { %v8628_v18 = vsel %vm3994_vm13, %v14892_v22, 0.0 }
 0xb12   :  { %v8629_v36 = vadd.f32 %v8628_v18, %v8627_v37 }
 0xb14   :  { %v8631_v3 = vadd.f32 %v8630_v54, %v8629_v36 }
 0xb16   :  { %v8633_v30 = vadd.f32 %v8632_v15, %v8631_v3 }
 0xb35   :  { %v14900_v50 = vpop.f32.mrb[44].mxu1 }
 0xb36   :  { %v14902_v7 = vpop.f32.mrb[45].mxu1  ;;  %v8638_v41 = vsel %vm3994_vm13, %v14900_v50, 0.0 }
 0xb37   :  { %v8634_v26 = vsel %vm3994_vm13, %v14902_v7, 0.0  ;;  %v14906_v43 = vpop.f32.mrb[46].mxu1 }
 0xb38   :  { %16778 = vst [vmem:[#allocation5_spill] sm:$0xff] %v14906_v43  ;;  %v8635_v38 = vadd.f32 %v8634_v26, %v8633_v30  ;;  %v14908_v45 = vpop.f32.mrb[47].mxu1  ;;  %v8640_v35 = vsel %vm3994_vm13, %v14906_v43, 0.0 }
 0xb39   :  { %v8636_v17 = vsel %vm3994_vm13, %v14908_v45, 0.0 }
 0xb3a   :  { %v8637_v1 = vadd.f32 %v8636_v17, %v8635_v38 }
 0xb3c   :  { %v8639_v23 = vadd.f32 %v8638_v41, %v8637_v1 }
 0xb3e   :  { %v8641_v58 = vadd.f32 %v8640_v35, %v8639_v23 }
 0xb5d   :  { %v14916_v11 = vpop.f32.mrb[48].mxu1 }
 0xb5e   :  { %16779 = vst [vmem:[#allocation7_spill] sm:$0xff] %v14916_v11  ;;  %v14918_v37 = vpop.f32.mrb[49].mxu1  ;;  %v8646_v26 = vsel %vm3994_vm13, %v14916_v11, 0.0 }
 0xb5f   :  { %16780 = vst [vmem:[#allocation9_spill] sm:$0xff] %v14918_v37  ;;  %v8642_v18 = vsel %vm3994_vm13, %v14918_v37, 0.0  ;;  %v14922_v36 = vpop.f32.mrb[50].mxu1 }
 0xb60   :  { %16781 = vst [vmem:[#allocation6_spill] sm:$0xff] %v14922_v36  ;;  %v8643_v54 = vadd.f32 %v8642_v18, %v8641_v58  ;;  %v14924_v3 = vpop.f32.mrb[51].mxu1  ;;  %v8648_v17 = vsel %vm3994_vm13, %v14922_v36, 0.0 }
 0xb61   :  { %16782 = vst [vmem:[#allocation8_spill] sm:$0xff] %v14924_v3  ;;  %v8644_v15 = vsel %vm3994_vm13, %v14924_v3, 0.0 }
 0xb62   :  { %v8645_v30 = vadd.f32 %v8644_v15, %v8643_v54 }
 0xb64   :  { %v8647_v38 = vadd.f32 %v8646_v26, %v8645_v30 }
 0xb66   :  { %v8649_v1 = vadd.f32 %v8648_v17, %v8647_v38 }
 0xb85   :  { %v14932_v41 = vpop.f32.mrb[52].mxu1 }
 0xb86   :  { %16783 = vst [vmem:[#allocation11_spill] sm:$0xff] %v14932_v41  ;;  %v14934_v23 = vpop.f32.mrb[53].mxu1  ;;  %v8654_v30 = vsel %vm3994_vm13, %v14932_v41, 0.0 }
 0xb87   :  { %16784 = vst [vmem:[#allocation13_spill] sm:$0xff] %v14934_v23  ;;  %v8650_v35 = vsel %vm3994_vm13, %v14934_v23, 0.0  ;;  %v14938_v58 = vpop.f32.mrb[54].mxu1 }
 0xb88   :  { %16785 = vst [vmem:[#allocation10_spill] sm:$0xff] %v14938_v58  ;;  %v8651_v18 = vadd.f32 %v8650_v35, %v8649_v1  ;;  %v14940_v3 = vpop.f32.mrb[55].mxu1  ;;  %v8656_v38 = vsel %vm3994_vm13, %v14938_v58, 0.0 }
 0xb89   :  { %16786 = vst [vmem:[#allocation12_spill] sm:$0xff] %v14940_v3  ;;  %v8652_v54 = vsel %vm3994_vm13, %v14940_v3, 0.0 }
 0xb8a   :  { %v8653_v15 = vadd.f32 %v8652_v54, %v8651_v18 }
 0xb8c   :  { %v8655_v26 = vadd.f32 %v8654_v30, %v8653_v15 }
 0xb8e   :  { %v8657_v17 = vadd.f32 %v8656_v38, %v8655_v26 }
 0xbad   :  { %v14948_v36 = vpop.f32.mrb[56].mxu1 }
 0xbae   :  { %16787 = vst [vmem:[#allocation15_spill] sm:$0xff] %v14948_v36  ;;  %v14950_v23 = vpop.f32.mrb[57].mxu1  ;;  %v8662_v15 = vsel %vm3994_vm13, %v14948_v36, 0.0 }
 0xbaf   :  { %16788 = vst [vmem:[#allocation17_spill] sm:$0xff] %v14950_v23  ;;  %v8658_v1 = vsel %vm3994_vm13, %v14950_v23, 0.0  ;;  %v14954_v35 = vpop.f32.mrb[58].mxu1 }
 0xbb0   :  { %16789 = vst [vmem:[#allocation14_spill] sm:$0xff] %v14954_v35  ;;  %v8659_v11 = vadd.f32 %v8658_v1, %v8657_v17  ;;  %v14956_v3 = vpop.f32.mrb[59].mxu1  ;;  %v8664_v26 = vsel %vm3994_vm13, %v14954_v35, 0.0 }
 0xbb1   :  { %16790 = vst [vmem:[#allocation16_spill] sm:$0xff] %v14956_v3  ;;  %v8660_v18 = vsel %vm3994_vm13, %v14956_v3, 0.0 }
 0xbb2   :  { %v8661_v54 = vadd.f32 %v8660_v18, %v8659_v11 }
 0xbb4   :  { %v8663_v30 = vadd.f32 %v8662_v15, %v8661_v54 }
 0xbb6   :  { %v8665_v38 = vadd.f32 %v8664_v26, %v8663_v30 }
 0xbd5   :  { %v14964_v58 = vpop.f32.mrb[60].mxu1 }
 0xbd6   :  { %v14966_v23 = vpop.f32.mrb[61].mxu1  ;;  %v8670_v54 = vsel %vm3994_vm13, %v14964_v58, 0.0 }
 0xbd7   :  { %16791 = vst [vmem:[#allocation19_spill] sm:$0xff] %v14966_v23  ;;  %v8666_v17 = vsel %vm3994_vm13, %v14966_v23, 0.0  ;;  %v14970_v1 = vpop.f32.mrb[62].mxu1 }
 0xbd8   :  { %v8667_v41 = vadd.f32 %v8666_v17, %v8665_v38  ;;  %v14972_v3 = vpop.f32.mrb[63].mxu1  ;;  %v8672_v30 = vsel %vm3994_vm13, %v14970_v1, 0.0 }
 0xbd9   :  { %16792 = vst [vmem:[#allocation25_spill] sm:$0xff] %v14972_v3  ;;  %v8668_v11 = vsel %vm3994_vm13, %v14972_v3, 0.0 }
 0xbda   :  { %v8669_v18 = vadd.f32 %v8668_v11, %v8667_v41 }
 0xbdc   :  { %v8671_v15 = vadd.f32 %v8670_v54, %v8669_v18  ;;  %v16803_v18 = vld [vmem:[#allocation7_spill] sm:$0xff]  ;;  %v16805_v54 = vld [vmem:[#allocation6_spill] sm:$0xff] }
 0xbde   :  { %v8673_v26 = vadd.f32 %v8672_v30, %v8671_v15  ;;  %v16807_v15 = vld [vmem:[#allocation13_spill] sm:$0xff] }
 0xbe0   :  { %v8674_v35 = vrot.slane %v8673_v26, 4 }
 0xbe2   :  { %v8675_v36 = vadd.f32 %v8674_v35, %v8673_v26  ;;  %v16809_v26 = vld [vmem:[#allocation12_spill] sm:$0xff] }
 0xbe4   :  { %v8676_v23 = vrot.slane %v8675_v36, 2 }
 0xbe6   :  { %v8677_v37 = vadd.f32 %v8676_v23, %v8675_v36  ;;  %v16799_v36 = vld [vmem:[#allocation9_spill] sm:$0xff]  ;;  %v16801_v23 = vld [vmem:[#allocation8_spill] sm:$0xff] }
 0xbe8   :  { %v8678_v43 = vrot.slane %v8677_v37, 1 }
 0xbea   :  { %v8679_v38 = vadd.f32 %v8678_v43, %v8677_v37  ;;  %v16797_v37 = vld [vmem:[#allocation5_spill] sm:$0xff] }
 0xbec   :  { %v14980_v17 = vmul.f32 0.001953125, %v8679_v38 }
 0xbee   :  { %v14984_v3 = vsub.f32 %v14423_v51, %v14980_v17  ;;  %v14988_v41 = vsub.f32 %v14429_v42, %v14980_v17  ;;  %v14992_v11 = vsub.f32 %v14421_v55, %v14980_v17  ;;  %v14996_v35 = vsub.f32 %v14427_v2, %v14980_v17 }
 0xbef   :  { %v15000_v43 = vsub.f32 %v14473_v4, %v14980_v17  ;;  %v15004_v51 = vsub.f32 %v14481_v20, %v14980_v17  ;;  %v15008_v42 = vsub.f32 %v14471_v46, %v14980_v17  ;;  %v15012_v55 = vsub.f32 %v14479_v13, %v14980_v17 }
 0xbf0   :  { %16793 = vst [vmem:[#allocation20_spill] sm:$0xff] %v14984_v3  ;;  %16794 = vst [vmem:[#allocation21_spill] sm:$0xff] %v14988_v41  ;;  %v15016_v2 = vsub.f32 %v14521_v40, %v14980_v17  ;;  %v15020_v4 = vsub.f32 %v14530_v56, %v14980_v17  ;;  %v15024_v20 = vsub.f32 %v14519_v10, %v14980_v17 }
 0xbf1   :  { %16795 = vst [vmem:[#allocation22_spill] sm:$0xff] %v14992_v11  ;;  %16796 = vst [vmem:[#allocation23_spill] sm:$0xff] %v14996_v35  ;;  %v15028_v46 = vsub.f32 %v14528_v12, %v14980_v17  ;;  %v15032_v13 = vsub.f32 %v14571_v62, %v14980_v17  ;;  %v15036_v40 = vsub.f32 %v14579_v29, %v14980_v17 }
 0xbf2   :  { %v15040_v56 = vsub.f32 %v14569_v27, %v14980_v17  ;;  %v15044_v10 = vsub.f32 %v14577_v0, %v14980_v17  ;;  %v15048_v12 = vsub.f32 %v14621_v25, %v14980_v17  ;;  %v15052_v62 = vsub.f32 %v14629_v34, %v14980_v17 }
 0xbf3   :  { %v15056_v29 = vsub.f32 %v14619_v33, %v14980_v17  ;;  %v15060_v27 = vsub.f32 %v14627_v28, %v14980_v17  ;;  %v15064_v0 = vsub.f32 %v14671_v16, %v14980_v17  ;;  %v15068_v25 = vsub.f32 %v14679_v19, %v14980_v17 }
 0xbf4   :  { %v15072_v34 = vsub.f32 %v14669_v8, %v14980_v17  ;;  %v15076_v33 = vsub.f32 %v14677_v32, %v14980_v17  ;;  %v15080_v28 = vsub.f32 %v14731_v57, %v14980_v17  ;;  %v15084_v16 = vsub.f32 %v14740_v53, %v14980_v17 }
 0xbf5   :  { %v15088_v19 = vsub.f32 %v14729_v5, %v14980_v17  ;;  %v15092_v8 = vsub.f32 %v14738_v63, %v14980_v17  ;;  %v15096_v32 = vsub.f32 %v14782_v49, %v14980_v17  ;;  %v15100_v57 = vsub.f32 %v14790_v52, %v14980_v17 }
 0xbf6   :  { %v15104_v53 = vsub.f32 %v14780_v14, %v14980_v17  ;;  %v15108_v5 = vsub.f32 %v14788_v9, %v14980_v17  ;;  %v15112_v63 = vsub.f32 %v14820_v48, %v14980_v17  ;;  %v15116_v49 = vsub.f32 %v14828_v44, %v14980_v17 }
 0xbf7   :  { %v15120_v52 = vsub.f32 %v14818_v24, %v14980_v17  ;;  %v15124_v14 = vsub.f32 %v14826_v6, %v14980_v17  ;;  %v15128_v9 = vsub.f32 %v14858_v39, %v14980_v17  ;;  %v15132_v48 = vsub.f32 %v14866_v61, %v14980_v17 }
 0xbf8   :  { %v15136_v44 = vsub.f32 %v14856_v59, %v14980_v17  ;;  %v15140_v24 = vsub.f32 %v14864_v60, %v14980_v17  ;;  %v15144_v6 = vsub.f32 %v14886_v47, %v14980_v17  ;;  %v15148_v39 = vsub.f32 %v14892_v22, %v14980_v17 }
 0xbf9   :  { %v15152_v61 = vsub.f32 %v14884_v31, %v14980_v17  ;;  %v15156_v59 = vsub.f32 %v14890_v21, %v14980_v17  ;;  %v15160_v60 = vsub.f32 %v14902_v7, %v14980_v17  ;;  %v15164_v47 = vsub.f32 %v14908_v45, %v14980_v17 }
 0xbfa   :  { %v15168_v22 = vsub.f32 %v14900_v50, %v14980_v17  ;;  %v15172_v31 = vsub.f32 %v16797_v37, %v14980_v17  ;;  %v15176_v21 = vsub.f32 %v16799_v36, %v14980_v17  ;;  %v15180_v7 = vsub.f32 %v16801_v23, %v14980_v17  ;;  %v16811_v37 = vld [vmem:[#allocation11_spill] sm:$0xff]  ;;  %v16813_v23 = vld [vmem:[#allocation10_spill] sm:$0xff] }
 0xbfb   :  { %v15184_v45 = vsub.f32 %v16803_v18, %v14980_v17  ;;  %v15188_v50 = vsub.f32 %v16805_v54, %v14980_v17  ;;  %v15192_v30 = vsub.f32 %v16807_v15, %v14980_v17  ;;  %v15196_v38 = vsub.f32 %v16809_v26, %v14980_v17 }
 0xbfc   :  { %16798 = vst [vmem:[#allocation24_spill] sm:$0xff] %v15172_v31  ;;  %16800 = vst [vmem:[#allocation18_spill] sm:$0xff] %v15176_v21  ;;  %v15200_v36 = vsub.f32 %v16811_v37, %v14980_v17  ;;  %v15204_v18 = vsub.f32 %v16813_v23, %v14980_v17 }
 0xbfd   :  { %16802 = vst [vmem:[#allocation5_spill] sm:$0xff] %v15180_v7  ;;  %16804 = vst [vmem:[#allocation9_spill] sm:$0xff] %v15184_v45  ;;  %v16815_v45 = vld [vmem:[#allocation17_spill] sm:$0xff] }
 0xbfe   :  { %16806 = vst [vmem:[#allocation8_spill] sm:$0xff] %v15188_v50  ;;  %16808 = vst [vmem:[#allocation7_spill] sm:$0xff] %v15192_v30  ;;  %v15208_v54 = vsub.f32 %v16815_v45, %v14980_v17  ;;  %v16817_v50 = vld [vmem:[#allocation16_spill] sm:$0xff]  ;;  %v16819_v30 = vld [vmem:[#allocation15_spill] sm:$0xff] }
 0xbff   :  { %16810 = vst [vmem:[#allocation6_spill] sm:$0xff] %v15196_v38  ;;  %16812 = vst [vmem:[#allocation13_spill] sm:$0xff] %v15200_v36  ;;  %v15212_v15 = vsub.f32 %v16817_v50, %v14980_v17  ;;  %v15216_v26 = vsub.f32 %v16819_v30, %v14980_v17  ;;  %v16821_v38 = vld [vmem:[#allocation14_spill] sm:$0xff]  ;;  %v16823_v36 = vld [vmem:[#allocation19_spill] sm:$0xff]  ;;  %v15232_v50 = vsub.f32 %v14964_v58, %v14980_v17 }
 0xc00   :  { %16814 = vst [vmem:[#allocation12_spill] sm:$0xff] %v15204_v18  ;;  %16816 = vst [vmem:[#allocation11_spill] sm:$0xff] %v15208_v54  ;;  %v15220_v37 = vsub.f32 %v16821_v38, %v14980_v17  ;;  %v15224_v23 = vsub.f32 %v16823_v36, %v14980_v17  ;;  %v16825_v18 = vld [vmem:[#allocation25_spill] sm:$0xff]  ;;  %v15236_v30 = vsub.f32 %v14970_v1, %v14980_v17 }
 0xc01   :  { %16818 = vst [vmem:[#allocation10_spill] sm:$0xff] %v15212_v15  ;;  %16820 = vst [vmem:[#allocation17_spill] sm:$0xff] %v15216_v26  ;;  %v15228_v45 = vsub.f32 %v16825_v18, %v14980_v17  ;;  %v8745_v38 = vmul.f32 %v14984_v3, %v14984_v3  ;;  %v8747_v36 = vmul.f32 %v14992_v11, %v14992_v11 }
 0xc02   :  { %16822 = vst [vmem:[#allocation16_spill] sm:$0xff] %v15220_v37  ;;  %16824 = vst [vmem:[#allocation15_spill] sm:$0xff] %v15224_v23  ;;  %v8746_v37 = vmul.f32 %v14988_v41, %v14988_v41  ;;  %v8748_v18 = vmul.f32 %v14996_v35, %v14996_v35  ;;  %v8749_v1 = vmul.f32 %v15000_v43, %v15000_v43 }
 0xc03   :  { %16826 = vst [vmem:[#allocation14_spill] sm:$0xff] %v15228_v45  ;;  %16827 = vst [vmem:[#allocation19_spill] sm:$0xff] %v15232_v50  ;;  %v8809_v45 = vsel %vm3994_vm13, %v8745_v38, 0.0  ;;  %v8812_v17 = vsel %vm3994_vm13, %v8747_v36, 0.0  ;;  %v8750_v41 = vmul.f32 %v15004_v51, %v15004_v51  ;;  %v8751_v35 = vmul.f32 %v15008_v42, %v15008_v42 }
 0xc04   :  { %16828 = vst [vmem:[#allocation25_spill] sm:$0xff] %v15236_v30  ;;  %v8810_v58 = vsel %vm3994_vm13, %v8746_v37, 0.0  ;;  %v8814_v30 = vsel %vm3994_vm13, %v8748_v18, 0.0  ;;  %v8816_v38 = vsel %vm3994_vm13, %v8749_v1, 0.0  ;;  %v8752_v37 = vmul.f32 %v15012_v55, %v15012_v55 }
 0xc05   :  { %v8811_v50 = vadd.f32 %v8810_v58, %v8809_v45  ;;  %v8818_v45 = vsel %vm3994_vm13, %v8750_v41, 0.0  ;;  %v8820_v36 = vsel %vm3994_vm13, %v8751_v35, 0.0  ;;  %v8756_v41 = vmul.f32 %v15028_v46, %v15028_v46 }
 0xc06   :  { %v8757_v35 = vmul.f32 %v15032_v13, %v15032_v13 }
 0xc07   :  { %v8813_v3 = vadd.f32 %v8812_v17, %v8811_v50  ;;  %v8753_v50 = vmul.f32 %v15016_v2, %v15016_v2 }
 0xc09   :  { %v8815_v11 = vadd.f32 %v8814_v30, %v8813_v3  ;;  %v8754_v3 = vmul.f32 %v15020_v4, %v15020_v4  ;;  %v8822_v30 = vsel %vm3994_vm13, %v8752_v37, 0.0  ;;  %v8824_v1 = vsel %vm3994_vm13, %v8753_v50, 0.0 }
 0xc0a   :  { %v8758_v37 = vmul.f32 %v15036_v40, %v15036_v40  ;;  %v8759_v50 = vmul.f32 %v15040_v56, %v15040_v56 }
 0xc0b   :  { %v8817_v23 = vadd.f32 %v8816_v38, %v8815_v11  ;;  %v8755_v11 = vmul.f32 %v15024_v20, %v15024_v20 }
 0xc0d   :  { %v8819_v58 = vadd.f32 %v8818_v45, %v8817_v23  ;;  %v8826_v23 = vsel %vm3994_vm13, %v8754_v3, 0.0  ;;  %v8760_v3 = vmul.f32 %v15044_v10, %v15044_v10 }
 0xc0f   :  { %v8821_v17 = vadd.f32 %v8820_v36, %v8819_v58  ;;  %v8828_v58 = vsel %vm3994_vm13, %v8755_v11, 0.0  ;;  %v8761_v11 = vmul.f32 %v15048_v12, %v15048_v12 }
 0xc11   :  { %v8823_v18 = vadd.f32 %v8822_v30, %v8821_v17  ;;  %v8830_v17 = vsel %vm3994_vm13, %v8756_v41, 0.0  ;;  %v8762_v41 = vmul.f32 %v15052_v62, %v15052_v62 }
 0xc13   :  { %v8825_v38 = vadd.f32 %v8824_v1, %v8823_v18  ;;  %v8832_v18 = vsel %vm3994_vm13, %v8757_v35, 0.0  ;;  %v8763_v35 = vmul.f32 %v15056_v29, %v15056_v29 }
 0xc15   :  { %v8827_v45 = vadd.f32 %v8826_v23, %v8825_v38  ;;  %v8834_v38 = vsel %vm3994_vm13, %v8758_v37, 0.0  ;;  %v8764_v37 = vmul.f32 %v15060_v27, %v15060_v27 }
 0xc17   :  { %v8829_v36 = vadd.f32 %v8828_v58, %v8827_v45  ;;  %v8836_v45 = vsel %vm3994_vm13, %v8759_v50, 0.0  ;;  %v8765_v50 = vmul.f32 %v15064_v0, %v15064_v0 }
 0xc19   :  { %v8831_v30 = vadd.f32 %v8830_v17, %v8829_v36  ;;  %v8838_v36 = vsel %vm3994_vm13, %v8760_v3, 0.0  ;;  %v8766_v3 = vmul.f32 %v15068_v25, %v15068_v25 }
 0xc1b   :  { %v8833_v1 = vadd.f32 %v8832_v18, %v8831_v30  ;;  %v8840_v30 = vsel %vm3994_vm13, %v8761_v11, 0.0  ;;  %v8767_v11 = vmul.f32 %v15072_v34, %v15072_v34 }
 0xc1d   :  { %v8835_v23 = vadd.f32 %v8834_v38, %v8833_v1  ;;  %v8842_v1 = vsel %vm3994_vm13, %v8762_v41, 0.0  ;;  %v8768_v41 = vmul.f32 %v15076_v33, %v15076_v33 }
 0xc1f   :  { %v8837_v58 = vadd.f32 %v8836_v45, %v8835_v23  ;;  %v8844_v23 = vsel %vm3994_vm13, %v8763_v35, 0.0  ;;  %v8769_v35 = vmul.f32 %v15080_v28, %v15080_v28 }
 0xc21   :  { %v8839_v17 = vadd.f32 %v8838_v36, %v8837_v58  ;;  %v8846_v58 = vsel %vm3994_vm13, %v8764_v37, 0.0  ;;  %v8770_v37 = vmul.f32 %v15084_v16, %v15084_v16 }
 0xc23   :  { %v8841_v18 = vadd.f32 %v8840_v30, %v8839_v17  ;;  %v8848_v17 = vsel %vm3994_vm13, %v8765_v50, 0.0  ;;  %v8771_v50 = vmul.f32 %v15088_v19, %v15088_v19 }
 0xc25   :  { %v8843_v38 = vadd.f32 %v8842_v1, %v8841_v18  ;;  %v8850_v18 = vsel %vm3994_vm13, %v8766_v3, 0.0  ;;  %v8772_v3 = vmul.f32 %v15092_v8, %v15092_v8 }
 0xc27   :  { %v8845_v45 = vadd.f32 %v8844_v23, %v8843_v38  ;;  %v8852_v38 = vsel %vm3994_vm13, %v8767_v11, 0.0  ;;  %v8773_v11 = vmul.f32 %v15096_v32, %v15096_v32 }
 0xc29   :  { %v8847_v36 = vadd.f32 %v8846_v58, %v8845_v45  ;;  %v8854_v45 = vsel %vm3994_vm13, %v8768_v41, 0.0  ;;  %v8774_v41 = vmul.f32 %v15100_v57, %v15100_v57 }
 0xc2b   :  { %v8849_v30 = vadd.f32 %v8848_v17, %v8847_v36  ;;  %v8856_v36 = vsel %vm3994_vm13, %v8769_v35, 0.0  ;;  %v8775_v35 = vmul.f32 %v15104_v53, %v15104_v53 }
 0xc2d   :  { %v8851_v1 = vadd.f32 %v8850_v18, %v8849_v30  ;;  %v8858_v30 = vsel %vm3994_vm13, %v8770_v37, 0.0  ;;  %v8776_v37 = vmul.f32 %v15108_v5, %v15108_v5 }
 0xc2f   :  { %v8853_v23 = vadd.f32 %v8852_v38, %v8851_v1  ;;  %v8860_v1 = vsel %vm3994_vm13, %v8771_v50, 0.0  ;;  %v8777_v50 = vmul.f32 %v15112_v63, %v15112_v63 }
 0xc31   :  { %v8855_v58 = vadd.f32 %v8854_v45, %v8853_v23  ;;  %v8862_v23 = vsel %vm3994_vm13, %v8772_v3, 0.0  ;;  %v8778_v3 = vmul.f32 %v15116_v49, %v15116_v49 }
 0xc33   :  { %v8857_v17 = vadd.f32 %v8856_v36, %v8855_v58  ;;  %v8864_v58 = vsel %vm3994_vm13, %v8773_v11, 0.0  ;;  %v8779_v11 = vmul.f32 %v15120_v52, %v15120_v52 }
 0xc35   :  { %v8859_v18 = vadd.f32 %v8858_v30, %v8857_v17  ;;  %v8866_v17 = vsel %vm3994_vm13, %v8774_v41, 0.0  ;;  %v8780_v41 = vmul.f32 %v15124_v14, %v15124_v14 }
 0xc37   :  { %v8861_v38 = vadd.f32 %v8860_v1, %v8859_v18  ;;  %v8868_v18 = vsel %vm3994_vm13, %v8775_v35, 0.0  ;;  %v8781_v35 = vmul.f32 %v15128_v9, %v15128_v9 }
 0xc39   :  { %v8863_v45 = vadd.f32 %v8862_v23, %v8861_v38  ;;  %v8870_v38 = vsel %vm3994_vm13, %v8776_v37, 0.0  ;;  %v8782_v37 = vmul.f32 %v15132_v48, %v15132_v48 }
 0xc3b   :  { %v8865_v36 = vadd.f32 %v8864_v58, %v8863_v45  ;;  %v8872_v45 = vsel %vm3994_vm13, %v8777_v50, 0.0  ;;  %v8783_v50 = vmul.f32 %v15136_v44, %v15136_v44 }
 0xc3d   :  { %v8867_v30 = vadd.f32 %v8866_v17, %v8865_v36  ;;  %v8874_v36 = vsel %vm3994_vm13, %v8778_v3, 0.0  ;;  %v8784_v3 = vmul.f32 %v15140_v24, %v15140_v24 }
 0xc3f   :  { %v8869_v1 = vadd.f32 %v8868_v18, %v8867_v30  ;;  %v8876_v30 = vsel %vm3994_vm13, %v8779_v11, 0.0  ;;  %v8785_v11 = vmul.f32 %v15144_v6, %v15144_v6 }
 0xc41   :  { %v8871_v23 = vadd.f32 %v8870_v38, %v8869_v1  ;;  %v8878_v1 = vsel %vm3994_vm13, %v8780_v41, 0.0  ;;  %v8786_v41 = vmul.f32 %v15148_v39, %v15148_v39 }
 0xc43   :  { %v8873_v58 = vadd.f32 %v8872_v45, %v8871_v23  ;;  %v8880_v23 = vsel %vm3994_vm13, %v8781_v35, 0.0  ;;  %v8787_v35 = vmul.f32 %v15152_v61, %v15152_v61 }
 0xc45   :  { %v8875_v17 = vadd.f32 %v8874_v36, %v8873_v58  ;;  %v8882_v58 = vsel %vm3994_vm13, %v8782_v37, 0.0  ;;  %v8788_v37 = vmul.f32 %v15156_v59, %v15156_v59 }
 0xc47   :  { %v8877_v18 = vadd.f32 %v8876_v30, %v8875_v17  ;;  %v8884_v17 = vsel %vm3994_vm13, %v8783_v50, 0.0  ;;  %v8789_v50 = vmul.f32 %v15160_v60, %v15160_v60 }
 0xc49   :  { %v8879_v38 = vadd.f32 %v8878_v1, %v8877_v18  ;;  %v8886_v18 = vsel %vm3994_vm13, %v8784_v3, 0.0  ;;  %v8790_v3 = vmul.f32 %v15164_v47, %v15164_v47 }
 0xc4b   :  { %v8881_v45 = vadd.f32 %v8880_v23, %v8879_v38  ;;  %v8888_v38 = vsel %vm3994_vm13, %v8785_v11, 0.0  ;;  %v8791_v11 = vmul.f32 %v15168_v22, %v15168_v22 }
 0xc4d   :  { %v8883_v36 = vadd.f32 %v8882_v58, %v8881_v45  ;;  %v8890_v45 = vsel %vm3994_vm13, %v8786_v41, 0.0  ;;  %v8792_v41 = vmul.f32 %v15172_v31, %v15172_v31 }
 0xc4f   :  { %v8885_v30 = vadd.f32 %v8884_v17, %v8883_v36  ;;  %v8892_v36 = vsel %vm3994_vm13, %v8787_v35, 0.0  ;;  %v8793_v35 = vmul.f32 %v15176_v21, %v15176_v21 }
 0xc51   :  { %v8887_v1 = vadd.f32 %v8886_v18, %v8885_v30  ;;  %v8894_v30 = vsel %vm3994_vm13, %v8788_v37, 0.0  ;;  %v8794_v37 = vmul.f32 %v15180_v7, %v15180_v7 }
 0xc53   :  { %v8889_v23 = vadd.f32 %v8888_v38, %v8887_v1  ;;  %v8896_v1 = vsel %vm3994_vm13, %v8789_v50, 0.0  ;;  %v16829_v50 = vld [vmem:[#allocation9_spill] sm:$0xff] }
 0xc55   :  { %v8891_v58 = vadd.f32 %v8890_v45, %v8889_v23  ;;  %v8898_v23 = vsel %vm3994_vm13, %v8790_v3, 0.0  ;;  %v16830_v3 = vld [vmem:[#allocation8_spill] sm:$0xff] }
 0xc57   :  { %v8893_v17 = vadd.f32 %v8892_v36, %v8891_v58  ;;  %v8900_v58 = vsel %vm3994_vm13, %v8791_v11, 0.0  ;;  %v16831_v11 = vld [vmem:[#allocation7_spill] sm:$0xff] }
 0xc59   :  { %v8895_v18 = vadd.f32 %v8894_v30, %v8893_v17  ;;  %v8902_v17 = vsel %vm3994_vm13, %v8792_v41, 0.0  ;;  %v16832_v41 = vld [vmem:[#allocation6_spill] sm:$0xff] }
 0xc5b   :  { %v8897_v38 = vadd.f32 %v8896_v1, %v8895_v18  ;;  %v8795_v18 = vmul.f32 %v16829_v50, %v16829_v50  ;;  %v8904_v1 = vsel %vm3994_vm13, %v8793_v35, 0.0  ;;  %v16833_v35 = vld [vmem:[#allocation13_spill] sm:$0xff] }
 0xc5d   :  { %v8899_v45 = vadd.f32 %v8898_v23, %v8897_v38  ;;  %v8796_v38 = vmul.f32 %v16830_v3, %v16830_v3  ;;  %v8906_v23 = vsel %vm3994_vm13, %v8794_v37, 0.0  ;;  %v16834_v37 = vld [vmem:[#allocation12_spill] sm:$0xff] }
 0xc5f   :  { %v8901_v36 = vadd.f32 %v8900_v58, %v8899_v45  ;;  %v8797_v45 = vmul.f32 %v16831_v11, %v16831_v11  ;;  %v8908_v58 = vsel %vm3994_vm13, %v8795_v18, 0.0 }
 0xc61   :  { %v8903_v30 = vadd.f32 %v8902_v17, %v8901_v36  ;;  %v8798_v36 = vmul.f32 %v16832_v41, %v16832_v41  ;;  %v8910_v17 = vsel %vm3994_vm13, %v8796_v38, 0.0 }
 0xc63   :  { %v8905_v31 = vadd.f32 %v8904_v1, %v8903_v30  ;;  %v8799_v30 = vmul.f32 %v16833_v35, %v16833_v35  ;;  %v8912_v1 = vsel %vm3994_vm13, %v8797_v45, 0.0 }
 0xc65   :  { %v8907_v21 = vadd.f32 %v8906_v23, %v8905_v31  ;;  %v8800_v31 = vmul.f32 %v16834_v37, %v16834_v37  ;;  %v8914_v23 = vsel %vm3994_vm13, %v8798_v36, 0.0  ;;  %v8916_v18 = vsel %vm3994_vm13, %v8799_v30, 0.0  ;;  %v16835_v36 = vld [vmem:[#allocation16_spill] sm:$0xff]  ;;  %v16836_v30 = vld [vmem:[#allocation15_spill] sm:$0xff] }
 0xc67   :  { %v8909_v7 = vadd.f32 %v8908_v58, %v8907_v21  ;;  %v8801_v21 = vmul.f32 %v15208_v54, %v15208_v54  ;;  %v8918_v38 = vsel %vm3994_vm13, %v8800_v31, 0.0  ;;  %v16837_v31 = vld [vmem:[#allocation14_spill] sm:$0xff] }
 0xc69   :  { %v8911_v50 = vadd.f32 %v8910_v17, %v8909_v7  ;;  %v8802_v7 = vmul.f32 %v15212_v15, %v15212_v15  ;;  %v8920_v45 = vsel %vm3994_vm13, %v8801_v21, 0.0  ;;  %v16838_v21 = vld [vmem:[#allocation19_spill] sm:$0xff] }
 0xc6b   :  { %v8913_v3 = vadd.f32 %v8912_v1, %v8911_v50  ;;  %v8803_v50 = vmul.f32 %v15216_v26, %v15216_v26 }
 0xc6d   :  { %v8915_v11 = vadd.f32 %v8914_v23, %v8913_v3  ;;  %v8804_v3 = vmul.f32 %v16835_v36, %v16835_v36  ;;  %v8922_v23 = vsel %vm3994_vm13, %v8802_v7, 0.0  ;;  %v16839_v7 = vld [vmem:[#allocation25_spill] sm:$0xff] }
 0xc6f   :  { %v8917_v58 = vadd.f32 %v8916_v18, %v8915_v11  ;;  %v8805_v11 = vmul.f32 %v16836_v30, %v16836_v30  ;;  %v8924_v18 = vsel %vm3994_vm13, %v8803_v50, 0.0 }
 0xc71   :  { %v8919_v17 = vadd.f32 %v8918_v38, %v8917_v58  ;;  %v8806_v58 = vmul.f32 %v16837_v31, %v16837_v31  ;;  %v8926_v38 = vsel %vm3994_vm13, %v8804_v3, 0.0 }
 0xc73   :  { %v8921_v1 = vadd.f32 %v8920_v45, %v8919_v17  ;;  %v8807_v17 = vmul.f32 %v16838_v21, %v16838_v21  ;;  %v8928_v45 = vsel %vm3994_vm13, %v8805_v11, 0.0 }
 0xc75   :  { %v8923_v54 = vadd.f32 %v8922_v23, %v8921_v1  ;;  %v8808_v1 = vmul.f32 %v16839_v7, %v16839_v7  ;;  %v8930_v23 = vsel %vm3994_vm13, %v8806_v58, 0.0  ;;  %v16840_v7 = vld [vmem:[#allocation20_spill] sm:$0xff]  ;;  %v16841_v58 = vld [vmem:[#allocation21_spill] sm:$0xff] }
 0xc77   :  { %v8925_v15 = vadd.f32 %v8924_v18, %v8923_v54  ;;  %v8932_v54 = vsel %vm3994_vm13, %v8807_v17, 0.0  ;;  %v8934_v18 = vsel %vm3994_vm13, %v8808_v1, 0.0  ;;  %v16842_v17 = vld [vmem:[#allocation22_spill] sm:$0xff]  ;;  %v16843_v1 = vld [vmem:[#allocation23_spill] sm:$0xff] }
 0xc79   :  { %v8927_v26 = vadd.f32 %v8926_v38, %v8925_v15 }
 0xc7b   :  { %v8929_v36 = vadd.f32 %v8928_v45, %v8927_v26 }
 0xc7d   :  { %v8931_v30 = vadd.f32 %v8930_v23, %v8929_v36 }
 0xc7f   :  { %v8933_v50 = vadd.f32 %v8932_v54, %v8931_v30 }
 0xc81   :  { %v8935_v31 = vadd.f32 %v8934_v18, %v8933_v50  ;;  %v16844_v50 = vld [vmem:[#allocation24_spill] sm:$0xff]  ;;  %v16845_v18 = vld [vmem:[#allocation18_spill] sm:$0xff] }
 0xc83   :  { %v8936_v3 = vrot.slane %v8935_v31, 4 }
 0xc85   :  { %v8937_v15 = vadd.f32 %v8936_v3, %v8935_v31  ;;  %v16846_v3 = vld [vmem:[#allocation5_spill] sm:$0xff] }
 0xc87   :  { %v8938_v38 = vrot.slane %v8937_v15, 2 }
 0xc89   :  { %v8939_v37 = vadd.f32 %v8938_v38, %v8937_v15  ;;  %v16847_v15 = vld [vmem:[#allocation9_spill] sm:$0xff]  ;;  %v16848_v38 = vld [vmem:[#allocation8_spill] sm:$0xff] }
 0xc8b   :  { %v8940_v21 = vrot.slane %v8939_v37, 1 }
 0xc8d   :  { %v8941_v35 = vadd.f32 %v8940_v21, %v8939_v37 }
 0xc8f   :  { %v8942_v11 = vmul.f32 0.001953125, %v8941_v35 }
 0xc91   :  { %v8943_v26 = vadd.f32 1e-05, %v8942_v11  ;;  %v16850_v11 = vld [vmem:[#allocation7_spill] sm:$0xff] }
 0xc93   :  { %9622 = vrsqrt.f32 %v8943_v26 }
 0xc9d   :  { %v15430_v45 = vpop.eup %9622 }
 0xc9e   :  { %v15434_v36 = vmul.f32 %v15430_v45, %v16840_v7  ;;  %v15438_v30 = vmul.f32 %v15430_v45, %v16841_v58  ;;  %v15442_v31 = vmul.f32 %v15430_v45, %v16842_v17  ;;  %v15446_v37 = vmul.f32 %v15430_v45, %v16843_v1  ;;  %v16853_v17 = vld [vmem:[#allocation13_spill] sm:$0xff] }
 0xc9f   :  { %v15450_v35 = vmul.f32 %v15430_v45, %v15000_v43  ;;  %v15454_v21 = vmul.f32 %v15430_v45, %v15004_v51  ;;  %v15458_v7 = vmul.f32 %v15430_v45, %v15008_v42  ;;  %v15462_v23 = vmul.f32 %v15430_v45, %v15012_v55 }
 0xca0   :  { %v15466_v54 = vmul.f32 %v15430_v45, %v15016_v2  ;;  %v15470_v43 = vmul.f32 %v15430_v45, %v15020_v4  ;;  %v15474_v51 = vmul.f32 %v15430_v45, %v15024_v20  ;;  %v15478_v42 = vmul.f32 %v15430_v45, %v15028_v46 }
 0xca1   :  { %v15482_v55 = vmul.f32 %v15430_v45, %v15032_v13  ;;  %v15486_v2 = vmul.f32 %v15430_v45, %v15036_v40  ;;  %v15490_v4 = vmul.f32 %v15430_v45, %v15040_v56  ;;  %v15494_v20 = vmul.f32 %v15430_v45, %v15044_v10 }
 0xca2   :  { %v15498_v46 = vmul.f32 %v15430_v45, %v15048_v12  ;;  %v15502_v13 = vmul.f32 %v15430_v45, %v15052_v62  ;;  %v15506_v40 = vmul.f32 %v15430_v45, %v15056_v29  ;;  %v15510_v56 = vmul.f32 %v15430_v45, %v15060_v27 }
 0xca3   :  { %v15514_v10 = vmul.f32 %v15430_v45, %v15064_v0  ;;  %v15518_v12 = vmul.f32 %v15430_v45, %v15068_v25  ;;  %v15522_v62 = vmul.f32 %v15430_v45, %v15072_v34  ;;  %v15526_v29 = vmul.f32 %v15430_v45, %v15076_v33 }
 0xca4   :  { %v15530_v27 = vmul.f32 %v15430_v45, %v15080_v28  ;;  %v15534_v0 = vmul.f32 %v15430_v45, %v15084_v16  ;;  %v15538_v25 = vmul.f32 %v15430_v45, %v15088_v19  ;;  %v15542_v34 = vmul.f32 %v15430_v45, %v15092_v8 }
 0xca5   :  { %v15546_v33 = vmul.f32 %v15430_v45, %v15096_v32  ;;  %v15550_v28 = vmul.f32 %v15430_v45, %v15100_v57  ;;  %v15554_v16 = vmul.f32 %v15430_v45, %v15104_v53  ;;  %v15558_v19 = vmul.f32 %v15430_v45, %v15108_v5 }
 0xca6   :  { %v15562_v8 = vmul.f32 %v15430_v45, %v15112_v63  ;;  %v15566_v32 = vmul.f32 %v15430_v45, %v15116_v49  ;;  %v15570_v57 = vmul.f32 %v15430_v45, %v15120_v52  ;;  %v15574_v53 = vmul.f32 %v15430_v45, %v15124_v14 }
 0xca7   :  { %v15578_v5 = vmul.f32 %v15430_v45, %v15128_v9  ;;  %v15582_v63 = vmul.f32 %v15430_v45, %v15132_v48  ;;  %v15586_v49 = vmul.f32 %v15430_v45, %v15136_v44  ;;  %v15590_v52 = vmul.f32 %v15430_v45, %v15140_v24 }
 0xca8   :  { %v15594_v14 = vmul.f32 %v15430_v45, %v15144_v6  ;;  %v15598_v9 = vmul.f32 %v15430_v45, %v15148_v39  ;;  %v15602_v48 = vmul.f32 %v15430_v45, %v15152_v61  ;;  %v15606_v44 = vmul.f32 %v15430_v45, %v15156_v59 }
 0xca9   :  { %v15610_v24 = vmul.f32 %v15430_v45, %v15160_v60  ;;  %v15614_v6 = vmul.f32 %v15430_v45, %v15164_v47  ;;  %v15618_v39 = vmul.f32 %v15430_v45, %v15168_v22  ;;  %v15622_v61 = vmul.f32 %v15430_v45, %v16844_v50  ;;  %v16855_v50 = vld [vmem:[#allocation12_spill] sm:$0xff] }
 0xcaa   :  { %v15626_v59 = vmul.f32 %v15430_v45, %v16845_v18  ;;  %v15630_v60 = vmul.f32 %v15430_v45, %v16846_v3  ;;  %v15634_v47 = vmul.f32 %v15430_v45, %v16847_v15  ;;  %v15638_v22 = vmul.f32 %v15430_v45, %v16848_v38  ;;  %v15659_v3 = vld [vmem:[%s16535_s5] ss:$0 sm:$0xff]  ;;  %v16857_v15 = vld [vmem:[#allocation11_spill] sm:$0xff] }
 0xcab   :  { %v15642_v26 = vmul.f32 %v15430_v45, %v16850_v11  ;;  %v15646_v58 = vmul.f32 %v15430_v45, %v16832_v41  ;;  %v15650_v1 = vmul.f32 %v15430_v45, %v16853_v17  ;;  %v15654_v18 = vmul.f32 %v15430_v45, %v16855_v50  ;;  %v16859_v11 = vld [vmem:[#allocation10_spill] sm:$0xff] }
 0xcac   :  { %16849 = vst [vmem:[#allocation6_spill] sm:$0xff] %v15638_v22  ;;  %v15663_v38 = vmul.f32 %v15430_v45, %v16857_v15  ;;  %v15667_v41 = vmul.f32 %v15430_v45, %v16859_v11  ;;  %v16864_v22 = vld [vmem:[#allocation14_spill] sm:$0xff] }
 0xcad   :  { %16851 = vst [vmem:[#allocation20_spill] sm:$0xff] %v15642_v26  ;;  %16852 = vst [vmem:[#allocation21_spill] sm:$0xff] %v15646_v58  ;;  %v16861_v58 = vld [vmem:[#allocation17_spill] sm:$0xff]  ;;  %v15683_v15 = vmul.f32 %v15430_v45, %v16864_v22  ;;  %v15703_v22 = vmul.f32 %v15659_v3, %v15442_v31  ;;  %v15723_v31 = vmul.f32 %v15659_v3, %v15462_v23 }
 0xcae   :  { %16854 = vst [vmem:[#allocation22_spill] sm:$0xff] %v15650_v1  ;;  %16856 = vst [vmem:[#allocation23_spill] sm:$0xff] %v15654_v18  ;;  %v15671_v17 = vmul.f32 %v15430_v45, %v16861_v58  ;;  %v16862_v1 = vld [vmem:[#allocation16_spill] sm:$0xff]  ;;  %v16863_v18 = vld [vmem:[#allocation15_spill] sm:$0xff]  ;;  %v15743_v23 = vmul.f32 %v15659_v3, %v15482_v55  ;;  %v15763_v55 = vmul.f32 %v15659_v3, %v15502_v13 }
 0xcaf   :  { %16858 = vst [vmem:[#allocation24_spill] sm:$0xff] %v15663_v38  ;;  %16860 = vst [vmem:[#allocation18_spill] sm:$0xff] %v15667_v41  ;;  %v15675_v50 = vmul.f32 %v15430_v45, %v16862_v1  ;;  %v15679_v26 = vmul.f32 %v15430_v45, %v16863_v18  ;;  %v16865_v38 = vld [vmem:[#allocation19_spill] sm:$0xff]  ;;  %v16866_v41 = vld [vmem:[#allocation25_spill] sm:$0xff]  ;;  %v15695_v1 = vmul.f32 %v15659_v3, %v15434_v36 }
 0xcb0   :  { %v15687_v11 = vmul.f32 %v15430_v45, %v16865_v38  ;;  %v15691_v58 = vmul.f32 %v15430_v45, %v16866_v41  ;;  %v15699_v18 = vmul.f32 %v15659_v3, %v15438_v30  ;;  %v15707_v38 = vmul.f32 %v15659_v3, %v15446_v37 }
 0xcb1   :  { %v15711_v45 = vmul.f32 %v15659_v3, %v15450_v35  ;;  %v15715_v36 = vmul.f32 %v15659_v3, %v15454_v21  ;;  %v15719_v30 = vmul.f32 %v15659_v3, %v15458_v7  ;;  %v15727_v37 = vmul.f32 %v15659_v3, %v15466_v54 }
 0xcb2   :  { %v15731_v35 = vmul.f32 %v15659_v3, %v15470_v43  ;;  %v15735_v21 = vmul.f32 %v15659_v3, %v15474_v51  ;;  %v15739_v7 = vmul.f32 %v15659_v3, %v15478_v42  ;;  %v15747_v54 = vmul.f32 %v15659_v3, %v15486_v2 }
 0xcb3   :  { %v15751_v43 = vmul.f32 %v15659_v3, %v15490_v4  ;;  %v15755_v51 = vmul.f32 %v15659_v3, %v15494_v20  ;;  %v15759_v42 = vmul.f32 %v15659_v3, %v15498_v46  ;;  %v15767_v2 = vmul.f32 %v15659_v3, %v15506_v40  ;;  %v16871_v41 = vld [vmem:[#allocation6_spill] sm:$0xff] }
 0xcb4   :  { %v15771_v4 = vmul.f32 %v15659_v3, %v15510_v56  ;;  %v15775_v20 = vmul.f32 %v15659_v3, %v15514_v10  ;;  %v15779_v46 = vmul.f32 %v15659_v3, %v15518_v12  ;;  %v15783_v13 = vmul.f32 %v15659_v3, %v15522_v62 }
 0xcb5   :  { %v15787_v40 = vmul.f32 %v15659_v3, %v15526_v29  ;;  %v15791_v56 = vmul.f32 %v15659_v3, %v15530_v27  ;;  %v15795_v10 = vmul.f32 %v15659_v3, %v15534_v0  ;;  %v15799_v12 = vmul.f32 %v15659_v3, %v15538_v25 }
 0xcb6   :  { %v15803_v62 = vmul.f32 %v15659_v3, %v15542_v34  ;;  %v15807_v29 = vmul.f32 %v15659_v3, %v15546_v33  ;;  %v15811_v27 = vmul.f32 %v15659_v3, %v15550_v28  ;;  %v15815_v0 = vmul.f32 %v15659_v3, %v15554_v16 }
 0xcb7   :  { %v15819_v25 = vmul.f32 %v15659_v3, %v15558_v19  ;;  %v15823_v34 = vmul.f32 %v15659_v3, %v15562_v8  ;;  %v15827_v33 = vmul.f32 %v15659_v3, %v15566_v32  ;;  %v15831_v28 = vmul.f32 %v15659_v3, %v15570_v57 }
 0xcb8   :  { %v15835_v16 = vmul.f32 %v15659_v3, %v15574_v53  ;;  %v15839_v19 = vmul.f32 %v15659_v3, %v15578_v5  ;;  %v15843_v8 = vmul.f32 %v15659_v3, %v15582_v63  ;;  %v15847_v32 = vmul.f32 %v15659_v3, %v15586_v49 }
 0xcb9   :  { %v15851_v57 = vmul.f32 %v15659_v3, %v15590_v52  ;;  %v15855_v53 = vmul.f32 %v15659_v3, %v15594_v14  ;;  %v15859_v5 = vmul.f32 %v15659_v3, %v15598_v9  ;;  %v15863_v63 = vmul.f32 %v15659_v3, %v15602_v48 }
 0xcba   :  { %v15867_v49 = vmul.f32 %v15659_v3, %v15606_v44  ;;  %v15871_v52 = vmul.f32 %v15659_v3, %v15610_v24  ;;  %v15875_v14 = vmul.f32 %v15659_v3, %v15614_v6  ;;  %v15879_v9 = vmul.f32 %v15659_v3, %v15618_v39 }
 0xcbb   :  { %v15883_v48 = vmul.f32 %v15659_v3, %v15622_v61  ;;  %v15887_v44 = vmul.f32 %v15659_v3, %v15626_v59  ;;  %v15891_v24 = vmul.f32 %v15659_v3, %v15630_v60  ;;  %v15895_v6 = vmul.f32 %v15659_v3, %v15634_v47 }
 0xcbc   :  { %16867 = vst [vmem:[#allocation5_spill] sm:$0xff] %v15879_v9  ;;  %v15899_v39 = vmul.f32 %v15659_v3, %v16871_v41  ;;  %v16873_v9 = vld [vmem:[#allocation20_spill] sm:$0xff]  ;;  %v15920_v41 = vld [vmem:[%s16536_s6] ss:$0 sm:$0xff] }
 0xcbd   :  { %16868 = vst [vmem:[#allocation9_spill] sm:$0xff] %v15883_v48  ;;  %16869 = vst [vmem:[#allocation8_spill] sm:$0xff] %v15887_v44  ;;  %v15903_v61 = vmul.f32 %v15659_v3, %v16873_v9  ;;  %v16875_v48 = vld [vmem:[#allocation21_spill] sm:$0xff]  ;;  %v16876_v44 = vld [vmem:[#allocation22_spill] sm:$0xff] }
 0xcbe   :  { %16870 = vst [vmem:[#allocation7_spill] sm:$0xff] %v15891_v24  ;;  %16872 = vst [vmem:[#allocation13_spill] sm:$0xff] %v15899_v39  ;;  %v15907_v59 = vmul.f32 %v15659_v3, %v16875_v48  ;;  %v15911_v60 = vmul.f32 %v15659_v3, %v16876_v44  ;;  %v16877_v24 = vld [vmem:[#allocation23_spill] sm:$0xff]  ;;  %v16879_v39 = vld [vmem:[#allocation24_spill] sm:$0xff]  ;;  %v15932_v44 = vmul.f32 %v15659_v3, %v15671_v17 }
 0xcbf   :  { %16874 = vst [vmem:[#allocation12_spill] sm:$0xff] %v15903_v61  ;;  %v15915_v47 = vmul.f32 %v15659_v3, %v16877_v24  ;;  %v15924_v9 = vmul.f32 %v15659_v3, %v16879_v39  ;;  %v16880_v61 = vld [vmem:[#allocation18_spill] sm:$0xff]  ;;  %v15936_v24 = vmul.f32 %v15659_v3, %v15675_v50  ;;  %v15944_v39 = vmul.f32 %v15659_v3, %v15683_v15 }
 0xcc0   :  { %v15928_v48 = vmul.f32 %v15659_v3, %v16880_v61  ;;  %v15948_v61 = vmul.f32 %v15659_v3, %v15687_v11  ;;  %v15952_v17 = vmul.f32 %v15659_v3, %v15691_v58  ;;  %v15956_v50 = vadd.f32 %v15920_v41, %v15695_v1 }
 0xcc1   :  { %16878 = vst [vmem:[#allocation11_spill] sm:$0xff] %v15915_v47  ;;  %v15940_v47 = vmul.f32 %v15659_v3, %v15679_v26  ;;  %v15960_v26 = vadd.f32 %v15920_v41, %v15699_v18  ;;  %v15964_v15 = vadd.f32 %v15920_v41, %v15703_v22  ;;  %v15968_v11 = vadd.f32 %v15920_v41, %v15707_v38 }
 0xcc2   :  { %v15972_v3 = vadd.f32 %v15920_v41, %v15711_v45  ;;  %v15976_v58 = vadd.f32 %v15920_v41, %v15715_v36  ;;  %v15980_v1 = vadd.f32 %v15920_v41, %v15719_v30  ;;  %v15984_v18 = vadd.f32 %v15920_v41, %v15723_v31 }
 0xcc3   :  { %v15988_v22 = vadd.f32 %v15920_v41, %v15727_v37  ;;  %v15992_v38 = vadd.f32 %v15920_v41, %v15731_v35  ;;  %v15996_v45 = vadd.f32 %v15920_v41, %v15735_v21  ;;  %v16000_v36 = vadd.f32 %v15920_v41, %v15739_v7 }
 0xcc4   :  { %v16004_v30 = vadd.f32 %v15920_v41, %v15743_v23  ;;  %v16008_v31 = vadd.f32 %v15920_v41, %v15747_v54  ;;  %v16012_v37 = vadd.f32 %v15920_v41, %v15751_v43  ;;  %v16016_v35 = vadd.f32 %v15920_v41, %v15755_v51 }
 0xcc5   :  { %v16020_v21 = vadd.f32 %v15920_v41, %v15759_v42  ;;  %v16024_v7 = vadd.f32 %v15920_v41, %v15763_v55  ;;  %v16028_v23 = vadd.f32 %v15920_v41, %v15767_v2  ;;  %v16032_v54 = vadd.f32 %v15920_v41, %v15771_v4 }
 0xcc6   :  { %v16036_v43 = vadd.f32 %v15920_v41, %v15775_v20  ;;  %v16040_v51 = vadd.f32 %v15920_v41, %v15779_v46  ;;  %v16044_v42 = vadd.f32 %v15920_v41, %v15783_v13  ;;  %v16048_v55 = vadd.f32 %v15920_v41, %v15787_v40 }
 0xcc7   :  { %v16052_v2 = vadd.f32 %v15920_v41, %v15791_v56  ;;  %v16056_v4 = vadd.f32 %v15920_v41, %v15795_v10  ;;  %v16060_v20 = vadd.f32 %v15920_v41, %v15799_v12  ;;  %v16064_v46 = vadd.f32 %v15920_v41, %v15803_v62 }
 0xcc8   :  { %v16068_v13 = vadd.f32 %v15920_v41, %v15807_v29  ;;  %v16072_v40 = vadd.f32 %v15920_v41, %v15811_v27  ;;  %v16076_v56 = vadd.f32 %v15920_v41, %v15815_v0  ;;  %v16080_v10 = vadd.f32 %v15920_v41, %v15819_v25 }
 0xcc9   :  { %v16084_v12 = vadd.f32 %v15920_v41, %v15823_v34  ;;  %v16088_v62 = vadd.f32 %v15920_v41, %v15827_v33  ;;  %v16092_v29 = vadd.f32 %v15920_v41, %v15831_v28  ;;  %v16096_v27 = vadd.f32 %v15920_v41, %v15835_v16 }
 0xcca   :  { %v16100_v0 = vadd.f32 %v15920_v41, %v15839_v19  ;;  %v16104_v25 = vadd.f32 %v15920_v41, %v15843_v8  ;;  %v16108_v34 = vadd.f32 %v15920_v41, %v15847_v32  ;;  %v16112_v33 = vadd.f32 %v15920_v41, %v15851_v57 }
 0xccb   :  { %v16116_v28 = vadd.f32 %v15920_v41, %v15855_v53  ;;  %v16120_v16 = vadd.f32 %v15920_v41, %v15859_v5  ;;  %v16124_v19 = vadd.f32 %v15920_v41, %v15863_v63  ;;  %v16128_v8 = vadd.f32 %v15920_v41, %v15867_v49  ;;  %v16885_v53 = vld [vmem:[#allocation5_spill] sm:$0xff] }
 0xccc   :  { %v16132_v32 = vadd.f32 %v15920_v41, %v15871_v52  ;;  %v16136_v57 = vadd.f32 %v15920_v41, %v15875_v14  ;;  %v16140_v5 = vadd.f32 %v15920_v41, %v16885_v53  ;;  %v16156_v14 = vadd.f32 %v15920_v41, %v15895_v6 }
 0xccd   :  { %16881 = vst [vmem:[#allocation10_spill] sm:$0xff] %v16120_v16  ;;  %16882 = vst [vmem:[#allocation17_spill] sm:$0xff] %v16124_v19  ;;  %v16887_v16 = vld [vmem:[#allocation9_spill] sm:$0xff]  ;;  %v16888_v19 = vld [vmem:[#allocation8_spill] sm:$0xff] }
 0xcce   :  { %16883 = vst [vmem:[#allocation16_spill] sm:$0xff] %v16128_v8  ;;  %16884 = vst [vmem:[#allocation15_spill] sm:$0xff] %v16136_v57  ;;  %v16144_v63 = vadd.f32 %v15920_v41, %v16887_v16  ;;  %v16148_v49 = vadd.f32 %v15920_v41, %v16888_v19  ;;  %v16889_v8 = vld [vmem:[#allocation7_spill] sm:$0xff]  ;;  %v16891_v57 = vld [vmem:[#allocation13_spill] sm:$0xff]  ;;  %v16168_v19 = vadd.f32 %v15920_v41, %v15907_v59 }
 0xccf   :  { %16886 = vst [vmem:[#allocation14_spill] sm:$0xff] %v16140_v5  ;;  %v16152_v52 = vadd.f32 %v15920_v41, %v16889_v8  ;;  %v16160_v53 = vadd.f32 %v15920_v41, %v16891_v57  ;;  %v16892_v5 = vld [vmem:[#allocation12_spill] sm:$0xff]  ;;  %v16172_v8 = vadd.f32 %v15920_v41, %v15911_v60  ;;  %v16180_v57 = vadd.f32 %v15920_v41, %v15924_v9 }
 0xcd0   :  { %v16164_v16 = vadd.f32 %v15920_v41, %v16892_v5  ;;  %v16184_v5 = vadd.f32 %v15920_v41, %v15928_v48  ;;  %v16188_v59 = vadd.f32 %v15920_v41, %v15932_v44  ;;  %v16192_v60 = vadd.f32 %v15920_v41, %v15936_v24 }
 0xcd1   :  { %16890 = vst [vmem:[#allocation19_spill] sm:$0xff] %v16152_v52  ;;  %v16893_v52 = vld [vmem:[#allocation11_spill] sm:$0xff]  ;;  %v16200_v9 = vadd.f32 %v15920_v41, %v15944_v39  ;;  %v16204_v48 = vadd.f32 %v15920_v41, %v15948_v61  ;;  %v16208_v44 = vadd.f32 %v15920_v41, %v15952_v17  ;;  %v9152_v24 = vmax.f32 %v15960_v26, 0.0 }
 0xcd2   :  { %v16176_v6 = vadd.f32 %v15920_v41, %v16893_v52  ;;  %16894 = vst [vmem:[#allocation25_spill] sm:$0xff] %v16188_v59  ;;  %16895 = vst [vmem:[#allocation6_spill] sm:$0xff] %v16192_v60  ;;  %v16196_v52 = vadd.f32 %v15920_v41, %v15940_v47  ;;  %v9151_v59 = vmax.f32 %v15956_v50, 0.0  ;;  %v9153_v60 = vmax.f32 %v15964_v15, 0.0 }
 0xcd3   :  { %16897 = vst [vmem:[#allocation21_spill] sm:$0xff] %v16200_v9  ;;  %16898 = vst [vmem:[#allocation22_spill] sm:$0xff] %v16204_v48  ;;  %v9154_v47 = vmax.f32 %v15968_v11, 0.0  ;;  %v9156_v39 = vmax.f32 %v15976_v58, 0.0  ;;  %v9157_v9 = vmax.f32 %v15980_v1, 0.0  ;;  %v9158_v61 = vmax.f32 %v15984_v18, 0.0 }
 0xcd4   :  { %16896 = vst [vmem:[#allocation20_spill] sm:$0xff] %v16196_v52  ;;  %v9155_v52 = vmax.f32 %v15972_v3, 0.0  ;;  %v9159_v48 = vmax.f32 %v15988_v22, 0.0  ;;  %v9160_v41 = vmax.f32 %v15992_v38, 0.0  ;;  %v9161_v17 = vmax.f32 %v15996_v45, 0.0  ;;  %9215 = vst.msk [vmem:[%s16537_s7] sm:$0xff] %vm3994_vm13, %v9151_v59 }
 0xcd5   :  { %v9162_v50 = vmax.f32 %v16000_v36, 0.0  ;;  %9216 = vst.msk [vmem:[%s16537_s7 + $0x8] sm:$0xff] %vm3994_vm13, %v9152_v24  ;;  %9217 = vst.msk [vmem:[%s16537_s7 + $0x10] sm:$0xff] %vm3994_vm13, %v9153_v60  ;;  %v9163_v26 = vmax.f32 %v16004_v30, 0.0  ;;  %v9164_v15 = vmax.f32 %v16008_v31, 0.0  ;;  %v9165_v11 = vmax.f32 %v16012_v37, 0.0 }
 0xcd6   :  { %9218 = vst.msk [vmem:[%s16537_s7 + $0x18] sm:$0xff] %vm3994_vm13, %v9154_v47  ;;  %v9166_v3 = vmax.f32 %v16016_v35, 0.0  ;;  %9219 = vst.msk [vmem:[%s16537_s7 + $0x20] sm:$0xff] %vm3994_vm13, %v9155_v52  ;;  %v9167_v58 = vmax.f32 %v16020_v21, 0.0  ;;  %v9168_v1 = vmax.f32 %v16024_v7, 0.0  ;;  %v9169_v18 = vmax.f32 %v16028_v23, 0.0 }
 0xcd7   :  { %9220 = vst.msk [vmem:[%s16537_s7 + $0x28] sm:$0xff] %vm3994_vm13, %v9156_v39  ;;  %9221 = vst.msk [vmem:[%s16537_s7 + $0x30] sm:$0xff] %vm3994_vm13, %v9157_v9  ;;  %v9170_v22 = vmax.f32 %v16032_v54, 0.0  ;;  %v9171_v38 = vmax.f32 %v16036_v43, 0.0  ;;  %v9172_v45 = vmax.f32 %v16040_v51, 0.0  ;;  %v9173_v36 = vmax.f32 %v16044_v42, 0.0 }
 0xcd8   :  { %9222 = vst.msk [vmem:[%s16537_s7 + $0x38] sm:$0xff] %vm3994_vm13, %v9158_v61  ;;  %9223 = vst.msk [vmem:[%s16537_s7 + $0x40] sm:$0xff] %vm3994_vm13, %v9159_v48  ;;  %v9174_v30 = vmax.f32 %v16048_v55, 0.0  ;;  %v9175_v31 = vmax.f32 %v16052_v2, 0.0  ;;  %v9176_v37 = vmax.f32 %v16056_v4, 0.0  ;;  %v9177_v35 = vmax.f32 %v16060_v20, 0.0 }
 0xcd9   :  { %9224 = vst.msk [vmem:[%s16537_s7 + $0x48] sm:$0xff] %vm3994_vm13, %v9160_v41  ;;  %9225 = vst.msk [vmem:[%s16537_s7 + $0x50] sm:$0xff] %vm3994_vm13, %v9161_v17  ;;  %v9178_v21 = vmax.f32 %v16064_v46, 0.0  ;;  %v9179_v7 = vmax.f32 %v16068_v13, 0.0  ;;  %v9180_v23 = vmax.f32 %v16072_v40, 0.0  ;;  %v9181_v54 = vmax.f32 %v16076_v56, 0.0 }
 0xcda   :  { %9226 = vst.msk [vmem:[%s16537_s7 + $0x58] sm:$0xff] %vm3994_vm13, %v9162_v50  ;;  %9227 = vst.msk [vmem:[%s16537_s7 + $0x60] sm:$0xff] %vm3994_vm13, %v9163_v26  ;;  %v9182_v43 = vmax.f32 %v16080_v10, 0.0  ;;  %v9183_v51 = vmax.f32 %v16084_v12, 0.0  ;;  %v9184_v42 = vmax.f32 %v16088_v62, 0.0  ;;  %v9185_v55 = vmax.f32 %v16092_v29, 0.0 }
 0xcdb   :  { %9228 = vst.msk [vmem:[%s16537_s7 + $0x68] sm:$0xff] %vm3994_vm13, %v9164_v15  ;;  %9229 = vst.msk [vmem:[%s16537_s7 + $0x70] sm:$0xff] %vm3994_vm13, %v9165_v11  ;;  %v9186_v2 = vmax.f32 %v16096_v27, 0.0  ;;  %v9187_v4 = vmax.f32 %v16100_v0, 0.0  ;;  %v9188_v20 = vmax.f32 %v16104_v25, 0.0  ;;  %v9189_v46 = vmax.f32 %v16108_v34, 0.0 }
 0xcdc   :  { %9230 = vst.msk [vmem:[%s16537_s7 + $0x78] sm:$0xff] %vm3994_vm13, %v9166_v3  ;;  %9231 = vst.msk [vmem:[%s16537_s7 + $0x80] sm:$0xff] %vm3994_vm13, %v9167_v58  ;;  %v9190_v13 = vmax.f32 %v16112_v33, 0.0  ;;  %v9191_v40 = vmax.f32 %v16116_v28, 0.0  ;;  %v16899_v56 = vld [vmem:[#allocation10_spill] sm:$0xff]  ;;  %v16900_v12 = vld [vmem:[#allocation17_spill] sm:$0xff] }
 0xcdd   :  { %9232 = vst.msk [vmem:[%s16537_s7 + $0x88] sm:$0xff] %vm3994_vm13, %v9168_v1  ;;  %9233 = vst.msk [vmem:[%s16537_s7 + $0x90] sm:$0xff] %vm3994_vm13, %v9169_v18  ;;  %v9192_v10 = vmax.f32 %v16899_v56, 0.0  ;;  %v9193_v62 = vmax.f32 %v16900_v12, 0.0  ;;  %v16901_v29 = vld [vmem:[#allocation16_spill] sm:$0xff]  ;;  %v9195_v0 = vmax.f32 %v16132_v32, 0.0 }
 0xcde   :  { %9234 = vst.msk [vmem:[%s16537_s7 + $0x98] sm:$0xff] %vm3994_vm13, %v9170_v22  ;;  %9235 = vst.msk [vmem:[%s16537_s7 + $0xa0] sm:$0xff] %vm3994_vm13, %v9171_v38  ;;  %v9194_v27 = vmax.f32 %v16901_v29, 0.0  ;;  %v16902_v25 = vld [vmem:[#allocation15_spill] sm:$0xff]  ;;  %v16903_v33 = vld [vmem:[#allocation14_spill] sm:$0xff]  ;;  %v9198_v59 = vmax.f32 %v16144_v63, 0.0 }
 0xcdf   :  { %9236 = vst.msk [vmem:[%s16537_s7 + $0xa8] sm:$0xff] %vm3994_vm13, %v9172_v45  ;;  %9237 = vst.msk [vmem:[%s16537_s7 + $0xb0] sm:$0xff] %vm3994_vm13, %v9173_v36  ;;  %v9196_v34 = vmax.f32 %v16902_v25, 0.0  ;;  %v9197_v28 = vmax.f32 %v16903_v33, 0.0  ;;  %v9199_v32 = vmax.f32 %v16148_v49, 0.0  ;;  %v16904_v63 = vld [vmem:[#allocation19_spill] sm:$0xff] }
 0xce0   :  { %9238 = vst.msk [vmem:[%s16537_s7 + $0xb8] sm:$0xff] %vm3994_vm13, %v9174_v30  ;;  %9239 = vst.msk [vmem:[%s16537_s7 + $0xc0] sm:$0xff] %vm3994_vm13, %v9175_v31  ;;  %v9200_v60 = vmax.f32 %v16904_v63, 0.0  ;;  %v9201_v52 = vmax.f32 %v16156_v14, 0.0  ;;  %v9202_v9 = vmax.f32 %v16160_v53, 0.0  ;;  %v9203_v49 = vmax.f32 %v16164_v16, 0.0 }
 0xce1   :  { %9240 = vst.msk [vmem:[%s16537_s7 + $0xc8] sm:$0xff] %vm3994_vm13, %v9176_v37  ;;  %9241 = vst.msk [vmem:[%s16537_s7 + $0xd0] sm:$0xff] %vm3994_vm13, %v9177_v35  ;;  %v9204_v14 = vmax.f32 %v16168_v19, 0.0  ;;  %v9205_v53 = vmax.f32 %v16172_v8, 0.0  ;;  %v9206_v48 = vmax.f32 %v16176_v6, 0.0  ;;  %v9207_v16 = vmax.f32 %v16180_v57, 0.0 }
 0xce2   :  { %9242 = vst.msk [vmem:[%s16537_s7 + $0xd8] sm:$0xff] %vm3994_vm13, %v9178_v21  ;;  %9243 = vst.msk [vmem:[%s16537_s7 + $0xe0] sm:$0xff] %vm3994_vm13, %v9179_v7  ;;  %v9208_v19 = vmax.f32 %v16184_v5, 0.0  ;;  %v16905_v8 = vld [vmem:[#allocation25_spill] sm:$0xff]  ;;  %v16906_v24 = vld [vmem:[#allocation6_spill] sm:$0xff]  ;;  %v9214_v50 = vmax.f32 %v16208_v44, 0.0 }
 0xce3   :  { %9244 = vst.msk [vmem:[%s16537_s7 + $0xe8] sm:$0xff] %vm3994_vm13, %v9180_v23  ;;  %9245 = vst.msk [vmem:[%s16537_s7 + $0xf0] sm:$0xff] %vm3994_vm13, %v9181_v54  ;;  %v9209_v6 = vmax.f32 %v16905_v8, 0.0  ;;  %v9210_v47 = vmax.f32 %v16906_v24, 0.0  ;;  %v16907_v57 = vld [vmem:[#allocation20_spill] sm:$0xff]  ;;  %v16908_v39 = vld [vmem:[#allocation21_spill] sm:$0xff] }
 0xce4   :  { %9246 = vst.msk [vmem:[%s16537_s7 + $0xf8] sm:$0xff] %vm3994_vm13, %v9182_v43  ;;  %9247 = vst.msk [vmem:[%s16537_s7 + $0x100] sm:$0xff] %vm3994_vm13, %v9183_v51  ;;  %v9211_v5 = vmax.f32 %v16907_v57, 0.0  ;;  %v9212_v61 = vmax.f32 %v16908_v39, 0.0  ;;  %v16909_v41 = vld [vmem:[#allocation22_spill] sm:$0xff] }
 0xce5   :  { %9248 = vst.msk [vmem:[%s16537_s7 + $0x108] sm:$0xff] %vm3994_vm13, %v9184_v42  ;;  %9249 = vst.msk [vmem:[%s16537_s7 + $0x110] sm:$0xff] %vm3994_vm13, %v9185_v55  ;;  %v9213_v17 = vmax.f32 %v16909_v41, 0.0 }
 0xce6   :  { %9250 = vst.msk [vmem:[%s16537_s7 + $0x118] sm:$0xff] %vm3994_vm13, %v9186_v2  ;;  %9251 = vst.msk [vmem:[%s16537_s7 + $0x120] sm:$0xff] %vm3994_vm13, %v9187_v4 }
 0xce7   :  { %9252 = vst.msk [vmem:[%s16537_s7 + $0x128] sm:$0xff] %vm3994_vm13, %v9188_v20  ;;  %9253 = vst.msk [vmem:[%s16537_s7 + $0x130] sm:$0xff] %vm3994_vm13, %v9189_v46 }
 0xce8   :  { %9254 = vst.msk [vmem:[%s16537_s7 + $0x138] sm:$0xff] %vm3994_vm13, %v9190_v13  ;;  %9255 = vst.msk [vmem:[%s16537_s7 + $0x140] sm:$0xff] %vm3994_vm13, %v9191_v40 }
 0xce9   :  { %9256 = vst.msk [vmem:[%s16537_s7 + $0x148] sm:$0xff] %vm3994_vm13, %v9192_v10  ;;  %9257 = vst.msk [vmem:[%s16537_s7 + $0x150] sm:$0xff] %vm3994_vm13, %v9193_v62 }
 0xcea   :  { %9258 = vst.msk [vmem:[%s16537_s7 + $0x158] sm:$0xff] %vm3994_vm13, %v9194_v27  ;;  %9259 = vst.msk [vmem:[%s16537_s7 + $0x160] sm:$0xff] %vm3994_vm13, %v9195_v0 }
 0xceb   :  { %9260 = vst.msk [vmem:[%s16537_s7 + $0x168] sm:$0xff] %vm3994_vm13, %v9196_v34  ;;  %9261 = vst.msk [vmem:[%s16537_s7 + $0x170] sm:$0xff] %vm3994_vm13, %v9197_v28 }
 0xcec   :  { %9262 = vst.msk [vmem:[%s16537_s7 + $0x178] sm:$0xff] %vm3994_vm13, %v9198_v59  ;;  %9263 = vst.msk [vmem:[%s16537_s7 + $0x180] sm:$0xff] %vm3994_vm13, %v9199_v32 }
 0xced   :  { %9264 = vst.msk [vmem:[%s16537_s7 + $0x188] sm:$0xff] %vm3994_vm13, %v9200_v60  ;;  %9265 = vst.msk [vmem:[%s16537_s7 + $0x190] sm:$0xff] %vm3994_vm13, %v9201_v52 }
 0xcee   :  { %9266 = vst.msk [vmem:[%s16537_s7 + $0x198] sm:$0xff] %vm3994_vm13, %v9202_v9  ;;  %9267 = vst.msk [vmem:[%s16537_s7 + $0x1a0] sm:$0xff] %vm3994_vm13, %v9203_v49 }
 0xcef   :  { %9268 = vst.msk [vmem:[%s16537_s7 + $0x1a8] sm:$0xff] %vm3994_vm13, %v9204_v14  ;;  %9269 = vst.msk [vmem:[%s16537_s7 + $0x1b0] sm:$0xff] %vm3994_vm13, %v9205_v53 }
 0xcf0   :  { %9270 = vst.msk [vmem:[%s16537_s7 + $0x1b8] sm:$0xff] %vm3994_vm13, %v9206_v48  ;;  %9271 = vst.msk [vmem:[%s16537_s7 + $0x1c0] sm:$0xff] %vm3994_vm13, %v9207_v16 }
 0xcf1   :  { %9272 = vst.msk [vmem:[%s16537_s7 + $0x1c8] sm:$0xff] %vm3994_vm13, %v9208_v19  ;;  %9273 = vst.msk [vmem:[%s16537_s7 + $0x1d0] sm:$0xff] %vm3994_vm13, %v9209_v6 }
 0xcf2   :  { %9274 = vst.msk [vmem:[%s16537_s7 + $0x1d8] sm:$0xff] %vm3994_vm13, %v9210_v47  ;;  %9275 = vst.msk [vmem:[%s16537_s7 + $0x1e0] sm:$0xff] %vm3994_vm13, %v9211_v5 }
 0xcf3   :  { %9276 = vst.msk [vmem:[%s16537_s7 + $0x1e8] sm:$0xff] %vm3994_vm13, %v9212_v61  ;;  %9277 = vst.msk [vmem:[%s16537_s7 + $0x1f0] sm:$0xff] %vm3994_vm13, %v9213_v17 }
 0xcf4   :  { %9278 = vst.msk [vmem:[%s16537_s7 + $0x1f8] sm:$0xff] %vm3994_vm13, %v9214_v50 }

</bundles_post_ra>
